<compile_context>
chip_gen: v7x
topology: tpu7x:2x2x1
jax: 0.10.0
libtpu: 0.0.40
codegen_flags: <defaults>
</compile_context>

<pallas_src>
import jax
import jax.numpy as jnp
from jax.experimental import pallas as pl
from jax.experimental.pallas import tpu as pltpu


def _gelu(x):
    # TODO(synk): PyTorch nn.GELU defaults to exact erf; the tanh approximation is used
    # because erf lowering inside Mosaic kernels is not guaranteed (reference below matches).
    return jax.nn.gelu(x, approximate=True)


# --------------------------------------------------------------------------------------
# Pallas kernel: full CaterpillarBlock forward for one (HW, k*C) packed image-group tile.
# All spatial mixing is expressed as precomputed (HW,HW) bf16 operators (MXU), all channel
# mixing as block-diagonal (kC, .) bf16 operators (MXU); only BN/GELU/LN-normalize/residual
# remain on the VPU/EUP in f32.
# --------------------------------------------------------------------------------------
def _block_kernel(x_ref, vecs_ref, b1_ref, gbias_ref, cm_ref, sp_ref, w1_ref, w2_ref, o_ref):
    f32, bf16 = jnp.float32, jnp.bfloat16

    def spatial_channel(z_bf16, si, ci):
        # channel mix (block-diag over packed images) then spatial mix, both MXU matmuls
        zc = jnp.dot(z_bf16, cm_ref[ci], preferred_element_type=f32)
        return jnp.dot(sp_ref[si], zc.astype(bf16), preferred_element_type=f32)

    x = x_ref[...]                                    # (HW, kC) f32

    vecs = vecs_ref[...]                              # (8, kC) packed per-lane params
    s1, t1 = vecs[0:1, :], vecs[1:2, :]               # BN1 folded scale / bias
    s2, t2 = vecs[2:3, :], vecs[3:4, :]               # BN2 folded scale / bias
    ln_g, ln_b = vecs[4:5, :], vecs[5:6, :]           # LayerNorm gamma / beta
    b_local, b2 = vecs[6:7, :], vecs[7:8, :]          # fused local bias, MLP fc2 bias

    # ---------------- localMix: BN + GELU, then sum_beta S_beta @ (y @ M_beta) ----------
    y = _gelu(x * s1 + t1).astype(bf16)
    local = (spatial_channel(y, 0, 0)                 # t branch
             + spatial_channel(y, 1, 1)               # b branch
             + spatial_channel(y, 2, 2)               # l branch
             + spatial_channel(y, 3, 3)               # r branch
             + b_local)

    # ---------------- globalMix: BN + GELU, o-path + Kh-path + Kw-path ------------------
    g = _gelu(local * s2 + t2).astype(bf16)
    a_o = jnp.dot(g, cm_ref[4], preferred_element_type=f32)
    gm = (a_o
          + spatial_channel(g, 4, 5)                  # kron(I_H, wh) path
          + spatial_channel(g, 5, 6)                  # kron(ww, I_W) path
          + gbias_ref[...].astype(f32))               # folded proj_h / proj_w biases
    x1 = gm + x                                       # first residual

    # ---------------- channelMix: per-image segmented LayerNorm + MLP -------------------
    # segmented mean/var via a block-diagonal averaging matmul (entries 1/C, exact in bf16)
    mu = jnp.dot(x1.astype(bf16), cm_ref[7], preferred_element_type=f32)
    d = x1 - mu
    var = jnp.dot((d * d).astype(bf16), cm_ref[7], preferred_element_type=f32)
    xn = d * jax.lax.rsqrt(var + 1e-5) * ln_g + ln_b
    h1 = _gelu(jnp.dot(xn.astype(bf16), w1_ref[...], preferred_element_type=f32)
               + b1_ref[...])
    cm = jnp.dot(h1.astype(bf16), w2_ref[...], preferred_element_type=f32) + b2
    o_ref[...] = cm + x1                              # second residual


# --------------------------------------------------------------------------------------
# Wrapper / glue
# --------------------------------------------------------------------------------------
def choose_pack(B, C):
    """Images packed per grid step: lane-dense (k*C <= 128) but keep >= 2 parallel steps."""
    kmax = max(1, 128 // C)
    if B >= 2:
        kmax = min(kmax, B // 2)
    k = 1
    for cand in range(1, kmax + 1):
        if B % cand == 0:
            k = cand
    return max(k, 1)


def caterpillar_block_pallas(x_nchw, kin, H, W, C, step, k):
    B = x_nchw.shape[0]
    assert B % k == 0
    G = B // k
    HW = H * W
    kC = k * C

    # pack k images along the lane (channel) axis: row = spatial position, lanes = [img0 C | img1 C | ...]
    x_nhwc = jnp.transpose(x_nchw, (0, 2, 3, 1))
    x_pack = (x_nhwc.reshape(G, k, HW, C)
              .transpose(0, 2, 1, 3)
              .reshape(G * HW, kC))

    def _const_spec(a):
        nd = a.ndim
        return pl.BlockSpec(a.shape, lambda g, _z=(0,) * nd: _z)

    in_specs = [pl.BlockSpec((HW, kC), lambda g: (g, 0))]
    in_specs += [_const_spec(a) for a in kin]

    out_flat = pl.pallas_call(
        _block_kernel,
        out_shape=jax.ShapeDtypeStruct((G * HW, kC), jnp.float32),
        grid=(G,),
        in_specs=in_specs,
        out_specs=pl.BlockSpec((HW, kC), lambda g: (g, 0)),
        compiler_params=pltpu.CompilerParams(
            dimension_semantics=("parallel",),
            vmem_limit_bytes=32 * 1024 * 1024,
        ),
    )(x_pack, *kin)

    out = (out_flat.reshape(G, HW, k, C)
           .transpose(0, 2, 1, 3)
           .reshape(B, H, W, C)
           .transpose(0, 3, 1, 2))
    return out


# --------------------------------------------------------------------------------------
# Parameter construction (BatchNorm folded for inference)
# --------------------------------------------------------------------------------------
def make_params(key, C, H, W):
    assert C % 4 == 0 and H == W
    C4 = C // 4
    ks = iter(jax.random.split(key, 32))

    def n(shape, s=0.05):
        return s * jax.random.normal(next(ks), shape, jnp.float32)

    def bn_fold(Cn, eps=1e-5):
        gamma = 1.0 + n((Cn,), 0.1)
        beta = n((Cn,), 0.1)
        mean = n((Cn,), 0.1)
        var = 1.0 + 0.1 * jnp.abs(jax.random.normal(next(ks), (Cn,), jnp.float32))
        scale = gamma / jnp.sqrt(var + eps)
        return scale, beta - mean * scale

    p = {}
    p['bn1_scale'], p['bn1_bias'] = bn_fold(C)
    p['wt'], p['bt'] = n((C4, C)), n((C4,), 0.02)
    p['wb'], p['bb'] = n((C4, C)), n((C4,), 0.02)
    p['wl'], p['bl'] = n((C4, C)), n((C4,), 0.02)
    p['wr'], p['br'] = n((C4, C)), n((C4,), 0.02)
    p['wfuse'], p['bfuse'] = n((C, C)), n((C,), 0.02)
    p['bn2_scale'], p['bn2_bias'] = bn_fold(C)
    p['wh'], p['bh'] = n((W, W)), n((W,), 0.02)      # proj_h (mixes the W axis)
    p['ww'], p['bw'] = n((H, H)), n((H,), 0.02)      # proj_w (mixes the H axis)
    p['wfuse2'] = n((C, 3 * C))                      # bias=False
    p['ln_g'] = 1.0 + n((C,), 0.1)
    p['ln_b'] = n((C,), 0.1)
    p['w1'], p['b1'] = n((3 * C, C)), n((3 * C,), 0.02)
    p['w2'], p['b2'] = n((C, 3 * C)), n((C,), 0.02)
    return p


# --------------------------------------------------------------------------------------
# Kernel-side constant packing / folding
# --------------------------------------------------------------------------------------
def make_kernel_inputs(p, C, H, W, step, k):
    C4 = C // 4
    HW = H * W
    f32, bf16 = jnp.float32, jnp.bfloat16
    Ik = jnp.eye(k, dtype=f32)

    def packk(m):                           # block-diagonal over the k packed images
        return jnp.kron(Ik, m)

    def tilek(v):                           # per-channel vector -> per-lane vector
        return jnp.tile(v, (k,))

    # fuse weight rows per torch concat order [t, b, r, l]
    WfT = p['wfuse'].T                                             # (C_in, C_out)
    F = {'t': WfT[0:C4], 'b': WfT[C4:2 * C4],
         'r': WfT[2 * C4:3 * C4], 'l': WfT[3 * C4:4 * C4]}
    # per-branch conv composed with its fuse rows: M_beta = w_beta.T @ F_beta  (C, C)
    M = {b: p['w' + b].T @ F[b] for b in ('t', 'b', 'l', 'r')}
    # branch biases are shift-invariant under replicate shifts -> fold through the fuse
    bias_local = (p['bfuse'] + p['bt'] @ F['t'] + p['bb'] @ F['b']
                  + p['bl'] @ F['l'] + p['br'] @ F['r'])

    # global fuse blocks (bias=False), torch input channel order [o, h, w]
    WgT = p['wfuse2'].T                                            # (3C, C)
    Wo, Wh_c, Ww_c = WgT[0:C], WgT[C:2 * C], WgT[2 * C:3 * C]

    # spatial operators (HW, HW): exact 0/1 replicate-shift matrices + kron mixes
    rows = jnp.arange(HW)
    hh, wv = rows // W, rows % W
    eyeHW = jnp.eye(HW, dtype=f32)
    S_t = eyeHW[jnp.clip(hh + step, 0, H - 1) * W + wv]
    S_b = eyeHW[jnp.clip(hh - step, 0, H - 1) * W + wv]
    S_l = eyeHW[hh * W + jnp.clip(wv + step, 0, W - 1)]
    S_r = eyeHW[hh * W + jnp.clip(wv - step, 0, W - 1)]
    Kh = jnp.kron(jnp.eye(H, dtype=f32), p['wh'])                  # mixes W within each H row
    Kw = jnp.kron(p['ww'], jnp.eye(W, dtype=f32))                  # mixes H for each W column
    spat = jnp.stack([S_t, S_b, S_l, S_r, Kh, Kw], axis=0).astype(bf16)

    # channel operators, block-diagonal over packed images; A_mean entries 1/C exact in bf16
    A_mean = jnp.full((C, C), 1.0 / C, f32)
    cmats = jnp.stack([packk(M['t']), packk(M['b']), packk(M['l']), packk(M['r']),
                       packk(Wo), packk(Wh_c), packk(Ww_c), packk(A_mean)],
                      axis=0).astype(bf16)                         # (8, kC, kC)

    W1 = packk(p['w1'].T).astype(bf16)                             # (kC, 3kC)
    W2 = packk(p['w2'].T).astype(bf16)                             # (3kC, kC)

    # proj_h / proj_w biases folded into a per-row additive term, tiled over packed images
    bh_flat = jnp.tile(p['bh'], (H,))[:, None]                     # row (h, v) -> bh[v]
    bw_flat = jnp.repeat(p['bw'], W)[:, None]                      # row (u, w) -> bw[u]
    gbias1 = (bh_flat * jnp.sum(Wh_c, axis=0)[None, :]
              + bw_flat * jnp.sum(Ww_c, axis=0)[None, :])          # (HW, C)
    gbias = jnp.tile(gbias1, (1, k)).astype(bf16)                  # (HW, kC)

    vecs = jnp.stack([tilek(p['bn1_scale']), tilek(p['bn1_bias']),
                      tilek(p['bn2_scale']), tilek(p['bn2_bias']),
                      tilek(p['ln_g']), tilek(p['ln_b']),
                      tilek(bias_local), tilek(p['b2'])], axis=0)  # (8, kC)
    b1v = tilek(p['b1'])[None, :]                                  # (1, 3kC)

    return [vecs.astype(f32), b1v.astype(f32), gbias, cmats, spat, W1, W2]


# --------------------------------------------------------------------------------------
# Pure-JAX reference mirroring the PyTorch module (eval mode) for a sanity check.
# --------------------------------------------------------------------------------------
def reference_forward(x, p, step):
    B, C, H, W = x.shape

    def bn_act(z, scale, bias):
        return _gelu(z * scale[None, :, None, None] + bias[None, :, None, None])

    def conv1x1(z, w, b=None):
        o = jnp.einsum('oc,bchw->bohw', w, z)
        return o if b is None else o + b[None, :, None, None]

    # localMix
    y = bn_act(x, p['bn1_scale'], p['bn1_bias'])
    xt = conv1x1(y, p['wt'], p['bt'])
    xb = conv1x1(y, p['wb'], p['bb'])
    xl = conv1x1(y, p['wl'], p['bl'])
    xr = conv1x1(y, p['wr'], p['br'])
    xt = xt[:, :, jnp.clip(jnp.arange(H) + step, 0, H - 1), :]
    xb = xb[:, :, jnp.clip(jnp.arange(H) - step, 0, H - 1), :]
    xl = xl[:, :, :, jnp.clip(jnp.arange(W) + step, 0, W - 1)]
    xr = xr[:, :, :, jnp.clip(jnp.arange(W) - step, 0, W - 1)]
    local = conv1x1(jnp.concatenate([xt, xb, xr, xl], axis=1), p['wfuse'], p['bfuse'])
    # globalMix
    g = bn_act(local, p['bn2_scale'], p['bn2_bias'])
    gh = jnp.einsum('vw,bchw->bchv', p['wh'], g) + p['bh'][None, None, None, :]
    gw = jnp.einsum('uh,bchw->bcuw', p['ww'], g) + p['bw'][None, None, :, None]
    gm = conv1x1(jnp.concatenate([g, gh, gw], axis=1), p['wfuse2'])
    x1 = gm + x
    # channelMix
    xp = jnp.transpose(x1, (0, 2, 3, 1))
    mu = jnp.mean(xp, axis=-1, keepdims=True)
    var = jnp.mean(jnp.square(xp - mu), axis=-1, keepdims=True)
    xn = (xp - mu) * jax.lax.rsqrt(var + 1e-5) * p['ln_g'] + p['ln_b']
    h1 = _gelu(xn @ p['w1'].T + p['b1'])
    cm = h1 @ p['w2'].T + p['b2']
    return jnp.transpose(cm, (0, 3, 1, 2)) + x1


if __name__ == "__main__":
    # B=8 with C=32 -> k=4 images packed per grid step (kC = 128 lanes, fully lane-dense)
    # while still keeping 2 parallel grid steps (both v7x TensorCores busy).
    B, C, H, W, step = 8, 32, 16, 16, 2
    key = jax.random.PRNGKey(0)
    kx, kp = jax.random.split(key)
    x = jax.random.normal(kx, (B, C, H, W), jnp.float32)

    params = make_params(kp, C, H, W)
    k = choose_pack(B, C)
    kin = make_kernel_inputs(params, C, H, W, step, k)

    fwd = jax.jit(caterpillar_block_pallas, static_argnums=(2, 3, 4, 5, 6))
    out = fwd(x, kin, H, W, C, step, k)
    out = jax.block_until_ready(out)

    ref = reference_forward(x, params, step)
    err = float(jnp.max(jnp.abs(out - ref)))
    assert out.shape == (B, C, H, W), out.shape
    # bf16 MXU operands with f32 accumulation (weights, shift/kron operators, LN stats):
    # observed error is a few 1e-3; 2e-2 is a safe bound.
    assert err < 2e-2, f"max abs error vs reference: {err}"
    print("KERNEL_OK")
</pallas_src>

<mosaic_0001>
module attributes {stable_mosaic.version = 11 : i64} {
  func.func @_block_kernel(%arg0: i32, %arg1: memref<256x128xf32, #tpu.memory_space<vmem>>, %arg2: memref<8x128xf32, #tpu.memory_space<vmem>>, %arg3: memref<1x384xf32, #tpu.memory_space<vmem>>, %arg4: memref<256x128xbf16, #tpu.memory_space<vmem>>, %arg5: memref<8x128x128xbf16, #tpu.memory_space<vmem>>, %arg6: memref<6x256x256xbf16, #tpu.memory_space<vmem>>, %arg7: memref<128x384xbf16, #tpu.memory_space<vmem>>, %arg8: memref<384x128xbf16, #tpu.memory_space<vmem>>, %arg9: memref<256x128xf32, #tpu.memory_space<vmem>>) attributes {dimension_semantics = [#tpu.dimension_semantics<parallel>], iteration_bounds = array<i64: 2>, scalar_prefetch = 0 : i64, scratch_operands = 0 : i64, tpu.core_type = #tpu.core_type<tc>, window_params = [{transform_indices = @transform_0, window_bounds = array<i64: 256, 128>}, {pipeline_mode = #tpu.pipeline_mode<synchronous>, transform_indices = @transform_1, window_bounds = array<i64: 8, 128>}, {pipeline_mode = #tpu.pipeline_mode<synchronous>, transform_indices = @transform_2, window_bounds = array<i64: 1, 384>}, {pipeline_mode = #tpu.pipeline_mode<synchronous>, transform_indices = @transform_3, window_bounds = array<i64: 256, 128>}, {pipeline_mode = #tpu.pipeline_mode<synchronous>, transform_indices = @transform_4, window_bounds = array<i64: 8, 128, 128>}, {pipeline_mode = #tpu.pipeline_mode<synchronous>, transform_indices = @transform_5, window_bounds = array<i64: 6, 256, 256>}, {pipeline_mode = #tpu.pipeline_mode<synchronous>, transform_indices = @transform_6, window_bounds = array<i64: 128, 384>}, {pipeline_mode = #tpu.pipeline_mode<synchronous>, transform_indices = @transform_7, window_bounds = array<i64: 384, 128>}, {transform_indices = @transform_8, window_bounds = array<i64: 256, 128>}]} {
    %c0 = arith.constant 0 : index
    %c0_0 = arith.constant 0 : index
    %0 = vector.load %arg1[%c0, %c0_0] : memref<256x128xf32, #tpu.memory_space<vmem>>, vector<256x128xf32>
    %c0_1 = arith.constant 0 : index
    %c0_2 = arith.constant 0 : index
    %1 = vector.load %arg2[%c0_1, %c0_2] : memref<8x128xf32, #tpu.memory_space<vmem>>, vector<8x128xf32>
    %2 = vector.extract_strided_slice %1 {offsets = [0, 0], sizes = [1, 128], strides = [1, 1]} : vector<8x128xf32> to vector<1x128xf32>
    %3 = vector.extract_strided_slice %1 {offsets = [1, 0], sizes = [1, 128], strides = [1, 1]} : vector<8x128xf32> to vector<1x128xf32>
    %4 = vector.extract_strided_slice %1 {offsets = [2, 0], sizes = [1, 128], strides = [1, 1]} : vector<8x128xf32> to vector<1x128xf32>
    %5 = vector.extract_strided_slice %1 {offsets = [3, 0], sizes = [1, 128], strides = [1, 1]} : vector<8x128xf32> to vector<1x128xf32>
    %6 = vector.extract_strided_slice %1 {offsets = [4, 0], sizes = [1, 128], strides = [1, 1]} : vector<8x128xf32> to vector<1x128xf32>
    %7 = vector.extract_strided_slice %1 {offsets = [5, 0], sizes = [1, 128], strides = [1, 1]} : vector<8x128xf32> to vector<1x128xf32>
    %8 = vector.extract_strided_slice %1 {offsets = [6, 0], sizes = [1, 128], strides = [1, 1]} : vector<8x128xf32> to vector<1x128xf32>
    %9 = vector.extract_strided_slice %1 {offsets = [7, 0], sizes = [1, 128], strides = [1, 1]} : vector<8x128xf32> to vector<1x128xf32>
    %10 = vector.broadcast %2 : vector<1x128xf32> to vector<256x128xf32>
    %11 = arith.mulf %0, %10 : vector<256x128xf32>
    %12 = vector.broadcast %3 : vector<1x128xf32> to vector<256x128xf32>
    %13 = arith.addf %11, %12 : vector<256x128xf32>
    %14 = arith.mulf %13, %13 : vector<256x128xf32>
    %15 = arith.mulf %13, %14 : vector<256x128xf32>
    %cst = arith.constant 4.471500e-02 : f32
    %16 = vector.broadcast %cst : f32 to vector<256x128xf32>
    %17 = arith.mulf %16, %15 : vector<256x128xf32>
    %18 = arith.addf %13, %17 : vector<256x128xf32>
    %cst_3 = arith.constant 0.797884583 : f32
    %19 = vector.broadcast %cst_3 : f32 to vector<256x128xf32>
    %20 = arith.mulf %19, %18 : vector<256x128xf32>
    %21 = math.tanh %20 : vector<256x128xf32>
    %cst_4 = arith.constant 1.000000e+00 : f32
    %22 = vector.broadcast %cst_4 : f32 to vector<256x128xf32>
    %23 = arith.addf %22, %21 : vector<256x128xf32>
    %cst_5 = arith.constant 5.000000e-01 : f32
    %24 = vector.broadcast %cst_5 : f32 to vector<256x128xf32>
    %25 = arith.mulf %24, %23 : vector<256x128xf32>
    %26 = arith.mulf %13, %25 : vector<256x128xf32>
    %27 = arith.truncf %26 : vector<256x128xf32> to vector<256x128xbf16>
    %c0_6 = arith.constant 0 : index
    %c0_7 = arith.constant 0 : index
    %c0_8 = arith.constant 0 : index
    %28 = vector.load %arg5[%c0_6, %c0_7, %c0_8] : memref<8x128x128xbf16, #tpu.memory_space<vmem>>, vector<1x128x128xbf16>
    %29 = vector.shape_cast %28 : vector<1x128x128xbf16> to vector<128x128xbf16>
    %cst_9 = arith.constant dense<0.000000e+00> : vector<256x128xf32>
    %30 = tpu.matmul %27, %29, %cst_9 {dimension_numbers = #tpu.dot_dimension_numbers<[1], [0], [0], [1], [0, 0, 1, 1], [], []>} : vector<256x128xbf16>, vector<128x128xbf16>, vector<256x128xf32> -> vector<256x128xf32>
    %c0_10 = arith.constant 0 : index
    %c0_11 = arith.constant 0 : index
    %c0_12 = arith.constant 0 : index
    %31 = vector.load %arg6[%c0_10, %c0_11, %c0_12] : memref<6x256x256xbf16, #tpu.memory_space<vmem>>, vector<1x256x256xbf16>
    %32 = vector.shape_cast %31 : vector<1x256x256xbf16> to vector<256x256xbf16>
    %33 = arith.truncf %30 : vector<256x128xf32> to vector<256x128xbf16>
    %cst_13 = arith.constant dense<0.000000e+00> : vector<256x128xf32>
    %34 = tpu.matmul %32, %33, %cst_13 {dimension_numbers = #tpu.dot_dimension_numbers<[1], [0], [0], [1], [0, 0, 1, 1], [], []>} : vector<256x256xbf16>, vector<256x128xbf16>, vector<256x128xf32> -> vector<256x128xf32>
    %c1 = arith.constant 1 : index
    %c0_14 = arith.constant 0 : index
    %c0_15 = arith.constant 0 : index
    %35 = vector.load %arg5[%c1, %c0_14, %c0_15] : memref<8x128x128xbf16, #tpu.memory_space<vmem>>, vector<1x128x128xbf16>
    %36 = vector.shape_cast %35 : vector<1x128x128xbf16> to vector<128x128xbf16>
    %cst_16 = arith.constant dense<0.000000e+00> : vector<256x128xf32>
    %37 = tpu.matmul %27, %36, %cst_16 {dimension_numbers = #tpu.dot_dimension_numbers<[1], [0], [0], [1], [0, 0, 1, 1], [], []>} : vector<256x128xbf16>, vector<128x128xbf16>, vector<256x128xf32> -> vector<256x128xf32>
    %c1_17 = arith.constant 1 : index
    %c0_18 = arith.constant 0 : index
    %c0_19 = arith.constant 0 : index
    %38 = vector.load %arg6[%c1_17, %c0_18, %c0_19] : memref<6x256x256xbf16, #tpu.memory_space<vmem>>, vector<1x256x256xbf16>
    %39 = vector.shape_cast %38 : vector<1x256x256xbf16> to vector<256x256xbf16>
    %40 = arith.truncf %37 : vector<256x128xf32> to vector<256x128xbf16>
    %cst_20 = arith.constant dense<0.000000e+00> : vector<256x128xf32>
    %41 = tpu.matmul %39, %40, %cst_20 {dimension_numbers = #tpu.dot_dimension_numbers<[1], [0], [0], [1], [0, 0, 1, 1], [], []>} : vector<256x256xbf16>, vector<256x128xbf16>, vector<256x128xf32> -> vector<256x128xf32>
    %42 = arith.addf %34, %41 : vector<256x128xf32>
    %c2 = arith.constant 2 : index
    %c0_21 = arith.constant 0 : index
    %c0_22 = arith.constant 0 : index
    %43 = vector.load %arg5[%c2, %c0_21, %c0_22] : memref<8x128x128xbf16, #tpu.memory_space<vmem>>, vector<1x128x128xbf16>
    %44 = vector.shape_cast %43 : vector<1x128x128xbf16> to vector<128x128xbf16>
    %cst_23 = arith.constant dense<0.000000e+00> : vector<256x128xf32>
    %45 = tpu.matmul %27, %44, %cst_23 {dimension_numbers = #tpu.dot_dimension_numbers<[1], [0], [0], [1], [0, 0, 1, 1], [], []>} : vector<256x128xbf16>, vector<128x128xbf16>, vector<256x128xf32> -> vector<256x128xf32>
    %c2_24 = arith.constant 2 : index
    %c0_25 = arith.constant 0 : index
    %c0_26 = arith.constant 0 : index
    %46 = vector.load %arg6[%c2_24, %c0_25, %c0_26] : memref<6x256x256xbf16, #tpu.memory_space<vmem>>, vector<1x256x256xbf16>
    %47 = vector.shape_cast %46 : vector<1x256x256xbf16> to vector<256x256xbf16>
    %48 = arith.truncf %45 : vector<256x128xf32> to vector<256x128xbf16>
    %cst_27 = arith.constant dense<0.000000e+00> : vector<256x128xf32>
    %49 = tpu.matmul %47, %48, %cst_27 {dimension_numbers = #tpu.dot_dimension_numbers<[1], [0], [0], [1], [0, 0, 1, 1], [], []>} : vector<256x256xbf16>, vector<256x128xbf16>, vector<256x128xf32> -> vector<256x128xf32>
    %50 = arith.addf %42, %49 : vector<256x128xf32>
    %c3 = arith.constant 3 : index
    %c0_28 = arith.constant 0 : index
    %c0_29 = arith.constant 0 : index
    %51 = vector.load %arg5[%c3, %c0_28, %c0_29] : memref<8x128x128xbf16, #tpu.memory_space<vmem>>, vector<1x128x128xbf16>
    %52 = vector.shape_cast %51 : vector<1x128x128xbf16> to vector<128x128xbf16>
    %cst_30 = arith.constant dense<0.000000e+00> : vector<256x128xf32>
    %53 = tpu.matmul %27, %52, %cst_30 {dimension_numbers = #tpu.dot_dimension_numbers<[1], [0], [0], [1], [0, 0, 1, 1], [], []>} : vector<256x128xbf16>, vector<128x128xbf16>, vector<256x128xf32> -> vector<256x128xf32>
    %c3_31 = arith.constant 3 : index
    %c0_32 = arith.constant 0 : index
    %c0_33 = arith.constant 0 : index
    %54 = vector.load %arg6[%c3_31, %c0_32, %c0_33] : memref<6x256x256xbf16, #tpu.memory_space<vmem>>, vector<1x256x256xbf16>
    %55 = vector.shape_cast %54 : vector<1x256x256xbf16> to vector<256x256xbf16>
    %56 = arith.truncf %53 : vector<256x128xf32> to vector<256x128xbf16>
    %cst_34 = arith.constant dense<0.000000e+00> : vector<256x128xf32>
    %57 = tpu.matmul %55, %56, %cst_34 {dimension_numbers = #tpu.dot_dimension_numbers<[1], [0], [0], [1], [0, 0, 1, 1], [], []>} : vector<256x256xbf16>, vector<256x128xbf16>, vector<256x128xf32> -> vector<256x128xf32>
    %58 = arith.addf %50, %57 : vector<256x128xf32>
    %59 = vector.broadcast %8 : vector<1x128xf32> to vector<256x128xf32>
    %60 = arith.addf %58, %59 : vector<256x128xf32>
    %61 = vector.broadcast %4 : vector<1x128xf32> to vector<256x128xf32>
    %62 = arith.mulf %60, %61 : vector<256x128xf32>
    %63 = vector.broadcast %5 : vector<1x128xf32> to vector<256x128xf32>
    %64 = arith.addf %62, %63 : vector<256x128xf32>
    %65 = arith.mulf %64, %64 : vector<256x128xf32>
    %66 = arith.mulf %64, %65 : vector<256x128xf32>
    %cst_35 = arith.constant 4.471500e-02 : f32
    %67 = vector.broadcast %cst_35 : f32 to vector<256x128xf32>
    %68 = arith.mulf %67, %66 : vector<256x128xf32>
    %69 = arith.addf %64, %68 : vector<256x128xf32>
    %cst_36 = arith.constant 0.797884583 : f32
    %70 = vector.broadcast %cst_36 : f32 to vector<256x128xf32>
    %71 = arith.mulf %70, %69 : vector<256x128xf32>
    %72 = math.tanh %71 : vector<256x128xf32>
    %cst_37 = arith.constant 1.000000e+00 : f32
    %73 = vector.broadcast %cst_37 : f32 to vector<256x128xf32>
    %74 = arith.addf %73, %72 : vector<256x128xf32>
    %cst_38 = arith.constant 5.000000e-01 : f32
    %75 = vector.broadcast %cst_38 : f32 to vector<256x128xf32>
    %76 = arith.mulf %75, %74 : vector<256x128xf32>
    %77 = arith.mulf %64, %76 : vector<256x128xf32>
    %78 = arith.truncf %77 : vector<256x128xf32> to vector<256x128xbf16>
    %c4 = arith.constant 4 : index
    %c0_39 = arith.constant 0 : index
    %c0_40 = arith.constant 0 : index
    %79 = vector.load %arg5[%c4, %c0_39, %c0_40] : memref<8x128x128xbf16, #tpu.memory_space<vmem>>, vector<1x128x128xbf16>
    %80 = vector.shape_cast %79 : vector<1x128x128xbf16> to vector<128x128xbf16>
    %cst_41 = arith.constant dense<0.000000e+00> : vector<256x128xf32>
    %81 = tpu.matmul %78, %80, %cst_41 {dimension_numbers = #tpu.dot_dimension_numbers<[1], [0], [0], [1], [0, 0, 1, 1], [], []>} : vector<256x128xbf16>, vector<128x128xbf16>, vector<256x128xf32> -> vector<256x128xf32>
    %c5 = arith.constant 5 : index
    %c0_42 = arith.constant 0 : index
    %c0_43 = arith.constant 0 : index
    %82 = vector.load %arg5[%c5, %c0_42, %c0_43] : memref<8x128x128xbf16, #tpu.memory_space<vmem>>, vector<1x128x128xbf16>
    %83 = vector.shape_cast %82 : vector<1x128x128xbf16> to vector<128x128xbf16>
    %cst_44 = arith.constant dense<0.000000e+00> : vector<256x128xf32>
    %84 = tpu.matmul %78, %83, %cst_44 {dimension_numbers = #tpu.dot_dimension_numbers<[1], [0], [0], [1], [0, 0, 1, 1], [], []>} : vector<256x128xbf16>, vector<128x128xbf16>, vector<256x128xf32> -> vector<256x128xf32>
    %c4_45 = arith.constant 4 : index
    %c0_46 = arith.constant 0 : index
    %c0_47 = arith.constant 0 : index
    %85 = vector.load %arg6[%c4_45, %c0_46, %c0_47] : memref<6x256x256xbf16, #tpu.memory_space<vmem>>, vector<1x256x256xbf16>
    %86 = vector.shape_cast %85 : vector<1x256x256xbf16> to vector<256x256xbf16>
    %87 = arith.truncf %84 : vector<256x128xf32> to vector<256x128xbf16>
    %cst_48 = arith.constant dense<0.000000e+00> : vector<256x128xf32>
    %88 = tpu.matmul %86, %87, %cst_48 {dimension_numbers = #tpu.dot_dimension_numbers<[1], [0], [0], [1], [0, 0, 1, 1], [], []>} : vector<256x256xbf16>, vector<256x128xbf16>, vector<256x128xf32> -> vector<256x128xf32>
    %89 = arith.addf %81, %88 : vector<256x128xf32>
    %c6 = arith.constant 6 : index
    %c0_49 = arith.constant 0 : index
    %c0_50 = arith.constant 0 : index
    %90 = vector.load %arg5[%c6, %c0_49, %c0_50] : memref<8x128x128xbf16, #tpu.memory_space<vmem>>, vector<1x128x128xbf16>
    %91 = vector.shape_cast %90 : vector<1x128x128xbf16> to vector<128x128xbf16>
    %cst_51 = arith.constant dense<0.000000e+00> : vector<256x128xf32>
    %92 = tpu.matmul %78, %91, %cst_51 {dimension_numbers = #tpu.dot_dimension_numbers<[1], [0], [0], [1], [0, 0, 1, 1], [], []>} : vector<256x128xbf16>, vector<128x128xbf16>, vector<256x128xf32> -> vector<256x128xf32>
    %c5_52 = arith.constant 5 : index
    %c0_53 = arith.constant 0 : index
    %c0_54 = arith.constant 0 : index
    %93 = vector.load %arg6[%c5_52, %c0_53, %c0_54] : memref<6x256x256xbf16, #tpu.memory_space<vmem>>, vector<1x256x256xbf16>
    %94 = vector.shape_cast %93 : vector<1x256x256xbf16> to vector<256x256xbf16>
    %95 = arith.truncf %92 : vector<256x128xf32> to vector<256x128xbf16>
    %cst_55 = arith.constant dense<0.000000e+00> : vector<256x128xf32>
    %96 = tpu.matmul %94, %95, %cst_55 {dimension_numbers = #tpu.dot_dimension_numbers<[1], [0], [0], [1], [0, 0, 1, 1], [], []>} : vector<256x256xbf16>, vector<256x128xbf16>, vector<256x128xf32> -> vector<256x128xf32>
    %97 = arith.addf %89, %96 : vector<256x128xf32>
    %c0_56 = arith.constant 0 : index
    %c0_57 = arith.constant 0 : index
    %98 = vector.load %arg4[%c0_56, %c0_57] : memref<256x128xbf16, #tpu.memory_space<vmem>>, vector<256x128xbf16>
    %99 = arith.extf %98 : vector<256x128xbf16> to vector<256x128xf32>
    %100 = arith.addf %97, %99 : vector<256x128xf32>
    %101 = arith.addf %100, %0 : vector<256x128xf32>
    %102 = arith.truncf %101 : vector<256x128xf32> to vector<256x128xbf16>
    %c7 = arith.constant 7 : index
    %c0_58 = arith.constant 0 : index
    %c0_59 = arith.constant 0 : index
    %103 = vector.load %arg5[%c7, %c0_58, %c0_59] : memref<8x128x128xbf16, #tpu.memory_space<vmem>>, vector<1x128x128xbf16>
    %104 = vector.shape_cast %103 : vector<1x128x128xbf16> to vector<128x128xbf16>
    %cst_60 = arith.constant dense<0.000000e+00> : vector<256x128xf32>
    %105 = tpu.matmul %102, %104, %cst_60 {dimension_numbers = #tpu.dot_dimension_numbers<[1], [0], [0], [1], [0, 0, 1, 1], [], []>} : vector<256x128xbf16>, vector<128x128xbf16>, vector<256x128xf32> -> vector<256x128xf32>
    %106 = arith.subf %101, %105 : vector<256x128xf32>
    %107 = arith.mulf %106, %106 : vector<256x128xf32>
    %108 = arith.truncf %107 : vector<256x128xf32> to vector<256x128xbf16>
    %c7_61 = arith.constant 7 : index
    %c0_62 = arith.constant 0 : index
    %c0_63 = arith.constant 0 : index
    %109 = vector.load %arg5[%c7_61, %c0_62, %c0_63] : memref<8x128x128xbf16, #tpu.memory_space<vmem>>, vector<1x128x128xbf16>
    %110 = vector.shape_cast %109 : vector<1x128x128xbf16> to vector<128x128xbf16>
    %cst_64 = arith.constant dense<0.000000e+00> : vector<256x128xf32>
    %111 = tpu.matmul %108, %110, %cst_64 {dimension_numbers = #tpu.dot_dimension_numbers<[1], [0], [0], [1], [0, 0, 1, 1], [], []>} : vector<256x128xbf16>, vector<128x128xbf16>, vector<256x128xf32> -> vector<256x128xf32>
    %cst_65 = arith.constant 9.99999974E-6 : f32
    %112 = vector.broadcast %cst_65 : f32 to vector<256x128xf32>
    %113 = arith.addf %111, %112 : vector<256x128xf32>
    %114 = math.rsqrt %113 : vector<256x128xf32>
    %115 = arith.mulf %106, %114 : vector<256x128xf32>
    %116 = vector.broadcast %6 : vector<1x128xf32> to vector<256x128xf32>
    %117 = arith.mulf %115, %116 : vector<256x128xf32>
    %118 = vector.broadcast %7 : vector<1x128xf32> to vector<256x128xf32>
    %119 = arith.addf %117, %118 : vector<256x128xf32>
    %120 = arith.truncf %119 : vector<256x128xf32> to vector<256x128xbf16>
    %c0_66 = arith.constant 0 : index
    %c0_67 = arith.constant 0 : index
    %121 = vector.load %arg7[%c0_66, %c0_67] : memref<128x384xbf16, #tpu.memory_space<vmem>>, vector<128x384xbf16>
    %cst_68 = arith.constant dense<0.000000e+00> : vector<256x384xf32>
    %122 = tpu.matmul %120, %121, %cst_68 {dimension_numbers = #tpu.dot_dimension_numbers<[1], [0], [0], [1], [0, 0, 1, 1], [], []>} : vector<256x128xbf16>, vector<128x384xbf16>, vector<256x384xf32> -> vector<256x384xf32>
    %c0_69 = arith.constant 0 : index
    %c0_70 = arith.constant 0 : index
    %123 = vector.load %arg3[%c0_69, %c0_70] : memref<1x384xf32, #tpu.memory_space<vmem>>, vector<1x384xf32>
    %124 = vector.broadcast %123 : vector<1x384xf32> to vector<256x384xf32>
    %125 = arith.addf %122, %124 : vector<256x384xf32>
    %126 = arith.mulf %125, %125 : vector<256x384xf32>
    %127 = arith.mulf %125, %126 : vector<256x384xf32>
    %cst_71 = arith.constant 4.471500e-02 : f32
    %128 = vector.broadcast %cst_71 : f32 to vector<256x384xf32>
    %129 = arith.mulf %128, %127 : vector<256x384xf32>
    %130 = arith.addf %125, %129 : vector<256x384xf32>
    %cst_72 = arith.constant 0.797884583 : f32
    %131 = vector.broadcast %cst_72 : f32 to vector<256x384xf32>
    %132 = arith.mulf %131, %130 : vector<256x384xf32>
    %133 = math.tanh %132 : vector<256x384xf32>
    %cst_73 = arith.constant 1.000000e+00 : f32
    %134 = vector.broadcast %cst_73 : f32 to vector<256x384xf32>
    %135 = arith.addf %134, %133 : vector<256x384xf32>
    %cst_74 = arith.constant 5.000000e-01 : f32
    %136 = vector.broadcast %cst_74 : f32 to vector<256x384xf32>
    %137 = arith.mulf %136, %135 : vector<256x384xf32>
    %138 = arith.mulf %125, %137 : vector<256x384xf32>
    %139 = arith.truncf %138 : vector<256x384xf32> to vector<256x384xbf16>
    %c0_75 = arith.constant 0 : index
    %c0_76 = arith.constant 0 : index
    %140 = vector.load %arg8[%c0_75, %c0_76] : memref<384x128xbf16, #tpu.memory_space<vmem>>, vector<384x128xbf16>
    %cst_77 = arith.constant dense<0.000000e+00> : vector<256x128xf32>
    %141 = tpu.matmul %139, %140, %cst_77 {dimension_numbers = #tpu.dot_dimension_numbers<[1], [0], [0], [1], [0, 0, 1, 1], [], []>} : vector<256x384xbf16>, vector<384x128xbf16>, vector<256x128xf32> -> vector<256x128xf32>
    %142 = vector.broadcast %9 : vector<1x128xf32> to vector<256x128xf32>
    %143 = arith.addf %141, %142 : vector<256x128xf32>
    %144 = arith.addf %143, %101 : vector<256x128xf32>
    %c0_78 = arith.constant 0 : index
    %c0_79 = arith.constant 0 : index
    %145 = vector.load %arg9[%c0_78, %c0_79] : memref<256x128xf32, #tpu.memory_space<vmem>>, vector<256x128xf32>
    tpu.vector_store %arg9[%c0_78, %c0_79], %144 {strides = array<i32>} : memref<256x128xf32, #tpu.memory_space<vmem>>, vector<256x128xf32>,
    return
  }
  func.func @transform_0(%arg0: i32) -> (i32, i32) {
    %c0_i32 = arith.constant 0 : i32
    %c0_i32_0 = arith.constant 0 : i32
    return %arg0, %c0_i32 : i32, i32
  }
  func.func @transform_1(%arg0: i32) -> (i32, i32) {
    %c0_i32 = arith.constant 0 : i32
    %c0_i32_0 = arith.constant 0 : i32
    %c0_i32_1 = arith.constant 0 : i32
    return %c0_i32, %c0_i32_0 : i32, i32
  }
  func.func @transform_2(%arg0: i32) -> (i32, i32) {
    %c0_i32 = arith.constant 0 : i32
    %c0_i32_0 = arith.constant 0 : i32
    %c0_i32_1 = arith.constant 0 : i32
    return %c0_i32, %c0_i32_0 : i32, i32
  }
  func.func @transform_3(%arg0: i32) -> (i32, i32) {
    %c0_i32 = arith.constant 0 : i32
    %c0_i32_0 = arith.constant 0 : i32
    %c0_i32_1 = arith.constant 0 : i32
    return %c0_i32, %c0_i32_0 : i32, i32
  }
  func.func @transform_4(%arg0: i32) -> (i32, i32, i32) {
    %c0_i32 = arith.constant 0 : i32
    %c0_i32_0 = arith.constant 0 : i32
    %c0_i32_1 = arith.constant 0 : i32
    %c0_i32_2 = arith.constant 0 : i32
    return %c0_i32, %c0_i32_0, %c0_i32_1 : i32, i32, i32
  }
  func.func @transform_5(%arg0: i32) -> (i32, i32, i32) {
    %c0_i32 = arith.constant 0 : i32
    %c0_i32_0 = arith.constant 0 : i32
    %c0_i32_1 = arith.constant 0 : i32
    %c0_i32_2 = arith.constant 0 : i32
    return %c0_i32, %c0_i32_0, %c0_i32_1 : i32, i32, i32
  }
  func.func @transform_6(%arg0: i32) -> (i32, i32) {
    %c0_i32 = arith.constant 0 : i32
    %c0_i32_0 = arith.constant 0 : i32
    %c0_i32_1 = arith.constant 0 : i32
    return %c0_i32, %c0_i32_0 : i32, i32
  }
  func.func @transform_7(%arg0: i32) -> (i32, i32) {
    %c0_i32 = arith.constant 0 : i32
    %c0_i32_0 = arith.constant 0 : i32
    %c0_i32_1 = arith.constant 0 : i32
    return %c0_i32, %c0_i32_0 : i32, i32
  }
  func.func @transform_8(%arg0: i32) -> (i32, i32) {
    %c0_i32 = arith.constant 0 : i32
    %c0_i32_0 = arith.constant 0 : i32
    return %arg0, %c0_i32 : i32, i32
  }
}

</mosaic_0001>

<bundles_post_ra>
// kernel: caterpillar_block_pallas.1
= control target key start
LH: loop header
LB: loop body
LE: loop exit
PB: predicated region body
PF: predicated region fallthrough
CT: control target
= control target key end

     0   :  { %s11019_s27 = smov 0   ;;  %s15285_s0 = inlined_call_operand.vmem [shape: f32[512,128], index: 0, kind: input, shape index: {}]   ;;  %s15286_s1 = inlined_call_operand.vmem [shape: f32[8,128], index: 1, kind: input, shape index: {}]   ;;  %s15287_s2 = inlined_call_operand.vmem [shape: f32[1,384], index: 2, kind: input, shape index: {}]   ;;  %s15288_s3 = inlined_call_operand.vmem [shape: bf16[256,128], index: 3, kind: input, shape index: {}]   ;;  %s15289_s4 = inlined_call_operand.vmem [shape: bf16[8,128,128], index: 4, kind: input, shape index: {}]   ;;  %s15290_s5 = inlined_call_operand.vmem [shape: bf16[6,256,256], index: 5, kind: input, shape index: {}]   ;;  %s15291_s6 = inlined_call_operand.vmem [shape: bf16[128,384], index: 6, kind: input, shape index: {}]   ;;  %s15292_s7 = inlined_call_operand.vmem [shape: bf16[384,128], index: 7, kind: input, shape index: {}]   ;;  %s15293_s8 = inlined_call_operand.vmem [shape: f32[512,128], index: 8, kind: output, shape index: {}]  }
   0x1 LB: > { %s7871_s28 = sadd.s32 4294967295, %s10971_s27   ;;  %p7875_p0 = scmp.ge.s32.totalorder %s10971_s27, 1  ;;  %s10971_s27 = sphi %s11019_s27, %s18_s27  }
   0x2   : > { %p263_p1 = scmp.lt.s32.totalorder %s10971_s27, 3 }
   0x4   : > { %p264_p2 = pnand %p7875_p0, %p263_p1 }
   0x6   : > { %267 = sbr.rel (%p264_p2) target bundleno = 3023 (0xbcf), region = 52 }
   0xd   : > { %v10138_v0 = vld [vmem:[%s15289_s4] sm:$0xff]   ;;  %s7876_s9 = sshll.u32 %s7871_s28, 5  ;;  %v343_v1 = vlaneseq  ;;  %v10139_v2 = vld [vmem:[%s15289_s4 + $0x8] sm:$0xff]   ;;  %v10140_v4 = vld [vmem:[%s15289_s4 + $0x10] sm:$0xff]  }
   0xe   : > { %p298_p3 = scmp.lt.s32.totalorder %s7876_s9, 63  ;;  %10113 = vmatprep.subr.bf16.mxu1 %v10138_v0  ;;  %9585 = vmatprep.subr.bf16.mxu0 %v10138_v0  ;;  %v10141_v7 = vld [vmem:[%s15289_s4 + $0x18] sm:$0xff]   ;;  %v342_v10 = vld [vmem:[%s15286_s1] sm:$0xff]  ;;  %v10143_v37 = vld [vmem:[%s15289_s4 + $0x28] sm:$0xff]  }
   0xf   : > { %v11033_v3 = vshrl.u32 %v343_v1, 7  ;;  %10121 = vmatpush3.bf16.msra.mxu1 %v10138_v0  ;;  %9586 = vmatpush3.bf16.msra.mxu0 %v10138_v0  ;;  %v10142_v22 = vld [vmem:[%s15289_s4 + $0x20] sm:$0xff]   ;;  %v10144_v45 = vld [vmem:[%s15289_s4 + $0x30] sm:$0xff]   ;;  %v10145_v0 = vld [vmem:[%s15289_s4 + $0x38] sm:$0xff]  }
  0x10   : > { %s15569_s9 = smov (!%p298_p3, %s7876_s9), 63  ;;  %10114 = vmatprep.subr.bf16.mxu1 %v10139_v2  ;;  %9587 = vmatprep.subr.bf16.mxu0 %v10139_v2 }
  0x11   : > { %15351 = vst [vmem:[#allocation2_spill] sm:$0xff] %v11033_v3  ;;  %s7877_s14 = sshll.u32 %s15569_s9, 3  ;;  %v15296_v5 = vsub.s32 0, %v11033_v3  ;;  %v15295_v6 = vsub.s32 1, %v11033_v3 }
  0x12   : > { %s11047_s17 = scalar_lea.vmem %s15285_s0, %s7877_s14  ;;  %s15186_s29 = scalar_lea.vmem %s15293_s8, %s7877_s14 }
  0x13   : > { %10122 = vmatpush3.bf16.msra.mxu1 %v10139_v2  ;;  %9588 = vmatpush3.bf16.msra.mxu0 %v10139_v2  ;;  %v326_v8 = vld [vmem:[%s11047_s17 + $0x80] sm:$0xff]  ;;  %v327_v9 = vld [vmem:[%s11047_s17 + $0x88] sm:$0xff]  ;;  %v11060_v11 = vrot.slane %v342_v10, %v15296_v5  ;;  %v11064_v12 = vrot.slane %v342_v10, %v15295_v6  ;;  %v328_v15 = vld [vmem:[%s11047_s17 + $0x90] sm:$0xff] }
  0x14   : > { %10115 = vmatprep.subr.bf16.mxu1 %v10140_v4  ;;  %9589 = vmatprep.subr.bf16.mxu0 %v10140_v4  ;;  %v310_v13 = vld [vmem:[%s11047_s17] sm:$0xff]  ;;  %v311_v14 = vld [vmem:[%s11047_s17 + $0x8] sm:$0xff]  ;;  %v329_v16 = vld [vmem:[%s11047_s17 + $0x98] sm:$0xff] }
  0x15   : > { %v363_v17 = vmul.f32 %v11060_v11, %v326_v8  ;;  %v364_v18 = vmul.f32 %v11060_v11, %v327_v9  ;;  %v347_v19 = vmul.f32 %v11060_v11, %v310_v13  ;;  %v312_v20 = vld [vmem:[%s11047_s17 + $0x10] sm:$0xff]  ;;  %v313_v21 = vld [vmem:[%s11047_s17 + $0x18] sm:$0xff]  ;;  %v348_v23 = vmul.f32 %v11060_v11, %v311_v14  ;;  %v330_v50 = vld [vmem:[%s11047_s17 + $0xa0] sm:$0xff] }
  0x16   : > { %v365_v24 = vmul.f32 %v11060_v11, %v328_v15  ;;  %v366_v25 = vmul.f32 %v11060_v11, %v329_v16  ;;  %v349_v29 = vmul.f32 %v11060_v11, %v312_v20  ;;  %v350_v33 = vmul.f32 %v11060_v11, %v313_v21  ;;  %v331_v63 = vld [vmem:[%s11047_s17 + $0xa8] sm:$0xff]  ;;  %v314_v8 = vld [vmem:[%s11047_s17 + $0x20] sm:$0xff] }
  0x17   : > { %10123 = vmatpush3.bf16.msra.mxu1 %v10140_v4  ;;  %9590 = vmatpush3.bf16.msra.mxu0 %v10140_v4  ;;  %v11082_v26 = vadd.f32 %v11064_v12, %v363_v17  ;;  %v11085_v27 = vadd.f32 %v11064_v12, %v364_v18  ;;  %v11088_v28 = vadd.f32 %v11064_v12, %v347_v19  ;;  %v315_v9 = vld [vmem:[%s11047_s17 + $0x28] sm:$0xff] }
  0x18   : > { %10116 = vmatprep.subr.bf16.mxu1 %v10141_v7  ;;  %9591 = vmatprep.subr.bf16.mxu0 %v10141_v7  ;;  %v11092_v30 = vadd.f32 %v11064_v12, %v348_v23  ;;  %v11095_v31 = vadd.f32 %v11064_v12, %v365_v24  ;;  %v11098_v32 = vadd.f32 %v11064_v12, %v366_v25 }
  0x19   : > { %v431_v34 = vmul.f32 %v11082_v26, %v11082_v26  ;;  %v432_v35 = vmul.f32 %v11085_v27, %v11085_v27  ;;  %v415_v36 = vmul.f32 %v11088_v28, %v11088_v28  ;;  %v11120_v44 = vadd.f32 %v11064_v12, %v349_v29  ;;  %v11163_v29 = vld [vmem:[%s15289_s4 + $0x40] sm:$0xff]  }
  0x1a   : > { %v416_v38 = vmul.f32 %v11092_v30, %v11092_v30  ;;  %v433_v39 = vmul.f32 %v11095_v31, %v11095_v31  ;;  %v434_v40 = vmul.f32 %v11098_v32, %v11098_v32  ;;  %v11129_v49 = vadd.f32 %v11064_v12, %v350_v33 }
  0x1b   : > { %10124 = vmatpush3.bf16.msra.mxu1 %v10141_v7  ;;  %9592 = vmatpush3.bf16.msra.mxu0 %v10141_v7  ;;  %v463_v41 = vmul.f32 %v431_v34, %v11082_v26  ;;  %v464_v42 = vmul.f32 %v432_v35, %v11085_v27  ;;  %v447_v43 = vmul.f32 %v415_v36, %v11088_v28 }
  0x1c   : > { %10117 = vmatprep.subr.bf16.mxu1 %v10142_v22  ;;  %9593 = vmatprep.subr.bf16.mxu0 %v10142_v22  ;;  %v448_v46 = vmul.f32 %v416_v38, %v11092_v30  ;;  %v465_v47 = vmul.f32 %v433_v39, %v11095_v31  ;;  %v466_v48 = vmul.f32 %v434_v40, %v11098_v32  ;;  %v332_v39 = vld [vmem:[%s11047_s17 + $0xb0] sm:$0xff]  ;;  %v333_v40 = vld [vmem:[%s11047_s17 + $0xb8] sm:$0xff] }
  0x1d   : > { %v495_v51 = vmul.f32 0.044715, %v463_v41  ;;  %v496_v52 = vmul.f32 0.044715, %v464_v42  ;;  %v479_v53 = vmul.f32 0.044715, %v447_v43  ;;  %v417_v54 = vmul.f32 %v11120_v44, %v11120_v44 }
  0x1e   : > { %v480_v55 = vmul.f32 0.044715, %v448_v46  ;;  %v497_v56 = vmul.f32 0.044715, %v465_v47  ;;  %v498_v57 = vmul.f32 0.044715, %v466_v48  ;;  %v418_v58 = vmul.f32 %v11129_v49, %v11129_v49 }
  0x1f   : > { %10125 = vmatpush3.bf16.msra.mxu1 %v10142_v22  ;;  %9594 = vmatpush3.bf16.msra.mxu0 %v10142_v22  ;;  %v527_v59 = vadd.f32 %v495_v51, %v11082_v26  ;;  %v528_v60 = vadd.f32 %v496_v52, %v11085_v27  ;;  %v511_v61 = vadd.f32 %v479_v53, %v11088_v28  ;;  %v316_v48 = vld [vmem:[%s11047_s17 + $0x30] sm:$0xff] }
  0x20   : > { %10118 = vmatprep.subr.bf16.mxu1 %v10143_v37  ;;  %9595 = vmatprep.subr.bf16.mxu0 %v10143_v37  ;;  %v449_v62 = vmul.f32 %v417_v54, %v11120_v44  ;;  %v512_v1 = vadd.f32 %v480_v55, %v11092_v30  ;;  %v529_v2 = vadd.f32 %v497_v56, %v11095_v31 }
  0x21   : > { %v530_v4 = vadd.f32 %v498_v57, %v11098_v32  ;;  %v450_v7 = vmul.f32 %v418_v58, %v11129_v49  ;;  %v559_v10 = vmul.f32 0.7978846, %v527_v59  ;;  %v560_v13 = vmul.f32 0.7978846, %v528_v60 }
  0x22   : > { %v543_v14 = vmul.f32 0.7978846, %v511_v61  ;;  %v367_v15 = vmul.f32 %v11060_v11, %v330_v50  ;;  %v544_v16 = vmul.f32 0.7978846, %v512_v1  ;;  %v561_v17 = vmul.f32 0.7978846, %v529_v2 }
  0x23   : > { %10126 = vmatpush3.bf16.msra.mxu1 %v10143_v37  ;;  %9596 = vmatpush3.bf16.msra.mxu0 %v10143_v37  ;;  %v562_v18 = vmul.f32 0.7978846, %v530_v4  ;;  %v368_v19 = vmul.f32 %v11060_v11, %v331_v63  ;;  %10546 = vtanh.f32 %v559_v10  ;;  %v481_v20 = vmul.f32 0.044715, %v449_v62  ;;  %v317_v50 = vld [vmem:[%s11047_s17 + $0x38] sm:$0xff] }
  0x24   : > { %10119 = vmatprep.subr.bf16.mxu1 %v10144_v45  ;;  %9597 = vmatprep.subr.bf16.mxu0 %v10144_v45  ;;  %v482_v21 = vmul.f32 0.044715, %v450_v7  ;;  %v11153_v22 = vadd.f32 %v11064_v12, %v367_v15  ;;  %10548 = vtanh.f32 %v560_v13  ;;  %v351_v24 = vmul.f32 %v11060_v11, %v314_v8 }
  0x25   : > { %v11156_v23 = vadd.f32 %v11064_v12, %v368_v19  ;;  %v352_v25 = vmul.f32 %v11060_v11, %v315_v9  ;;  %10550 = vtanh.f32 %v543_v14  ;;  %v513_v33 = vadd.f32 %v481_v20, %v11120_v44 }
  0x26   : > { %v514_v34 = vadd.f32 %v482_v21, %v11129_v49  ;;  %v435_v35 = vmul.f32 %v11153_v22, %v11153_v22  ;;  %10552 = vtanh.f32 %v544_v16  ;;  %v11172_v37 = vadd.f32 %v11064_v12, %v351_v24 }
  0x27   : > { %10127 = vmatpush3.bf16.msra.mxu1 %v10144_v45  ;;  %9598 = vmatpush3.bf16.msra.mxu0 %v10144_v45  ;;  %v436_v36 = vmul.f32 %v11156_v23, %v11156_v23  ;;  %v11175_v38 = vadd.f32 %v11064_v12, %v352_v25  ;;  %10554 = vtanh.f32 %v561_v17  ;;  %v545_v41 = vmul.f32 0.7978846, %v513_v33 }
  0x28   : > { %10120 = vmatprep.subr.bf16.mxu1 %v10145_v0  ;;  %9599 = vmatprep.subr.bf16.mxu0 %v10145_v0  ;;  %v546_v42 = vmul.f32 0.7978846, %v514_v34  ;;  %v467_v43 = vmul.f32 %v435_v35, %v11153_v22  ;;  %10556 = vtanh.f32 %v562_v18  ;;  %v419_v46 = vmul.f32 %v11172_v37, %v11172_v37 }
  0x29   : > { %v468_v45 = vmul.f32 %v436_v36, %v11156_v23  ;;  %v420_v47 = vmul.f32 %v11175_v38, %v11175_v38  ;;  %10558 = vtanh.f32 %v545_v41  ;;  %v369_v52 = vmul.f32 %v11060_v11, %v332_v39 }
  0x2a   : > { %v499_v51 = vmul.f32 0.044715, %v467_v43  ;;  %v370_v53 = vmul.f32 %v11060_v11, %v333_v40  ;;  %10560 = vtanh.f32 %v546_v42  ;;  %v451_v55 = vmul.f32 %v419_v46, %v11172_v37 }
  0x2b   : > { %10128 = vmatpush3.bf16.msra.mxu1 %v10145_v0  ;;  %9600 = vmatpush3.bf16.msra.mxu0 %v10145_v0  ;;  %v500_v54 = vmul.f32 0.044715, %v468_v45  ;;  %v452_v56 = vmul.f32 %v420_v47, %v11175_v38  ;;  %v11194_v58 = vadd.f32 %v11064_v12, %v369_v52  ;;  %v353_v60 = vmul.f32 %v11060_v11, %v316_v48 }
  0x2c   : > { %9633 = vmatprep.subr.bf16.mxu1 %v11163_v29  ;;  %v531_v57 = vadd.f32 %v499_v51, %v11153_v22  ;;  %v11197_v59 = vadd.f32 %v11064_v12, %v370_v53  ;;  %v483_v62 = vmul.f32 0.044715, %v451_v55  ;;  %v354_v0 = vmul.f32 %v11060_v11, %v317_v50  ;;  %v334_v55 = vld [vmem:[%s11047_s17 + $0xc0] sm:$0xff] }
  0x2d   : > { %v532_v61 = vadd.f32 %v500_v54, %v11156_v23  ;;  %v484_v63 = vmul.f32 0.044715, %v452_v56  ;;  %v10547_v1 = vpop.eup %10546  ;;  %v437_v4 = vmul.f32 %v11194_v58, %v11194_v58  ;;  %v11207_v8 = vadd.f32 %v11064_v12, %v353_v60 }
  0x2e   : > { %v563_v2 = vmul.f32 0.7978846, %v531_v57  ;;  %v438_v7 = vmul.f32 %v11197_v59, %v11197_v59  ;;  %v10549_v9 = vpop.eup %10548  ;;  %v623_v10 = vadd.f32 1.0, %v10547_v1  ;;  %v515_v14 = vadd.f32 %v483_v62, %v11172_v37 }
  0x2f   : > { %v564_v13 = vmul.f32 0.7978846, %v532_v61  ;;  %v516_v15 = vadd.f32 %v484_v63, %v11175_v38  ;;  %v10551_v16 = vpop.eup %10550  ;;  %v624_v17 = vadd.f32 1.0, %v10549_v9  ;;  %v469_v18 = vmul.f32 %v437_v4, %v11194_v58  ;;  %v335_v61 = vld [vmem:[%s11047_s17 + $0xc8] sm:$0xff] }
  0x30   : > { %10562 = vtanh.f32 %v563_v2  ;;  %v470_v19 = vmul.f32 %v438_v7, %v11197_v59  ;;  %v10553_v20 = vpop.eup %10552  ;;  %v655_v21 = vmul.f32 0.5, %v623_v10  ;;  %v607_v24 = vadd.f32 1.0, %v10551_v16 }
  0x31   : > { %10564 = vtanh.f32 %v564_v13  ;;  %v547_v25 = vmul.f32 0.7978846, %v515_v14  ;;  %v10555_v33 = vpop.eup %10554  ;;  %v656_v34 = vmul.f32 0.5, %v624_v17  ;;  %v608_v35 = vadd.f32 1.0, %v10553_v20  ;;  %v318_v14 = vld [vmem:[%s11047_s17 + $0x40] sm:$0xff] }
  0x32   : > { %v548_v36 = vmul.f32 0.7978846, %v516_v15  ;;  %v501_v39 = vmul.f32 0.044715, %v469_v18  ;;  %v10557_v40 = vpop.eup %10556  ;;  %v687_v41 = vmul.f32 %v655_v21, %v11082_v26  ;;  %v639_v42 = vmul.f32 0.5, %v607_v24 }
  0x33   : > { %v625_v43 = vadd.f32 1.0, %v10555_v33  ;;  %10566 = vtanh.f32 %v547_v25  ;;  %v10559_v45 = vpop.eup %10558  ;;  %v688_v46 = vmul.f32 %v656_v34, %v11085_v27  ;;  %v640_v47 = vmul.f32 0.5, %v608_v35  ;;  %v319_v33 = vld [vmem:[%s11047_s17 + $0x48] sm:$0xff] }
  0x34   : > { %v626_v48 = vadd.f32 1.0, %v10557_v40  ;;  %10568 = vtanh.f32 %v548_v36  ;;  %v10561_v50 = vpop.eup %10560  ;;  %v671_v51 = vmul.f32 %v639_v42, %v11088_v28  ;;  %v609_v53 = vadd.f32 1.0, %v10559_v45 }
  0x35   : > { %v657_v52 = vmul.f32 0.5, %v625_v43  ;;  %v502_v54 = vmul.f32 0.044715, %v470_v19  ;;  %v11217_v56 = vpack.c.bf16 %v688_v46, %v687_v41  ;;  %v672_v26 = vmul.f32 %v640_v47, %v11092_v30  ;;  %v10147_v30 = vld [vmem:[%s15289_s4 + $0x48] sm:$0xff]  }
  0x36   : > { %v658_v57 = vmul.f32 0.5, %v626_v48  ;;  %v610_v60 = vadd.f32 1.0, %v10561_v50  ;;  %v641_v62 = vmul.f32 0.5, %v609_v53  ;;  %v533_v63 = vadd.f32 %v501_v39, %v11194_v58 }
  0x37   : > { %v689_v27 = vmul.f32 %v657_v52, %v11095_v31  ;;  %v534_v1 = vadd.f32 %v502_v54, %v11197_v59  ;;  %9617 = vmatprep.mubr.bf16.mxu1 %v11217_v56  ;;  %v11225_v28 = vpack.c.bf16 %v672_v26, %v671_v51  ;;  %v11232_v7 = vadd.f32 %v11064_v12, %v354_v0  ;;  %v336_v51 = vld [vmem:[%s11047_s17 + $0xd0] sm:$0xff] }
  0x38   : > { %v690_v2 = vmul.f32 %v658_v57, %v11098_v32  ;;  %v642_v4 = vmul.f32 0.5, %v610_v60  ;;  %v673_v31 = vmul.f32 %v641_v62, %v11120_v44  ;;  %v565_v9 = vmul.f32 0.7978846, %v533_v63 }
  0x39   : > { %v566_v10 = vmul.f32 0.7978846, %v534_v1  ;;  %v421_v13 = vmul.f32 %v11207_v8, %v11207_v8  ;;  %9601 = vmatprep.mubr.bf16.mxu0 %v11225_v28  ;;  %v422_v0 = vmul.f32 %v11232_v7, %v11232_v7  ;;  %v371_v17 = vmul.f32 %v11060_v11, %v334_v55  ;;  %v10149_v55 = vld [vmem:[%s15289_s4 + $0x58] sm:$0xff]  }
  0x3a   : > { %v10563_v15 = vpop.eup %10562  ;;  %v11239_v32 = vpack.c.bf16 %v690_v2, %v689_v27  ;;  %v674_v16 = vmul.f32 %v642_v4, %v11129_v49  ;;  %10570 = vtanh.f32 %v565_v9  ;;  %v372_v20 = vmul.f32 %v11060_v11, %v335_v61  ;;  %v10148_v49 = vld [vmem:[%s15289_s4 + $0x50] sm:$0xff]  }
  0x3b   : > { %v10565_v44 = vpop.eup %10564  ;;  %v627_v18 = vadd.f32 1.0, %v10563_v15  ;;  %v453_v19 = vmul.f32 %v421_v13, %v11207_v8  ;;  %10572 = vtanh.f32 %v566_v10  ;;  %v454_v25 = vmul.f32 %v422_v0, %v11232_v7  ;;  %v10150_v10 = vld [vmem:[%s15289_s4 + $0x60] sm:$0xff]  }
  0x3c   : > { %9618 = vmatmul.mubr.bf16.vlgmr.msra.gmra.mrb[0].mxu1 %v11239_v32  ;;  %v11248_v21 = vpack.c.bf16 %v674_v16, %v673_v31  ;;  %v628_v24 = vadd.f32 1.0, %v10565_v44  ;;  %v11257_v39 = vadd.f32 %v11064_v12, %v371_v17  ;;  %v11260_v40 = vadd.f32 %v11064_v12, %v372_v20  ;;  %v320_v20 = vld [vmem:[%s11047_s17 + $0x50] sm:$0xff] }
  0x3d   : > { %v10567_v34 = vpop.eup %10566  ;;  %9634 = vmatpush3.bf16.msra.mxu1 %v11163_v29  ;;  %v659_v35 = vmul.f32 0.5, %v627_v18  ;;  %v485_v36 = vmul.f32 0.044715, %v453_v19  ;;  %v486_v45 = vmul.f32 0.044715, %v454_v25  ;;  %v355_v46 = vmul.f32 %v11060_v11, %v318_v14 }
  0x3e   : > { %v10569_v41 = vpop.eup %10568  ;;  %9602 = vmatmul.mubr.bf16.vlgmr.msra.gmra.mrb[0].mxu0 %v11248_v21  ;;  %9635 = vmatprep.subr.bf16.mxu1 %v10147_v30  ;;  %v660_v42 = vmul.f32 0.5, %v628_v24  ;;  %v611_v43 = vadd.f32 1.0, %v10567_v34  ;;  %v439_v50 = vmul.f32 %v11257_v39, %v11257_v39  ;;  %v440_v26 = vmul.f32 %v11260_v40, %v11260_v40  ;;  %v321_v34 = vld [vmem:[%s11047_s17 + $0x58] sm:$0xff] }
  0x3f   : > { %v691_v29 = vmul.f32 %v659_v35, %v11153_v22  ;;  %v612_v47 = vadd.f32 1.0, %v10569_v41  ;;  %v517_v48 = vadd.f32 %v485_v36, %v11207_v8  ;;  %v518_v54 = vadd.f32 %v486_v45, %v11232_v7  ;;  %v337_v22 = vld [vmem:[%s11047_s17 + $0xd8] sm:$0xff]  ;;  %v338_v35 = vld [vmem:[%s11047_s17 + $0xe0] sm:$0xff]  ;;  %v10151_v45 = vld [vmem:[%s15289_s4 + $0x68] sm:$0xff]  }
  0x40   : > { %v692_v52 = vmul.f32 %v660_v42, %v11156_v23  ;;  %v643_v53 = vmul.f32 0.5, %v611_v43  ;;  %v471_v61 = vmul.f32 %v439_v50, %v11257_v39  ;;  %v356_v27 = vmul.f32 %v11060_v11, %v319_v33 }
  0x41   : > { %9636 = vmatpush3.bf16.msra.mxu1 %v10147_v30  ;;  %v644_v57 = vmul.f32 0.5, %v612_v47  ;;  %v549_v60 = vmul.f32 0.7978846, %v517_v48  ;;  %v550_v63 = vmul.f32 0.7978846, %v518_v54  ;;  %v472_v1 = vmul.f32 %v440_v26, %v11260_v40 }
  0x42   : > { %v11279_v62 = vpack.c.bf16 %v692_v52, %v691_v29  ;;  %v675_v23 = vmul.f32 %v643_v53, %v11172_v37  ;;  %9637 = vmatprep.subr.bf16.mxu1 %v10148_v49  ;;  %v503_v4 = vmul.f32 0.044715, %v471_v61  ;;  %v11285_v30 = vadd.f32 %v11064_v12, %v355_v46  ;;  %v10152_v61 = vld [vmem:[%s15289_s4 + $0x70] sm:$0xff]  }
  0x43   : > { %v676_v2 = vmul.f32 %v644_v57, %v11175_v38  ;;  %10574 = vtanh.f32 %v549_v60  ;;  %v504_v31 = vmul.f32 0.044715, %v472_v1  ;;  %v11289_v9 = vadd.f32 %v11064_v12, %v356_v27  ;;  %v339_v60 = vld [vmem:[%s11047_s17 + $0xe8] sm:$0xff] }
  0x44   : > { %9621 = vmatprep.mubr.bf16.mxu1 %v11279_v62  ;;  %10576 = vtanh.f32 %v550_v63  ;;  %v373_v37 = vmul.f32 %v11060_v11, %v336_v51  ;;  %v10571_v38 = vpop.eup %10570  ;;  %v535_v14 = vadd.f32 %v503_v4, %v11257_v39  ;;  %v423_v15 = vmul.f32 %v11285_v30, %v11285_v30 }
  0x45   : > { %v11295_v13 = vpack.c.bf16 %v676_v2, %v675_v23  ;;  %9638 = vmatpush3.bf16.msra.mxu1 %v10148_v49  ;;  %v374_v16 = vmul.f32 %v11060_v11, %v337_v22  ;;  %v10573_v0 = vpop.eup %10572  ;;  %v629_v17 = vadd.f32 1.0, %v10571_v38  ;;  %v536_v44 = vadd.f32 %v504_v31, %v11260_v40 }
  0x46   : > { %9639 = vmatprep.subr.bf16.mxu1 %v10149_v55  ;;  %v424_v18 = vmul.f32 %v11289_v9, %v11289_v9  ;;  %v11305_v19 = vadd.f32 %v11064_v12, %v373_v37  ;;  %v630_v24 = vadd.f32 1.0, %v10573_v0  ;;  %v567_v49 = vmul.f32 0.7978846, %v535_v14 }
  0x47   : > { %9605 = vmatprep.mubr.bf16.mxu0 %v11295_v13  ;;  %v455_v25 = vmul.f32 %v423_v15, %v11285_v30  ;;  %v11311_v33 = vadd.f32 %v11064_v12, %v374_v16  ;;  %v661_v36 = vmul.f32 0.5, %v629_v17  ;;  %v568_v41 = vmul.f32 0.7978846, %v536_v44 }
  0x48   : > { %v456_v42 = vmul.f32 %v424_v18, %v11289_v9  ;;  %v441_v43 = vmul.f32 %v11305_v19, %v11305_v19  ;;  %v662_v46 = vmul.f32 0.5, %v630_v24  ;;  %10578 = vtanh.f32 %v567_v49  ;;  %v10153_v18 = vld [vmem:[%s15289_s4 + $0x78] sm:$0xff]  }
  0x49   : > { %9640 = vmatpush3.bf16.msra.mxu1 %v10149_v55  ;;  %v487_v29 = vmul.f32 0.044715, %v455_v25  ;;  %v442_v47 = vmul.f32 %v11311_v33, %v11311_v33  ;;  %v693_v48 = vmul.f32 %v661_v36, %v11194_v58  ;;  %10580 = vtanh.f32 %v568_v41 }
  0x4a   : > { %v488_v50 = vmul.f32 0.044715, %v456_v42  ;;  %v473_v51 = vmul.f32 %v441_v43, %v11305_v19  ;;  %9641 = vmatprep.subr.bf16.mxu1 %v10150_v10  ;;  %v694_v52 = vmul.f32 %v662_v46, %v11197_v59  ;;  %v357_v55 = vmul.f32 %v11060_v11, %v320_v20 }
  0x4b   : > { %v519_v53 = vadd.f32 %v487_v29, %v11285_v30  ;;  %v474_v54 = vmul.f32 %v442_v47, %v11311_v33  ;;  %v358_v57 = vmul.f32 %v11060_v11, %v321_v34  ;;  %v375_v58 = vmul.f32 %v11060_v11, %v338_v35  ;;  %v323_v34 = vld [vmem:[%s11047_s17 + $0x68] sm:$0xff] }
  0x4c   : > { %v520_v26 = vadd.f32 %v488_v50, %v11289_v9  ;;  %v505_v22 = vmul.f32 0.044715, %v473_v51  ;;  %v11336_v59 = vpack.c.bf16 %v694_v52, %v693_v48  ;;  %v11339_v1 = vadd.f32 %v11064_v12, %v357_v55 }
  0x4d   : > { %v10575_v27 = vpop.eup %10574  ;;  %v551_v23 = vmul.f32 0.7978846, %v519_v53  ;;  %v506_v63 = vmul.f32 0.044715, %v474_v54  ;;  %9642 = vmatpush3.bf16.msra.mxu1 %v10150_v10  ;;  %v11343_v38 = vadd.f32 %v11064_v12, %v358_v57  ;;  %v322_v10 = vld [vmem:[%s11047_s17 + $0x60] sm:$0xff]  ;;  %v376_v25 = vmul.f32 %v11060_v11, %v339_v60 }
  0x4e   : > { %v10577_v2 = vpop.eup %10576  ;;  %v613_v4 = vadd.f32 1.0, %v10575_v27  ;;  %v552_v31 = vmul.f32 0.7978846, %v520_v26  ;;  %v537_v37 = vadd.f32 %v505_v22, %v11305_v19  ;;  %9643 = vmatprep.subr.bf16.mxu1 %v10151_v45  ;;  %9622 = vmatmul.mubr.bf16.gmra.mrb[4].mxu1 %v11336_v59  ;;  %v425_v16 = vmul.f32 %v11339_v1, %v11339_v1 }
  0x4f   : > { %v614_v14 = vadd.f32 1.0, %v10577_v2  ;;  %10582 = vtanh.f32 %v551_v23  ;;  %v538_v15 = vadd.f32 %v506_v63, %v11311_v33  ;;  %v426_v44 = vmul.f32 %v11343_v38, %v11343_v38  ;;  %v340_v23 = vld [vmem:[%s11047_s17 + $0xf0] sm:$0xff] }
  0x50   : > { %v645_v0 = vmul.f32 0.5, %v613_v4  ;;  %10584 = vtanh.f32 %v552_v31  ;;  %v569_v17 = vmul.f32 0.7978846, %v537_v37  ;;  %v457_v49 = vmul.f32 %v425_v16, %v11339_v1 }
  0x51   : > { %v646_v20 = vmul.f32 0.5, %v614_v14  ;;  %v570_v24 = vmul.f32 0.7978846, %v538_v15  ;;  %9644 = vmatpush3.bf16.msra.mxu1 %v10151_v45  ;;  %v458_v36 = vmul.f32 %v426_v44, %v11343_v38  ;;  %v11361_v41 = vadd.f32 %v11064_v12, %v375_v58 }
  0x52   : > { %v677_v35 = vmul.f32 %v645_v0, %v11207_v8  ;;  %10586 = vtanh.f32 %v569_v17  ;;  %9645 = vmatprep.subr.bf16.mxu1 %v10152_v61  ;;  %v10579_v42 = vpop.eup %10578  ;;  %v489_v46 = vmul.f32 0.044715, %v457_v49  ;;  %v11365_v29 = vadd.f32 %v11064_v12, %v376_v25 }
  0x53   : > { %v678_v43 = vmul.f32 %v646_v20, %v11232_v7  ;;  %10588 = vtanh.f32 %v570_v24  ;;  %v10581_v45 = vpop.eup %10580  ;;  %v631_v47 = vadd.f32 1.0, %v10579_v42  ;;  %v490_v48 = vmul.f32 0.044715, %v458_v36  ;;  %v341_v24 = vld [vmem:[%s11047_s17 + $0xf8] sm:$0xff]  ;;  %v324_v36 = vld [vmem:[%s11047_s17 + $0x70] sm:$0xff] }
  0x54   : > { %v443_v8 = vmul.f32 %v11361_v41, %v11361_v41  ;;  %v359_v50 = vmul.f32 %v11060_v11, %v322_v10  ;;  %v632_v52 = vadd.f32 1.0, %v10581_v45  ;;  %v521_v53 = vadd.f32 %v489_v46, %v11339_v1 }
  0x55   : > { %v11370_v51 = vpack.c.bf16 %v678_v43, %v677_v35  ;;  %v444_v7 = vmul.f32 %v11365_v29, %v11365_v29  ;;  %9646 = vmatpush3.bf16.msra.mxu1 %v10152_v61  ;;  %v663_v54 = vmul.f32 0.5, %v631_v47  ;;  %v522_v55 = vadd.f32 %v490_v48, %v11343_v38 }
  0x56   : > { %v475_v26 = vmul.f32 %v443_v8, %v11361_v41  ;;  %v360_v22 = vmul.f32 %v11060_v11, %v323_v34  ;;  %9647 = vmatprep.subr.bf16.mxu1 %v10153_v18  ;;  %v664_v57 = vmul.f32 0.5, %v632_v52  ;;  %v553_v60 = vmul.f32 0.7978846, %v521_v53  ;;  %v325_v52 = vld [vmem:[%s11047_s17 + $0x78] sm:$0xff] }
  0x57   : > { %9606 = vmatmul.mubr.bf16.gmra.mrb[4].mxu0 %v11370_v51  ;;  %v476_v58 = vmul.f32 %v444_v7, %v11365_v29  ;;  %v11381_v27 = vadd.f32 %v11064_v12, %v359_v50  ;;  %v695_v61 = vmul.f32 %v663_v54, %v11257_v39  ;;  %v554_v63 = vmul.f32 0.7978846, %v522_v55 }
  0x58   : > { %v507_v2 = vmul.f32 0.044715, %v475_v26  ;;  %v11386_v4 = vadd.f32 %v11064_v12, %v360_v22  ;;  %v696_v37 = vmul.f32 %v664_v57, %v11260_v40  ;;  %10590 = vtanh.f32 %v553_v60 }
  0x59   : > { %v10583_v31 = vpop.eup %10582  ;;  %v508_v14 = vmul.f32 0.044715, %v476_v58  ;;  %v427_v15 = vmul.f32 %v11381_v27, %v11381_v27  ;;  %9648 = vmatpush3.bf16.msra.mxu1 %v10153_v18  ;;  %10592 = vtanh.f32 %v554_v63  ;;  %v377_v35 = vmul.f32 %v11060_v11, %v340_v23 }
  0x5a   : > { %v10585_v16 = vpop.eup %10584  ;;  %v615_v10 = vadd.f32 1.0, %v10583_v31  ;;  %v539_v39 = vadd.f32 %v507_v2, %v11361_v41  ;;  %v428_v0 = vmul.f32 %v11386_v4, %v11386_v4  ;;  %v11394_v17 = vpack.c.bf16 %v696_v37, %v695_v61 }
  0x5b   : > { %v616_v44 = vadd.f32 1.0, %v10585_v16  ;;  %v540_v40 = vadd.f32 %v508_v14, %v11365_v29  ;;  %v459_v20 = vmul.f32 %v427_v15, %v11381_v27  ;;  %v378_v22 = vmul.f32 %v11060_v11, %v341_v24 }
  0x5c   : > { %v10587_v49 = vpop.eup %10586  ;;  %v647_v18 = vmul.f32 0.5, %v615_v10  ;;  %v571_v25 = vmul.f32 0.7978846, %v539_v39  ;;  %v460_v34 = vmul.f32 %v428_v0, %v11386_v4  ;;  %9625 = vmatprep.mubr.bf16.mxu1 %v11394_v17  ;;  %v11410_v57 = vadd.f32 %v11064_v12, %v377_v35 }
  0x5d   : > { %v10589_v42 = vpop.eup %10588  ;;  %v648_v43 = vmul.f32 0.5, %v616_v44  ;;  %v633_v46 = vadd.f32 1.0, %v10587_v49  ;;  %v572_v45 = vmul.f32 0.7978846, %v540_v40  ;;  %v491_v47 = vmul.f32 0.044715, %v459_v20 }
  0x5e   : > { %v679_v48 = vmul.f32 %v647_v18, %v11285_v30  ;;  %v634_v8 = vadd.f32 1.0, %v10589_v42  ;;  %10594 = vtanh.f32 %v571_v25  ;;  %v492_v50 = vmul.f32 0.044715, %v460_v34 }
  0x5f   : > { %v680_v53 = vmul.f32 %v648_v43, %v11289_v9  ;;  %v665_v7 = vmul.f32 0.5, %v633_v46  ;;  %10596 = vtanh.f32 %v572_v45  ;;  %v523_v54 = vadd.f32 %v491_v47, %v11381_v27 }
  0x60   : > { %v666_v55 = vmul.f32 0.5, %v634_v8  ;;  %v524_v26 = vadd.f32 %v492_v50, %v11386_v4  ;;  %v361_v23 = vmul.f32 %v11060_v11, %v324_v36  ;;  %v11418_v63 = vadd.f32 %v11064_v12, %v378_v22 }
  0x61   : > { %v11412_v60 = vpack.c.bf16 %v680_v53, %v679_v48  ;;  %v697_v30 = vmul.f32 %v665_v7, %v11305_v19  ;;  %v555_v58 = vmul.f32 0.7978846, %v523_v54  ;;  %v445_v2 = vmul.f32 %v11410_v57, %v11410_v57 }
  0x62   : > { %v698_v9 = vmul.f32 %v666_v55, %v11311_v33  ;;  %v556_v61 = vmul.f32 0.7978846, %v524_v26  ;;  %v10591_v31 = vpop.eup %10590  ;;  %v362_v37 = vmul.f32 %v11060_v11, %v325_v52  ;;  %v11425_v19 = vadd.f32 %v11064_v12, %v361_v23 }
  0x63   : > { %9609 = vmatprep.mubr.bf16.mxu0 %v11412_v60  ;;  %10598 = vtanh.f32 %v555_v58  ;;  %v10593_v14 = vpop.eup %10592  ;;  %v617_v33 = vadd.f32 1.0, %v10591_v31  ;;  %v446_v16 = vmul.f32 %v11418_v63, %v11418_v63  ;;  %v477_v39 = vmul.f32 %v445_v2, %v11410_v57 }
  0x64   : > { %v11427_v15 = vpack.c.bf16 %v698_v9, %v697_v30  ;;  %10600 = vtanh.f32 %v556_v61  ;;  %v618_v10 = vadd.f32 1.0, %v10593_v14  ;;  %v11433_v0 = vadd.f32 %v11064_v12, %v362_v37 }
  0x65   : > { %v429_v11 = vmul.f32 %v11425_v19, %v11425_v19  ;;  %v649_v44 = vmul.f32 0.5, %v617_v33  ;;  %v478_v40 = vmul.f32 %v446_v16, %v11418_v63  ;;  %v509_v24 = vmul.f32 0.044715, %v477_v39 }
  0x66   : > { %9626 = vmatmul.mubr.bf16.gmra.mrb[8].mxu1 %v11427_v15  ;;  %v650_v20 = vmul.f32 0.5, %v618_v10  ;;  %v430_v49 = vmul.f32 %v11433_v0, %v11433_v0 }
  0x67   : > { %v461_v18 = vmul.f32 %v429_v11, %v11425_v19  ;;  %v681_v34 = vmul.f32 %v649_v44, %v11339_v1  ;;  %v510_v12 = vmul.f32 0.044715, %v478_v40  ;;  %v541_v43 = vadd.f32 %v509_v24, %v11410_v57 }
  0x68   : > { %v10595_v25 = vpop.eup %10594  ;;  %v682_v36 = vmul.f32 %v650_v20, %v11343_v38  ;;  %v462_v46 = vmul.f32 %v430_v49, %v11433_v0 }
  0x69   : > { %v10597_v35 = vpop.eup %10596  ;;  %v635_v42 = vadd.f32 1.0, %v10595_v25  ;;  %v542_v47 = vadd.f32 %v510_v12, %v11418_v63  ;;  %v493_v48 = vmul.f32 0.044715, %v461_v18  ;;  %v573_v52 = vmul.f32 0.7978846, %v541_v43 }
  0x6a   : > { %v636_v45 = vadd.f32 1.0, %v10597_v35  ;;  %v11447_v8 = vpack.c.bf16 %v682_v36, %v681_v34  ;;  %v494_v53 = vmul.f32 0.044715, %v462_v46 }
  0x6b   : > { %v667_v50 = vmul.f32 0.5, %v635_v42  ;;  %v574_v1 = vmul.f32 0.7978846, %v542_v47  ;;  %v525_v54 = vadd.f32 %v493_v48, %v11425_v19  ;;  %10602 = vtanh.f32 %v573_v52 }
  0x6c   : > { %v668_v7 = vmul.f32 0.5, %v636_v45  ;;  %9610 = vmatmul.mubr.bf16.gmra.mrb[8].mxu0 %v11447_v8  ;;  %v526_v26 = vadd.f32 %v494_v53, %v11433_v0  ;;  %v10156_v53 = vld [vmem:[%s15290_s5 + $0x104] ss:$8 sps:$4 sm:$0xff]  }
  0x6d   : > { %v10599_v55 = vpop.eup %10598  ;;  %v699_v38 = vmul.f32 %v667_v50, %v11361_v41  ;;  %10604 = vtanh.f32 %v574_v1  ;;  %v557_v23 = vmul.f32 0.7978846, %v525_v54 }
  0x6e   : > { %v10601_v22 = vpop.eup %10600  ;;  %v700_v30 = vmul.f32 %v668_v7, %v11365_v29  ;;  %v619_v58 = vadd.f32 1.0, %v10599_v55  ;;  %v558_v61 = vmul.f32 0.7978846, %v526_v26  ;;  %v10159_v7 = vld [vmem:[%s15290_s5 + $0x4] ss:$8 sps:$4 sm:$0xff]  }
  0x6f   : > { %v620_v9 = vadd.f32 1.0, %v10601_v22  ;;  %10606 = vtanh.f32 %v557_v23 }
  0x70   : > { %v11454_v2 = vpack.c.bf16 %v700_v30, %v699_v38  ;;  %v651_v31 = vmul.f32 0.5, %v619_v58  ;;  %10608 = vtanh.f32 %v558_v61 }
  0x71   : > { %v652_v37 = vmul.f32 0.5, %v620_v9 }
  0x72   : > { %9629 = vmatprep.mubr.bf16.mxu1 %v11454_v2  ;;  %v683_v41 = vmul.f32 %v651_v31, %v11381_v27 }
  0x73   : > { %v684_v14 = vmul.f32 %v652_v37, %v11386_v4 }
  0x75   : > { %v11459_v33 = vpack.c.bf16 %v684_v14, %v683_v41  ;;  %v10603_v29 = vpop.eup %10602 }
  0x76   : > { %v637_v10 = vadd.f32 1.0, %v10603_v29 }
  0x77   : > { %9613 = vmatprep.mubr.bf16.mxu0 %v11459_v33  ;;  %v10605_v16 = vpop.eup %10604 }
  0x78   : > { %v638_v39 = vadd.f32 1.0, %v10605_v16  ;;  %v669_v44 = vmul.f32 0.5, %v637_v10 }
  0x79   : > { %v10607_v11 = vpop.eup %10606 }
  0x7a   : > { %v10609_v40 = vpop.eup %10608  ;;  %v670_v20 = vmul.f32 0.5, %v638_v39  ;;  %v621_v24 = vadd.f32 1.0, %v10607_v11  ;;  %v701_v49 = vmul.f32 %v669_v44, %v11410_v57 }
  0x7b   : > { %v622_v18 = vadd.f32 1.0, %v10609_v40 }
  0x7c   : > { %v702_v27 = vmul.f32 %v670_v20, %v11418_v63  ;;  %v653_v25 = vmul.f32 0.5, %v621_v24 }
  0x7d   : > { %v654_v4 = vmul.f32 0.5, %v622_v18 }
  0x7e   : > { %v11464_v34 = vpack.c.bf16 %v702_v27, %v701_v49  ;;  %v685_v12 = vmul.f32 %v653_v25, %v11425_v19 }
  0x7f   : > { %v686_v35 = vmul.f32 %v654_v4, %v11433_v0 }
  0x80   : > { %9630 = vmatmul.mubr.bf16.gmra.mrb[12].mxu1 %v11464_v34 }
  0x81   : > { %v11469_v36 = vpack.c.bf16 %v686_v35, %v685_v12  ;;  %9649 = vmatprep.mubr.bf16.mxu1 %v11225_v28 }
  0x83   : > { %9614 = vmatmul.mubr.bf16.gmra.mrb[12].mxu0 %v11469_v36 }
  0x84   : > { %1459 = vmatprep.mubr.bf16.mxu0 %v10156_v53  ;;  %v10162_v53 = vld [vmem:[%s15290_s5 + $0x14] ss:$8 sps:$4 sm:$0xff]  }
  0x88   : > { %9650 = vmatmul.mubr.bf16.vlgmr.msra.gmra.mrb[16].mxu1 %v11248_v21 }
  0x89   : > { %9653 = vmatprep.mubr.bf16.mxu1 %v11295_v13 }
  0x90   : > { %9654 = vmatmul.mubr.bf16.gmra.mrb[20].mxu1 %v11370_v51 }
  0x91   : > { %9657 = vmatprep.mubr.bf16.mxu1 %v11412_v60 }
  0x98   : > { %9658 = vmatmul.mubr.bf16.gmra.mrb[24].mxu1 %v11447_v8 }
  0x99   : > { %9661 = vmatprep.mubr.bf16.mxu1 %v11459_v33 }
  0xa0   : > { %9662 = vmatmul.mubr.bf16.gmra.mrb[28].mxu1 %v11469_v36 }
  0xa1   : > { %9665 = vmatprep.mubr.bf16.mxu1 %v11217_v56 }
  0xa8   : > { %9666 = vmatmul.mubr.bf16.gmra.mrb[32].mxu1 %v11239_v32 }
  0xa9   : > { %9669 = vmatprep.mubr.bf16.mxu1 %v11279_v62 }
  0xb0   : > { %9670 = vmatmul.mubr.bf16.gmra.mrb[36].mxu1 %v11336_v59 }
  0xb1   : > { %9673 = vmatprep.mubr.bf16.mxu1 %v11394_v17 }
  0xb8   : > { %9674 = vmatmul.mubr.bf16.gmra.mrb[40].mxu1 %v11427_v15 }
  0xb9   : > { %9677 = vmatprep.mubr.bf16.mxu1 %v11454_v2 }
  0xc0   : > { %9678 = vmatmul.mubr.bf16.gmra.mrb[44].mxu1 %v11464_v34 }
  0xc1   : > { %1780 = vmatprep.mubr.bf16.mxu1 %v10159_v7 }
 0x10f   : > { %v9619_v57 = vpop.f32.mrb[0].mxu1 }
 0x110   : > { %v881_v63 = vpop.f32.mrb[1].mxu1 }
 0x111   : > { %v9603_v19 = vpop.f32.mrb[0].mxu0  ;;  %v9620_v0 = vpop.f32.mrb[2].mxu1 }
 0x112   : > { %v817_v42 = vpop.f32.mrb[1].mxu0  ;;  %v985_v43 = vpack.c.bf16 %v9620_v0, %v9619_v57  ;;  %v884_v46 = vpop.f32.mrb[3].mxu1 }
 0x113   : > { %v9604_v45 = vpop.f32.mrb[2].mxu0  ;;  %v984_v47 = vpack.c.bf16 %v884_v46, %v881_v63 }
 0x114   : > { %v977_v48 = vpack.c.bf16 %v9604_v45, %v9603_v19  ;;  %v820_v50 = vpop.f32.mrb[3].mxu0 }
 0x115   : > { %v976_v52 = vpack.c.bf16 %v820_v50, %v817_v42  ;;  %8697 = vmatprep.subr.bf16.mxu1 %v984_v47 }
 0x117   : > { %8698 = vmatpush3.bf16.msra.mxu1 %v976_v52  ;;  %v10157_v52 = vld [vmem:[%s15290_s5] ss:$8 sps:$4 sm:$0xff]  }
 0x118   : > { %8699 = vmatprep.subr.bf16.mxu1 %v985_v43 }
 0x11b   : > { %8700 = vmatpush3.bf16.msra.mxu1 %v977_v48 }
 0x121   : > { %v9623_v1 = vpop.f32.mrb[4].mxu1 }
 0x122   : > { %v897_v54 = vpop.f32.mrb[5].mxu1 }
 0x123   : > { %v9624_v55 = vpop.f32.mrb[6].mxu1 }
 0x124   : > { %v987_v38 = vpack.c.bf16 %v9624_v55, %v9623_v1  ;;  %v900_v26 = vpop.f32.mrb[7].mxu1 }
 0x125   : > { %v986_v22 = vpack.c.bf16 %v900_v26, %v897_v54 }
 0x127   : > { %8701 = vmatprep.subr.bf16.mxu1 %v986_v22  ;;  %v10165_v22 = vld [vmem:[%s15290_s5 + $0x10] ss:$8 sps:$4 sm:$0xff]  }
 0x12a   : > { %v9607_v30 = vpop.f32.mrb[4].mxu0 }
 0x12b   : > { %v833_v58 = vpop.f32.mrb[5].mxu0 }
 0x12c   : > { %v9608_v23 = vpop.f32.mrb[6].mxu0 }
 0x12d   : > { %v979_v9 = vpack.c.bf16 %v9608_v23, %v9607_v30  ;;  %v836_v61 = vpop.f32.mrb[7].mxu0  ;;  %v10168_v30 = vld [vmem:[%s15290_s5 + $0x24] ss:$8 sps:$4 sm:$0xff]  }
 0x12e   : > { %v978_v31 = vpack.c.bf16 %v836_v61, %v833_v58 }
 0x130   : > { %8702 = vmatpush3.bf16.msra.mxu1 %v978_v31 }
 0x131   : > { %8703 = vmatprep.subr.bf16.mxu1 %v987_v38 }
 0x134   : > { %8704 = vmatpush3.bf16.msra.mxu1 %v979_v9 }
 0x139   : > { %v9627_v37 = vpop.f32.mrb[8].mxu1 }
 0x13a   : > { %v913_v41 = vpop.f32.mrb[9].mxu1 }
 0x13b   : > { %v9628_v14 = vpop.f32.mrb[10].mxu1 }
 0x13c   : > { %v989_v29 = vpack.c.bf16 %v9628_v14, %v9627_v37  ;;  %v916_v16 = vpop.f32.mrb[11].mxu1  ;;  %v10174_v14 = vld [vmem:[%s15290_s5 + $0x34] ss:$8 sps:$4 sm:$0xff]  }
 0x13d   : > { %v988_v10 = vpack.c.bf16 %v916_v16, %v913_v41  ;;  %v10171_v41 = vld [vmem:[%s15290_s5 + $0x20] ss:$8 sps:$4 sm:$0xff]  }
 0x13f   : > { %8705 = vmatprep.subr.bf16.mxu1 %v988_v10  ;;  %v9611_v39 = vpop.f32.mrb[8].mxu0 }
 0x140   : > { %v849_v11 = vpop.f32.mrb[9].mxu0 }
 0x141   : > { %v9612_v44 = vpop.f32.mrb[10].mxu0 }
 0x142   : > { %v981_v40 = vpack.c.bf16 %v9612_v44, %v9611_v39  ;;  %v852_v20 = vpop.f32.mrb[11].mxu0 }
 0x143   : > { %v980_v24 = vpack.c.bf16 %v852_v20, %v849_v11  ;;  %v10180_v20 = vld [vmem:[%s15290_s5 + $0x44] ss:$8 sps:$4 sm:$0xff]  }
 0x145   : > { %8706 = vmatpush3.bf16.msra.mxu1 %v980_v24 }
 0x146   : > { %8707 = vmatprep.subr.bf16.mxu1 %v989_v29 }
 0x149   : > { %8708 = vmatpush3.bf16.msra.mxu1 %v981_v40  ;;  %v10177_v40 = vld [vmem:[%s15290_s5 + $0x30] ss:$8 sps:$4 sm:$0xff]  }
 0x153   : > { %v9631_v49 = vpop.f32.mrb[12].mxu1 }
 0x154   : > { %v929_v18 = vpop.f32.mrb[13].mxu1 }
 0x155   : > { %v9632_v27 = vpop.f32.mrb[14].mxu1 }
 0x156   : > { %v9615_v25 = vpop.f32.mrb[12].mxu0  ;;  %v991_v4 = vpack.c.bf16 %v9632_v27, %v9631_v49  ;;  %v932_v12 = vpop.f32.mrb[15].mxu1 }
 0x157   : > { %v865_v35 = vpop.f32.mrb[13].mxu0  ;;  %v990_v57 = vpack.c.bf16 %v932_v12, %v929_v18  ;;  %v10183_v12 = vld [vmem:[%s15290_s5 + $0x40] ss:$8 sps:$4 sm:$0xff]  }
 0x158   : > { %v9616_v63 = vpop.f32.mrb[14].mxu0 }
 0x159   : > { %v983_v19 = vpack.c.bf16 %v9616_v63, %v9615_v25  ;;  %v868_v0 = vpop.f32.mrb[15].mxu0  ;;  %8709 = vmatprep.subr.bf16.mxu1 %v990_v57 }
 0x15a   : > { %v982_v42 = vpack.c.bf16 %v868_v0, %v865_v35  ;;  %v10187_v35 = vld [vmem:[%s15290_s5 + $0x54] ss:$8 sps:$4 sm:$0xff]  }
 0x15b   : > { %v9651_v43 = vpop.f32.mrb[16].mxu1 }
 0x15c   : > { %8710 = vmatpush3.bf16.msra.mxu1 %v982_v42  ;;  %v1091_v46 = vpop.f32.mrb[17].mxu1 }
 0x15d   : > { %8711 = vmatprep.subr.bf16.mxu1 %v991_v4  ;;  %v9652_v45 = vpop.f32.mrb[18].mxu1 }
 0x15e   : > { %v1252_v47 = vpack.c.bf16 %v9652_v45, %v9651_v43  ;;  %v1094_v48 = vpop.f32.mrb[19].mxu1  ;;  %v10193_v45 = vld [vmem:[%s15290_s5 + $0x64] ss:$8 sps:$4 sm:$0xff]  }
 0x15f   : > { %v1251_v50 = vpack.c.bf16 %v1094_v48, %v1091_v46  ;;  %v10190_v46 = vld [vmem:[%s15290_s5 + $0x50] ss:$8 sps:$4 sm:$0xff]  }
 0x160   : > { %8712 = vmatpush3.bf16.msra.mxu1 %v983_v19 }
 0x163   : > { %v11500_v7 = vpop.f32.mrb[20].mxu1  ;;  %1781 = vmatmul.mubr.bf16.vlgmr.msra.gmra.mrb[48].mxu1 %v10157_v52 }
 0x164   : > { %v1107_v1 = vpop.f32.mrb[21].mxu1  ;;  %1788 = vmatprep.mubr.bf16.mxu1 %v10162_v53 }
 0x165   : > { %v9656_v54 = vpop.f32.mrb[22].mxu1 }
 0x166   : > { %v1254_v55 = vpack.c.bf16 %v9656_v54, %v11500_v7  ;;  %v1110_v38 = vpop.f32.mrb[23].mxu1  ;;  %v10200_v54 = vld [vmem:[%s15290_s5 + $0x74] ss:$8 sps:$4 sm:$0xff]  }
 0x167   : > { %v1253_v26 = vpack.c.bf16 %v1110_v38, %v1107_v1  ;;  %v10196_v1 = vld [vmem:[%s15290_s5 + $0x60] ss:$8 sps:$4 sm:$0xff]  }
 0x16b   : > { %v11509_v58 = vpop.f32.mrb[24].mxu1  ;;  %1789 = vmatmul.mubr.bf16.gmra.mrb[52].mxu1 %v10165_v22 }
 0x16c   : > { %v1123_v23 = vpop.f32.mrb[25].mxu1  ;;  %1796 = vmatprep.mubr.bf16.mxu1 %v10168_v30 }
 0x16d   : > { %v11511_v9 = vpop.f32.mrb[26].mxu1 }
 0x16e   : > { %v1256_v61 = vpack.c.bf16 %v11511_v9, %v11509_v58  ;;  %v1126_v31 = vpop.f32.mrb[27].mxu1  ;;  %v10206_v9 = vld [vmem:[%s15290_s5 + $0x84] ss:$8 sps:$4 sm:$0xff]  }
 0x16f   : > { %v1255_v37 = vpack.c.bf16 %v1126_v31, %v1123_v23  ;;  %v10203_v23 = vld [vmem:[%s15290_s5 + $0x70] ss:$8 sps:$4 sm:$0xff]   ;;  %v10184_v31 = vld [vmem:[%s15289_s4 + $0x80] sm:$0xff]  }
 0x173   : > { %v11521_v29 = vpop.f32.mrb[28].mxu1  ;;  %1797 = vmatmul.mubr.bf16.gmra.mrb[56].mxu1 %v10171_v41  ;;  %v10197_v41 = vld [vmem:[%s15289_s4 + $0x88] sm:$0xff]  }
 0x174   : > { %v1139_v16 = vpop.f32.mrb[29].mxu1  ;;  %1804 = vmatprep.mubr.bf16.mxu1 %v10174_v14  ;;  %v10209_v14 = vld [vmem:[%s15290_s5 + $0x80] ss:$8 sps:$4 sm:$0xff]  }
 0x175   : > { %v11523_v10 = vpop.f32.mrb[30].mxu1 }
 0x176   : > { %v1258_v39 = vpack.c.bf16 %v11523_v10, %v11521_v29  ;;  %v1142_v11 = vpop.f32.mrb[31].mxu1  ;;  %v10210_v29 = vld [vmem:[%s15289_s4 + $0x90] sm:$0xff]  }
 0x177   : > { %v1257_v44 = vpack.c.bf16 %v1142_v11, %v1139_v16  ;;  %v10213_v16 = vld [vmem:[%s15290_s5 + $0x94] ss:$8 sps:$4 sm:$0xff]   ;;  %v10164_v10 = vld [vmem:[%s15290_s5 + $0x110] ss:$8 sps:$4 sm:$0xff]  }
 0x178   : > { %v10216_v11 = vld [vmem:[%s15290_s5 + $0x90] ss:$8 sps:$4 sm:$0xff]  }
 0x17b   : > { %v9667_v24 = vpop.f32.mrb[32].mxu1  ;;  %1805 = vmatmul.mubr.bf16.gmra.mrb[60].mxu1 %v10177_v40  ;;  %v10219_v40 = vld [vmem:[%s15290_s5 + $0xa4] ss:$8 sps:$4 sm:$0xff]  }
 0x17c   : > { %v1155_v49 = vpop.f32.mrb[33].mxu1  ;;  %1812 = vmatprep.mubr.bf16.mxu1 %v10180_v20  ;;  %v10236_v20 = vld [vmem:[%s15289_s4 + $0xa0] sm:$0xff]  }
 0x17d   : > { %v9668_v18 = vpop.f32.mrb[34].mxu1 }
 0x17e   : > { %v1260_v27 = vpack.c.bf16 %v9668_v18, %v9667_v24  ;;  %v1158_v25 = vpop.f32.mrb[35].mxu1  ;;  %v10170_v24 = vld [vmem:[%s15290_s5 + $0x120] ss:$8 sps:$4 sm:$0xff]  }
 0x17f   : > { %v1259_v4 = vpack.c.bf16 %v1158_v25, %v1155_v49  ;;  %v10172_v49 = vld [vmem:[%s15290_s5 + $0x134] ss:$8 sps:$4 sm:$0xff]   ;;  %v10222_v18 = vld [vmem:[%s15290_s5 + $0xa0] ss:$8 sps:$4 sm:$0xff]  }
 0x180   : > { %v10226_v25 = vld [vmem:[%s15290_s5 + $0xb4] ss:$8 sps:$4 sm:$0xff]  }
 0x181   : > { %8585 = vmatprep.subr.bf16.mxu0 %v1259_v4  ;;  %v10256_v4 = vld [vmem:[%s15289_s4 + $0xb0] sm:$0xff]  }
 0x182   : > { %8586 = vmatpush3.bf16.msra.mxu0 %v1251_v50 }
 0x183   : > { %v9671_v57 = vpop.f32.mrb[36].mxu1  ;;  %8587 = vmatprep.subr.bf16.mxu0 %v1260_v27  ;;  %1813 = vmatmul.mubr.bf16.gmra.mrb[64].mxu1 %v10183_v12  ;;  %v10249_v27 = vld [vmem:[%s15289_s4 + $0xa8] sm:$0xff]   ;;  %v10176_v12 = vld [vmem:[%s15290_s5 + $0x130] ss:$8 sps:$4 sm:$0xff]  }
 0x184   : > { %v1171_v63 = vpop.f32.mrb[37].mxu1  ;;  %1820 = vmatprep.mubr.bf16.mxu1 %v10187_v35  ;;  %v10178_v35 = vld [vmem:[%s15290_s5 + $0x144] ss:$8 sps:$4 sm:$0xff]  }
 0x185   : > { %v9672_v19 = vpop.f32.mrb[38].mxu1 }
 0x186   : > { %v1262_v0 = vpack.c.bf16 %v9672_v19, %v9671_v57  ;;  %v1174_v42 = vpop.f32.mrb[39].mxu1  ;;  %8588 = vmatpush3.bf16.msra.mxu0 %v1252_v47  ;;  %v10229_v57 = vld [vmem:[%s15290_s5 + $0xb0] ss:$8 sps:$4 sm:$0xff]   ;;  %v10232_v19 = vld [vmem:[%s15290_s5 + $0xc4] ss:$8 sps:$4 sm:$0xff]  }
 0x187   : > { %v1261_v43 = vpack.c.bf16 %v1174_v42, %v1171_v63  ;;  %v10257_v63 = vld [vmem:[%s15289_s4 + $0xb8] sm:$0xff]  }
 0x188   : > { %v10185_v42 = vld [vmem:[%s15290_s5 + $0x154] ss:$8 sps:$4 sm:$0xff]  }
 0x189   : > { %8589 = vmatprep.subr.bf16.mxu0 %v1261_v43  ;;  %v10235_v43 = vld [vmem:[%s15290_s5 + $0xc0] ss:$8 sps:$4 sm:$0xff]  }
 0x18a   : > { %8590 = vmatpush3.bf16.msra.mxu0 %v1253_v26 }
 0x18b   : > { %v9675_v48 = vpop.f32.mrb[40].mxu1  ;;  %8591 = vmatprep.subr.bf16.mxu0 %v1262_v0  ;;  %1821 = vmatmul.mubr.bf16.gmra.mrb[68].mxu1 %v10190_v46  ;;  %v10182_v0 = vld [vmem:[%s15290_s5 + $0x140] ss:$8 sps:$4 sm:$0xff]   ;;  %v10239_v46 = vld [vmem:[%s15290_s5 + $0xd4] ss:$8 sps:$4 sm:$0xff]  }
 0x18c   : > { %v1187_v50 = vpop.f32.mrb[41].mxu1  ;;  %1828 = vmatprep.mubr.bf16.mxu1 %v10193_v45  ;;  %v10258_v45 = vld [vmem:[%s15289_s4 + $0xc0] sm:$0xff]  }
 0x18d   : > { %v9676_v52 = vpop.f32.mrb[42].mxu1 }
 0x18e   : > { %v1264_v53 = vpack.c.bf16 %v9676_v52, %v9675_v48  ;;  %v1190_v7 = vpop.f32.mrb[43].mxu1  ;;  %8592 = vmatpush3.bf16.msra.mxu0 %v1254_v55  ;;  %v10189_v48 = vld [vmem:[%s15290_s5 + $0x150] ss:$8 sps:$4 sm:$0xff]  }
 0x18f   : > { %v1263_v47 = vpack.c.bf16 %v1190_v7, %v1187_v50  ;;  %v10191_v50 = vld [vmem:[%s15290_s5 + $0x164] ss:$8 sps:$4 sm:$0xff]   ;;  %v10242_v52 = vld [vmem:[%s15290_s5 + $0xd0] ss:$8 sps:$4 sm:$0xff]   ;;  %v10195_v7 = vld [vmem:[%s15290_s5 + $0x160] ss:$8 sps:$4 sm:$0xff]  }
 0x191   : > { %8593 = vmatprep.subr.bf16.mxu0 %v1263_v47  ;;  %v10198_v47 = vld [vmem:[%s15290_s5 + $0x174] ss:$8 sps:$4 sm:$0xff]  }
 0x192   : > { %8594 = vmatpush3.bf16.msra.mxu0 %v1255_v37  ;;  %v10160_v37 = vld [vmem:[%s15290_s5 + $0x114] ss:$8 sps:$4 sm:$0xff]  }
 0x193   : > { %v9679_v38 = vpop.f32.mrb[44].mxu1  ;;  %8595 = vmatprep.subr.bf16.mxu0 %v1264_v53  ;;  %1829 = vmatmul.mubr.bf16.gmra.mrb[72].mxu1 %v10196_v1  ;;  %v10245_v53 = vld [vmem:[%s15290_s5 + $0xe4] ss:$8 sps:$4 sm:$0xff]   ;;  %v10248_v1 = vld [vmem:[%s15290_s5 + $0xe0] ss:$8 sps:$4 sm:$0xff]  }
 0x194   : > { %v1203_v26 = vpop.f32.mrb[45].mxu1  ;;  %1836 = vmatprep.mubr.bf16.mxu1 %v10200_v54  ;;  %v10252_v54 = vld [vmem:[%s15290_s5 + $0xf4] ss:$8 sps:$4 sm:$0xff]  }
 0x195   : > { %v9680_v22 = vpop.f32.mrb[46].mxu1 }
 0x196   : > { %v1266_v30 = vpack.c.bf16 %v9680_v22, %v9679_v38  ;;  %v1206_v58 = vpop.f32.mrb[47].mxu1  ;;  %8596 = vmatpush3.bf16.msra.mxu0 %v1256_v61  ;;  %v10154_v61 = vld [vmem:[%s15290_s5 + $0x100] ss:$8 sps:$4 sm:$0xff]   ;;  %v10202_v38 = vld [vmem:[%s15290_s5 + $0x170] ss:$8 sps:$4 sm:$0xff]  }
 0x197   : > { %v1265_v55 = vpack.c.bf16 %v1206_v58, %v1203_v26  ;;  %v10204_v26 = vld [vmem:[%s15290_s5 + $0x184] ss:$8 sps:$4 sm:$0xff]   ;;  %v10255_v22 = vld [vmem:[%s15290_s5 + $0xf0] ss:$8 sps:$4 sm:$0xff]   ;;  %v10211_v58 = vld [vmem:[%s15290_s5 + $0x194] ss:$8 sps:$4 sm:$0xff]  }
 0x199   : > { %8597 = vmatprep.subr.bf16.mxu0 %v1265_v55  ;;  %v10215_v55 = vld [vmem:[%s15290_s5 + $0x190] ss:$8 sps:$4 sm:$0xff]  }
 0x19a   : > { %8598 = vmatpush3.bf16.msra.mxu0 %v1257_v44  ;;  %v10223_v44 = vld [vmem:[%s15289_s4 + $0x98] sm:$0xff]  }
 0x19b   : > { %8599 = vmatprep.subr.bf16.mxu0 %v1266_v30  ;;  %1837 = vmatmul.mubr.bf16.gmra.mrb[76].mxu1 %v10203_v23  ;;  %v10208_v30 = vld [vmem:[%s15290_s5 + $0x180] ss:$8 sps:$4 sm:$0xff]   ;;  %v10217_v23 = vld [vmem:[%s15290_s5 + $0x1a4] ss:$8 sps:$4 sm:$0xff]  }
 0x19c   : > { %1844 = vmatprep.mubr.bf16.mxu1 %v10206_v9  ;;  %v10221_v9 = vld [vmem:[%s15290_s5 + $0x1a0] ss:$8 sps:$4 sm:$0xff]  }
 0x19e   : > { %8600 = vmatpush3.bf16.msra.mxu0 %v1258_v39  ;;  %v10166_v39 = vld [vmem:[%s15290_s5 + $0x124] ss:$8 sps:$4 sm:$0xff]  }
 0x19f   : > { %9681 = vmatprep.subr.bf16.mxu0 %v10184_v31 }
 0x1a1   : > { %1460 = vmatmul.mubr.bf16.vlgmr.msra.gmra.mrb[16].mxu0 %v10154_v61  ;;  %v10228_v61 = vld [vmem:[%s15290_s5 + $0x1b0] ss:$8 sps:$4 sm:$0xff]  }
 0x1a2   : > { %1467 = vmatprep.mubr.bf16.mxu0 %v10160_v37  ;;  %9682 = vmatpush3.bf16.msra.mxu0 %v10184_v31  ;;  %v10224_v31 = vld [vmem:[%s15290_s5 + $0x1b4] ss:$8 sps:$4 sm:$0xff]   ;;  %v10230_v37 = vld [vmem:[%s15290_s5 + $0x1c4] ss:$8 sps:$4 sm:$0xff]  }
 0x1a3   : > { %9683 = vmatprep.subr.bf16.mxu0 %v10197_v41  ;;  %1845 = vmatmul.mubr.bf16.gmra.mrb[80].mxu1 %v10209_v14  ;;  %v10237_v14 = vld [vmem:[%s15290_s5 + $0x1d4] ss:$8 sps:$4 sm:$0xff]  }
 0x1a4   : > { %1852 = vmatprep.mubr.bf16.mxu1 %v10213_v16  ;;  %v10241_v16 = vld [vmem:[%s15290_s5 + $0x1d0] ss:$8 sps:$4 sm:$0xff]  }
 0x1a6   : > { %9684 = vmatpush3.bf16.msra.mxu0 %v10197_v41  ;;  %v10234_v41 = vld [vmem:[%s15290_s5 + $0x1c0] ss:$8 sps:$4 sm:$0xff]  }
 0x1a7   : > { %9685 = vmatprep.subr.bf16.mxu0 %v10210_v29 }
 0x1a9   : > { %1468 = vmatmul.mubr.bf16.gmra.mrb[20].mxu0 %v10164_v10  ;;  %v10247_v10 = vld [vmem:[%s15290_s5 + $0x1e0] ss:$8 sps:$4 sm:$0xff]  }
 0x1aa   : > { %1475 = vmatprep.mubr.bf16.mxu0 %v10166_v39  ;;  %9686 = vmatpush3.bf16.msra.mxu0 %v10210_v29  ;;  %v10243_v29 = vld [vmem:[%s15290_s5 + $0x1e4] ss:$8 sps:$4 sm:$0xff]   ;;  %v10250_v39 = vld [vmem:[%s15290_s5 + $0x1f4] ss:$8 sps:$4 sm:$0xff]  }
 0x1ab   : > { %1853 = vmatmul.mubr.bf16.gmra.mrb[84].mxu1 %v10216_v11  ;;  %9687 = vmatprep.subr.bf16.mxu0 %v10223_v44  ;;  %v10254_v11 = vld [vmem:[%s15290_s5 + $0x1f0] ss:$8 sps:$4 sm:$0xff]  }
 0x1ac   : > { %1860 = vmatprep.mubr.bf16.mxu1 %v10219_v40  ;;  %v10260_v40 = vld [vmem:[%s15289_s4 + $0xd0] sm:$0xff]  }
 0x1ae   : > { %9688 = vmatpush3.bf16.msra.mxu0 %v10223_v44  ;;  %v10259_v44 = vld [vmem:[%s15289_s4 + $0xc8] sm:$0xff]  }
 0x1af   : > { %9689 = vmatprep.subr.bf16.mxu0 %v10236_v20 }
 0x1b1   : > { %1476 = vmatmul.mubr.bf16.gmra.mrb[24].mxu0 %v10170_v24  ;;  %v10262_v24 = vld [vmem:[%s15289_s4 + $0xe0] sm:$0xff]  }
 0x1b2   : > { %1483 = vmatprep.mubr.bf16.mxu0 %v10172_v49  ;;  %9690 = vmatpush3.bf16.msra.mxu0 %v10236_v20  ;;  %v10261_v20 = vld [vmem:[%s15289_s4 + $0xd8] sm:$0xff]   ;;  %v10263_v49 = vld [vmem:[%s15289_s4 + $0xe8] sm:$0xff]  }
 0x1b3   : > { %1861 = vmatmul.mubr.bf16.gmra.mrb[88].mxu1 %v10222_v18  ;;  %9691 = vmatprep.subr.bf16.mxu0 %v10249_v27  ;;  %v10264_v18 = vld [vmem:[%s15289_s4 + $0xf0] sm:$0xff]  }
 0x1b4   : > { %1868 = vmatprep.mubr.bf16.mxu1 %v10226_v25  ;;  %v10265_v25 = vld [vmem:[%s15289_s4 + $0xf8] sm:$0xff]  }
 0x1b6   : > { %9692 = vmatpush3.bf16.msra.mxu0 %v10249_v27 }
 0x1b7   : > { %9693 = vmatprep.subr.bf16.mxu0 %v10256_v4 }
 0x1b9   : > { %1484 = vmatmul.mubr.bf16.gmra.mrb[28].mxu0 %v10176_v12 }
 0x1ba   : > { %1491 = vmatprep.mubr.bf16.mxu0 %v10178_v35  ;;  %9694 = vmatpush3.bf16.msra.mxu0 %v10256_v4 }
 0x1bb   : > { %1869 = vmatmul.mubr.bf16.gmra.mrb[92].mxu1 %v10229_v57  ;;  %9695 = vmatprep.subr.bf16.mxu0 %v10257_v63 }
 0x1bc   : > { %1876 = vmatprep.mubr.bf16.mxu1 %v10232_v19 }
 0x1be   : > { %9696 = vmatpush3.bf16.msra.mxu0 %v10257_v63 }
 0x1bf   : > { %9729 = vmatprep.subr.bf16.mxu0 %v10258_v45 }
 0x1c1   : > { %1492 = vmatmul.mubr.bf16.gmra.mrb[32].mxu0 %v10182_v0 }
 0x1c2   : > { %1499 = vmatprep.mubr.bf16.mxu0 %v10185_v42 }
 0x1c3   : > { %1877 = vmatmul.mubr.bf16.gmra.mrb[96].mxu1 %v10235_v43 }
 0x1c4   : > { %1884 = vmatprep.mubr.bf16.mxu1 %v10239_v46 }
 0x1c9   : > { %1500 = vmatmul.mubr.bf16.gmra.mrb[36].mxu0 %v10189_v48 }
 0x1ca   : > { %1507 = vmatprep.mubr.bf16.mxu0 %v10191_v50 }
 0x1cb   : > { %1885 = vmatmul.mubr.bf16.gmra.mrb[100].mxu1 %v10242_v52 }
 0x1cc   : > { %1892 = vmatprep.mubr.bf16.mxu1 %v10245_v53 }
 0x1d1   : > { %1508 = vmatmul.mubr.bf16.gmra.mrb[40].mxu0 %v10195_v7 }
 0x1d2   : > { %1515 = vmatprep.mubr.bf16.mxu0 %v10198_v47 }
 0x1d3   : > { %1893 = vmatmul.mubr.bf16.gmra.mrb[104].mxu1 %v10248_v1 }
 0x1d4   : > { %1900 = vmatprep.mubr.bf16.mxu1 %v10252_v54 }
 0x1d9   : > { %1516 = vmatmul.mubr.bf16.gmra.mrb[44].mxu0 %v10202_v38 }
 0x1da   : > { %1523 = vmatprep.mubr.bf16.mxu0 %v10204_v26 }
 0x1db   : > { %1901 = vmatmul.mubr.bf16.gmra.mrb[108].mxu1 %v10255_v22 }
 0x1e1   : > { %1524 = vmatmul.mubr.bf16.gmra.mrb[48].mxu0 %v10208_v30 }
 0x1e2   : > { %1531 = vmatprep.mubr.bf16.mxu0 %v10211_v58 }
 0x1e9   : > { %1532 = vmatmul.mubr.bf16.gmra.mrb[52].mxu0 %v10215_v55 }
 0x1ea   : > { %1539 = vmatprep.mubr.bf16.mxu0 %v10217_v23 }
 0x1f1   : > { %1540 = vmatmul.mubr.bf16.gmra.mrb[56].mxu0 %v10221_v9 }
 0x1f2   : > { %1547 = vmatprep.mubr.bf16.mxu0 %v10224_v31 }
 0x1f9   : > { %1548 = vmatmul.mubr.bf16.gmra.mrb[60].mxu0 %v10228_v61 }
 0x1fa   : > { %1555 = vmatprep.mubr.bf16.mxu0 %v10230_v37 }
 0x201   : > { %1556 = vmatmul.mubr.bf16.gmra.mrb[64].mxu0 %v10234_v41 }
 0x202   : > { %1563 = vmatprep.mubr.bf16.mxu0 %v10237_v14 }
 0x209   : > { %1564 = vmatmul.mubr.bf16.gmra.mrb[68].mxu0 %v10241_v16 }
 0x20a   : > { %1571 = vmatprep.mubr.bf16.mxu0 %v10243_v29 }
 0x211   : > { %1572 = vmatmul.mubr.bf16.gmra.mrb[72].mxu0 %v10247_v10 }
 0x212   : > { %1579 = vmatprep.mubr.bf16.mxu0 %v10250_v39 }
 0x219   : > { %1580 = vmatmul.mubr.bf16.gmra.mrb[76].mxu0 %v10254_v11 }
 0x21a   : > { %9697 = vmatprep.mubr.bf16.mxu0 %v11225_v28 }
 0x221   : > { %9698 = vmatmul.mubr.bf16.vlgmr.msra.gmra.mrb[80].mxu0 %v11248_v21 }
 0x222   : > { %9701 = vmatprep.mubr.bf16.mxu0 %v11295_v13  ;;  %9730 = vmatpush3.bf16.msra.mxu0 %v10258_v45 }
 0x223   : > { %9731 = vmatprep.subr.bf16.mxu0 %v10259_v44 }
 0x226   : > { %9732 = vmatpush3.bf16.msra.mxu0 %v10259_v44 }
 0x227   : > { %9733 = vmatprep.subr.bf16.mxu0 %v10260_v40 }
 0x229   : > { %9702 = vmatmul.mubr.bf16.gmra.mrb[84].mxu0 %v11370_v51 }
 0x22a   : > { %9705 = vmatprep.mubr.bf16.mxu0 %v11412_v60  ;;  %9734 = vmatpush3.bf16.msra.mxu0 %v10260_v40 }
 0x22b   : > { %9735 = vmatprep.subr.bf16.mxu0 %v10261_v20 }
 0x22e   : > { %9736 = vmatpush3.bf16.msra.mxu0 %v10261_v20 }
 0x22f   : > { %9737 = vmatprep.subr.bf16.mxu0 %v10262_v24 }
 0x231   : > { %9706 = vmatmul.mubr.bf16.gmra.mrb[88].mxu0 %v11447_v8 }
 0x232   : > { %9709 = vmatprep.mubr.bf16.mxu0 %v11459_v33  ;;  %9738 = vmatpush3.bf16.msra.mxu0 %v10262_v24 }
 0x233   : > { %9739 = vmatprep.subr.bf16.mxu0 %v10263_v49 }
 0x236   : > { %9740 = vmatpush3.bf16.msra.mxu0 %v10263_v49  ;;  %v8713_v27 = vpop.f32.mrb[48].mxu1 }
 0x237   : > { %9741 = vmatprep.subr.bf16.mxu0 %v10264_v18  ;;  %v8714_v4 = vpop.f32.mrb[49].mxu1 }
 0x238   : > { %v11753_v12 = vadd.f32 %v8714_v4, %v8713_v27  ;;  %v8716_v35 = vpop.f32.mrb[50].mxu1 }
 0x239   : > { %9710 = vmatmul.mubr.bf16.gmra.mrb[92].mxu0 %v11469_v36  ;;  %v8717_v57 = vpop.f32.mrb[51].mxu1 }
 0x23a   : > { %9713 = vmatprep.mubr.bf16.mxu0 %v11217_v56  ;;  %9742 = vmatpush3.bf16.msra.mxu0 %v10264_v18  ;;  %v11757_v63 = vadd.f32 %v8717_v57, %v8716_v35 }
 0x23b   : > { %9743 = vmatprep.subr.bf16.mxu0 %v10265_v25 }
 0x23e   : > { %9744 = vmatpush3.bf16.msra.mxu0 %v10265_v25  ;;  %v8719_v19 = vpop.f32.mrb[52].mxu1 }
 0x23f   : > { %v8720_v0 = vpop.f32.mrb[53].mxu1 }
 0x240   : > { %v11759_v42 = vadd.f32 %v8720_v0, %v8719_v19  ;;  %v8722_v43 = vpop.f32.mrb[54].mxu1 }
 0x241   : > { %9714 = vmatmul.mubr.bf16.gmra.mrb[96].mxu0 %v11239_v32  ;;  %v8723_v46 = vpop.f32.mrb[55].mxu1 }
 0x242   : > { %9717 = vmatprep.mubr.bf16.mxu0 %v11279_v62  ;;  %v11763_v45 = vadd.f32 %v8723_v46, %v8722_v43 }
 0x246   : > { %v8725_v48 = vpop.f32.mrb[56].mxu1 }
 0x247   : > { %v8726_v50 = vpop.f32.mrb[57].mxu1 }
 0x248   : > { %v11765_v52 = vadd.f32 %v8726_v50, %v8725_v48  ;;  %v8728_v53 = vpop.f32.mrb[58].mxu1 }
 0x249   : > { %9718 = vmatmul.mubr.bf16.gmra.mrb[100].mxu0 %v11336_v59  ;;  %v8729_v7 = vpop.f32.mrb[59].mxu1 }
 0x24a   : > { %9721 = vmatprep.mubr.bf16.mxu0 %v11394_v17  ;;  %v11769_v47 = vadd.f32 %v8729_v7, %v8728_v53 }
 0x24e   : > { %v8731_v1 = vpop.f32.mrb[60].mxu1 }
 0x24f   : > { %v8732_v54 = vpop.f32.mrb[61].mxu1 }
 0x250   : > { %v11771_v38 = vadd.f32 %v8732_v54, %v8731_v1  ;;  %v8734_v26 = vpop.f32.mrb[62].mxu1 }
 0x251   : > { %9722 = vmatmul.mubr.bf16.gmra.mrb[104].mxu0 %v11427_v15  ;;  %v8735_v22 = vpop.f32.mrb[63].mxu1 }
 0x252   : > { %9725 = vmatprep.mubr.bf16.mxu0 %v11454_v2  ;;  %v11775_v30 = vadd.f32 %v8735_v22, %v8734_v26 }
 0x256   : > { %v8737_v58 = vpop.f32.mrb[64].mxu1 }
 0x257   : > { %v8738_v55 = vpop.f32.mrb[65].mxu1 }
 0x258   : > { %v11777_v23 = vadd.f32 %v8738_v55, %v8737_v58  ;;  %v8740_v9 = vpop.f32.mrb[66].mxu1 }
 0x259   : > { %9726 = vmatmul.mubr.bf16.gmra.mrb[108].mxu0 %v11464_v34  ;;  %v8741_v31 = vpop.f32.mrb[67].mxu1 }
 0x25a   : > { %9745 = vmatprep.mubr.bf16.mxu0 %v11225_v28  ;;  %v11781_v61 = vadd.f32 %v8741_v31, %v8740_v9 }
 0x25e   : > { %v8743_v37 = vpop.f32.mrb[68].mxu1 }
 0x25f   : > { %v8744_v41 = vpop.f32.mrb[69].mxu1 }
 0x260   : > { %v11783_v14 = vadd.f32 %v8744_v41, %v8743_v37  ;;  %v8746_v16 = vpop.f32.mrb[70].mxu1 }
 0x261   : > { %9746 = vmatmul.mubr.bf16.vlgmr.msra.gmra.mrb[112].mxu0 %v11248_v21  ;;  %v8747_v29 = vpop.f32.mrb[71].mxu1 }
 0x262   : > { %9749 = vmatprep.mubr.bf16.mxu0 %v11295_v13  ;;  %v11787_v10 = vadd.f32 %v8747_v29, %v8746_v16 }
 0x266   : > { %v8749_v39 = vpop.f32.mrb[72].mxu1 }
 0x267   : > { %v8750_v11 = vpop.f32.mrb[73].mxu1 }
 0x268   : > { %v11789_v44 = vadd.f32 %v8750_v11, %v8749_v39  ;;  %v8752_v40 = vpop.f32.mrb[74].mxu1 }
 0x269   : > { %9750 = vmatmul.mubr.bf16.gmra.mrb[116].mxu0 %v11370_v51  ;;  %v8753_v28 = vpop.f32.mrb[75].mxu1 }
 0x26a   : > { %9753 = vmatprep.mubr.bf16.mxu0 %v11412_v60  ;;  %v11793_v20 = vadd.f32 %v8753_v28, %v8752_v40 }
 0x26e   : > { %v8755_v24 = vpop.f32.mrb[76].mxu1 }
 0x26f   : > { %v8756_v49 = vpop.f32.mrb[77].mxu1 }
 0x270   : > { %v11795_v21 = vadd.f32 %v8756_v49, %v8755_v24  ;;  %v8758_v18 = vpop.f32.mrb[78].mxu1 }
 0x271   : > { %9754 = vmatmul.mubr.bf16.gmra.mrb[120].mxu0 %v11447_v8  ;;  %v8759_v13 = vpop.f32.mrb[79].mxu1 }
 0x272   : > { %9757 = vmatprep.mubr.bf16.mxu0 %v11459_v33  ;;  %v11799_v27 = vadd.f32 %v8759_v13, %v8758_v18 }
 0x274   : > { %v8601_v25 = vpop.f32.mrb[16].mxu0 }
 0x275   : > { %v8602_v4 = vpop.f32.mrb[17].mxu0 }
 0x276   : > { %v8603_v51 = vadd.f32 %v8602_v4, %v8601_v25  ;;  %v8604_v35 = vpop.f32.mrb[18].mxu0  ;;  %v8761_v57 = vpop.f32.mrb[80].mxu1 }
 0x277   : > { %v8605_v60 = vpop.f32.mrb[19].mxu0  ;;  %v8762_v19 = vpop.f32.mrb[81].mxu1 }
 0x278   : > { %v11802_v0 = vadd.f32 %v11753_v12, %v8603_v51  ;;  %v8606_v43 = vadd.f32 %v8605_v60, %v8604_v35  ;;  %v11804_v46 = vadd.f32 %v8762_v19, %v8761_v57  ;;  %v8764_v48 = vpop.f32.mrb[82].mxu1 }
 0x279   : > { %9758 = vmatmul.mubr.bf16.gmra.mrb[124].mxu0 %v11469_v36  ;;  %v8765_v8 = vpop.f32.mrb[83].mxu1 }
 0x27a   : > { %v11808_v33 = vadd.f32 %v11757_v63, %v8606_v43  ;;  %9761 = vmatprep.mubr.bf16.mxu0 %v11217_v56  ;;  %v11811_v50 = vadd.f32 %v8765_v8, %v8764_v48 }
 0x27c   : > { %v8607_v53 = vpop.f32.mrb[20].mxu0 }
 0x27d   : > { %v8608_v7 = vpop.f32.mrb[21].mxu0 }
 0x27e   : > { %v8609_v1 = vadd.f32 %v8608_v7, %v8607_v53  ;;  %v8610_v54 = vpop.f32.mrb[22].mxu0  ;;  %v8767_v12 = vpop.f32.mrb[84].mxu1 }
 0x27f   : > { %v8611_v26 = vpop.f32.mrb[23].mxu0  ;;  %v8768_v22 = vpop.f32.mrb[85].mxu1 }
 0x280   : > { %v11814_v58 = vadd.f32 %v11759_v42, %v8609_v1  ;;  %v8612_v55 = vadd.f32 %v8611_v26, %v8610_v54  ;;  %v11816_v36 = vadd.f32 %v8768_v22, %v8767_v12  ;;  %v8770_v9 = vpop.f32.mrb[86].mxu1 }
 0x281   : > { %9762 = vmatmul.mubr.bf16.gmra.mrb[128].mxu0 %v11239_v32  ;;  %v8771_v63 = vpop.f32.mrb[87].mxu1 }
 0x282   : > { %v11820_v56 = vadd.f32 %v11763_v45, %v8612_v55  ;;  %9765 = vmatprep.mubr.bf16.mxu0 %v11279_v62  ;;  %v11823_v31 = vadd.f32 %v8771_v63, %v8770_v9 }
 0x284   : > { %v8613_v37 = vpop.f32.mrb[24].mxu0 }
 0x285   : > { %v8614_v41 = vpop.f32.mrb[25].mxu0 }
 0x286   : > { %v8615_v16 = vadd.f32 %v8614_v41, %v8613_v37  ;;  %v8616_v29 = vpop.f32.mrb[26].mxu0  ;;  %v8773_v42 = vpop.f32.mrb[88].mxu1 }
 0x287   : > { %v8617_v39 = vpop.f32.mrb[27].mxu0  ;;  %v8774_v11 = vpop.f32.mrb[89].mxu1 }
 0x288   : > { %v11826_v40 = vadd.f32 %v11765_v52, %v8615_v16  ;;  %v8618_v28 = vadd.f32 %v8617_v39, %v8616_v29  ;;  %v11828_v32 = vadd.f32 %v8774_v11, %v8773_v42  ;;  %v8776_v24 = vpop.f32.mrb[90].mxu1 }
 0x289   : > { %9766 = vmatmul.mubr.bf16.gmra.mrb[132].mxu0 %v11336_v59  ;;  %v8777_v45 = vpop.f32.mrb[91].mxu1 }
 0x28a   : > { %v11832_v62 = vadd.f32 %v11769_v47, %v8618_v28  ;;  %9769 = vmatprep.mubr.bf16.mxu0 %v11394_v17  ;;  %v11835_v49 = vadd.f32 %v8777_v45, %v8776_v24 }
 0x28c   : > { %v8619_v18 = vpop.f32.mrb[28].mxu0 }
 0x28d   : > { %v8620_v13 = vpop.f32.mrb[29].mxu0 }
 0x28e   : > { %v8621_v25 = vadd.f32 %v8620_v13, %v8619_v18  ;;  %v8622_v4 = vpop.f32.mrb[30].mxu0  ;;  %v8779_v52 = vpop.f32.mrb[92].mxu1 }
 0x28f   : > { %v8623_v51 = vpop.f32.mrb[31].mxu0  ;;  %v8780_v35 = vpop.f32.mrb[93].mxu1 }
 0x290   : > { %v11838_v57 = vadd.f32 %v11771_v38, %v8621_v25  ;;  %v8624_v60 = vadd.f32 %v8623_v51, %v8622_v4  ;;  %v11840_v59 = vadd.f32 %v8780_v35, %v8779_v52  ;;  %v8782_v19 = vpop.f32.mrb[94].mxu1 }
 0x291   : > { %9770 = vmatmul.mubr.bf16.gmra.mrb[136].mxu0 %v11427_v15  ;;  %v8783_v47 = vpop.f32.mrb[95].mxu1 }
 0x292   : > { %v11844_v17 = vadd.f32 %v11775_v30, %v8624_v60  ;;  %9773 = vmatprep.mubr.bf16.mxu0 %v11454_v2  ;;  %v11847_v43 = vadd.f32 %v8783_v47, %v8782_v19 }
 0x294   : > { %v8625_v48 = vpop.f32.mrb[32].mxu0 }
 0x295   : > { %v8626_v8 = vpop.f32.mrb[33].mxu0 }
 0x296   : > { %v8627_v53 = vadd.f32 %v8626_v8, %v8625_v48  ;;  %v8628_v7 = vpop.f32.mrb[34].mxu0  ;;  %v8785_v38 = vpop.f32.mrb[96].mxu1 }
 0x297   : > { %v8629_v1 = vpop.f32.mrb[35].mxu0  ;;  %v8786_v54 = vpop.f32.mrb[97].mxu1 }
 0x298   : > { %v11850_v12 = vadd.f32 %v11777_v23, %v8627_v53  ;;  %v8630_v26 = vadd.f32 %v8629_v1, %v8628_v7  ;;  %v11852_v15 = vadd.f32 %v8786_v54, %v8785_v38  ;;  %v8788_v22 = vpop.f32.mrb[98].mxu1 }
 0x299   : > { %9774 = vmatmul.mubr.bf16.gmra.mrb[140].mxu0 %v11464_v34  ;;  %v8789_v30 = vpop.f32.mrb[99].mxu1 }
 0x29a   : > { %v11856_v2 = vadd.f32 %v11781_v61, %v8630_v26  ;;  %v11858_v55 = vadd.f32 %v8789_v30, %v8788_v22 }
 0x29c   : > { %v8631_v9 = vpop.f32.mrb[36].mxu0 }
 0x29d   : > { %v8632_v63 = vpop.f32.mrb[37].mxu0 }
 0x29e   : > { %v8633_v37 = vadd.f32 %v8632_v63, %v8631_v9  ;;  %v8634_v41 = vpop.f32.mrb[38].mxu0  ;;  %v8791_v16 = vpop.f32.mrb[100].mxu1 }
 0x29f   : > { %v8635_v29 = vpop.f32.mrb[39].mxu0  ;;  %v8792_v23 = vpop.f32.mrb[101].mxu1 }
 0x2a0   : > { %v11861_v42 = vadd.f32 %v11783_v14, %v8633_v37  ;;  %v8636_v39 = vadd.f32 %v8635_v29, %v8634_v41  ;;  %v11863_v11 = vadd.f32 %v8792_v23, %v8791_v16  ;;  %v8794_v34 = vpop.f32.mrb[102].mxu1 }
 0x2a1   : > { %v8795_v28 = vpop.f32.mrb[103].mxu1 }
 0x2a2   : > { %v11866_v61 = vadd.f32 %v11787_v10, %v8636_v39  ;;  %v11868_v24 = vadd.f32 %v8795_v28, %v8794_v34  ;;  %v10268_v28 = vld [vmem:[%s15290_s5 + $0x204] ss:$8 sps:$4 sm:$0xff]  }
 0x2a3   : > { %2376 = vmatprep.mubr.bf16.mxu1 %v10268_v28 }
 0x2a4   : > { %v8637_v45 = vpop.f32.mrb[40].mxu0 }
 0x2a5   : > { %v8638_v18 = vpop.f32.mrb[41].mxu0 }
 0x2a6   : > { %v8639_v13 = vadd.f32 %v8638_v18, %v8637_v45  ;;  %v8640_v25 = vpop.f32.mrb[42].mxu0  ;;  %v8797_v4 = vpop.f32.mrb[104].mxu1 }
 0x2a7   : > { %v8641_v52 = vpop.f32.mrb[43].mxu0  ;;  %v8798_v51 = vpop.f32.mrb[105].mxu1 }
 0x2a8   : > { %v11871_v14 = vadd.f32 %v11789_v44, %v8639_v13  ;;  %v8642_v35 = vadd.f32 %v8641_v52, %v8640_v25  ;;  %v11873_v60 = vadd.f32 %v8798_v51, %v8797_v4  ;;  %v8800_v19 = vpop.f32.mrb[106].mxu1 }
 0x2a9   : > { %v8801_v47 = vpop.f32.mrb[107].mxu1 }
 0x2aa   : > { %v11876_v10 = vadd.f32 %v11793_v20, %v8642_v35  ;;  %v11878_v48 = vadd.f32 %v8801_v47, %v8800_v19 }
 0x2ac   : > { %v8643_v8 = vpop.f32.mrb[44].mxu0 }
 0x2ad   : > { %v8644_v53 = vpop.f32.mrb[45].mxu0 }
 0x2ae   : > { %v8645_v7 = vadd.f32 %v8644_v53, %v8643_v8  ;;  %v8646_v38 = vpop.f32.mrb[46].mxu0  ;;  %v8803_v1 = vpop.f32.mrb[108].mxu1 }
 0x2af   : > { %v8647_v54 = vpop.f32.mrb[47].mxu0  ;;  %v8804_v26 = vpop.f32.mrb[109].mxu1 }
 0x2b0   : > { %v11881_v44 = vadd.f32 %v11795_v21, %v8645_v7  ;;  %v8648_v22 = vadd.f32 %v8647_v54, %v8646_v38  ;;  %v11883_v30 = vadd.f32 %v8804_v26, %v8803_v1  ;;  %v8806_v9 = vpop.f32.mrb[110].mxu1 }
 0x2b1   : > { %v8807_v63 = vpop.f32.mrb[111].mxu1 }
 0x2b2   : > { %v11886_v20 = vadd.f32 %v11799_v27, %v8648_v22  ;;  %v11888_v37 = vadd.f32 %v8807_v63, %v8806_v9 }
 0x2b4   : > { %v8649_v41 = vpop.f32.mrb[48].mxu0 }
 0x2b5   : > { %v8650_v16 = vpop.f32.mrb[49].mxu0 }
 0x2b6   : > { %v8651_v29 = vadd.f32 %v8650_v16, %v8649_v41  ;;  %v8652_v23 = vpop.f32.mrb[50].mxu0 }
 0x2b7   : > { %v8653_v39 = vpop.f32.mrb[51].mxu0 }
 0x2b8   : > { %v11891_v34 = vadd.f32 %v11804_v46, %v8651_v29  ;;  %v8654_v21 = vadd.f32 %v8653_v39, %v8652_v23 }
 0x2ba   : > { %v11897_v45 = vadd.f32 %v11811_v50, %v8654_v21 }
 0x2bc   : > { %v8655_v27 = vpop.f32.mrb[52].mxu0 }
 0x2bd   : > { %v8656_v18 = vpop.f32.mrb[53].mxu0 }
 0x2be   : > { %v8657_v13 = vadd.f32 %v8656_v18, %v8655_v27  ;;  %v8658_v25 = vpop.f32.mrb[54].mxu0 }
 0x2bf   : > { %v8659_v4 = vpop.f32.mrb[55].mxu0 }
 0x2c0   : > { %v11900_v52 = vadd.f32 %v11816_v36, %v8657_v13  ;;  %v8660_v51 = vadd.f32 %v8659_v4, %v8658_v25 }
 0x2c2   : > { %v11903_v46 = vadd.f32 %v11823_v31, %v8660_v51 }
 0x2c4   : > { %v8661_v35 = vpop.f32.mrb[56].mxu0 }
 0x2c5   : > { %v8662_v19 = vpop.f32.mrb[57].mxu0 }
 0x2c6   : > { %v8663_v47 = vadd.f32 %v8662_v19, %v8661_v35  ;;  %v8664_v8 = vpop.f32.mrb[58].mxu0 }
 0x2c7   : > { %v8665_v53 = vpop.f32.mrb[59].mxu0 }
 0x2c8   : > { %v11906_v50 = vadd.f32 %v11828_v32, %v8663_v47  ;;  %v8666_v7 = vadd.f32 %v8665_v53, %v8664_v8 }
 0x2ca   : > { %v11909_v38 = vadd.f32 %v11835_v49, %v8666_v7 }
 0x2cc   : > { %v8667_v1 = vpop.f32.mrb[60].mxu0 }
 0x2cd   : > { %v8668_v54 = vpop.f32.mrb[61].mxu0 }
 0x2ce   : > { %v8669_v36 = vadd.f32 %v8668_v54, %v8667_v1  ;;  %v8670_v26 = vpop.f32.mrb[62].mxu0 }
 0x2cf   : > { %v8671_v22 = vpop.f32.mrb[63].mxu0 }
 0x2d0   : > { %v11912_v31 = vadd.f32 %v11840_v59, %v8669_v36  ;;  %v8672_v9 = vadd.f32 %v8671_v22, %v8670_v26 }
 0x2d2   : > { %v11915_v63 = vadd.f32 %v11847_v43, %v8672_v9 }
 0x2d4   : > { %v8673_v41 = vpop.f32.mrb[64].mxu0 }
 0x2d5   : > { %v8674_v16 = vpop.f32.mrb[65].mxu0 }
 0x2d6   : > { %v8675_v32 = vadd.f32 %v8674_v16, %v8673_v41  ;;  %v8676_v29 = vpop.f32.mrb[66].mxu0 }
 0x2d7   : > { %v8677_v23 = vpop.f32.mrb[67].mxu0 }
 0x2d8   : > { %v11918_v49 = vadd.f32 %v11852_v15, %v8675_v32  ;;  %v8678_v39 = vadd.f32 %v8677_v23, %v8676_v29 }
 0x2da   : > { %v11921_v21 = vadd.f32 %v11858_v55, %v8678_v39 }
 0x2dc   : > { %v8679_v28 = vpop.f32.mrb[68].mxu0 }
 0x2dd   : > { %v8680_v27 = vpop.f32.mrb[69].mxu0 }
 0x2de   : > { %v8681_v59 = vadd.f32 %v8680_v27, %v8679_v28  ;;  %v8682_v18 = vpop.f32.mrb[70].mxu0 }
 0x2df   : > { %v8683_v13 = vpop.f32.mrb[71].mxu0 }
 0x2e0   : > { %v11924_v43 = vadd.f32 %v11863_v11, %v8681_v59  ;;  %v8684_v25 = vadd.f32 %v8683_v13, %v8682_v18 }
 0x2e2   : > { %v11927_v4 = vadd.f32 %v11868_v24, %v8684_v25 }
 0x2e4   : > { %v8685_v51 = vpop.f32.mrb[72].mxu0 }
 0x2e5   : > { %v8686_v35 = vpop.f32.mrb[73].mxu0 }
 0x2e6   : > { %v8687_v15 = vadd.f32 %v8686_v35, %v8685_v51  ;;  %v8688_v19 = vpop.f32.mrb[74].mxu0 }
 0x2e7   : > { %v8689_v47 = vpop.f32.mrb[75].mxu0 }
 0x2e8   : > { %v11930_v55 = vadd.f32 %v11873_v60, %v8687_v15  ;;  %v8690_v8 = vadd.f32 %v8689_v47, %v8688_v19 }
 0x2ea   : > { %v11933_v53 = vadd.f32 %v11878_v48, %v8690_v8  ;;  %v10294_v48 = vld [vmem:[%s15290_s5 + $0x304] ss:$8 sps:$4 sm:$0xff]  }
 0x2eb   : > { %3004 = vmatprep.mubr.bf16.mxu0 %v10294_v48 }
 0x2ec   : > { %v8691_v7 = vpop.f32.mrb[76].mxu0 }
 0x2ed   : > { %v8692_v1 = vpop.f32.mrb[77].mxu0 }
 0x2ee   : > { %v8693_v11 = vadd.f32 %v8692_v1, %v8691_v7  ;;  %v8694_v54 = vpop.f32.mrb[78].mxu0 }
 0x2ef   : > { %v8695_v36 = vpop.f32.mrb[79].mxu0 }
 0x2f0   : > { %v11936_v24 = vadd.f32 %v11883_v30, %v8693_v11  ;;  %v8696_v26 = vadd.f32 %v8695_v36, %v8694_v54 }
 0x2f2   : > { %v11939_v22 = vadd.f32 %v11888_v37, %v8696_v26 }
 0x2f4   : > { %v9699_v9 = vpop.f32.mrb[80].mxu0 }
 0x2f5   : > { %v2008_v41 = vpop.f32.mrb[81].mxu0 }
 0x2f6   : > { %v9700_v60 = vpop.f32.mrb[82].mxu0 }
 0x2f7   : > { %v2169_v16 = vpack.c.bf16 %v9700_v60, %v9699_v9  ;;  %v2011_v32 = vpop.f32.mrb[83].mxu0 }
 0x2f8   : > { %v2168_v29 = vpack.c.bf16 %v2011_v32, %v2008_v41 }
 0x2fc   : > { %v9703_v23 = vpop.f32.mrb[84].mxu0 }
 0x2fd   : > { %v2024_v39 = vpop.f32.mrb[85].mxu0 }
 0x2fe   : > { %v9704_v28 = vpop.f32.mrb[86].mxu0 }
 0x2ff   : > { %v2171_v30 = vpack.c.bf16 %v9704_v28, %v9703_v23  ;;  %v2027_v27 = vpop.f32.mrb[87].mxu0 }
 0x300   : > { %v2170_v59 = vpack.c.bf16 %v2027_v27, %v2024_v39 }
 0x304   : > { %v9707_v18 = vpop.f32.mrb[88].mxu0 }
 0x305   : > { %v2040_v37 = vpop.f32.mrb[89].mxu0 }
 0x306   : > { %v9708_v13 = vpop.f32.mrb[90].mxu0 }
 0x307   : > { %v2173_v25 = vpack.c.bf16 %v9708_v13, %v9707_v18  ;;  %v2043_v51 = vpop.f32.mrb[91].mxu0 }
 0x308   : > { %v2172_v35 = vpack.c.bf16 %v2043_v51, %v2040_v37 }
 0x30c   : > { %v9711_v15 = vpop.f32.mrb[92].mxu0 }
 0x30d   : > { %v2056_v19 = vpop.f32.mrb[93].mxu0 }
 0x30e   : > { %v9712_v47 = vpop.f32.mrb[94].mxu0 }
 0x30f   : > { %v2175_v8 = vpack.c.bf16 %v9712_v47, %v9711_v15  ;;  %v2059_v7 = vpop.f32.mrb[95].mxu0 }
 0x310   : > { %v2174_v1 = vpack.c.bf16 %v2059_v7, %v2056_v19 }
 0x314   : > { %v9715_v11 = vpop.f32.mrb[96].mxu0 }
 0x315   : > { %v2072_v54 = vpop.f32.mrb[97].mxu0 }
 0x316   : > { %v9716_v36 = vpop.f32.mrb[98].mxu0 }
 0x317   : > { %v2177_v26 = vpack.c.bf16 %v9716_v36, %v9715_v11  ;;  %v2075_v9 = vpop.f32.mrb[99].mxu0 }
 0x318   : > { %v2176_v41 = vpack.c.bf16 %v2075_v9, %v2072_v54  ;;  %v10269_v9 = vld [vmem:[%s15290_s5 + $0x214] ss:$8 sps:$4 sm:$0xff]  }
 0x31a   : > { %8833 = vmatprep.subr.bf16.mxu1 %v2176_v41 }
 0x31b   : > { %8834 = vmatpush3.bf16.msra.mxu1 %v2168_v29 }
 0x31c   : > { %v9719_v60 = vpop.f32.mrb[100].mxu0  ;;  %8835 = vmatprep.subr.bf16.mxu1 %v2177_v26 }
 0x31d   : > { %v2088_v32 = vpop.f32.mrb[101].mxu0 }
 0x31e   : > { %v9720_v48 = vpop.f32.mrb[102].mxu0 }
 0x31f   : > { %v2179_v23 = vpack.c.bf16 %v9720_v48, %v9719_v60  ;;  %v2091_v39 = vpop.f32.mrb[103].mxu0  ;;  %8836 = vmatpush3.bf16.msra.mxu1 %v2169_v16 }
 0x320   : > { %v2178_v28 = vpack.c.bf16 %v2091_v39, %v2088_v32  ;;  %v10271_v32 = vld [vmem:[%s15290_s5 + $0x210] ss:$8 sps:$4 sm:$0xff]  }
 0x322   : > { %8837 = vmatprep.subr.bf16.mxu1 %v2178_v28 }
 0x323   : > { %8838 = vmatpush3.bf16.msra.mxu1 %v2170_v59 }
 0x324   : > { %v9723_v27 = vpop.f32.mrb[104].mxu0  ;;  %8839 = vmatprep.subr.bf16.mxu1 %v2179_v23 }
 0x325   : > { %v2104_v18 = vpop.f32.mrb[105].mxu0 }
 0x326   : > { %v9724_v37 = vpop.f32.mrb[106].mxu0 }
 0x327   : > { %v2181_v13 = vpack.c.bf16 %v9724_v37, %v9723_v27  ;;  %v2107_v51 = vpop.f32.mrb[107].mxu0  ;;  %8840 = vmatpush3.bf16.msra.mxu1 %v2171_v30  ;;  %v10266_v30 = vld [vmem:[%s15290_s5 + $0x200] ss:$8 sps:$4 sm:$0xff]  }
 0x328   : > { %v2180_v15 = vpack.c.bf16 %v2107_v51, %v2104_v18  ;;  %v10274_v37 = vld [vmem:[%s15290_s5 + $0x220] ss:$8 sps:$4 sm:$0xff]  }
 0x32a   : > { %8841 = vmatprep.subr.bf16.mxu1 %v2180_v15  ;;  %v10275_v15 = vld [vmem:[%s15290_s5 + $0x234] ss:$8 sps:$4 sm:$0xff]  }
 0x32b   : > { %8842 = vmatpush3.bf16.msra.mxu1 %v2172_v35 }
 0x32c   : > { %v9727_v29 = vpop.f32.mrb[108].mxu0  ;;  %8843 = vmatprep.subr.bf16.mxu1 %v2181_v13 }
 0x32d   : > { %v2120_v19 = vpop.f32.mrb[109].mxu0 }
 0x32e   : > { %v9728_v47 = vpop.f32.mrb[110].mxu0 }
 0x32f   : > { %v2183_v7 = vpack.c.bf16 %v9728_v47, %v9727_v29  ;;  %v2123_v11 = vpop.f32.mrb[111].mxu0  ;;  %8844 = vmatpush3.bf16.msra.mxu1 %v2173_v25 }
 0x330   : > { %v2182_v16 = vpack.c.bf16 %v2123_v11, %v2120_v19  ;;  %v10277_v11 = vld [vmem:[%s15290_s5 + $0x230] ss:$8 sps:$4 sm:$0xff]  }
 0x332   : > { %8845 = vmatprep.subr.bf16.mxu1 %v2182_v16 }
 0x333   : > { %8846 = vmatpush3.bf16.msra.mxu1 %v2174_v1 }
 0x334   : > { %8847 = vmatprep.subr.bf16.mxu1 %v2183_v7  ;;  %v9747_v59 = vpop.f32.mrb[112].mxu0 }
 0x335   : > { %v2636_v54 = vpop.f32.mrb[113].mxu0 }
 0x336   : > { %v9748_v36 = vpop.f32.mrb[114].mxu0 }
 0x337   : > { %v2797_v26 = vpack.c.bf16 %v9748_v36, %v9747_v59  ;;  %8848 = vmatpush3.bf16.msra.mxu1 %v2175_v8  ;;  %v2639_v35 = vpop.f32.mrb[115].mxu0  ;;  %v10272_v8 = vld [vmem:[%s15290_s5 + $0x224] ss:$8 sps:$4 sm:$0xff]  }
 0x338   : > { %v2796_v41 = vpack.c.bf16 %v2639_v35, %v2636_v54  ;;  %v10278_v54 = vld [vmem:[%s15290_s5 + $0x244] ss:$8 sps:$4 sm:$0xff]  }
 0x33a   : > { %2377 = vmatmul.mubr.bf16.vlgmr.msra.gmra.mrb[112].mxu1 %v10266_v30 }
 0x33b   : > { %2384 = vmatprep.mubr.bf16.mxu1 %v10269_v9 }
 0x33c   : > { %v11950_v25 = vpop.f32.mrb[116].mxu0 }
 0x33d   : > { %v2652_v1 = vpop.f32.mrb[117].mxu0 }
 0x33e   : > { %v9752_v60 = vpop.f32.mrb[118].mxu0 }
 0x33f   : > { %v2799_v48 = vpack.c.bf16 %v9752_v60, %v11950_v25  ;;  %v2655_v23 = vpop.f32.mrb[119].mxu0  ;;  %v10280_v25 = vld [vmem:[%s15290_s5 + $0x240] ss:$8 sps:$4 sm:$0xff]  }
 0x340   : > { %v2798_v39 = vpack.c.bf16 %v2655_v23, %v2652_v1 }
 0x342   : > { %2385 = vmatmul.mubr.bf16.gmra.mrb[116].mxu1 %v10271_v32  ;;  %v10281_v32 = vld [vmem:[%s15290_s5 + $0x254] ss:$8 sps:$4 sm:$0xff]  }
 0x343   : > { %2392 = vmatprep.mubr.bf16.mxu1 %v10272_v8 }
 0x344   : > { %v11959_v28 = vpop.f32.mrb[120].mxu0 }
 0x345   : > { %v2668_v27 = vpop.f32.mrb[121].mxu0 }
 0x346   : > { %v11961_v18 = vpop.f32.mrb[122].mxu0 }
 0x347   : > { %v2801_v13 = vpack.c.bf16 %v11961_v18, %v11959_v28  ;;  %v2671_v51 = vpop.f32.mrb[123].mxu0  ;;  %v10283_v18 = vld [vmem:[%s15290_s5 + $0x250] ss:$8 sps:$4 sm:$0xff]  }
 0x348   : > { %v2800_v29 = vpack.c.bf16 %v2671_v51, %v2668_v27 }
 0x34a   : > { %2393 = vmatmul.mubr.bf16.gmra.mrb[120].mxu1 %v10274_v37 }
 0x34b   : > { %2400 = vmatprep.mubr.bf16.mxu1 %v10275_v15  ;;  %v10284_v15 = vld [vmem:[%s15290_s5 + $0x264] ss:$8 sps:$4 sm:$0xff]  }
 0x34c   : > { %v11971_v19 = vpop.f32.mrb[124].mxu0 }
 0x34d   : > { %v2684_v47 = vpop.f32.mrb[125].mxu0 }
 0x34e   : > { %v11973_v7 = vpop.f32.mrb[126].mxu0 }
 0x34f   : > { %v2803_v16 = vpack.c.bf16 %v11973_v7, %v11971_v19  ;;  %v2687_v59 = vpop.f32.mrb[127].mxu0 }
 0x350   : > { %v2802_v36 = vpack.c.bf16 %v2687_v59, %v2684_v47 }
 0x352   : > { %2401 = vmatmul.mubr.bf16.gmra.mrb[124].mxu1 %v10277_v11  ;;  %v10286_v11 = vld [vmem:[%s15290_s5 + $0x260] ss:$8 sps:$4 sm:$0xff]  }
 0x353   : > { %2408 = vmatprep.mubr.bf16.mxu1 %v10278_v54 }
 0x354   : > { %v9763_v30 = vpop.f32.mrb[128].mxu0 }
 0x355   : > { %v2700_v35 = vpop.f32.mrb[129].mxu0 }
 0x356   : > { %v9764_v9 = vpop.f32.mrb[130].mxu0 }
 0x357   : > { %v2805_v1 = vpack.c.bf16 %v9764_v9, %v9763_v30  ;;  %v2703_v60 = vpop.f32.mrb[131].mxu0 }
 0x358   : > { %v2804_v23 = vpack.c.bf16 %v2703_v60, %v2700_v35 }
 0x35a   : > { %2409 = vmatmul.mubr.bf16.gmra.mrb[128].mxu1 %v10280_v25  ;;  %8969 = vmatprep.subr.bf16.mxu0 %v2804_v23  ;;  %v10289_v25 = vld [vmem:[%s15290_s5 + $0x270] ss:$8 sps:$4 sm:$0xff]   ;;  %v10295_v23 = vld [vmem:[%s15290_s5 + $0x280] ss:$8 sps:$4 sm:$0xff]  }
 0x35b   : > { %8970 = vmatpush3.bf16.msra.mxu0 %v2796_v41  ;;  %2416 = vmatprep.mubr.bf16.mxu1 %v10281_v32 }
 0x35c   : > { %v9767_v8 = vpop.f32.mrb[132].mxu0  ;;  %8971 = vmatprep.subr.bf16.mxu0 %v2805_v1 }
 0x35d   : > { %v2716_v28 = vpop.f32.mrb[133].mxu0 }
 0x35e   : > { %v9768_v27 = vpop.f32.mrb[134].mxu0 }
 0x35f   : > { %v2807_v37 = vpack.c.bf16 %v9768_v27, %v9767_v8  ;;  %v2719_v51 = vpop.f32.mrb[135].mxu0  ;;  %8972 = vmatpush3.bf16.msra.mxu0 %v2797_v26  ;;  %v10287_v26 = vld [vmem:[%s15290_s5 + $0x274] ss:$8 sps:$4 sm:$0xff]   ;;  %v10304_v27 = vld [vmem:[%s15290_s5 + $0x324] ss:$8 sps:$4 sm:$0xff]  }
 0x360   : > { %v2806_v19 = vpack.c.bf16 %v2719_v51, %v2716_v28  ;;  %v10298_v8 = vld [vmem:[%s15290_s5 + $0x314] ss:$8 sps:$4 sm:$0xff]   ;;  %v10302_v28 = vld [vmem:[%s15290_s5 + $0x2a4] ss:$8 sps:$4 sm:$0xff]  }
 0x361   : > { %v10308_v51 = vld [vmem:[%s15290_s5 + $0x2b4] ss:$8 sps:$4 sm:$0xff]  }
 0x362   : > { %2417 = vmatmul.mubr.bf16.gmra.mrb[132].mxu1 %v10283_v18  ;;  %8973 = vmatprep.subr.bf16.mxu0 %v2806_v19  ;;  %v10306_v18 = vld [vmem:[%s15290_s5 + $0x2a0] ss:$8 sps:$4 sm:$0xff]   ;;  %v10312_v19 = vld [vmem:[%s15290_s5 + $0x2b0] ss:$8 sps:$4 sm:$0xff]  }
 0x363   : > { %8974 = vmatpush3.bf16.msra.mxu0 %v2798_v39  ;;  %2424 = vmatprep.mubr.bf16.mxu1 %v10284_v15  ;;  %v10310_v15 = vld [vmem:[%s15290_s5 + $0x334] ss:$8 sps:$4 sm:$0xff]  }
 0x364   : > { %v9771_v41 = vpop.f32.mrb[136].mxu0  ;;  %8975 = vmatprep.subr.bf16.mxu0 %v2807_v37  ;;  %v10307_v37 = vld [vmem:[%s15290_s5 + $0x320] ss:$8 sps:$4 sm:$0xff]  }
 0x365   : > { %v2732_v47 = vpop.f32.mrb[137].mxu0 }
 0x366   : > { %v9772_v7 = vpop.f32.mrb[138].mxu0 }
 0x367   : > { %v2809_v59 = vpack.c.bf16 %v9772_v7, %v9771_v41  ;;  %v2735_v54 = vpop.f32.mrb[139].mxu0  ;;  %8976 = vmatpush3.bf16.msra.mxu0 %v2799_v48  ;;  %v10290_v48 = vld [vmem:[%s15290_s5 + $0x284] ss:$8 sps:$4 sm:$0xff]   ;;  %v10313_v41 = vld [vmem:[%s15290_s5 + $0x330] ss:$8 sps:$4 sm:$0xff]  }
 0x368   : > { %v2808_v30 = vpack.c.bf16 %v2735_v54, %v2732_v47  ;;  %v10314_v47 = vld [vmem:[%s15290_s5 + $0x2c4] ss:$8 sps:$4 sm:$0xff]   ;;  %v10320_v54 = vld [vmem:[%s15290_s5 + $0x2d4] ss:$8 sps:$4 sm:$0xff]  }
 0x369   : > { %v10316_v7 = vld [vmem:[%s15290_s5 + $0x344] ss:$8 sps:$4 sm:$0xff]  }
 0x36a   : > { %2425 = vmatmul.mubr.bf16.gmra.mrb[136].mxu1 %v10286_v11  ;;  %8977 = vmatprep.subr.bf16.mxu0 %v2808_v30  ;;  %v10318_v11 = vld [vmem:[%s15290_s5 + $0x2c0] ss:$8 sps:$4 sm:$0xff]   ;;  %v10324_v30 = vld [vmem:[%s15290_s5 + $0x2d0] ss:$8 sps:$4 sm:$0xff]  }
 0x36b   : > { %8978 = vmatpush3.bf16.msra.mxu0 %v2800_v29  ;;  %2432 = vmatprep.mubr.bf16.mxu1 %v10287_v26  ;;  %v10292_v29 = vld [vmem:[%s15290_s5 + $0x300] ss:$8 sps:$4 sm:$0xff]   ;;  %v10322_v26 = vld [vmem:[%s15290_s5 + $0x354] ss:$8 sps:$4 sm:$0xff]  }
 0x36c   : > { %v9775_v39 = vpop.f32.mrb[140].mxu0  ;;  %8979 = vmatprep.subr.bf16.mxu0 %v2809_v59  ;;  %v10319_v59 = vld [vmem:[%s15290_s5 + $0x340] ss:$8 sps:$4 sm:$0xff]  }
 0x36d   : > { %v2748_v35 = vpop.f32.mrb[141].mxu0 }
 0x36e   : > { %v9776_v9 = vpop.f32.mrb[142].mxu0 }
 0x36f   : > { %v2811_v1 = vpack.c.bf16 %v9776_v9, %v9775_v39  ;;  %v2751_v60 = vpop.f32.mrb[143].mxu0  ;;  %8980 = vmatpush3.bf16.msra.mxu0 %v2801_v13  ;;  %v10296_v13 = vld [vmem:[%s15290_s5 + $0x294] ss:$8 sps:$4 sm:$0xff]   ;;  %v10325_v39 = vld [vmem:[%s15290_s5 + $0x350] ss:$8 sps:$4 sm:$0xff]  }
 0x370   : > { %v2810_v32 = vpack.c.bf16 %v2751_v60, %v2748_v35  ;;  %v10326_v35 = vld [vmem:[%s15290_s5 + $0x2e4] ss:$8 sps:$4 sm:$0xff]   ;;  %v10332_v60 = vld [vmem:[%s15290_s5 + $0x2f4] ss:$8 sps:$4 sm:$0xff]  }
 0x371   : > { %v10328_v9 = vld [vmem:[%s15290_s5 + $0x364] ss:$8 sps:$4 sm:$0xff]  }
 0x372   : > { %2433 = vmatmul.mubr.bf16.gmra.mrb[140].mxu1 %v10289_v25  ;;  %8981 = vmatprep.subr.bf16.mxu0 %v2810_v32  ;;  %v10330_v25 = vld [vmem:[%s15290_s5 + $0x2e0] ss:$8 sps:$4 sm:$0xff]   ;;  %v10336_v32 = vld [vmem:[%s15290_s5 + $0x2f0] ss:$8 sps:$4 sm:$0xff]  }
 0x373   : > { %8982 = vmatpush3.bf16.msra.mxu0 %v2802_v36  ;;  %2440 = vmatprep.mubr.bf16.mxu1 %v10290_v48  ;;  %v10300_v36 = vld [vmem:[%s15290_s5 + $0x290] ss:$8 sps:$4 sm:$0xff]   ;;  %v10334_v48 = vld [vmem:[%s15290_s5 + $0x374] ss:$8 sps:$4 sm:$0xff]  }
 0x374   : > { %8983 = vmatprep.subr.bf16.mxu0 %v2811_v1  ;;  %v10331_v1 = vld [vmem:[%s15290_s5 + $0x360] ss:$8 sps:$4 sm:$0xff]  }
 0x377   : > { %8984 = vmatpush3.bf16.msra.mxu0 %v2803_v16  ;;  %v10301_v16 = vld [vmem:[%s15290_s5 + $0x310] ss:$8 sps:$4 sm:$0xff]  }
 0x37a   : > { %2441 = vmatmul.mubr.bf16.gmra.mrb[144].mxu1 %v10295_v23  ;;  %3005 = vmatmul.mubr.bf16.vlgmr.msra.gmra.mrb[144].mxu0 %v10292_v29  ;;  %v10337_v29 = vld [vmem:[%s15290_s5 + $0x370] ss:$8 sps:$4 sm:$0xff]   ;;  %v10338_v23 = vld [vmem:[%s15290_s5 + $0x384] ss:$8 sps:$4 sm:$0xff]  }
 0x37b   : > { %2448 = vmatprep.mubr.bf16.mxu1 %v10296_v13  ;;  %3012 = vmatprep.mubr.bf16.mxu0 %v10298_v8  ;;  %v10340_v13 = vld [vmem:[%s15290_s5 + $0x380] ss:$8 sps:$4 sm:$0xff]   ;;  %v10341_v8 = vld [vmem:[%s15290_s5 + $0x394] ss:$8 sps:$4 sm:$0xff]  }
 0x382   : > { %2449 = vmatmul.mubr.bf16.gmra.mrb[148].mxu1 %v10300_v36  ;;  %3013 = vmatmul.mubr.bf16.gmra.mrb[148].mxu0 %v10301_v16  ;;  %v10343_v36 = vld [vmem:[%s15290_s5 + $0x390] ss:$8 sps:$4 sm:$0xff]   ;;  %v10344_v16 = vld [vmem:[%s15290_s5 + $0x3a4] ss:$8 sps:$4 sm:$0xff]  }
 0x383   : > { %2456 = vmatprep.mubr.bf16.mxu1 %v10302_v28  ;;  %3020 = vmatprep.mubr.bf16.mxu0 %v10304_v27  ;;  %v10346_v28 = vld [vmem:[%s15290_s5 + $0x3a0] ss:$8 sps:$4 sm:$0xff]   ;;  %v10347_v27 = vld [vmem:[%s15290_s5 + $0x3b4] ss:$8 sps:$4 sm:$0xff]  }
 0x38a   : > { %2457 = vmatmul.mubr.bf16.gmra.mrb[152].mxu1 %v10306_v18  ;;  %3021 = vmatmul.mubr.bf16.gmra.mrb[152].mxu0 %v10307_v37  ;;  %v10349_v18 = vld [vmem:[%s15290_s5 + $0x3b0] ss:$8 sps:$4 sm:$0xff]   ;;  %v10350_v37 = vld [vmem:[%s15290_s5 + $0x3c4] ss:$8 sps:$4 sm:$0xff]  }
 0x38b   : > { %2464 = vmatprep.mubr.bf16.mxu1 %v10308_v51  ;;  %3028 = vmatprep.mubr.bf16.mxu0 %v10310_v15  ;;  %v10352_v51 = vld [vmem:[%s15290_s5 + $0x3c0] ss:$8 sps:$4 sm:$0xff]   ;;  %v10353_v15 = vld [vmem:[%s15290_s5 + $0x3d4] ss:$8 sps:$4 sm:$0xff]  }
 0x392   : > { %2465 = vmatmul.mubr.bf16.gmra.mrb[156].mxu1 %v10312_v19  ;;  %3029 = vmatmul.mubr.bf16.gmra.mrb[156].mxu0 %v10313_v41  ;;  %v10355_v19 = vld [vmem:[%s15290_s5 + $0x3d0] ss:$8 sps:$4 sm:$0xff]   ;;  %v10356_v41 = vld [vmem:[%s15290_s5 + $0x3e4] ss:$8 sps:$4 sm:$0xff]  }
 0x393   : > { %2472 = vmatprep.mubr.bf16.mxu1 %v10314_v47  ;;  %3036 = vmatprep.mubr.bf16.mxu0 %v10316_v7  ;;  %v10362_v47 = vld [vmem:[%s15289_s4 + $0x140] sm:$0xff]  }
 0x394   : > { %v10363_v7 = vld [vmem:[%s15289_s4 + $0x100] sm:$0xff]   ;;  %9777 = vmatprep.subr.bf16.mxu1 %v10362_v47 }
 0x395   : > { %9778 = vmatpush3.bf16.msra.mxu1 %v10362_v47  ;;  %9825 = vmatprep.subr.bf16.mxu0 %v10363_v7 }
 0x396   : > { %9826 = vmatpush3.bf16.msra.mxu0 %v10363_v7 }
 0x39a   : > { %2473 = vmatmul.mubr.bf16.gmra.mrb[160].mxu1 %v10318_v11  ;;  %3037 = vmatmul.mubr.bf16.gmra.mrb[160].mxu0 %v10319_v59  ;;  %v10364_v11 = vld [vmem:[%s15289_s4 + $0x148] sm:$0xff]  }
 0x39b   : > { %2480 = vmatprep.mubr.bf16.mxu1 %v10320_v54  ;;  %3044 = vmatprep.mubr.bf16.mxu0 %v10322_v26  ;;  %v10365_v59 = vld [vmem:[%s15289_s4 + $0x108] sm:$0xff]   ;;  %v10359_v26 = vld [vmem:[%s15290_s5 + $0x3f4] ss:$8 sps:$4 sm:$0xff]  }
 0x39c   : > { %v10358_v54 = vld [vmem:[%s15290_s5 + $0x3e0] ss:$8 sps:$4 sm:$0xff]   ;;  %9779 = vmatprep.subr.bf16.mxu1 %v10364_v11  ;;  %9827 = vmatprep.subr.bf16.mxu0 %v10365_v59 }
 0x39d   : > { %9780 = vmatpush3.bf16.msra.mxu1 %v10364_v11  ;;  %9828 = vmatpush3.bf16.msra.mxu0 %v10365_v59 }
 0x3a2   : > { %2481 = vmatmul.mubr.bf16.gmra.mrb[164].mxu1 %v10324_v30  ;;  %3045 = vmatmul.mubr.bf16.gmra.mrb[164].mxu0 %v10325_v39  ;;  %v10366_v30 = vld [vmem:[%s15289_s4 + $0x150] sm:$0xff]  }
 0x3a3   : > { %2488 = vmatprep.mubr.bf16.mxu1 %v10326_v35  ;;  %3052 = vmatprep.mubr.bf16.mxu0 %v10328_v9  ;;  %v10367_v39 = vld [vmem:[%s15289_s4 + $0x110] sm:$0xff]   ;;  %v10368_v35 = vld [vmem:[%s15289_s4 + $0x158] sm:$0xff]  }
 0x3a4   : > { %9781 = vmatprep.subr.bf16.mxu1 %v10366_v30  ;;  %9829 = vmatprep.subr.bf16.mxu0 %v10367_v39  ;;  %v10369_v9 = vld [vmem:[%s15289_s4 + $0x118] sm:$0xff]  }
 0x3a5   : > { %9782 = vmatpush3.bf16.msra.mxu1 %v10366_v30  ;;  %9830 = vmatpush3.bf16.msra.mxu0 %v10367_v39 }
 0x3a6   : > { %9783 = vmatprep.subr.bf16.mxu1 %v10368_v35  ;;  %9831 = vmatprep.subr.bf16.mxu0 %v10369_v9 }
 0x3a9   : > { %9784 = vmatpush3.bf16.msra.mxu1 %v10368_v35  ;;  %9832 = vmatpush3.bf16.msra.mxu0 %v10369_v9 }
 0x3aa   : > { %2489 = vmatmul.mubr.bf16.gmra.mrb[168].mxu1 %v10330_v25  ;;  %3053 = vmatmul.mubr.bf16.gmra.mrb[168].mxu0 %v10331_v1  ;;  %v10361_v25 = vld [vmem:[%s15290_s5 + $0x3f0] ss:$8 sps:$4 sm:$0xff]   ;;  %v10370_v1 = vld [vmem:[%s15289_s4 + $0x160] sm:$0xff]  }
 0x3ab   : > { %2496 = vmatprep.mubr.bf16.mxu1 %v10332_v60  ;;  %3060 = vmatprep.mubr.bf16.mxu0 %v10334_v48  ;;  %v10371_v60 = vld [vmem:[%s15289_s4 + $0x120] sm:$0xff]   ;;  %v10372_v48 = vld [vmem:[%s15289_s4 + $0x168] sm:$0xff]  }
 0x3ac   : > { %9785 = vmatprep.subr.bf16.mxu1 %v10370_v1  ;;  %9833 = vmatprep.subr.bf16.mxu0 %v10371_v60 }
 0x3ad   : > { %9786 = vmatpush3.bf16.msra.mxu1 %v10370_v1  ;;  %9834 = vmatpush3.bf16.msra.mxu0 %v10371_v60 }
 0x3ae   : > { %9787 = vmatprep.subr.bf16.mxu1 %v10372_v48 }
 0x3b1   : > { %9788 = vmatpush3.bf16.msra.mxu1 %v10372_v48 }
 0x3b2   : > { %2497 = vmatmul.mubr.bf16.gmra.mrb[172].mxu1 %v10336_v32  ;;  %3061 = vmatmul.mubr.bf16.gmra.mrb[172].mxu0 %v10337_v29  ;;  %v10373_v32 = vld [vmem:[%s15289_s4 + $0x128] sm:$0xff]   ;;  %v10374_v29 = vld [vmem:[%s15289_s4 + $0x170] sm:$0xff]  }
 0x3b3   : > { %3068 = vmatprep.mubr.bf16.mxu0 %v10338_v23  ;;  %9835 = vmatprep.subr.bf16.mxu0 %v10373_v32  ;;  %v10375_v23 = vld [vmem:[%s15289_s4 + $0x130] sm:$0xff]  }
 0x3b4   : > { %9836 = vmatpush3.bf16.msra.mxu0 %v10373_v32  ;;  %9789 = vmatprep.subr.bf16.mxu1 %v10374_v29 }
 0x3b5   : > { %9837 = vmatprep.subr.bf16.mxu0 %v10375_v23  ;;  %9790 = vmatpush3.bf16.msra.mxu1 %v10374_v29 }
 0x3b8   : > { %9838 = vmatpush3.bf16.msra.mxu0 %v10375_v23 }
 0x3ba   : > { %3069 = vmatmul.mubr.bf16.gmra.mrb[176].mxu0 %v10340_v13  ;;  %v10376_v13 = vld [vmem:[%s15289_s4 + $0x178] sm:$0xff]  }
 0x3bb   : > { %3076 = vmatprep.mubr.bf16.mxu0 %v10341_v8  ;;  %v10377_v8 = vld [vmem:[%s15289_s4 + $0x138] sm:$0xff]   ;;  %9791 = vmatprep.subr.bf16.mxu1 %v10376_v13 }
 0x3bc   : > { %9839 = vmatprep.subr.bf16.mxu0 %v10377_v8  ;;  %9792 = vmatpush3.bf16.msra.mxu1 %v10376_v13 }
 0x3bd   : > { %9840 = vmatpush3.bf16.msra.mxu0 %v10377_v8 }
 0x3c2   : > { %3077 = vmatmul.mubr.bf16.gmra.mrb[180].mxu0 %v10343_v36 }
 0x3c3   : > { %3084 = vmatprep.mubr.bf16.mxu0 %v10344_v16 }
 0x3ca   : > { %3085 = vmatmul.mubr.bf16.gmra.mrb[184].mxu0 %v10346_v28 }
 0x3cb   : > { %3092 = vmatprep.mubr.bf16.mxu0 %v10347_v27 }
 0x3d2   : > { %3093 = vmatmul.mubr.bf16.gmra.mrb[188].mxu0 %v10349_v18 }
 0x3d3   : > { %3100 = vmatprep.mubr.bf16.mxu0 %v10350_v37 }
 0x3da   : > { %3101 = vmatmul.mubr.bf16.gmra.mrb[192].mxu0 %v10352_v51 }
 0x3db   : > { %3108 = vmatprep.mubr.bf16.mxu0 %v10353_v15 }
 0x3e2   : > { %3109 = vmatmul.mubr.bf16.gmra.mrb[196].mxu0 %v10355_v19 }
 0x3e3   : > { %3116 = vmatprep.mubr.bf16.mxu0 %v10356_v41 }
 0x3ea   : > { %3117 = vmatmul.mubr.bf16.gmra.mrb[200].mxu0 %v10358_v54 }
 0x3eb   : > { %3124 = vmatprep.mubr.bf16.mxu0 %v10359_v26 }
 0x3f2   : > { %3125 = vmatmul.mubr.bf16.gmra.mrb[204].mxu0 %v10361_v25 }
 0x40d   : > { %v8849_v36 = vpop.f32.mrb[112].mxu1 }
 0x40e   : > { %v8850_v16 = vpop.f32.mrb[113].mxu1 }
 0x40f   : > { %v8851_v28 = vadd.f32 %v8850_v16, %v8849_v36  ;;  %v8852_v27 = vpop.f32.mrb[114].mxu1 }
 0x410   : > { %v8853_v18 = vpop.f32.mrb[115].mxu1 }
 0x411   : > { %v12194_v37 = vadd.f32 %v8851_v28, %v11802_v0  ;;  %v8854_v51 = vadd.f32 %v8853_v18, %v8852_v27 }
 0x413   : > { %v12197_v15 = vadd.f32 %v8854_v51, %v11808_v33 }
 0x415   : > { %v8855_v19 = vpop.f32.mrb[116].mxu1 }
 0x416   : > { %v8856_v41 = vpop.f32.mrb[117].mxu1 }
 0x417   : > { %v8857_v47 = vadd.f32 %v8856_v41, %v8855_v19  ;;  %v8858_v7 = vpop.f32.mrb[118].mxu1 }
 0x418   : > { %v8859_v11 = vpop.f32.mrb[119].mxu1 }
 0x419   : > { %v12200_v59 = vadd.f32 %v8857_v47, %v11814_v58  ;;  %v8860_v54 = vadd.f32 %v8859_v11, %v8858_v7 }
 0x41b   : > { %v12203_v26 = vadd.f32 %v8860_v54, %v11820_v56 }
 0x41d   : > { %v8861_v30 = vpop.f32.mrb[120].mxu1 }
 0x41e   : > { %v8862_v39 = vpop.f32.mrb[121].mxu1 }
 0x41f   : > { %v8863_v0 = vadd.f32 %v8862_v39, %v8861_v30  ;;  %v8864_v35 = vpop.f32.mrb[122].mxu1 }
 0x420   : > { %v8865_v9 = vpop.f32.mrb[123].mxu1 }
 0x421   : > { %v12206_v33 = vadd.f32 %v8863_v0, %v11826_v40  ;;  %v8866_v25 = vadd.f32 %v8865_v9, %v8864_v35 }
 0x423   : > { %v12209_v1 = vadd.f32 %v8866_v25, %v11832_v62 }
 0x425   : > { %v8867_v60 = vpop.f32.mrb[124].mxu1 }
 0x426   : > { %v8868_v48 = vpop.f32.mrb[125].mxu1 }
 0x427   : > { %v8869_v58 = vadd.f32 %v8868_v48, %v8867_v60  ;;  %v8870_v32 = vpop.f32.mrb[126].mxu1 }
 0x428   : > { %v8871_v29 = vpop.f32.mrb[127].mxu1 }
 0x429   : > { %v12212_v56 = vadd.f32 %v8869_v58, %v11838_v57  ;;  %v8872_v23 = vadd.f32 %v8871_v29, %v8870_v32 }
 0x42b   : > { %v12215_v13 = vadd.f32 %v8872_v23, %v11844_v17  ;;  %v3167_v23 = vsub.s32 6, %v11033_v3 }
 0x42d   : > { %v8873_v8 = vpop.f32.mrb[128].mxu1 }
 0x42e   : > { %v8874_v36 = vpop.f32.mrb[129].mxu1 }
 0x42f   : > { %v8875_v40 = vadd.f32 %v8874_v36, %v8873_v8  ;;  %v8876_v16 = vpop.f32.mrb[130].mxu1 }
 0x430   : > { %v8877_v28 = vpop.f32.mrb[131].mxu1 }
 0x431   : > { %v12218_v62 = vadd.f32 %v8875_v40, %v11850_v12  ;;  %v8878_v27 = vadd.f32 %v8877_v28, %v8876_v16 }
 0x433   : > { %v12221_v18 = vadd.f32 %v8878_v27, %v11856_v2  ;;  %v10930_v27 = vld [vmem:[%s15286_s1] sm:$0xff] }
 0x435   : > { %v8879_v51 = vpop.f32.mrb[132].mxu1 }
 0x436   : > { %v8880_v19 = vpop.f32.mrb[133].mxu1 }
 0x437   : > { %v8881_v57 = vadd.f32 %v8880_v19, %v8879_v51  ;;  %v8882_v41 = vpop.f32.mrb[134].mxu1  ;;  %v3239_v51 = vsub.s32 3, %v11033_v3 }
 0x438   : > { %v8883_v47 = vpop.f32.mrb[135].mxu1 }
 0x439   : > { %v12224_v17 = vadd.f32 %v8881_v57, %v11861_v42  ;;  %v8884_v7 = vadd.f32 %v8883_v47, %v8882_v41 }
 0x43b   : > { %v12227_v11 = vadd.f32 %v8884_v7, %v11866_v61 }
 0x43d   : > { %v8885_v54 = vpop.f32.mrb[136].mxu1 }
 0x43e   : > { %v8886_v30 = vpop.f32.mrb[137].mxu1 }
 0x43f   : > { %v8887_v12 = vadd.f32 %v8886_v30, %v8885_v54  ;;  %v8888_v39 = vpop.f32.mrb[138].mxu1 }
 0x440   : > { %v8889_v0 = vpop.f32.mrb[139].mxu1 }
 0x441   : > { %v12230_v2 = vadd.f32 %v8887_v12, %v11871_v14  ;;  %v8890_v35 = vadd.f32 %v8889_v0, %v8888_v39  ;;  %v15294_v14 = vsub.s32 2, %v11033_v3  ;;  %v12258_v0 = vrot.slane %v10930_v27, %v3239_v51 }
 0x443   : > { %v12233_v9 = vadd.f32 %v8890_v35, %v11876_v10  ;;  %v12251_v57 = vrot.slane %v10930_v27, %v15294_v14 }
 0x445   : > { %v8891_v25 = vpop.f32.mrb[140].mxu1 }
 0x446   : > { %v8892_v60 = vpop.f32.mrb[141].mxu1 }
 0x447   : > { %v8893_v42 = vadd.f32 %v8892_v60, %v8891_v25  ;;  %v8894_v48 = vpop.f32.mrb[142].mxu1 }
 0x448   : > { %v8895_v58 = vpop.f32.mrb[143].mxu1 }
 0x449   : > { %v12236_v61 = vadd.f32 %v8893_v42, %v11881_v44  ;;  %v8896_v32 = vadd.f32 %v8895_v58, %v8894_v48  ;;  %v12246_v44 = vrot.slane %v10930_v27, %v3167_v23 }
 0x44b   : > { %v12239_v29 = vadd.f32 %v8896_v32, %v11886_v20 }
 0x44d   : > { %v8897_v8 = vpop.f32.mrb[144].mxu1  ;;  %v8985_v36 = vpop.f32.mrb[144].mxu0 }
 0x44e   : > { %v8898_v10 = vpop.f32.mrb[145].mxu1  ;;  %v8986_v40 = vpop.f32.mrb[145].mxu0 }
 0x44f   : > { %v8899_v16 = vadd.f32 %v8898_v10, %v8897_v8  ;;  %v8987_v28 = vadd.f32 %v8986_v40, %v8985_v36  ;;  %v8900_v20 = vpop.f32.mrb[146].mxu1  ;;  %v8988_v19 = vpop.f32.mrb[146].mxu0 }
 0x450   : > { %v8901_v41 = vpop.f32.mrb[147].mxu1  ;;  %v8989_v47 = vpop.f32.mrb[147].mxu0 }
 0x451   : > { %v3133_v7 = vadd.f32 %v8987_v28, %v12194_v37  ;;  %v8902_v54 = vadd.f32 %v8901_v41, %v8900_v20  ;;  %v8990_v30 = vadd.f32 %v8989_v47, %v8988_v19  ;;  %v12255_v12 = vadd.f32 %v8899_v16, %v11891_v34  ;;  %v12277_v20 = vld [vmem:[%s15289_s4 + $0x180] sm:$0xff]  }
 0x452   : > { %9873 = vmatprep.subr.bf16.mxu0 %v12277_v20 }
 0x453   : > { %v3169_v39 = vadd.f32 %v12246_v44, %v3133_v7  ;;  %v3134_v35 = vadd.f32 %v8990_v30, %v12197_v15  ;;  %v12262_v25 = vadd.f32 %v8902_v54, %v11897_v45 }
 0x455   : > { %v3205_v60 = vmul.f32 %v12251_v57, %v3169_v39  ;;  %v3170_v42 = vadd.f32 %v12246_v44, %v3134_v35  ;;  %v8903_v48 = vpop.f32.mrb[148].mxu1  ;;  %v8991_v37 = vpop.f32.mrb[148].mxu0 }
 0x456   : > { %v8904_v58 = vpop.f32.mrb[149].mxu1  ;;  %v8992_v32 = vpop.f32.mrb[149].mxu0 }
 0x457   : > { %v12267_v34 = vadd.f32 %v12258_v0, %v3205_v60  ;;  %v3206_v23 = vmul.f32 %v12251_v57, %v3170_v42  ;;  %v8905_v8 = vadd.f32 %v8904_v58, %v8903_v48  ;;  %v8993_v36 = vadd.f32 %v8992_v32, %v8991_v37  ;;  %v8906_v10 = vpop.f32.mrb[150].mxu1  ;;  %v8994_v15 = vpop.f32.mrb[150].mxu0 }
 0x458   : > { %v8907_v40 = vpop.f32.mrb[151].mxu1  ;;  %v8995_v45 = vpop.f32.mrb[151].mxu0 }
 0x459   : > { %v12271_v16 = vadd.f32 %v12258_v0, %v3206_v23  ;;  %v3135_v28 = vadd.f32 %v8993_v36, %v12200_v59  ;;  %v8908_v27 = vadd.f32 %v8907_v40, %v8906_v10  ;;  %v8996_v51 = vadd.f32 %v8995_v45, %v8994_v15 }
 0x45a   : > { %v3273_v19 = vmul.f32 %v12267_v34, %v12267_v34  ;;  %v12282_v41 = vadd.f32 %v8905_v8, %v11900_v52 }
 0x45b   : > { %v3171_v47 = vadd.f32 %v12246_v44, %v3135_v28  ;;  %v3136_v7 = vadd.f32 %v8996_v51, %v12203_v26  ;;  %v3274_v59 = vmul.f32 %v12271_v16, %v12271_v16  ;;  %v12289_v54 = vadd.f32 %v8908_v27, %v11903_v46 }
 0x45c   : > { %v3305_v30 = vmul.f32 %v3273_v19, %v12267_v34 }
 0x45d   : > { %v3207_v39 = vmul.f32 %v12251_v57, %v3171_v47  ;;  %v3172_v35 = vadd.f32 %v12246_v44, %v3136_v7  ;;  %v8909_v52 = vpop.f32.mrb[152].mxu1  ;;  %v8997_v60 = vpop.f32.mrb[152].mxu0  ;;  %v3306_v42 = vmul.f32 %v3274_v59, %v12271_v16 }
 0x45e   : > { %v8910_v48 = vpop.f32.mrb[153].mxu1  ;;  %v8998_v26 = vpop.f32.mrb[153].mxu0  ;;  %v3337_v37 = vmul.f32 0.044715, %v3305_v30 }
 0x45f   : > { %v12297_v58 = vadd.f32 %v12258_v0, %v3207_v39  ;;  %v3208_v46 = vmul.f32 %v12251_v57, %v3172_v35  ;;  %v8911_v32 = vadd.f32 %v8910_v48, %v8909_v52  ;;  %v8999_v23 = vadd.f32 %v8998_v26, %v8997_v60  ;;  %v8912_v8 = vpop.f32.mrb[154].mxu1  ;;  %v9000_v36 = vpop.f32.mrb[154].mxu0 }
 0x460   : > { %v8913_v10 = vpop.f32.mrb[155].mxu1  ;;  %v9001_v15 = vpop.f32.mrb[155].mxu0  ;;  %v3338_v40 = vmul.f32 0.044715, %v3306_v42  ;;  %v3369_v45 = vadd.f32 %v3337_v37, %v12267_v34 }
 0x461   : > { %v3275_v28 = vmul.f32 %v12297_v58, %v12297_v58  ;;  %v12304_v27 = vadd.f32 %v12258_v0, %v3208_v46  ;;  %v3137_v51 = vadd.f32 %v8999_v23, %v12206_v33  ;;  %v8914_v19 = vadd.f32 %v8913_v10, %v8912_v8 }
 0x462   : > { %v9002_v47 = vadd.f32 %v9001_v15, %v9000_v36  ;;  %v3370_v7 = vadd.f32 %v3338_v40, %v12271_v16  ;;  %v3401_v59 = vmul.f32 0.7978846, %v3369_v45  ;;  %v12309_v30 = vadd.f32 %v8911_v32, %v11906_v50 }
 0x463   : > { %v3307_v39 = vmul.f32 %v3275_v28, %v12297_v58  ;;  %v3276_v35 = vmul.f32 %v12304_v27, %v12304_v27  ;;  %v3173_v52 = vadd.f32 %v12246_v44, %v3137_v51  ;;  %v12316_v60 = vadd.f32 %v8914_v19, %v11909_v38 }
 0x464   : > { %v3138_v33 = vadd.f32 %v9002_v47, %v12209_v1  ;;  %v3402_v42 = vmul.f32 0.7978846, %v3370_v7  ;;  %10610 = vtanh.f32 %v3401_v59 }
 0x465   : > { %v3339_v48 = vmul.f32 0.044715, %v3307_v39  ;;  %v3308_v26 = vmul.f32 %v3276_v35, %v12304_v27  ;;  %v3209_v50 = vmul.f32 %v12251_v57, %v3173_v52  ;;  %v8915_v37 = vpop.f32.mrb[156].mxu1  ;;  %v9003_v46 = vpop.f32.mrb[156].mxu0 }
 0x466   : > { %v3174_v32 = vadd.f32 %v12246_v44, %v3138_v33  ;;  %v8916_v23 = vpop.f32.mrb[157].mxu1  ;;  %v9004_v8 = vpop.f32.mrb[157].mxu0  ;;  %10612 = vtanh.f32 %v3402_v42 }
 0x467   : > { %v3371_v36 = vadd.f32 %v3339_v48, %v12297_v58  ;;  %v3340_v38 = vmul.f32 0.044715, %v3308_v26  ;;  %v12324_v10 = vadd.f32 %v12258_v0, %v3209_v50  ;;  %v8917_v1 = vadd.f32 %v8916_v23, %v8915_v37  ;;  %v8918_v15 = vpop.f32.mrb[158].mxu1  ;;  %v9006_v40 = vpop.f32.mrb[158].mxu0 }
 0x468   : > { %v3210_v45 = vmul.f32 %v12251_v57, %v3174_v32  ;;  %v9005_v28 = vadd.f32 %v9004_v8, %v9003_v46  ;;  %v8919_v51 = vpop.f32.mrb[159].mxu1  ;;  %v9007_v19 = vpop.f32.mrb[159].mxu0 }
 0x469   : > { %v3372_v47 = vadd.f32 %v3340_v38, %v12304_v27  ;;  %v8920_v7 = vadd.f32 %v8919_v51, %v8918_v15  ;;  %v9008_v59 = vadd.f32 %v9007_v19, %v9006_v40  ;;  %v3403_v39 = vmul.f32 0.7978846, %v3371_v36 }
 0x46a   : > { %v12329_v35 = vadd.f32 %v12258_v0, %v3210_v45  ;;  %v3139_v52 = vadd.f32 %v9005_v28, %v12212_v56  ;;  %v3277_v33 = vmul.f32 %v12324_v10, %v12324_v10  ;;  %v12335_v42 = vadd.f32 %v8917_v1, %v11912_v31 }
 0x46b   : > { %v3140_v48 = vadd.f32 %v9008_v59, %v12215_v13  ;;  %v3404_v26 = vmul.f32 0.7978846, %v3372_v47  ;;  %10614 = vtanh.f32 %v3403_v39  ;;  %v12339_v50 = vadd.f32 %v8920_v7, %v11915_v63 }
 0x46c   : > { %v3175_v37 = vadd.f32 %v12246_v44, %v3139_v52  ;;  %v3278_v46 = vmul.f32 %v12329_v35, %v12329_v35  ;;  %v3309_v56 = vmul.f32 %v3277_v33, %v12324_v10 }
 0x46d   : > { %v3176_v32 = vadd.f32 %v12246_v44, %v3140_v48  ;;  %v8921_v23 = vpop.f32.mrb[160].mxu1  ;;  %v9009_v8 = vpop.f32.mrb[160].mxu0  ;;  %10616 = vtanh.f32 %v3404_v26 }
 0x46e   : > { %v10611_v31 = vpop.eup %10610  ;;  %v3211_v13 = vmul.f32 %v12251_v57, %v3175_v37  ;;  %v8922_v36 = vpop.f32.mrb[161].mxu1  ;;  %v3310_v63 = vmul.f32 %v3278_v46, %v12329_v35  ;;  %v3341_v1 = vmul.f32 0.044715, %v3309_v56 }
 0x46f   : > { %v9010_v38 = vpop.f32.mrb[161].mxu0  ;;  %v3212_v15 = vmul.f32 %v12251_v57, %v3176_v32  ;;  %v8923_v40 = vadd.f32 %v8922_v36, %v8921_v23  ;;  %v8924_v28 = vpop.f32.mrb[162].mxu1  ;;  %v3465_v19 = vadd.f32 1.0, %v10611_v31 }
 0x470   : > { %v9011_v45 = vadd.f32 %v9010_v38, %v9009_v8  ;;  %v9012_v51 = vpop.f32.mrb[162].mxu0  ;;  %v10613_v47 = vpop.eup %10612  ;;  %v12350_v7 = vadd.f32 %v12258_v0, %v3211_v13  ;;  %v3342_v52 = vmul.f32 0.044715, %v3310_v63  ;;  %v3373_v33 = vadd.f32 %v3341_v1, %v12324_v10 }
 0x471   : > { %v8925_v59 = vpop.f32.mrb[163].mxu1  ;;  %v9013_v39 = vpop.f32.mrb[163].mxu0  ;;  %v12354_v48 = vadd.f32 %v12258_v0, %v3212_v15  ;;  %v3466_v56 = vadd.f32 1.0, %v10613_v47  ;;  %v3497_v32 = vmul.f32 0.5, %v3465_v19 }
 0x472   : > { %v3141_v26 = vadd.f32 %v9011_v45, %v12218_v62  ;;  %v8926_v37 = vadd.f32 %v8925_v59, %v8924_v28  ;;  %v9014_v46 = vadd.f32 %v9013_v39, %v9012_v51  ;;  %v3374_v23 = vadd.f32 %v3342_v52, %v12329_v35 }
 0x473   : > { %v3405_v8 = vmul.f32 0.7978846, %v3373_v33  ;;  %v3279_v36 = vmul.f32 %v12350_v7, %v12350_v7  ;;  %v3280_v38 = vmul.f32 %v12354_v48, %v12354_v48  ;;  %v3498_v63 = vmul.f32 0.5, %v3466_v56 }
 0x474   : > { %v3177_v31 = vadd.f32 %v12246_v44, %v3141_v26  ;;  %v3142_v13 = vadd.f32 %v9014_v46, %v12221_v18  ;;  %v3529_v62 = vmul.f32 %v3497_v32, %v12267_v34  ;;  %v3406_v1 = vmul.f32 0.7978846, %v3374_v23 }
 0x475   : > { %10618 = vtanh.f32 %v3405_v8  ;;  %v10615_v15 = vpop.eup %10614  ;;  %v8927_v51 = vpop.f32.mrb[164].mxu1  ;;  %v3311_v18 = vmul.f32 %v3279_v36, %v12350_v7  ;;  %v3312_v47 = vmul.f32 %v3280_v38, %v12354_v48  ;;  %v3530_v52 = vmul.f32 %v3498_v63, %v12271_v16 }
 0x476   : > { %v3213_v45 = vmul.f32 %v12251_v57, %v3177_v31  ;;  %v3178_v28 = vadd.f32 %v12246_v44, %v3142_v13  ;;  %v9015_v19 = vpop.f32.mrb[164].mxu0  ;;  %v8928_v59 = vpop.f32.mrb[165].mxu1  ;;  %v3467_v33 = vadd.f32 1.0, %v10615_v15  ;;  %10620 = vtanh.f32 %v3406_v1 }
 0x477   : > { %v9016_v39 = vpop.f32.mrb[165].mxu0  ;;  %v12371_v34 = vadd.f32 %v8923_v40, %v11918_v49  ;;  %v10617_v26 = vpop.eup %10616  ;;  %v8929_v32 = vadd.f32 %v8928_v59, %v8927_v51  ;;  %v12377_v38 = vpack.c.bf16 %v3530_v52, %v3529_v62  ;;  %v3343_v1 = vmul.f32 0.044715, %v3311_v18 }
 0x478   : > { %v12374_v46 = vadd.f32 %v12258_v0, %v3213_v45  ;;  %v3214_v56 = vmul.f32 %v12251_v57, %v3178_v28  ;;  %v9017_v23 = vadd.f32 %v9016_v39, %v9015_v19  ;;  %v8930_v8 = vpop.f32.mrb[166].mxu1  ;;  %v9018_v31 = vpop.f32.mrb[166].mxu0  ;;  %v3468_v16 = vadd.f32 1.0, %v10617_v26 }
 0x479   : > { %v8931_v13 = vpop.f32.mrb[167].mxu1  ;;  %v9019_v36 = vpop.f32.mrb[167].mxu0  ;;  %v3499_v63 = vmul.f32 0.5, %v3467_v33  ;;  %9793 = vmatprep.mubr.bf16.mxu1 %v12377_v38  ;;  %9841 = vmatprep.mubr.bf16.mxu0 %v12377_v38  ;;  %v3344_v19 = vmul.f32 0.044715, %v3312_v47  ;;  %v3375_v62 = vadd.f32 %v3343_v1, %v12350_v7 }
 0x47a   : > { %v12380_v49 = vadd.f32 %v12258_v0, %v3214_v56  ;;  %v3143_v40 = vadd.f32 %v9017_v23, %v12224_v17  ;;  %v8932_v15 = vadd.f32 %v8931_v13, %v8930_v8  ;;  %v9020_v45 = vadd.f32 %v9019_v36, %v9018_v31 }
 0x47b   : > { %v3500_v28 = vmul.f32 0.5, %v3468_v16  ;;  %v3531_v51 = vmul.f32 %v3499_v63, %v12297_v58  ;;  %v3281_v39 = vmul.f32 %v12374_v46, %v12374_v46  ;;  %v3376_v33 = vadd.f32 %v3344_v19, %v12354_v48 }
 0x47c   : > { %v3179_v59 = vadd.f32 %v12246_v44, %v3143_v40  ;;  %v3144_v18 = vadd.f32 %v9020_v45, %v12227_v11  ;;  %v3282_v17 = vmul.f32 %v12380_v49, %v12380_v49  ;;  %v3407_v26 = vmul.f32 0.7978846, %v3375_v62 }
 0x47d   : > { %v3532_v52 = vmul.f32 %v3500_v28, %v12304_v27  ;;  %v12396_v58 = vadd.f32 %v8926_v37, %v11921_v21  ;;  %v8933_v23 = vpop.f32.mrb[168].mxu1  ;;  %v9021_v11 = vpop.f32.mrb[168].mxu0  ;;  %v3313_v8 = vmul.f32 %v3281_v39, %v12374_v46  ;;  %v3408_v63 = vmul.f32 0.7978846, %v3376_v33  ;;  %v10379_v37 = vld [vmem:[%s15289_s4 + $0x188] sm:$0xff]  }
 0x47e   : > { %v3215_v47 = vmul.f32 %v12251_v57, %v3179_v59  ;;  %v3180_v56 = vadd.f32 %v12246_v44, %v3144_v18  ;;  %v3314_v31 = vmul.f32 %v3282_v17, %v12380_v49  ;;  %v8934_v36 = vpop.f32.mrb[169].mxu1  ;;  %v9022_v16 = vpop.f32.mrb[169].mxu0  ;;  %10622 = vtanh.f32 %v3407_v26 }
 0x47f   : > { %v10619_v13 = vpop.eup %10618  ;;  %v12402_v27 = vpack.c.bf16 %v3532_v52, %v3531_v51  ;;  %v12405_v21 = vadd.f32 %v8929_v32, %v11924_v43  ;;  %v8935_v45 = vadd.f32 %v8934_v36, %v8933_v23  ;;  %v9023_v28 = vadd.f32 %v9022_v16, %v9021_v11  ;;  %v8936_v19 = vpop.f32.mrb[170].mxu1 }
 0x480   : > { %v12411_v1 = vadd.f32 %v12258_v0, %v3215_v47  ;;  %v3216_v40 = vmul.f32 %v12251_v57, %v3180_v56  ;;  %v9024_v62 = vpop.f32.mrb[170].mxu0  ;;  %v10621_v51 = vpop.eup %10620  ;;  %v3469_v43 = vadd.f32 1.0, %v10619_v13  ;;  %10624 = vtanh.f32 %v3408_v63 }
 0x481   : > { %v8937_v59 = vpop.f32.mrb[171].mxu1  ;;  %v9025_v18 = vpop.f32.mrb[171].mxu0  ;;  %9794 = vmatmul.mubr.bf16.vlgmr.msra.gmra.mrb[176].mxu1 %v12402_v27  ;;  %9842 = vmatmul.mubr.bf16.vlgmr.msra.gmra.mrb[208].mxu0 %v12402_v27  ;;  %v3345_v32 = vmul.f32 0.044715, %v3313_v8  ;;  %v12417_v39 = vadd.f32 %v8932_v15, %v11927_v4  ;;  %v3145_v52 = vadd.f32 %v9023_v28, %v12230_v2  ;;  %v3470_v47 = vadd.f32 1.0, %v10621_v51  ;;  %v10380_v4 = vld [vmem:[%s15289_s4 + $0x190] sm:$0xff]  }
 0x482   : > { %v12420_v17 = vadd.f32 %v12258_v0, %v3216_v40  ;;  %v12423_v33 = vadd.f32 %v8937_v59, %v8936_v19  ;;  %v9026_v26 = vadd.f32 %v9025_v18, %v9024_v62  ;;  %9874 = vmatpush3.bf16.msra.mxu0 %v12277_v20  ;;  %v3501_v56 = vmul.f32 0.5, %v3469_v43 }
 0x483   : > { %v3346_v23 = vmul.f32 0.044715, %v3314_v31  ;;  %v3377_v11 = vadd.f32 %v3345_v32, %v12374_v46  ;;  %9875 = vmatprep.subr.bf16.mxu0 %v10379_v37  ;;  %v3181_v15 = vadd.f32 %v12246_v44, %v3145_v52  ;;  %v3283_v2 = vmul.f32 %v12411_v1, %v12411_v1 }
 0x484   : > { %v3146_v8 = vadd.f32 %v9026_v26, %v12233_v9  ;;  %v3284_v20 = vmul.f32 %v12420_v17, %v12420_v17  ;;  %v3502_v13 = vmul.f32 0.5, %v3470_v47  ;;  %v3533_v31 = vmul.f32 %v3501_v56, %v12324_v10 }
 0x485   : > { %v3378_v36 = vadd.f32 %v3346_v23, %v12380_v49  ;;  %v3409_v16 = vmul.f32 0.7978846, %v3377_v11  ;;  %v3217_v63 = vmul.f32 %v12251_v57, %v3181_v15  ;;  %v8939_v28 = vpop.f32.mrb[172].mxu1  ;;  %v9027_v19 = vpop.f32.mrb[172].mxu0  ;;  %v3315_v9 = vmul.f32 %v3283_v2, %v12411_v1 }
 0x486   : > { %v3182_v40 = vadd.f32 %v12246_v44, %v3146_v8  ;;  %v3316_v62 = vmul.f32 %v3284_v20, %v12420_v17  ;;  %9876 = vmatpush3.bf16.msra.mxu0 %v10379_v37  ;;  %v8940_v51 = vpop.f32.mrb[173].mxu1  ;;  %v9028_v59 = vpop.f32.mrb[173].mxu0  ;;  %v3534_v18 = vmul.f32 %v3502_v13, %v12329_v35  ;;  %v12444_v10 = vadd.f32 %v8935_v45, %v11930_v55  ;;  %v10381_v37 = vld [vmem:[%s15289_s4 + $0x198] sm:$0xff]  }
 0x487   : > { %v3410_v43 = vmul.f32 0.7978846, %v3378_v36  ;;  %10626 = vtanh.f32 %v3409_v16  ;;  %9877 = vmatprep.subr.bf16.mxu0 %v10380_v4  ;;  %v12447_v32 = vadd.f32 %v12258_v0, %v3217_v63  ;;  %v8941_v26 = vadd.f32 %v8940_v51, %v8939_v28  ;;  %v8942_v56 = vpop.f32.mrb[174].mxu1  ;;  %v9030_v23 = vpop.f32.mrb[174].mxu0 }
 0x488   : > { %v3218_v52 = vmul.f32 %v12251_v57, %v3182_v40  ;;  %v9029_v47 = vadd.f32 %v9028_v59, %v9027_v19  ;;  %v10623_v35 = vpop.eup %10622  ;;  %v8943_v11 = vpop.f32.mrb[175].mxu1  ;;  %v12453_v8 = vpack.c.bf16 %v3534_v18, %v3533_v31  ;;  %v3347_v55 = vmul.f32 0.044715, %v3315_v9 }
 0x489   : > { %v9031_v15 = vpop.f32.mrb[175].mxu0  ;;  %10628 = vtanh.f32 %v3410_v43  ;;  %v3348_v45 = vmul.f32 0.044715, %v3316_v62  ;;  %v12459_v13 = vadd.f32 %v8943_v11, %v8942_v56  ;;  %v3471_v63 = vadd.f32 1.0, %v10623_v35 }
 0x48a   : > { %v12456_v2 = vadd.f32 %v12258_v0, %v3218_v52  ;;  %v3147_v20 = vadd.f32 %v9029_v47, %v12236_v61  ;;  %v9032_v36 = vadd.f32 %v9031_v15, %v9030_v23  ;;  %9878 = vmatpush3.bf16.msra.mxu0 %v10380_v4  ;;  %v10625_v16 = vpop.eup %10624  ;;  %9797 = vmatprep.mubr.bf16.mxu1 %v12453_v8  ;;  %v10382_v61 = vld [vmem:[%s15289_s4 + $0x1a0] sm:$0xff]  }
 0x48b   : > { %9845 = vmatprep.mubr.bf16.mxu0 %v12453_v8  ;;  %v3379_v31 = vadd.f32 %v3347_v55, %v12411_v1  ;;  %v3380_v40 = vadd.f32 %v3348_v45, %v12420_v17  ;;  %v3285_v28 = vmul.f32 %v12447_v32, %v12447_v32  ;;  %v3472_v9 = vadd.f32 1.0, %v10625_v16  ;;  %9879 = vmatprep.subr.bf16.mxu0 %v10381_v37  ;;  %v10383_v45 = vld [vmem:[%s15289_s4 + $0x1a8] sm:$0xff]  }
 0x48c   : > { %v3183_v19 = vadd.f32 %v12246_v44, %v3147_v20  ;;  %v3148_v4 = vadd.f32 %v9032_v36, %v12239_v29  ;;  %v3286_v62 = vmul.f32 %v12456_v2, %v12456_v2  ;;  %v3503_v51 = vmul.f32 0.5, %v3471_v63 }
 0x48d   : > { %v3411_v59 = vmul.f32 0.7978846, %v3379_v31  ;;  %v3412_v18 = vmul.f32 0.7978846, %v3380_v40  ;;  %v3317_v43 = vmul.f32 %v3285_v28, %v12447_v32  ;;  %v9033_v56 = vpop.f32.mrb[176].mxu0  ;;  %v3504_v23 = vmul.f32 0.5, %v3472_v9 }
 0x48e   : > { %v3219_v52 = vmul.f32 %v12251_v57, %v3183_v19  ;;  %v3184_v47 = vadd.f32 %v12246_v44, %v3148_v4  ;;  %v3318_v35 = vmul.f32 %v3286_v62, %v12456_v2  ;;  %9880 = vmatpush3.bf16.msra.mxu0 %v10381_v37  ;;  %v9034_v29 = vpop.f32.mrb[177].mxu0  ;;  %v3535_v11 = vmul.f32 %v3503_v51, %v12350_v7 }
 0x48f   : > { %10630 = vtanh.f32 %v3411_v59  ;;  %v3349_v15 = vmul.f32 0.044715, %v3317_v43  ;;  %v12481_v55 = vadd.f32 %v12423_v33, %v11933_v53  ;;  %9881 = vmatprep.subr.bf16.mxu0 %v10382_v61  ;;  %v9035_v37 = vadd.f32 %v9034_v29, %v9033_v56  ;;  %v9036_v16 = vpop.f32.mrb[178].mxu0 }
 0x490   : > { %v12487_v20 = vadd.f32 %v12258_v0, %v3219_v52  ;;  %v3220_v36 = vmul.f32 %v12251_v57, %v3184_v47  ;;  %v3536_v7 = vmul.f32 %v3504_v23, %v12354_v48  ;;  %v9037_v31 = vpop.f32.mrb[179].mxu0  ;;  %10632 = vtanh.f32 %v3412_v18 }
 0x491   : > { %v10627_v63 = vpop.eup %10626  ;;  %v3350_v40 = vmul.f32 0.044715, %v3318_v35  ;;  %v3381_v53 = vadd.f32 %v3349_v15, %v12447_v32  ;;  %v12493_v33 = vadd.f32 %v8941_v26, %v11936_v24  ;;  %v3149_v19 = vadd.f32 %v9035_v37, %v12255_v12  ;;  %v10384_v24 = vld [vmem:[%s15289_s4 + $0x1b0] sm:$0xff]  }
 0x492   : > { %v12496_v28 = vadd.f32 %v12258_v0, %v3220_v36  ;;  %v9038_v4 = vadd.f32 %v9037_v31, %v9036_v16  ;;  %v12499_v9 = vpack.c.bf16 %v3536_v7, %v3535_v11  ;;  %9882 = vmatpush3.bf16.msra.mxu0 %v10382_v61  ;;  %v3473_v48 = vadd.f32 1.0, %v10627_v63  ;;  %v10385_v16 = vld [vmem:[%s15289_s4 + $0x1b8] sm:$0xff]  }
 0x493   : > { %v10629_v62 = vpop.eup %10628  ;;  %v3382_v51 = vadd.f32 %v3350_v40, %v12456_v2  ;;  %v3413_v59 = vmul.f32 0.7978846, %v3381_v53  ;;  %v3287_v18 = vmul.f32 %v12487_v20, %v12487_v20  ;;  %9883 = vmatprep.subr.bf16.mxu0 %v10383_v45  ;;  %v3185_v26 = vadd.f32 %v12246_v44, %v3149_v19 }
 0x494   : > { %v3150_v12 = vadd.f32 %v9038_v4, %v12262_v25  ;;  %9798 = vmatmul.mubr.bf16.gmra.mrb[180].mxu1 %v12499_v9  ;;  %9846 = vmatmul.mubr.bf16.gmra.mrb[212].mxu0 %v12499_v9  ;;  %v3474_v61 = vadd.f32 1.0, %v10629_v62  ;;  %v3288_v43 = vmul.f32 %v12496_v28, %v12496_v28  ;;  %v3505_v52 = vmul.f32 0.5, %v3473_v48 }
 0x495   : > { %v3414_v47 = vmul.f32 0.7978846, %v3382_v51  ;;  %10634 = vtanh.f32 %v3413_v59  ;;  %v3319_v56 = vmul.f32 %v3287_v18, %v12487_v20  ;;  %v3221_v23 = vmul.f32 %v12251_v57, %v3185_v26  ;;  %v9039_v29 = vpop.f32.mrb[180].mxu0 }
 0x496   : > { %v3186_v35 = vadd.f32 %v12246_v44, %v3150_v12  ;;  %v3506_v11 = vmul.f32 0.5, %v3474_v61  ;;  %v3320_v25 = vmul.f32 %v3288_v43, %v12496_v28  ;;  %9884 = vmatpush3.bf16.msra.mxu0 %v10383_v45  ;;  %v9040_v15 = vpop.f32.mrb[181].mxu0  ;;  %v12519_v37 = vadd.f32 %v12459_v13, %v11939_v22 }
 0x497   : > { %10636 = vtanh.f32 %v3414_v47  ;;  %v3351_v36 = vmul.f32 0.044715, %v3319_v56  ;;  %9885 = vmatprep.subr.bf16.mxu0 %v10384_v24  ;;  %v12525_v7 = vadd.f32 %v12258_v0, %v3221_v23  ;;  %v9041_v31 = vadd.f32 %v9040_v15, %v9039_v29  ;;  %v9042_v40 = vpop.f32.mrb[182].mxu0 }
 0x498   : > { %v3222_v63 = vmul.f32 %v12251_v57, %v3186_v35  ;;  %v3538_v45 = vmul.f32 %v3506_v11, %v12380_v49  ;;  %v9043_v19 = vpop.f32.mrb[183].mxu0  ;;  %v3537_v4 = vmul.f32 %v3505_v52, %v12374_v46  ;;  %v3352_v22 = vmul.f32 0.044715, %v3320_v25 }
 0x499   : > { %v10631_v53 = vpop.eup %10630  ;;  %v3383_v13 = vadd.f32 %v3351_v36, %v12487_v20  ;;  %v3289_v62 = vmul.f32 %v12525_v7, %v12525_v7  ;;  %v3151_v51 = vadd.f32 %v9041_v31, %v12282_v41  ;;  %v9044_v59 = vadd.f32 %v9043_v19, %v9042_v40 }
 0x49a   : > { %v12534_v48 = vadd.f32 %v12258_v0, %v3222_v63  ;;  %9886 = vmatpush3.bf16.msra.mxu0 %v10384_v24  ;;  %v10633_v18 = vpop.eup %10632  ;;  %v12537_v26 = vpack.c.bf16 %v3538_v45, %v3537_v4  ;;  %v3475_v49 = vadd.f32 1.0, %v10631_v53  ;;  %v3384_v12 = vadd.f32 %v3352_v22, %v12496_v28 }
 0x49b   : > { %v3415_v46 = vmul.f32 0.7978846, %v3383_v13  ;;  %9887 = vmatprep.subr.bf16.mxu0 %v10385_v16  ;;  %v3187_v43 = vadd.f32 %v12246_v44, %v3151_v51  ;;  %v3152_v52 = vadd.f32 %v9044_v59, %v12289_v54  ;;  %v3476_v47 = vadd.f32 1.0, %v10633_v18 }
 0x49c   : > { %v3290_v61 = vmul.f32 %v12534_v48, %v12534_v48  ;;  %9801 = vmatprep.mubr.bf16.mxu1 %v12537_v26  ;;  %9849 = vmatprep.mubr.bf16.mxu0 %v12537_v26  ;;  %v3507_v41 = vmul.f32 0.5, %v3475_v49  ;;  %v3416_v24 = vmul.f32 0.7978846, %v3384_v12  ;;  %v3321_v56 = vmul.f32 %v3289_v62, %v12525_v7 }
 0x49d   : > { %10638 = vtanh.f32 %v3415_v46  ;;  %v3223_v23 = vmul.f32 %v12251_v57, %v3187_v43  ;;  %v3188_v35 = vadd.f32 %v12246_v44, %v3152_v52  ;;  %v9045_v29 = vpop.f32.mrb[184].mxu0  ;;  %v3508_v11 = vmul.f32 0.5, %v3476_v47 }
 0x49e   : > { %v3322_v25 = vmul.f32 %v3290_v61, %v12534_v48  ;;  %9888 = vmatpush3.bf16.msra.mxu0 %v10385_v16  ;;  %v9046_v15 = vpop.f32.mrb[185].mxu0  ;;  %10640 = vtanh.f32 %v3416_v24  ;;  %v3353_v36 = vmul.f32 0.044715, %v3321_v56  ;;  %v3539_v22 = vmul.f32 %v3507_v41, %v12411_v1 }
 0x49f   : > { %v10635_v54 = vpop.eup %10634  ;;  %v12551_v63 = vadd.f32 %v12258_v0, %v3223_v23  ;;  %v3224_v31 = vmul.f32 %v12251_v57, %v3188_v35  ;;  %v9047_v40 = vadd.f32 %v9046_v15, %v9045_v29  ;;  %v9048_v45 = vpop.f32.mrb[186].mxu0  ;;  %v3540_v53 = vmul.f32 %v3508_v11, %v12420_v17 }
 0x4a0   : > { %v9049_v4 = vpop.f32.mrb[187].mxu0  ;;  %v3477_v13 = vadd.f32 1.0, %v10635_v54  ;;  %v3354_v62 = vmul.f32 0.044715, %v3322_v25  ;;  %v3385_v16 = vadd.f32 %v3353_v36, %v12525_v7 }
 0x4a1   : > { %v10637_v19 = vpop.eup %10636  ;;  %v3291_v51 = vmul.f32 %v12551_v63, %v12551_v63  ;;  %v12560_v59 = vadd.f32 %v12258_v0, %v3224_v31  ;;  %v3153_v18 = vadd.f32 %v9047_v40, %v12309_v30  ;;  %v9050_v49 = vadd.f32 %v9049_v4, %v9048_v45 }
 0x4a2   : > { %v12563_v12 = vpack.c.bf16 %v3540_v53, %v3539_v22  ;;  %v3478_v17 = vadd.f32 1.0, %v10637_v19  ;;  %v3509_v46 = vmul.f32 0.5, %v3477_v13  ;;  %v3386_v61 = vadd.f32 %v3354_v62, %v12534_v48 }
 0x4a3   : > { %v3292_v1 = vmul.f32 %v12560_v59, %v12560_v59  ;;  %v3189_v43 = vadd.f32 %v12246_v44, %v3153_v18  ;;  %v3154_v52 = vadd.f32 %v9050_v49, %v12316_v60  ;;  %v3417_v47 = vmul.f32 0.7978846, %v3385_v16 }
 0x4a4   : > { %9802 = vmatmul.mubr.bf16.gmra.mrb[184].mxu1 %v12563_v12  ;;  %9850 = vmatmul.mubr.bf16.gmra.mrb[216].mxu0 %v12563_v12  ;;  %v3510_v30 = vmul.f32 0.5, %v3478_v17  ;;  %v3418_v41 = vmul.f32 0.7978846, %v3386_v61  ;;  %v3323_v24 = vmul.f32 %v3291_v51, %v12551_v63  ;;  %v3541_v60 = vmul.f32 %v3509_v46, %v12447_v32 }
 0x4a5   : > { %v3225_v56 = vmul.f32 %v12251_v57, %v3189_v43  ;;  %v3190_v23 = vadd.f32 %v12246_v44, %v3154_v52  ;;  %v9051_v35 = vpop.f32.mrb[188].mxu0  ;;  %10642 = vtanh.f32 %v3417_v47  ;;  %v3324_v29 = vmul.f32 %v3292_v1, %v12560_v59 }
 0x4a6   : > { %v9052_v25 = vpop.f32.mrb[189].mxu0  ;;  %v3542_v54 = vmul.f32 %v3510_v30, %v12456_v2  ;;  %10644 = vtanh.f32 %v3418_v41  ;;  %v3355_v15 = vmul.f32 0.044715, %v3323_v24 }
 0x4a7   : > { %v10639_v11 = vpop.eup %10638  ;;  %v12579_v36 = vadd.f32 %v12258_v0, %v3225_v56  ;;  %v3226_v31 = vmul.f32 %v12251_v57, %v3190_v23  ;;  %v9053_v40 = vadd.f32 %v9052_v25, %v9051_v35  ;;  %v9054_v45 = vpop.f32.mrb[190].mxu0  ;;  %v3356_v13 = vmul.f32 0.044715, %v3324_v29 }
 0x4a8   : > { %v3479_v53 = vadd.f32 1.0, %v10639_v11  ;;  %v10641_v19 = vpop.eup %10640  ;;  %v9055_v4 = vpop.f32.mrb[191].mxu0  ;;  %v12582_v22 = vpack.c.bf16 %v3542_v54, %v3541_v60  ;;  %v3387_v62 = vadd.f32 %v3355_v15, %v12551_v63 }
 0x4a9   : > { %v3293_v32 = vmul.f32 %v12579_v36, %v12579_v36  ;;  %v12588_v2 = vadd.f32 %v12258_v0, %v3226_v31  ;;  %v3155_v16 = vadd.f32 %v9053_v40, %v12335_v42  ;;  %v9056_v51 = vadd.f32 %v9055_v4, %v9054_v45 }
 0x4aa   : > { %9805 = vmatprep.mubr.bf16.mxu1 %v12582_v22  ;;  %9853 = vmatprep.mubr.bf16.mxu0 %v12582_v22  ;;  %v3480_v18 = vadd.f32 1.0, %v10641_v19  ;;  %v3511_v49 = vmul.f32 0.5, %v3479_v53  ;;  %v3388_v17 = vadd.f32 %v3356_v13, %v12560_v59  ;;  %v3419_v46 = vmul.f32 0.7978846, %v3387_v62 }
 0x4ab   : > { %v3294_v61 = vmul.f32 %v12588_v2, %v12588_v2  ;;  %v3191_v1 = vadd.f32 %v12246_v44, %v3155_v16  ;;  %v3156_v43 = vadd.f32 %v9056_v51, %v12339_v50  ;;  %v3325_v52 = vmul.f32 %v3293_v32, %v12579_v36 }
 0x4ac   : > { %v3512_v42 = vmul.f32 0.5, %v3480_v18  ;;  %v3420_v47 = vmul.f32 0.7978846, %v3388_v17  ;;  %10646 = vtanh.f32 %v3419_v46  ;;  %v3543_v29 = vmul.f32 %v3511_v49, %v12487_v20 }
 0x4ad   : > { %v3227_v30 = vmul.f32 %v12251_v57, %v3191_v1  ;;  %v3192_v41 = vadd.f32 %v12246_v44, %v3156_v43  ;;  %v9057_v24 = vpop.f32.mrb[192].mxu0  ;;  %v3326_v56 = vmul.f32 %v3294_v61, %v12588_v2  ;;  %v3357_v23 = vmul.f32 0.044715, %v3325_v52 }
 0x4ae   : > { %v9058_v35 = vpop.f32.mrb[193].mxu0  ;;  %v3544_v11 = vmul.f32 %v3512_v42, %v12496_v28  ;;  %10648 = vtanh.f32 %v3420_v47 }
 0x4af   : > { %v10643_v50 = vpop.eup %10642  ;;  %v12605_v25 = vadd.f32 %v12258_v0, %v3227_v30  ;;  %v3228_v60 = vmul.f32 %v12251_v57, %v3192_v41  ;;  %v9059_v54 = vadd.f32 %v9058_v35, %v9057_v24  ;;  %v9060_v15 = vpop.f32.mrb[194].mxu0  ;;  %v3358_v31 = vmul.f32 0.044715, %v3326_v56 }
 0x4b0   : > { %v10645_v40 = vpop.eup %10644  ;;  %v9061_v45 = vpop.f32.mrb[195].mxu0  ;;  %v12608_v53 = vpack.c.bf16 %v3544_v11, %v3543_v29  ;;  %v3481_v19 = vadd.f32 1.0, %v10643_v50  ;;  %v3389_v4 = vadd.f32 %v3357_v23, %v12579_v36 }
 0x4b1   : > { %v3295_v20 = vmul.f32 %v12605_v25, %v12605_v25  ;;  %v12614_v28 = vadd.f32 %v12258_v0, %v3228_v60  ;;  %v3157_v13 = vadd.f32 %v9059_v54, %v12371_v34  ;;  %v9062_v62 = vadd.f32 %v9061_v45, %v9060_v15 }
 0x4b2   : > { %9806 = vmatmul.mubr.bf16.gmra.mrb[188].mxu1 %v12608_v53  ;;  %9854 = vmatmul.mubr.bf16.gmra.mrb[220].mxu0 %v12608_v53  ;;  %v3482_v32 = vadd.f32 1.0, %v10645_v40  ;;  %v3513_v16 = vmul.f32 0.5, %v3481_v19  ;;  %v3390_v51 = vadd.f32 %v3358_v31, %v12588_v2  ;;  %v3421_v18 = vmul.f32 0.7978846, %v3389_v4 }
 0x4b3   : > { %v3296_v49 = vmul.f32 %v12614_v28, %v12614_v28  ;;  %v3193_v17 = vadd.f32 %v12246_v44, %v3157_v13  ;;  %v3158_v46 = vadd.f32 %v9062_v62, %v12396_v58  ;;  %v3327_v61 = vmul.f32 %v3295_v20, %v12605_v25 }
 0x4b4   : > { %v3514_v34 = vmul.f32 0.5, %v3482_v32  ;;  %v3422_v1 = vmul.f32 0.7978846, %v3390_v51  ;;  %10650 = vtanh.f32 %v3421_v18  ;;  %v3545_v56 = vmul.f32 %v3513_v16, %v12525_v7 }
 0x4b5   : > { %v3229_v43 = vmul.f32 %v12251_v57, %v3193_v17  ;;  %v3194_v52 = vadd.f32 %v12246_v44, %v3158_v46  ;;  %v9063_v42 = vpop.f32.mrb[196].mxu0  ;;  %v3328_v47 = vmul.f32 %v3296_v49, %v12614_v28  ;;  %v3359_v30 = vmul.f32 0.044715, %v3327_v61 }
 0x4b6   : > { %v10647_v41 = vpop.eup %10646  ;;  %v9064_v24 = vpop.f32.mrb[197].mxu0  ;;  %v3546_v23 = vmul.f32 %v3514_v34, %v12534_v48  ;;  %10652 = vtanh.f32 %v3422_v1 }
 0x4b7   : > { %v12631_v58 = vadd.f32 %v12258_v0, %v3229_v43  ;;  %v3230_v35 = vmul.f32 %v12251_v57, %v3194_v52  ;;  %v9065_v29 = vadd.f32 %v9064_v24, %v9063_v42  ;;  %v9066_v11 = vpop.f32.mrb[198].mxu0  ;;  %v3483_v50 = vadd.f32 1.0, %v10647_v41 }
 0x4b8   : > { %v10649_v60 = vpop.eup %10648  ;;  %v9067_v54 = vpop.f32.mrb[199].mxu0  ;;  %v12634_v15 = vpack.c.bf16 %v3546_v23, %v3545_v56  ;;  %v3360_v31 = vmul.f32 0.044715, %v3328_v47  ;;  %v3391_v40 = vadd.f32 %v3359_v30, %v12605_v25 }
 0x4b9   : > { %v3297_v7 = vmul.f32 %v12631_v58, %v12631_v58  ;;  %v12640_v48 = vadd.f32 %v12258_v0, %v3230_v35  ;;  %v3159_v45 = vadd.f32 %v9065_v29, %v12405_v21  ;;  %v9068_v19 = vadd.f32 %v9067_v54, %v9066_v11 }
 0x4ba   : > { %9809 = vmatprep.mubr.bf16.mxu1 %v12634_v15  ;;  %9857 = vmatprep.mubr.bf16.mxu0 %v12634_v15  ;;  %v3484_v4 = vadd.f32 1.0, %v10649_v60  ;;  %v3515_v20 = vmul.f32 0.5, %v3483_v50  ;;  %v3392_v13 = vadd.f32 %v3360_v31, %v12614_v28  ;;  %v3423_v62 = vmul.f32 0.7978846, %v3391_v40 }
 0x4bb   : > { %v3298_v32 = vmul.f32 %v12640_v48, %v12640_v48  ;;  %v3195_v16 = vadd.f32 %v12246_v44, %v3159_v45  ;;  %v3160_v51 = vadd.f32 %v9068_v19, %v12417_v39  ;;  %v3329_v18 = vmul.f32 %v3297_v7, %v12631_v58 }
 0x4bc   : > { %v3516_v21 = vmul.f32 0.5, %v3484_v4  ;;  %v3424_v49 = vmul.f32 0.7978846, %v3392_v13  ;;  %10654 = vtanh.f32 %v3423_v62  ;;  %v3547_v42 = vmul.f32 %v3515_v20, %v12551_v63 }
 0x4bd   : > { %v3231_v17 = vmul.f32 %v12251_v57, %v3195_v16  ;;  %v3196_v46 = vadd.f32 %v12246_v44, %v3160_v51  ;;  %v9069_v61 = vpop.f32.mrb[200].mxu0  ;;  %v3330_v34 = vmul.f32 %v3298_v32, %v12640_v48  ;;  %v3361_v1 = vmul.f32 0.044715, %v3329_v18 }
 0x4be   : > { %v10651_v43 = vpop.eup %10650  ;;  %v9070_v52 = vpop.f32.mrb[201].mxu0  ;;  %v3548_v47 = vmul.f32 %v3516_v21, %v12560_v59  ;;  %10656 = vtanh.f32 %v3424_v49 }
 0x4bf   : > { %v12657_v39 = vadd.f32 %v12258_v0, %v3231_v17  ;;  %v3232_v30 = vmul.f32 %v12251_v57, %v3196_v46  ;;  %v9071_v41 = vadd.f32 %v9070_v52, %v9069_v61  ;;  %v9072_v24 = vpop.f32.mrb[202].mxu0  ;;  %v3485_v56 = vadd.f32 1.0, %v10651_v43 }
 0x4c0   : > { %v10653_v23 = vpop.eup %10652  ;;  %v9073_v35 = vpop.f32.mrb[203].mxu0  ;;  %v12660_v29 = vpack.c.bf16 %v3548_v47, %v3547_v42  ;;  %v3362_v11 = vmul.f32 0.044715, %v3330_v34  ;;  %v3393_v50 = vadd.f32 %v3361_v1, %v12631_v58 }
 0x4c1   : > { %v3299_v63 = vmul.f32 %v12657_v39, %v12657_v39  ;;  %v12666_v59 = vadd.f32 %v12258_v0, %v3232_v30  ;;  %v3161_v60 = vadd.f32 %v9071_v41, %v12444_v10  ;;  %v9074_v54 = vadd.f32 %v9073_v35, %v9072_v24 }
 0x4c2   : > { %9810 = vmatmul.mubr.bf16.gmra.mrb[192].mxu1 %v12660_v29  ;;  %9858 = vmatmul.mubr.bf16.gmra.mrb[224].mxu0 %v12660_v29  ;;  %v3486_v31 = vadd.f32 1.0, %v10653_v23  ;;  %v3517_v40 = vmul.f32 0.5, %v3485_v56  ;;  %v3394_v7 = vadd.f32 %v3362_v11, %v12640_v48  ;;  %v3425_v45 = vmul.f32 0.7978846, %v3393_v50 }
 0x4c3   : > { %v3300_v19 = vmul.f32 %v12666_v59, %v12666_v59  ;;  %v3197_v4 = vadd.f32 %v12246_v44, %v3161_v60  ;;  %v3162_v20 = vadd.f32 %v9074_v54, %v12481_v55  ;;  %v3331_v13 = vmul.f32 %v3299_v63, %v12657_v39 }
 0x4c4   : > { %v3518_v10 = vmul.f32 0.5, %v3486_v31  ;;  %v3426_v62 = vmul.f32 0.7978846, %v3394_v7  ;;  %10658 = vtanh.f32 %v3425_v45  ;;  %v3549_v46 = vmul.f32 %v3517_v40, %v12579_v36 }
 0x4c5   : > { %v3233_v32 = vmul.f32 %v12251_v57, %v3197_v4  ;;  %v3198_v16 = vadd.f32 %v12246_v44, %v3162_v20  ;;  %v9075_v51 = vpop.f32.mrb[204].mxu0  ;;  %v3332_v18 = vmul.f32 %v3300_v19, %v12666_v59  ;;  %v3363_v21 = vmul.f32 0.044715, %v3331_v13 }
 0x4c6   : > { %v10655_v49 = vpop.eup %10654  ;;  %v9076_v17 = vpop.f32.mrb[205].mxu0  ;;  %v3550_v61 = vmul.f32 %v3518_v10, %v12588_v2  ;;  %10660 = vtanh.f32 %v3426_v62 }
 0x4c7   : > { %v12683_v55 = vadd.f32 %v12258_v0, %v3233_v32  ;;  %v3234_v34 = vmul.f32 %v12251_v57, %v3198_v16  ;;  %v9077_v1 = vadd.f32 %v9076_v17, %v9075_v51  ;;  %v9078_v43 = vpop.f32.mrb[206].mxu0  ;;  %v3487_v52 = vadd.f32 1.0, %v10655_v49 }
 0x4c8   : > { %v10657_v42 = vpop.eup %10656  ;;  %v9079_v47 = vpop.f32.mrb[207].mxu0  ;;  %v12686_v30 = vpack.c.bf16 %v3550_v61, %v3549_v46  ;;  %v3364_v41 = vmul.f32 0.044715, %v3332_v18  ;;  %v3395_v24 = vadd.f32 %v3363_v21, %v12657_v39 }
 0x4c9   : > { %v3301_v36 = vmul.f32 %v12683_v55, %v12683_v55  ;;  %v12692_v2 = vadd.f32 %v12258_v0, %v3234_v34  ;;  %v3163_v56 = vadd.f32 %v9077_v1, %v12493_v33  ;;  %v9080_v23 = vadd.f32 %v9079_v47, %v9078_v43 }
 0x4ca   : > { %9813 = vmatprep.mubr.bf16.mxu1 %v12686_v30  ;;  %9861 = vmatprep.mubr.bf16.mxu0 %v12686_v30  ;;  %v3488_v35 = vadd.f32 1.0, %v10657_v42  ;;  %v3519_v11 = vmul.f32 0.5, %v3487_v52  ;;  %v3396_v50 = vadd.f32 %v3364_v41, %v12666_v59  ;;  %v3427_v63 = vmul.f32 0.7978846, %v3395_v24 }
 0x4cb   : > { %v3302_v60 = vmul.f32 %v12692_v2, %v12692_v2  ;;  %v3199_v54 = vadd.f32 %v12246_v44, %v3163_v56  ;;  %v3164_v31 = vadd.f32 %v9080_v23, %v12519_v37  ;;  %v3333_v40 = vmul.f32 %v3301_v36, %v12683_v55 }
 0x4cc   : > { %v3520_v33 = vmul.f32 0.5, %v3488_v35  ;;  %v3428_v7 = vmul.f32 0.7978846, %v3396_v50  ;;  %10662 = vtanh.f32 %v3427_v63  ;;  %v3551_v10 = vmul.f32 %v3519_v11, %v12605_v25 }
 0x4cd   : > { %v3235_v45 = vmul.f32 %v12251_v57, %v3199_v54  ;;  %v3200_v19 = vadd.f32 %v12246_v44, %v3164_v31  ;;  %v3334_v4 = vmul.f32 %v3302_v60, %v12692_v2  ;;  %v3365_v20 = vmul.f32 0.044715, %v3333_v40 }
 0x4ce   : > { %v10659_v13 = vpop.eup %10658  ;;  %v3552_v62 = vmul.f32 %v3520_v33, %v12614_v28  ;;  %10664 = vtanh.f32 %v3428_v7 }
 0x4cf   : > { %v12709_v37 = vadd.f32 %v12258_v0, %v3235_v45  ;;  %v3236_v32 = vmul.f32 %v12251_v57, %v3200_v19  ;;  %v3489_v16 = vadd.f32 1.0, %v10659_v13  ;;  %v3366_v51 = vmul.f32 0.044715, %v3334_v4 }
 0x4d0   : > { %v10661_v18 = vpop.eup %10660  ;;  %v12712_v21 = vpack.c.bf16 %v3552_v62, %v3551_v10  ;;  %v3397_v44 = vadd.f32 %v3365_v20, %v12683_v55 }
 0x4d1   : > { %v3303_v49 = vmul.f32 %v12709_v37, %v12709_v37  ;;  %v3272_v25 = vadd.f32 %v12258_v0, %v3236_v32  ;;  %v3490_v17 = vadd.f32 1.0, %v10661_v18  ;;  %v3521_v28 = vmul.f32 0.5, %v3489_v16 }
 0x4d2   : > { %9814 = vmatmul.mubr.bf16.gmra.mrb[196].mxu1 %v12712_v21  ;;  %9862 = vmatmul.mubr.bf16.gmra.mrb[228].mxu0 %v12712_v21  ;;  %v3398_v57 = vadd.f32 %v3366_v51, %v12692_v2  ;;  %v3429_v46 = vmul.f32 0.7978846, %v3397_v44 }
 0x4d3   : > { %v3304_v61 = vmul.f32 %v3272_v25, %v3272_v25  ;;  %v3522_v34 = vmul.f32 0.5, %v3490_v17  ;;  %v3335_v1 = vmul.f32 %v3303_v49, %v12709_v37  ;;  %v3553_v52 = vmul.f32 %v3521_v28, %v12631_v58 }
 0x4d4   : > { %v3430_v43 = vmul.f32 0.7978846, %v3398_v57  ;;  %10666 = vtanh.f32 %v3429_v46 }
 0x4d5   : > { %v3554_v42 = vmul.f32 %v3522_v34, %v12640_v48  ;;  %v3336_v0 = vmul.f32 %v3304_v61, %v3272_v25  ;;  %v3367_v47 = vmul.f32 0.044715, %v3335_v1 }
 0x4d6   : > { %v10663_v41 = vpop.eup %10662  ;;  %10668 = vtanh.f32 %v3430_v43 }
 0x4d7   : > { %v3573_v24 = vpack.c.bf16 %v3554_v42, %v3553_v52  ;;  %v3491_v36 = vadd.f32 1.0, %v10663_v41  ;;  %v3368_v56 = vmul.f32 0.044715, %v3336_v0  ;;  %v3399_v23 = vadd.f32 %v3367_v47, %v12709_v37 }
 0x4d8   : > { %v10665_v35 = vpop.eup %10664 }
 0x4d9   : > { %9817 = vmatprep.mubr.bf16.mxu1 %v3573_v24  ;;  %9865 = vmatprep.mubr.bf16.mxu0 %v3573_v24  ;;  %v3492_v11 = vadd.f32 1.0, %v10665_v35  ;;  %v3523_v50 = vmul.f32 0.5, %v3491_v36  ;;  %v3400_v63 = vadd.f32 %v3368_v56, %v3272_v25  ;;  %v3431_v60 = vmul.f32 0.7978846, %v3399_v23 }
 0x4db   : > { %v3524_v54 = vmul.f32 0.5, %v3492_v11  ;;  %v3432_v58 = vmul.f32 0.7978846, %v3400_v63  ;;  %10670 = vtanh.f32 %v3431_v60  ;;  %v3555_v48 = vmul.f32 %v3523_v50, %v12657_v39 }
 0x4dd   : > { %v3556_v31 = vmul.f32 %v3524_v54, %v12666_v59  ;;  %10672 = vtanh.f32 %v3432_v58 }
 0x4de   : > { %v10667_v40 = vpop.eup %10666 }
 0x4df   : > { %v3574_v33 = vpack.c.bf16 %v3556_v31, %v3555_v48  ;;  %v3493_v7 = vadd.f32 1.0, %v10667_v40 }
 0x4e0   : > { %v10669_v45 = vpop.eup %10668 }
 0x4e1   : > { %9818 = vmatmul.mubr.bf16.gmra.mrb[200].mxu1 %v3574_v33  ;;  %9866 = vmatmul.mubr.bf16.gmra.mrb[232].mxu0 %v3574_v33  ;;  %v3494_v19 = vadd.f32 1.0, %v10669_v45  ;;  %v3525_v4 = vmul.f32 0.5, %v3493_v7 }
 0x4e3   : > { %v3526_v20 = vmul.f32 0.5, %v3494_v19  ;;  %v3557_v10 = vmul.f32 %v3525_v4, %v12683_v55 }
 0x4e5   : > { %v10671_v13 = vpop.eup %10670  ;;  %v3558_v62 = vmul.f32 %v3526_v20, %v12692_v2 }
 0x4e6   : > { %v3495_v32 = vadd.f32 1.0, %v10671_v13 }
 0x4e7   : > { %v10673_v16 = vpop.eup %10672  ;;  %v3575_v39 = vpack.c.bf16 %v3558_v62, %v3557_v10 }
 0x4e8   : > { %v3496_v51 = vadd.f32 1.0, %v10673_v16  ;;  %v3527_v59 = vmul.f32 0.5, %v3495_v32 }
 0x4e9   : > { %9821 = vmatprep.mubr.bf16.mxu1 %v3575_v39  ;;  %9869 = vmatprep.mubr.bf16.mxu0 %v3575_v39 }
 0x4ea   : > { %v3528_v18 = vmul.f32 0.5, %v3496_v51  ;;  %v3559_v44 = vmul.f32 %v3527_v59, %v12709_v37 }
 0x4ec   : > { %v3560_v49 = vmul.f32 %v3528_v18, %v3272_v25 }
 0x4ee   : > { %v3576_v17 = vpack.c.bf16 %v3560_v49, %v3559_v44 }
 0x4f0   : > { %9822 = vmatmul.mubr.bf16.gmra.mrb[204].mxu1 %v3576_v17  ;;  %9870 = vmatmul.mubr.bf16.gmra.mrb[236].mxu0 %v3576_v17 }
 0x4f1   : > { %9889 = vmatprep.mubr.bf16.mxu0 %v12377_v38  ;;  %v10388_v38 = vld [vmem:[%s15290_s5 + $0x404] ss:$8 sps:$4 sm:$0xff]  }
 0x4f2   : > { %4061 = vmatprep.mubr.bf16.mxu1 %v10388_v38 }
 0x4f8   : > { %9890 = vmatmul.mubr.bf16.vlgmr.msra.gmra.mrb[240].mxu0 %v12402_v27 }
 0x4f9   : > { %9893 = vmatprep.mubr.bf16.mxu0 %v12453_v8 }
 0x500   : > { %9894 = vmatmul.mubr.bf16.gmra.mrb[244].mxu0 %v12499_v9 }
 0x501   : > { %9897 = vmatprep.mubr.bf16.mxu0 %v12537_v26 }
 0x508   : > { %9898 = vmatmul.mubr.bf16.gmra.mrb[248].mxu0 %v12563_v12 }
 0x509   : > { %9901 = vmatprep.mubr.bf16.mxu0 %v12582_v22 }
 0x510   : > { %9902 = vmatmul.mubr.bf16.gmra.mrb[252].mxu0 %v12608_v53 }
 0x511   : > { %9905 = vmatprep.mubr.bf16.mxu0 %v12634_v15 }
 0x518   : > { %9906 = vmatmul.mubr.bf16.gmra.mrb[0].mxu0 %v12660_v29 }
 0x519   : > { %9909 = vmatprep.mubr.bf16.mxu0 %v12686_v30 }
 0x520   : > { %9910 = vmatmul.mubr.bf16.gmra.mrb[4].mxu0 %v12712_v21 }
 0x521   : > { %9913 = vmatprep.mubr.bf16.mxu0 %v3573_v24 }
 0x528   : > { %9914 = vmatmul.mubr.bf16.gmra.mrb[8].mxu0 %v3574_v33 }
 0x529   : > { %9917 = vmatprep.mubr.bf16.mxu0 %v3575_v39 }
 0x530   : > { %9918 = vmatmul.mubr.bf16.gmra.mrb[12].mxu0 %v3576_v17 }
 0x554   : > { %v9795_v27 = vpop.f32.mrb[176].mxu1  ;;  %v12745_v8 = vpop.f32.mrb[208].mxu0 }
 0x555   : > { %v3693_v9 = vpop.f32.mrb[177].mxu1  ;;  %v12747_v26 = vpop.f32.mrb[209].mxu0 }
 0x556   : > { %v9796_v12 = vpop.f32.mrb[178].mxu1  ;;  %v12749_v22 = vpop.f32.mrb[210].mxu0 }
 0x557   : > { %v3854_v53 = vpack.c.bf16 %v9796_v12, %v9795_v27  ;;  %v3696_v15 = vpop.f32.mrb[179].mxu1  ;;  %v12751_v29 = vpop.f32.mrb[211].mxu0 }
 0x558   : > { %v3853_v55 = vpack.c.bf16 %v3696_v15, %v3693_v9 }
 0x567   : > { %v9799_v30 = vpop.f32.mrb[180].mxu1  ;;  %v12753_v2 = vpop.f32.mrb[212].mxu0 }
 0x568   : > { %v3709_v37 = vpop.f32.mrb[181].mxu1  ;;  %v12755_v21 = vpop.f32.mrb[213].mxu0 }
 0x569   : > { %v9800_v25 = vpop.f32.mrb[182].mxu1  ;;  %v12757_v28 = vpop.f32.mrb[214].mxu0 }
 0x56a   : > { %v3856_v57 = vpack.c.bf16 %v9800_v25, %v9799_v30  ;;  %v3712_v46 = vpop.f32.mrb[183].mxu1  ;;  %v12759_v61 = vpop.f32.mrb[215].mxu0 }
 0x56b   : > { %v3855_v34 = vpack.c.bf16 %v3712_v46, %v3709_v37 }
 0x577   : > { %v9803_v1 = vpop.f32.mrb[184].mxu1  ;;  %v12761_v43 = vpop.f32.mrb[216].mxu0 }
 0x578   : > { %v3725_v52 = vpop.f32.mrb[185].mxu1  ;;  %v12763_v42 = vpop.f32.mrb[217].mxu0 }
 0x579   : > { %v9804_v0 = vpop.f32.mrb[186].mxu1  ;;  %v12765_v47 = vpop.f32.mrb[218].mxu0 }
 0x57a   : > { %v3858_v41 = vpack.c.bf16 %v9804_v0, %v9803_v1  ;;  %v3728_v24 = vpop.f32.mrb[187].mxu1  ;;  %v12767_v36 = vpop.f32.mrb[219].mxu0 }
 0x57b   : > { %v3857_v56 = vpack.c.bf16 %v3728_v24, %v3725_v52 }
 0x585   : > { %v12769_v23 = vpop.f32.mrb[188].mxu1  ;;  %v12771_v35 = vpop.f32.mrb[220].mxu0 }
 0x586   : > { %v3741_v11 = vpop.f32.mrb[189].mxu1  ;;  %v12773_v50 = vpop.f32.mrb[221].mxu0 }
 0x587   : > { %v12775_v63 = vpop.f32.mrb[190].mxu1  ;;  %v12777_v60 = vpop.f32.mrb[222].mxu0 }
 0x588   : > { %v3860_v54 = vpack.c.bf16 %v12775_v63, %v12769_v23  ;;  %v3744_v58 = vpop.f32.mrb[191].mxu1  ;;  %v12781_v48 = vpop.f32.mrb[223].mxu0  ;;  %v10392_v63 = vld [vmem:[%s15290_s5 + $0x424] ss:$8 sps:$4 sm:$0xff]  }
 0x589   : > { %v3859_v31 = vpack.c.bf16 %v3744_v58, %v3741_v11 }
 0x595   : > { %v9811_v40 = vpop.f32.mrb[192].mxu1  ;;  %v12783_v33 = vpop.f32.mrb[224].mxu0 }
 0x596   : > { %v3757_v7 = vpop.f32.mrb[193].mxu1  ;;  %v12785_v45 = vpop.f32.mrb[225].mxu0 }
 0x597   : > { %v9812_v19 = vpop.f32.mrb[194].mxu1  ;;  %v12787_v4 = vpop.f32.mrb[226].mxu0 }
 0x598   : > { %v3862_v20 = vpack.c.bf16 %v9812_v19, %v9811_v40  ;;  %v3760_v13 = vpop.f32.mrb[195].mxu1  ;;  %v12789_v10 = vpop.f32.mrb[227].mxu0 }
 0x599   : > { %v3861_v62 = vpack.c.bf16 %v3760_v13, %v3757_v7 }
 0x59b   : > { %9105 = vmatprep.subr.bf16.mxu1 %v3861_v62 }
 0x59c   : > { %9106 = vmatpush3.bf16.msra.mxu1 %v3853_v55 }
 0x59d   : > { %9107 = vmatprep.subr.bf16.mxu1 %v3862_v20  ;;  %v10386_v20 = vld [vmem:[%s15290_s5 + $0x400] ss:$8 sps:$4 sm:$0xff]  }
 0x5a0   : > { %9108 = vmatpush3.bf16.msra.mxu1 %v3854_v53 }
 0x5a5   : > { %v9815_v32 = vpop.f32.mrb[196].mxu1  ;;  %v12791_v16 = vpop.f32.mrb[228].mxu0 }
 0x5a6   : > { %v3773_v39 = vpop.f32.mrb[197].mxu1  ;;  %v12793_v51 = vpop.f32.mrb[229].mxu0 }
 0x5a7   : > { %v9816_v59 = vpop.f32.mrb[198].mxu1  ;;  %v12795_v18 = vpop.f32.mrb[230].mxu0 }
 0x5a8   : > { %v3864_v44 = vpack.c.bf16 %v9816_v59, %v9815_v32  ;;  %v3776_v49 = vpop.f32.mrb[199].mxu1  ;;  %v12797_v17 = vpop.f32.mrb[231].mxu0  ;;  %v10389_v32 = vld [vmem:[%s15290_s5 + $0x414] ss:$8 sps:$4 sm:$0xff]  }
 0x5a9   : > { %v3863_v38 = vpack.c.bf16 %v3776_v49, %v3773_v39  ;;  %v10391_v49 = vld [vmem:[%s15290_s5 + $0x410] ss:$8 sps:$4 sm:$0xff]  }
 0x5ab   : > { %9109 = vmatprep.subr.bf16.mxu1 %v3863_v38 }
 0x5ac   : > { %9110 = vmatpush3.bf16.msra.mxu1 %v3855_v34 }
 0x5ad   : > { %9111 = vmatprep.subr.bf16.mxu1 %v3864_v44 }
 0x5b0   : > { %9112 = vmatpush3.bf16.msra.mxu1 %v3856_v57 }
 0x5b4   : > { %v9819_v27 = vpop.f32.mrb[200].mxu1  ;;  %v12799_v9 = vpop.f32.mrb[232].mxu0 }
 0x5b5   : > { %v3789_v12 = vpop.f32.mrb[201].mxu1  ;;  %v12801_v53 = vpop.f32.mrb[233].mxu0 }
 0x5b6   : > { %v9820_v15 = vpop.f32.mrb[202].mxu1  ;;  %v12803_v55 = vpop.f32.mrb[234].mxu0 }
 0x5b7   : > { %v3866_v30 = vpack.c.bf16 %v9820_v15, %v9819_v27  ;;  %v3792_v37 = vpop.f32.mrb[203].mxu1  ;;  %v12805_v25 = vpop.f32.mrb[235].mxu0 }
 0x5b8   : > { %v3865_v46 = vpack.c.bf16 %v3792_v37, %v3789_v12 }
 0x5ba   : > { %9113 = vmatprep.subr.bf16.mxu1 %v3865_v46 }
 0x5bb   : > { %9114 = vmatpush3.bf16.msra.mxu1 %v3857_v56 }
 0x5bc   : > { %9115 = vmatprep.subr.bf16.mxu1 %v3866_v30  ;;  %v10394_v30 = vld [vmem:[%s15290_s5 + $0x420] ss:$8 sps:$4 sm:$0xff]  }
 0x5bf   : > { %9116 = vmatpush3.bf16.msra.mxu1 %v3858_v41 }
 0x5c3   : > { %v9823_v34 = vpop.f32.mrb[204].mxu1  ;;  %v12807_v57 = vpop.f32.mrb[236].mxu0 }
 0x5c4   : > { %v3805_v1 = vpop.f32.mrb[205].mxu1  ;;  %v12809_v52 = vpop.f32.mrb[237].mxu0 }
 0x5c5   : > { %v9824_v0 = vpop.f32.mrb[206].mxu1  ;;  %v12811_v24 = vpop.f32.mrb[238].mxu0 }
 0x5c6   : > { %v3868_v11 = vpack.c.bf16 %v9824_v0, %v9823_v34  ;;  %v3808_v58 = vpop.f32.mrb[207].mxu1  ;;  %v12813_v40 = vpop.f32.mrb[239].mxu0  ;;  %v10395_v34 = vld [vmem:[%s15290_s5 + $0x434] ss:$8 sps:$4 sm:$0xff]  }
 0x5c7   : > { %v3867_v7 = vpack.c.bf16 %v3808_v58, %v3805_v1 }
 0x5c9   : > { %9117 = vmatprep.subr.bf16.mxu1 %v3867_v7  ;;  %v10397_v7 = vld [vmem:[%s15290_s5 + $0x430] ss:$8 sps:$4 sm:$0xff]  }
 0x5ca   : > { %9118 = vmatpush3.bf16.msra.mxu1 %v3859_v31 }
 0x5cb   : > { %9119 = vmatprep.subr.bf16.mxu1 %v3868_v11  ;;  %v9891_v56 = vpop.f32.mrb[240].mxu0 }
 0x5cc   : > { %v4498_v19 = vpop.f32.mrb[241].mxu0 }
 0x5cd   : > { %v9892_v41 = vpop.f32.mrb[242].mxu0 }
 0x5ce   : > { %v4659_v13 = vpack.c.bf16 %v9892_v41, %v9891_v56  ;;  %9120 = vmatpush3.bf16.msra.mxu1 %v3860_v54  ;;  %v4501_v62 = vpop.f32.mrb[243].mxu0  ;;  %v10398_v41 = vld [vmem:[%s15290_s5 + $0x444] ss:$8 sps:$4 sm:$0xff]  }
 0x5cf   : > { %v4658_v39 = vpack.c.bf16 %v4501_v62, %v4498_v19 }
 0x5d1   : > { %4062 = vmatmul.mubr.bf16.vlgmr.msra.gmra.mrb[208].mxu1 %v10386_v20 }
 0x5d2   : > { %4069 = vmatprep.mubr.bf16.mxu1 %v10389_v32 }
 0x5d3   : > { %v12824_v31 = vpop.f32.mrb[244].mxu0 }
 0x5d4   : > { %v4514_v59 = vpop.f32.mrb[245].mxu0 }
 0x5d5   : > { %v9896_v44 = vpop.f32.mrb[246].mxu0 }
 0x5d6   : > { %v4661_v38 = vpack.c.bf16 %v9896_v44, %v12824_v31  ;;  %v4517_v23 = vpop.f32.mrb[247].mxu0 }
 0x5d7   : > { %v4660_v54 = vpack.c.bf16 %v4517_v23, %v4514_v59  ;;  %v10400_v59 = vld [vmem:[%s15290_s5 + $0x440] ss:$8 sps:$4 sm:$0xff]   ;;  %v10401_v23 = vld [vmem:[%s15290_s5 + $0x454] ss:$8 sps:$4 sm:$0xff]  }
 0x5d9   : > { %4070 = vmatmul.mubr.bf16.gmra.mrb[212].mxu1 %v10391_v49 }
 0x5da   : > { %4077 = vmatprep.mubr.bf16.mxu1 %v10392_v63 }
 0x5db   : > { %v12833_v27 = vpop.f32.mrb[248].mxu0 }
 0x5dc   : > { %v4530_v12 = vpop.f32.mrb[249].mxu0 }
 0x5dd   : > { %v12835_v15 = vpop.f32.mrb[250].mxu0 }
 0x5de   : > { %v4663_v37 = vpack.c.bf16 %v12835_v15, %v12833_v27  ;;  %v4533_v46 = vpop.f32.mrb[251].mxu0 }
 0x5df   : > { %v4662_v1 = vpack.c.bf16 %v4533_v46, %v4530_v12 }
 0x5e1   : > { %4078 = vmatmul.mubr.bf16.gmra.mrb[216].mxu1 %v10394_v30  ;;  %v10403_v30 = vld [vmem:[%s15290_s5 + $0x450] ss:$8 sps:$4 sm:$0xff]  }
 0x5e2   : > { %4085 = vmatprep.mubr.bf16.mxu1 %v10395_v34 }
 0x5e3   : > { %v12845_v0 = vpop.f32.mrb[252].mxu0 }
 0x5e4   : > { %v4546_v11 = vpop.f32.mrb[253].mxu0 }
 0x5e5   : > { %v12847_v58 = vpop.f32.mrb[254].mxu0 }
 0x5e6   : > { %v4665_v56 = vpack.c.bf16 %v12847_v58, %v12845_v0  ;;  %v4549_v19 = vpop.f32.mrb[255].mxu0  ;;  %v10404_v0 = vld [vmem:[%s15290_s5 + $0x464] ss:$8 sps:$4 sm:$0xff]  }
 0x5e7   : > { %v4664_v20 = vpack.c.bf16 %v4549_v19, %v4546_v11  ;;  %v10406_v19 = vld [vmem:[%s15290_s5 + $0x460] ss:$8 sps:$4 sm:$0xff]  }
 0x5e9   : > { %4086 = vmatmul.mubr.bf16.gmra.mrb[220].mxu1 %v10397_v7 }
 0x5ea   : > { %4093 = vmatprep.mubr.bf16.mxu1 %v10398_v41 }
 0x5eb   : > { %v9907_v62 = vpop.f32.mrb[0].mxu0 }
 0x5ec   : > { %v4562_v32 = vpop.f32.mrb[1].mxu0 }
 0x5ed   : > { %v9908_v31 = vpop.f32.mrb[2].mxu0 }
 0x5ee   : > { %v4667_v44 = vpack.c.bf16 %v9908_v31, %v9907_v62  ;;  %v4565_v49 = vpop.f32.mrb[3].mxu0 }
 0x5ef   : > { %v4666_v63 = vpack.c.bf16 %v4565_v49, %v4562_v32 }
 0x5f1   : > { %4094 = vmatmul.mubr.bf16.gmra.mrb[224].mxu1 %v10400_v59  ;;  %9265 = vmatprep.subr.bf16.mxu1 %v4666_v63 }
 0x5f2   : > { %9266 = vmatpush3.bf16.msra.mxu1 %v4658_v39  ;;  %4101 = vmatprep.mubr.bf16.mxu1 %v10401_v23 }
 0x5f3   : > { %v9911_v27 = vpop.f32.mrb[4].mxu0  ;;  %9267 = vmatprep.subr.bf16.mxu1 %v4667_v44  ;;  %v10409_v44 = vld [vmem:[%s15290_s5 + $0x470] ss:$8 sps:$4 sm:$0xff]  }
 0x5f4   : > { %v4578_v12 = vpop.f32.mrb[5].mxu0 }
 0x5f5   : > { %v9912_v15 = vpop.f32.mrb[6].mxu0 }
 0x5f6   : > { %v4669_v46 = vpack.c.bf16 %v9912_v15, %v9911_v27  ;;  %v4581_v34 = vpop.f32.mrb[7].mxu0  ;;  %9268 = vmatpush3.bf16.msra.mxu1 %v4659_v13  ;;  %v10407_v13 = vld [vmem:[%s15290_s5 + $0x474] ss:$8 sps:$4 sm:$0xff]   ;;  %v10421_v15 = vld [vmem:[%s15290_s5 + $0x4b0] ss:$8 sps:$4 sm:$0xff]  }
 0x5f7   : > { %v4668_v11 = vpack.c.bf16 %v4581_v34, %v4578_v12  ;;  %v10413_v27 = vld [vmem:[%s15290_s5 + $0x494] ss:$8 sps:$4 sm:$0xff]  }
 0x5f8   : > { %v10419_v12 = vld [vmem:[%s15290_s5 + $0x4b4] ss:$8 sps:$4 sm:$0xff]  }
 0x5f9   : > { %4102 = vmatmul.mubr.bf16.gmra.mrb[228].mxu1 %v10403_v30  ;;  %9269 = vmatprep.subr.bf16.mxu1 %v4668_v11  ;;  %v10424_v30 = vld [vmem:[%s15290_s5 + $0x4c4] ss:$8 sps:$4 sm:$0xff]   ;;  %v10427_v34 = vld [vmem:[%s15290_s5 + $0x4d4] ss:$8 sps:$4 sm:$0xff]  }
 0x5fa   : > { %9270 = vmatpush3.bf16.msra.mxu1 %v4660_v54  ;;  %4109 = vmatprep.mubr.bf16.mxu1 %v10404_v0  ;;  %v10425_v0 = vld [vmem:[%s15290_s5 + $0x4d0] ss:$8 sps:$4 sm:$0xff]   ;;  %v10430_v11 = vld [vmem:[%s15290_s5 + $0x4e4] ss:$8 sps:$4 sm:$0xff]  }
 0x5fb   : > { %v9915_v39 = vpop.f32.mrb[8].mxu0  ;;  %9271 = vmatprep.subr.bf16.mxu1 %v4669_v46  ;;  %v10422_v46 = vld [vmem:[%s15290_s5 + $0x4c0] ss:$8 sps:$4 sm:$0xff]  }
 0x5fc   : > { %v4594_v58 = vpop.f32.mrb[9].mxu0 }
 0x5fd   : > { %v9916_v7 = vpop.f32.mrb[10].mxu0 }
 0x5fe   : > { %v4671_v41 = vpack.c.bf16 %v9916_v7, %v9915_v39  ;;  %v4597_v62 = vpop.f32.mrb[11].mxu0  ;;  %9272 = vmatpush3.bf16.msra.mxu1 %v4661_v38  ;;  %v10410_v38 = vld [vmem:[%s15290_s5 + $0x484] ss:$8 sps:$4 sm:$0xff]   ;;  %v10428_v39 = vld [vmem:[%s15290_s5 + $0x4e0] ss:$8 sps:$4 sm:$0xff]  }
 0x5ff   : > { %v4670_v32 = vpack.c.bf16 %v4597_v62, %v4594_v58  ;;  %v10433_v58 = vld [vmem:[%s15290_s5 + $0x4f4] ss:$8 sps:$4 sm:$0xff]   ;;  %v10431_v7 = vld [vmem:[%s15290_s5 + $0x4f0] ss:$8 sps:$4 sm:$0xff]  }
 0x600   : > { %v10439_v62 = vld [vmem:[%s15290_s5 + $0x514] ss:$8 sps:$4 sm:$0xff]  }
 0x601   : > { %4110 = vmatmul.mubr.bf16.gmra.mrb[232].mxu1 %v10406_v19  ;;  %9273 = vmatprep.subr.bf16.mxu1 %v4670_v32  ;;  %v10436_v19 = vld [vmem:[%s15290_s5 + $0x504] ss:$8 sps:$4 sm:$0xff]  }
 0x602   : > { %9274 = vmatpush3.bf16.msra.mxu1 %v4662_v1  ;;  %4117 = vmatprep.mubr.bf16.mxu1 %v10407_v13  ;;  %v10412_v1 = vld [vmem:[%s15290_s5 + $0x480] ss:$8 sps:$4 sm:$0xff]   ;;  %v10437_v13 = vld [vmem:[%s15290_s5 + $0x510] ss:$8 sps:$4 sm:$0xff]   ;;  %v10442_v32 = vld [vmem:[%s15290_s5 + $0x524] ss:$8 sps:$4 sm:$0xff]  }
 0x603   : > { %v9919_v54 = vpop.f32.mrb[12].mxu0  ;;  %9275 = vmatprep.subr.bf16.mxu1 %v4671_v41  ;;  %v10434_v41 = vld [vmem:[%s15290_s5 + $0x500] ss:$8 sps:$4 sm:$0xff]  }
 0x604   : > { %v4610_v31 = vpop.f32.mrb[13].mxu0 }
 0x605   : > { %v9920_v59 = vpop.f32.mrb[14].mxu0 }
 0x606   : > { %v4673_v49 = vpack.c.bf16 %v9920_v59, %v9919_v54  ;;  %v4613_v23 = vpop.f32.mrb[15].mxu0  ;;  %9276 = vmatpush3.bf16.msra.mxu1 %v4663_v37  ;;  %v10415_v37 = vld [vmem:[%s15290_s5 + $0x490] ss:$8 sps:$4 sm:$0xff]   ;;  %v10440_v54 = vld [vmem:[%s15290_s5 + $0x520] ss:$8 sps:$4 sm:$0xff]  }
 0x607   : > { %v4672_v63 = vpack.c.bf16 %v4613_v23, %v4610_v31  ;;  %v10445_v31 = vld [vmem:[%s15290_s5 + $0x534] ss:$8 sps:$4 sm:$0xff]   ;;  %v10443_v59 = vld [vmem:[%s15290_s5 + $0x530] ss:$8 sps:$4 sm:$0xff]  }
 0x608   : > { %v10451_v23 = vld [vmem:[%s15290_s5 + $0x554] ss:$8 sps:$4 sm:$0xff]  }
 0x609   : > { %4118 = vmatmul.mubr.bf16.gmra.mrb[236].mxu1 %v10409_v44  ;;  %9277 = vmatprep.subr.bf16.mxu1 %v4672_v63  ;;  %v10448_v44 = vld [vmem:[%s15290_s5 + $0x544] ss:$8 sps:$4 sm:$0xff]  }
 0x60a   : > { %9278 = vmatpush3.bf16.msra.mxu1 %v4664_v20  ;;  %4125 = vmatprep.mubr.bf16.mxu1 %v10410_v38  ;;  %v10416_v20 = vld [vmem:[%s15290_s5 + $0x4a4] ss:$8 sps:$4 sm:$0xff]   ;;  %v10449_v38 = vld [vmem:[%s15290_s5 + $0x550] ss:$8 sps:$4 sm:$0xff]  }
 0x60b   : > { %9279 = vmatprep.subr.bf16.mxu1 %v4673_v49  ;;  %v10446_v49 = vld [vmem:[%s15290_s5 + $0x540] ss:$8 sps:$4 sm:$0xff]   ;;  %v10454_v63 = vld [vmem:[%s15290_s5 + $0x564] ss:$8 sps:$4 sm:$0xff]  }
 0x60e   : > { %9280 = vmatpush3.bf16.msra.mxu1 %v4665_v56  ;;  %v10418_v56 = vld [vmem:[%s15290_s5 + $0x4a0] ss:$8 sps:$4 sm:$0xff]  }
 0x611   : > { %4126 = vmatmul.mubr.bf16.gmra.mrb[240].mxu1 %v10412_v1  ;;  %v10452_v1 = vld [vmem:[%s15290_s5 + $0x560] ss:$8 sps:$4 sm:$0xff]  }
 0x612   : > { %4133 = vmatprep.mubr.bf16.mxu1 %v10413_v27  ;;  %v10457_v27 = vld [vmem:[%s15290_s5 + $0x574] ss:$8 sps:$4 sm:$0xff]  }
 0x619   : > { %4134 = vmatmul.mubr.bf16.gmra.mrb[244].mxu1 %v10415_v37  ;;  %v10455_v37 = vld [vmem:[%s15290_s5 + $0x570] ss:$8 sps:$4 sm:$0xff]  }
 0x61a   : > { %4141 = vmatprep.mubr.bf16.mxu1 %v10416_v20  ;;  %v10460_v20 = vld [vmem:[%s15290_s5 + $0x584] ss:$8 sps:$4 sm:$0xff]  }
 0x621   : > { %4142 = vmatmul.mubr.bf16.gmra.mrb[248].mxu1 %v10418_v56  ;;  %v10458_v56 = vld [vmem:[%s15290_s5 + $0x580] ss:$8 sps:$4 sm:$0xff]  }
 0x622   : > { %4149 = vmatprep.mubr.bf16.mxu1 %v10419_v12  ;;  %v10463_v12 = vld [vmem:[%s15290_s5 + $0x594] ss:$8 sps:$4 sm:$0xff]  }
 0x629   : > { %4150 = vmatmul.mubr.bf16.gmra.mrb[252].mxu1 %v10421_v15  ;;  %v10461_v15 = vld [vmem:[%s15290_s5 + $0x590] ss:$8 sps:$4 sm:$0xff]  }
 0x62a   : > { %4157 = vmatprep.mubr.bf16.mxu1 %v10424_v30  ;;  %v10466_v30 = vld [vmem:[%s15290_s5 + $0x5a4] ss:$8 sps:$4 sm:$0xff]  }
 0x631   : > { %4158 = vmatmul.mubr.bf16.gmra.mrb[0].mxu1 %v10422_v46  ;;  %v12992_v46 = vld [vmem:[%s15289_s4 + $0x1c0] sm:$0xff]  }
 0x632   : > { %4165 = vmatprep.mubr.bf16.mxu1 %v10427_v34  ;;  %9921 = vmatprep.subr.bf16.mxu0 %v12992_v46  ;;  %v10464_v34 = vld [vmem:[%s15290_s5 + $0x5a0] ss:$8 sps:$4 sm:$0xff]  }
 0x633   : > { %9922 = vmatpush3.bf16.msra.mxu0 %v12992_v46 }
 0x639   : > { %4166 = vmatmul.mubr.bf16.gmra.mrb[4].mxu1 %v10425_v0  ;;  %v10469_v0 = vld [vmem:[%s15290_s5 + $0x5b4] ss:$8 sps:$4 sm:$0xff]  }
 0x63a   : > { %4173 = vmatprep.mubr.bf16.mxu1 %v10430_v11  ;;  %v13005_v11 = vld [vmem:[%s15289_s4 + $0x1c8] sm:$0xff]  }
 0x63b   : > { %9923 = vmatprep.subr.bf16.mxu0 %v13005_v11 }
 0x63c   : > { %9924 = vmatpush3.bf16.msra.mxu0 %v13005_v11 }
 0x641   : > { %4174 = vmatmul.mubr.bf16.gmra.mrb[8].mxu1 %v10428_v39  ;;  %v13011_v39 = vld [vmem:[%s15289_s4 + $0x1d0] sm:$0xff]  }
 0x642   : > { %4181 = vmatprep.mubr.bf16.mxu1 %v10433_v58  ;;  %9925 = vmatprep.subr.bf16.mxu0 %v13011_v39 }
 0x643   : > { %9926 = vmatpush3.bf16.msra.mxu0 %v13011_v39 }
 0x649   : > { %4182 = vmatmul.mubr.bf16.gmra.mrb[12].mxu1 %v10431_v7 }
 0x64a   : > { %4866 = vmatprep.mubr.bf16.mxu1 %v10436_v19  ;;  %v10467_v19 = vld [vmem:[%s15290_s5 + $0x5b0] ss:$8 sps:$4 sm:$0xff]  }
 0x651   : > { %4867 = vmatmul.mubr.bf16.vlgmr.msra.gmra.mrb[16].mxu1 %v10434_v41 }
 0x652   : > { %4874 = vmatprep.mubr.bf16.mxu1 %v10439_v62 }
 0x659   : > { %4875 = vmatmul.mubr.bf16.gmra.mrb[20].mxu1 %v10437_v13  ;;  %v10472_v13 = vld [vmem:[%s15290_s5 + $0x5c4] ss:$8 sps:$4 sm:$0xff]  }
 0x65a   : > { %4882 = vmatprep.mubr.bf16.mxu1 %v10442_v32 }
 0x661   : > { %4883 = vmatmul.mubr.bf16.gmra.mrb[24].mxu1 %v10440_v54 }
 0x662   : > { %4890 = vmatprep.mubr.bf16.mxu1 %v10445_v31 }
 0x669   : > { %4891 = vmatmul.mubr.bf16.gmra.mrb[28].mxu1 %v10443_v59 }
 0x66a   : > { %4898 = vmatprep.mubr.bf16.mxu1 %v10448_v44 }
 0x671   : > { %4899 = vmatmul.mubr.bf16.gmra.mrb[32].mxu1 %v10446_v49  ;;  %v13031_v49 = vld [vmem:[%s15289_s4 + $0x1d8] sm:$0xff]  }
 0x672   : > { %4906 = vmatprep.mubr.bf16.mxu1 %v10451_v23  ;;  %9927 = vmatprep.subr.bf16.mxu0 %v13031_v49 }
 0x673   : > { %9928 = vmatpush3.bf16.msra.mxu0 %v13031_v49 }
 0x679   : > { %4907 = vmatmul.mubr.bf16.gmra.mrb[36].mxu1 %v10449_v38  ;;  %v10470_v38 = vld [vmem:[%s15290_s5 + $0x5c0] ss:$8 sps:$4 sm:$0xff]  }
 0x67a   : > { %4914 = vmatprep.mubr.bf16.mxu1 %v10454_v63 }
 0x681   : > { %4915 = vmatmul.mubr.bf16.gmra.mrb[40].mxu1 %v10452_v1  ;;  %v10475_v1 = vld [vmem:[%s15290_s5 + $0x5d4] ss:$8 sps:$4 sm:$0xff]  }
 0x682   : > { %4922 = vmatprep.mubr.bf16.mxu1 %v10457_v27 }
 0x689   : > { %4923 = vmatmul.mubr.bf16.gmra.mrb[44].mxu1 %v10455_v37 }
 0x68a   : > { %4930 = vmatprep.mubr.bf16.mxu1 %v10460_v20 }
 0x691   : > { %4931 = vmatmul.mubr.bf16.gmra.mrb[48].mxu1 %v10458_v56 }
 0x692   : > { %4938 = vmatprep.mubr.bf16.mxu1 %v10463_v12 }
 0x699   : > { %4939 = vmatmul.mubr.bf16.gmra.mrb[52].mxu1 %v10461_v15  ;;  %v13057_v15 = vld [vmem:[%s15289_s4 + $0x1e8] sm:$0xff]  }
 0x69a   : > { %4946 = vmatprep.mubr.bf16.mxu1 %v10466_v30 }
 0x6a1   : > { %4947 = vmatmul.mubr.bf16.gmra.mrb[56].mxu1 %v10464_v34 }
 0x6a2   : > { %4954 = vmatprep.mubr.bf16.mxu1 %v10469_v0 }
 0x6a4   : > { %v9121_v58 = vpop.f32.mrb[208].mxu1 }
 0x6a5   : > { %v9122_v7 = vpop.f32.mrb[209].mxu1 }
 0x6a6   : > { %v9123_v41 = vadd.f32 %v9122_v7, %v9121_v58  ;;  %v9124_v62 = vpop.f32.mrb[210].mxu1 }
 0x6a7   : > { %v9125_v32 = vpop.f32.mrb[211].mxu1 }
 0x6a8   : > { %v13023_v54 = vadd.f32 %v9123_v41, %v12747_v26  ;;  %v9126_v31 = vadd.f32 %v9125_v32, %v9124_v62  ;;  %v13073_v41 = vld [vmem:[%s15289_s4 + $0x1f0] sm:$0xff]  }
 0x6a9   : > { %4955 = vmatmul.mubr.bf16.gmra.mrb[60].mxu1 %v10467_v19 }
 0x6aa   : > { %v13026_v59 = vadd.f32 %v9126_v31, %v12751_v29  ;;  %4962 = vmatprep.mubr.bf16.mxu1 %v10472_v13  ;;  %v13043_v29 = vld [vmem:[%s15289_s4 + $0x1e0] sm:$0xff]  }
 0x6ab   : > { %9929 = vmatprep.subr.bf16.mxu0 %v13043_v29  ;;  %v10476_v31 = vld [vmem:[%s15290_s5 + $0x5e0] ss:$8 sps:$4 sm:$0xff]  }
 0x6ac   : > { %v9127_v44 = vpop.f32.mrb[212].mxu1  ;;  %9930 = vmatpush3.bf16.msra.mxu0 %v13043_v29 }
 0x6ad   : > { %v9128_v23 = vpop.f32.mrb[213].mxu1  ;;  %9931 = vmatprep.subr.bf16.mxu0 %v13057_v15 }
 0x6ae   : > { %v9129_v63 = vadd.f32 %v9128_v23, %v9127_v44  ;;  %v9130_v26 = vpop.f32.mrb[214].mxu1 }
 0x6af   : > { %v9131_v27 = vpop.f32.mrb[215].mxu1 }
 0x6b0   : > { %v13047_v37 = vadd.f32 %v12745_v8, %v9129_v63  ;;  %v9132_v20 = vadd.f32 %v9131_v27, %v9130_v26  ;;  %v10473_v8 = vld [vmem:[%s15290_s5 + $0x5d0] ss:$8 sps:$4 sm:$0xff]   ;;  %9932 = vmatpush3.bf16.msra.mxu0 %v13057_v15 }
 0x6b1   : > { %4963 = vmatmul.mubr.bf16.gmra.mrb[64].mxu1 %v10470_v38  ;;  %9933 = vmatprep.subr.bf16.mxu0 %v13073_v41 }
 0x6b2   : > { %v13051_v56 = vadd.f32 %v12749_v22, %v9132_v20  ;;  %4970 = vmatprep.mubr.bf16.mxu1 %v10475_v1  ;;  %v10478_v22 = vld [vmem:[%s15290_s5 + $0x5e4] ss:$8 sps:$4 sm:$0xff]  }
 0x6b4   : > { %v9133_v12 = vpop.f32.mrb[216].mxu1  ;;  %9934 = vmatpush3.bf16.msra.mxu0 %v13073_v41 }
 0x6b5   : > { %v9134_v30 = vpop.f32.mrb[217].mxu1 }
 0x6b6   : > { %v9135_v34 = vadd.f32 %v9134_v30, %v9133_v12  ;;  %v9136_v0 = vpop.f32.mrb[218].mxu1  ;;  %v10479_v12 = vld [vmem:[%s15290_s5 + $0x5f0] ss:$8 sps:$4 sm:$0xff]  }
 0x6b7   : > { %v9137_v58 = vpop.f32.mrb[219].mxu1 }
 0x6b8   : > { %v13068_v7 = vadd.f32 %v9135_v34, %v12755_v21  ;;  %v9138_v19 = vadd.f32 %v9137_v58, %v9136_v0  ;;  %v13083_v21 = vld [vmem:[%s15289_s4 + $0x1f8] sm:$0xff]  }
 0x6b9   : > { %4971 = vmatmul.mubr.bf16.gmra.mrb[68].mxu1 %v10473_v8  ;;  %9935 = vmatprep.subr.bf16.mxu0 %v13083_v21 }
 0x6ba   : > { %v13076_v62 = vadd.f32 %v9138_v19, %v12759_v61  ;;  %4978 = vmatprep.mubr.bf16.mxu1 %v10478_v22  ;;  %v10481_v61 = vld [vmem:[%s15290_s5 + $0x5f4] ss:$8 sps:$4 sm:$0xff]   ;;  %9936 = vmatpush3.bf16.msra.mxu0 %v13083_v21 }
 0x6bb   : > { %9969 = vmatprep.subr.bf16.mxu0 %v12992_v46 }
 0x6bc   : > { %v9139_v13 = vpop.f32.mrb[220].mxu1 }
 0x6bd   : > { %v9140_v32 = vpop.f32.mrb[221].mxu1 }
 0x6be   : > { %v9141_v44 = vadd.f32 %v9140_v32, %v9139_v13  ;;  %v9142_v23 = vpop.f32.mrb[222].mxu1 }
 0x6bf   : > { %v9143_v38 = vpop.f32.mrb[223].mxu1 }
 0x6c0   : > { %v13094_v63 = vadd.f32 %v12753_v2, %v9141_v44  ;;  %v9144_v26 = vadd.f32 %v9143_v38, %v9142_v23 }
 0x6c1   : > { %4979 = vmatmul.mubr.bf16.gmra.mrb[72].mxu1 %v10476_v31 }
 0x6c2   : > { %v13098_v1 = vadd.f32 %v12757_v28, %v9144_v26  ;;  %4986 = vmatprep.mubr.bf16.mxu1 %v10481_v61 }
 0x6c4   : > { %v9145_v27 = vpop.f32.mrb[224].mxu1 }
 0x6c5   : > { %v9146_v20 = vpop.f32.mrb[225].mxu1 }
 0x6c6   : > { %v9147_v30 = vadd.f32 %v9146_v20, %v9145_v27  ;;  %v9148_v8 = vpop.f32.mrb[226].mxu1 }
 0x6c7   : > { %v9149_v34 = vpop.f32.mrb[227].mxu1 }
 0x6c8   : > { %v13104_v2 = vadd.f32 %v9147_v30, %v12763_v42  ;;  %v9150_v0 = vadd.f32 %v9149_v34, %v9148_v8 }
 0x6c9   : > { %4987 = vmatmul.mubr.bf16.gmra.mrb[76].mxu1 %v10479_v12 }
 0x6ca   : > { %v13107_v22 = vadd.f32 %v9150_v0, %v12767_v36 }
 0x6cc   : > { %v9151_v28 = vpop.f32.mrb[228].mxu1 }
 0x6cd   : > { %v9152_v58 = vpop.f32.mrb[229].mxu1 }
 0x6ce   : > { %v9153_v19 = vadd.f32 %v9152_v58, %v9151_v28  ;;  %v9154_v13 = vpop.f32.mrb[230].mxu1 }
 0x6cf   : > { %v9155_v32 = vpop.f32.mrb[231].mxu1 }
 0x6d0   : > { %v13110_v31 = vadd.f32 %v12761_v43, %v9153_v19  ;;  %v9156_v44 = vadd.f32 %v9155_v32, %v9154_v13 }
 0x6d2   : > { %v13113_v23 = vadd.f32 %v12765_v47, %v9156_v44 }
 0x6d4   : > { %v9157_v61 = vpop.f32.mrb[232].mxu1 }
 0x6d5   : > { %v9158_v42 = vpop.f32.mrb[233].mxu1 }
 0x6d6   : > { %v9159_v38 = vadd.f32 %v9158_v42, %v9157_v61  ;;  %v9160_v26 = vpop.f32.mrb[234].mxu1 }
 0x6d7   : > { %v9161_v27 = vpop.f32.mrb[235].mxu1 }
 0x6d8   : > { %v13116_v36 = vadd.f32 %v9159_v38, %v12773_v50  ;;  %v9162_v20 = vadd.f32 %v9161_v27, %v9160_v26 }
 0x6da   : > { %v13119_v12 = vadd.f32 %v9162_v20, %v12781_v48 }
 0x6dc   : > { %v9163_v30 = vpop.f32.mrb[236].mxu1 }
 0x6dd   : > { %v9164_v8 = vpop.f32.mrb[237].mxu1 }
 0x6de   : > { %v9165_v43 = vadd.f32 %v9164_v8, %v9163_v30  ;;  %v9166_v34 = vpop.f32.mrb[238].mxu1 }
 0x6df   : > { %v9167_v0 = vpop.f32.mrb[239].mxu1 }
 0x6e0   : > { %v13122_v47 = vadd.f32 %v12771_v35, %v9165_v43  ;;  %v9168_v28 = vadd.f32 %v9167_v0, %v9166_v34 }
 0x6e2   : > { %v13125_v58 = vadd.f32 %v12777_v60, %v9168_v28 }
 0x6e4   : > { %v9169_v19 = vpop.f32.mrb[240].mxu1 }
 0x6e5   : > { %v9170_v13 = vpop.f32.mrb[241].mxu1 }
 0x6e6   : > { %v9171_v50 = vadd.f32 %v9170_v13, %v9169_v19  ;;  %v9172_v32 = vpop.f32.mrb[242].mxu1 }
 0x6e7   : > { %v9173_v44 = vpop.f32.mrb[243].mxu1 }
 0x6e8   : > { %v13128_v48 = vadd.f32 %v9171_v50, %v12785_v45  ;;  %v9174_v61 = vadd.f32 %v9173_v44, %v9172_v32 }
 0x6ea   : > { %v13131_v42 = vadd.f32 %v9174_v61, %v12789_v10 }
 0x6ec   : > { %v9175_v38 = vpop.f32.mrb[244].mxu1 }
 0x6ed   : > { %v9176_v26 = vpop.f32.mrb[245].mxu1 }
 0x6ee   : > { %v9177_v35 = vadd.f32 %v9176_v26, %v9175_v38  ;;  %v9178_v27 = vpop.f32.mrb[246].mxu1 }
 0x6ef   : > { %v9179_v20 = vpop.f32.mrb[247].mxu1 }
 0x6f0   : > { %v13134_v60 = vadd.f32 %v12783_v33, %v9177_v35  ;;  %v9180_v30 = vadd.f32 %v9179_v20, %v9178_v27 }
 0x6f2   : > { %v13137_v8 = vadd.f32 %v12787_v4, %v9180_v30 }
 0x6f4   : > { %v9181_v43 = vpop.f32.mrb[248].mxu1 }
 0x6f5   : > { %v9182_v34 = vpop.f32.mrb[249].mxu1 }
 0x6f6   : > { %v9183_v45 = vadd.f32 %v9182_v34, %v9181_v43  ;;  %v9184_v0 = vpop.f32.mrb[250].mxu1 }
 0x6f7   : > { %v9185_v28 = vpop.f32.mrb[251].mxu1 }
 0x6f8   : > { %v13140_v10 = vadd.f32 %v9183_v45, %v12793_v51  ;;  %v9186_v19 = vadd.f32 %v9185_v28, %v9184_v0 }
 0x6fa   : > { %v13143_v13 = vadd.f32 %v9186_v19, %v12797_v17 }
 0x6fc   : > { %v9187_v50 = vpop.f32.mrb[252].mxu1 }
 0x6fd   : > { %v9188_v32 = vpop.f32.mrb[253].mxu1 }
 0x6fe   : > { %v9189_v33 = vadd.f32 %v9188_v32, %v9187_v50  ;;  %v9190_v44 = vpop.f32.mrb[254].mxu1 }
 0x6ff   : > { %v9191_v61 = vpop.f32.mrb[255].mxu1 }
 0x700   : > { %v13146_v4 = vadd.f32 %v12791_v16, %v9189_v33  ;;  %v9192_v38 = vadd.f32 %v9191_v61, %v9190_v44 }
 0x702   : > { %v13149_v26 = vadd.f32 %v12795_v18, %v9192_v38 }
 0x704   : > { %v9193_v35 = vpop.f32.mrb[0].mxu1 }
 0x705   : > { %v9194_v27 = vpop.f32.mrb[1].mxu1 }
 0x706   : > { %v9195_v51 = vadd.f32 %v9194_v27, %v9193_v35  ;;  %v9196_v20 = vpop.f32.mrb[2].mxu1 }
 0x707   : > { %v9197_v30 = vpop.f32.mrb[3].mxu1 }
 0x708   : > { %v13152_v17 = vadd.f32 %v9195_v51, %v12801_v53  ;;  %v9198_v43 = vadd.f32 %v9197_v30, %v9196_v20 }
 0x70a   : > { %v13155_v34 = vadd.f32 %v9198_v43, %v12805_v25 }
 0x70c   : > { %v9199_v45 = vpop.f32.mrb[4].mxu1 }
 0x70d   : > { %v9200_v0 = vpop.f32.mrb[5].mxu1 }
 0x70e   : > { %v9201_v16 = vadd.f32 %v9200_v0, %v9199_v45  ;;  %v9202_v28 = vpop.f32.mrb[6].mxu1 }
 0x70f   : > { %v9203_v19 = vpop.f32.mrb[7].mxu1 }
 0x710   : > { %v13158_v18 = vadd.f32 %v12799_v9, %v9201_v16  ;;  %v9204_v50 = vadd.f32 %v9203_v19, %v9202_v28 }
 0x712   : > { %v13161_v32 = vadd.f32 %v12803_v55, %v9204_v50 }
 0x714   : > { %v9205_v33 = vpop.f32.mrb[8].mxu1 }
 0x715   : > { %v9206_v44 = vpop.f32.mrb[9].mxu1 }
 0x716   : > { %v9207_v53 = vadd.f32 %v9206_v44, %v9205_v33  ;;  %v9208_v61 = vpop.f32.mrb[10].mxu1 }
 0x717   : > { %v9209_v38 = vpop.f32.mrb[11].mxu1 }
 0x718   : > { %v13164_v25 = vadd.f32 %v9207_v53, %v12809_v52  ;;  %v9210_v35 = vadd.f32 %v9209_v38, %v9208_v61  ;;  %v8459_v52 = vld [vmem:[%s15288_s3] sm:$0xff]   ;;  %v8522_v38 = vld [vmem:[%s15288_s3 + $0x8] sm:$0xff]  }
 0x719   : > { %v8460_v19 = vunpack.c.l.bf16 %v8459_v52  ;;  %v8461_v53 = vunpack.c.h.bf16 %v8459_v52 }
 0x71a   : > { %v13167_v27 = vadd.f32 %v9210_v35, %v12813_v40 }
 0x71c   : > { %v9211_v51 = vpop.f32.mrb[12].mxu1 }
 0x71d   : > { %v9212_v20 = vpop.f32.mrb[13].mxu1 }
 0x71e   : > { %v9213_v9 = vadd.f32 %v9212_v20, %v9211_v51  ;;  %v9214_v30 = vpop.f32.mrb[14].mxu1 }
 0x71f   : > { %v9215_v43 = vpop.f32.mrb[15].mxu1 }
 0x720   : > { %v13170_v55 = vadd.f32 %v12807_v57, %v9213_v9  ;;  %v9216_v45 = vadd.f32 %v9215_v43, %v9214_v30  ;;  %v10931_v9 = vld [vmem:[%s11047_s17] sm:$0xff]  ;;  %v10932_v43 = vld [vmem:[%s11047_s17 + $0x8] sm:$0xff] }
 0x722   : > { %v13173_v0 = vadd.f32 %v12811_v24, %v9216_v45 }
 0x724   : > { %v9281_v16 = vpop.f32.mrb[16].mxu1 }
 0x725   : > { %v9282_v40 = vpop.f32.mrb[17].mxu1 }
 0x726   : > { %v9283_v28 = vadd.f32 %v9282_v40, %v9281_v16  ;;  %v9284_v50 = vpop.f32.mrb[18].mxu1  ;;  %v8464_v16 = vunpack.c.l.bf16 %v8522_v38 }
 0x727   : > { %v9285_v33 = vpop.f32.mrb[19].mxu1 }
 0x728   : > { %v4995_v44 = vadd.f32 %v9283_v28, %v13023_v54  ;;  %v9286_v57 = vadd.f32 %v9285_v33, %v9284_v50 }
 0x72a   : > { %v5091_v61 = vadd.f32 %v8460_v19, %v4995_v44  ;;  %v4996_v24 = vadd.f32 %v9286_v57, %v13026_v59  ;;  %v8465_v19 = vunpack.c.h.bf16 %v8522_v38  ;;  %v8523_v57 = vld [vmem:[%s15288_s3 + $0x10] sm:$0xff]  }
 0x72c   : > { %v5092_v35 = vadd.f32 %v8461_v53, %v4996_v24  ;;  %v9287_v51 = vpop.f32.mrb[20].mxu1  ;;  %v13184_v30 = vadd.f32 %v10931_v9, %v5091_v61  ;;  %v8468_v9 = vunpack.c.l.bf16 %v8523_v57 }
 0x72d   : > { %v9288_v20 = vpop.f32.mrb[21].mxu1 }
 0x72e   : > { %15352 = vst [vmem:[#allocation3_spill] sm:$0xff] %v13184_v30  ;;  %v13187_v45 = vadd.f32 %v10932_v43, %v5092_v35  ;;  %v9289_v54 = vadd.f32 %v9288_v20, %v9287_v51  ;;  %v9290_v52 = vpop.f32.mrb[22].mxu1  ;;  %v10933_v35 = vld [vmem:[%s11047_s17 + $0x10] sm:$0xff] }
 0x72f   : > { %v9291_v40 = vpop.f32.mrb[23].mxu1 }
 0x730   : > { %15353 = vst [vmem:[#allocation4_spill] sm:$0xff] %v13187_v45  ;;  %v4997_v59 = vadd.f32 %v9289_v54, %v13047_v37  ;;  %v9292_v28 = vadd.f32 %v9291_v40, %v9290_v52  ;;  %v5155_v50 = vpack.c.bf16 %v13187_v45, %v13184_v30  ;;  %v10934_v37 = vld [vmem:[%s11047_s17 + $0x18] sm:$0xff]  ;;  %v8469_v40 = vunpack.c.h.bf16 %v8523_v57 }
 0x732   : > { %v5093_v33 = vadd.f32 %v8464_v16, %v4997_v59  ;;  %v4998_v44 = vadd.f32 %v9292_v28, %v13051_v56  ;;  %9937 = vmatprep.mubr.bf16.mxu0 %v5155_v50 }
 0x734   : > { %v5094_v53 = vadd.f32 %v8465_v19, %v4998_v44  ;;  %v9293_v61 = vpop.f32.mrb[24].mxu1  ;;  %v13197_v51 = vadd.f32 %v10933_v35, %v5093_v33  ;;  %v8524_v19 = vld [vmem:[%s15288_s3 + $0x18] sm:$0xff]  }
 0x735   : > { %v9294_v24 = vpop.f32.mrb[25].mxu1 }
 0x736   : > { %15354 = vst [vmem:[#allocation5_spill] sm:$0xff] %v13197_v51  ;;  %v13200_v20 = vadd.f32 %v10934_v37, %v5094_v53  ;;  %v9295_v38 = vadd.f32 %v9294_v24, %v9293_v61  ;;  %v9296_v43 = vpop.f32.mrb[26].mxu1  ;;  %v10935_v53 = vld [vmem:[%s11047_s17 + $0x20] sm:$0xff] }
 0x737   : > { %v9297_v54 = vpop.f32.mrb[27].mxu1 }
 0x738   : > { %15355 = vst [vmem:[#allocation6_spill] sm:$0xff] %v13200_v20  ;;  %v5156_v56 = vpack.c.bf16 %v13200_v20, %v13197_v51  ;;  %v4999_v16 = vadd.f32 %v9295_v38, %v13068_v7  ;;  %v9298_v52 = vadd.f32 %v9297_v54, %v9296_v43  ;;  %v10936_v7 = vld [vmem:[%s11047_s17 + $0x28] sm:$0xff] }
 0x73a   : > { %v5095_v59 = vadd.f32 %v8468_v9, %v4999_v16  ;;  %v5000_v28 = vadd.f32 %v9298_v52, %v13076_v62  ;;  %9938 = vmatmul.mubr.bf16.vlgmr.msra.gmra.mrb[16].mxu0 %v5156_v56  ;;  %v8472_v62 = vunpack.c.l.bf16 %v8524_v19  ;;  %v8473_v9 = vunpack.c.h.bf16 %v8524_v19  ;;  %v8525_v16 = vld [vmem:[%s15288_s3 + $0x20] sm:$0xff]  }
 0x73b   : > { %9970 = vmatpush3.bf16.msra.mxu0 %v12992_v46 }
 0x73c   : > { %v5096_v50 = vadd.f32 %v8469_v40, %v5000_v28  ;;  %v9299_v33 = vpop.f32.mrb[28].mxu1  ;;  %9971 = vmatprep.subr.bf16.mxu0 %v13005_v11  ;;  %v13212_v61 = vadd.f32 %v10935_v53, %v5095_v59  ;;  %v10937_v40 = vld [vmem:[%s11047_s17 + $0x30] sm:$0xff]  ;;  %v10938_v28 = vld [vmem:[%s11047_s17 + $0x38] sm:$0xff] }
 0x73d   : > { %v9300_v44 = vpop.f32.mrb[29].mxu1 }
 0x73e   : > { %15356 = vst [vmem:[#allocation7_spill] sm:$0xff] %v13212_v61  ;;  %v13215_v57 = vadd.f32 %v10936_v7, %v5096_v50  ;;  %v9301_v24 = vadd.f32 %v9300_v44, %v9299_v33  ;;  %v9302_v35 = vpop.f32.mrb[30].mxu1 }
 0x73f   : > { %v9303_v37 = vpop.f32.mrb[31].mxu1  ;;  %9972 = vmatpush3.bf16.msra.mxu0 %v13005_v11 }
 0x740   : > { %15357 = vst [vmem:[#allocation8_spill] sm:$0xff] %v13215_v57  ;;  %v5001_v46 = vadd.f32 %v9301_v24, %v13094_v63  ;;  %v9304_v38 = vadd.f32 %v9303_v37, %v9302_v35  ;;  %v5157_v43 = vpack.c.bf16 %v13215_v57, %v13212_v61  ;;  %9973 = vmatprep.subr.bf16.mxu0 %v13011_v39  ;;  %v8477_v24 = vunpack.c.h.bf16 %v8525_v16  ;;  %v8526_v37 = vld [vmem:[%s15288_s3 + $0x28] sm:$0xff]  }
 0x742   : > { %v5097_v54 = vadd.f32 %v8472_v62, %v5001_v46  ;;  %v5002_v56 = vadd.f32 %v9304_v38, %v13098_v1  ;;  %9941 = vmatprep.mubr.bf16.mxu0 %v5157_v43  ;;  %v8476_v1 = vunpack.c.l.bf16 %v8525_v16  ;;  %v10940_v43 = vld [vmem:[%s11047_s17 + $0x48] sm:$0xff] }
 0x743   : > { %9974 = vmatpush3.bf16.msra.mxu0 %v13011_v39 }
 0x744   : > { %v5098_v11 = vadd.f32 %v8473_v9, %v5002_v56  ;;  %v9305_v63 = vpop.f32.mrb[32].mxu1  ;;  %9975 = vmatprep.subr.bf16.mxu0 %v13031_v49  ;;  %v13229_v59 = vadd.f32 %v10937_v40, %v5097_v54 }
 0x745   : > { %v9306_v52 = vpop.f32.mrb[33].mxu1 }
 0x746   : > { %15358 = vst [vmem:[#allocation9_spill] sm:$0xff] %v13229_v59  ;;  %v13232_v19 = vadd.f32 %v10938_v28, %v5098_v11  ;;  %v9307_v50 = vadd.f32 %v9306_v52, %v9305_v63  ;;  %v9308_v33 = vpop.f32.mrb[34].mxu1  ;;  %v8481_v52 = vunpack.c.h.bf16 %v8526_v37 }
 0x747   : > { %v9309_v44 = vpop.f32.mrb[35].mxu1  ;;  %9976 = vmatpush3.bf16.msra.mxu0 %v13031_v49 }
 0x748   : > { %15359 = vst [vmem:[#allocation10_spill] sm:$0xff] %v13232_v19  ;;  %v5158_v39 = vpack.c.bf16 %v13232_v19, %v13229_v59  ;;  %v5003_v53 = vadd.f32 %v9307_v50, %v13104_v2  ;;  %v9310_v7 = vadd.f32 %v9309_v44, %v9308_v33  ;;  %9977 = vmatprep.subr.bf16.mxu0 %v13043_v29  ;;  %v10939_v2 = vld [vmem:[%s11047_s17 + $0x40] sm:$0xff]  ;;  %v10941_v44 = vld [vmem:[%s11047_s17 + $0x50] sm:$0xff] }
 0x74a   : > { %v5099_v62 = vadd.f32 %v8476_v1, %v5003_v53  ;;  %v5004_v35 = vadd.f32 %v9310_v7, %v13107_v22  ;;  %9942 = vmatmul.mubr.bf16.gmra.mrb[20].mxu0 %v5158_v39  ;;  %v8480_v22 = vunpack.c.l.bf16 %v8526_v37  ;;  %v8527_v1 = vld [vmem:[%s15288_s3 + $0x30] sm:$0xff]   ;;  %v10942_v53 = vld [vmem:[%s11047_s17 + $0x58] sm:$0xff] }
 0x74b   : > { %9978 = vmatpush3.bf16.msra.mxu0 %v13043_v29 }
 0x74c   : > { %v5100_v49 = vadd.f32 %v8477_v24, %v5004_v35  ;;  %v9311_v46 = vpop.f32.mrb[36].mxu1  ;;  %9979 = vmatprep.subr.bf16.mxu0 %v13057_v15  ;;  %v13246_v9 = vadd.f32 %v10939_v2, %v5099_v62 }
 0x74d   : > { %v9312_v38 = vpop.f32.mrb[37].mxu1 }
 0x74e   : > { %15360 = vst [vmem:[#allocation11_spill] sm:$0xff] %v13246_v9  ;;  %v13249_v54 = vadd.f32 %v10940_v43, %v5100_v49  ;;  %v9313_v56 = vadd.f32 %v9312_v38, %v9311_v46  ;;  %v9314_v16 = vpop.f32.mrb[38].mxu1  ;;  %v8485_v46 = vunpack.c.h.bf16 %v8527_v1  ;;  %v8528_v43 = vld [vmem:[%s15288_s3 + $0x38] sm:$0xff]  }
 0x74f   : > { %v9315_v11 = vpop.f32.mrb[39].mxu1  ;;  %9980 = vmatpush3.bf16.msra.mxu0 %v13057_v15 }
 0x750   : > { %15361 = vst [vmem:[#allocation12_spill] sm:$0xff] %v13249_v54  ;;  %v5005_v29 = vadd.f32 %v9313_v56, %v13110_v31  ;;  %v9316_v63 = vadd.f32 %v9315_v11, %v9314_v16  ;;  %v5159_v40 = vpack.c.bf16 %v13249_v54, %v13246_v9  ;;  %9981 = vmatprep.subr.bf16.mxu0 %v13073_v41  ;;  %v10943_v11 = vld [vmem:[%s11047_s17 + $0x60] sm:$0xff] }
 0x752   : > { %v5101_v28 = vadd.f32 %v8480_v22, %v5005_v29  ;;  %v5006_v50 = vadd.f32 %v9316_v63, %v13113_v23  ;;  %9945 = vmatprep.mubr.bf16.mxu0 %v5159_v40  ;;  %v8484_v23 = vunpack.c.l.bf16 %v8527_v1  ;;  %v10944_v29 = vld [vmem:[%s11047_s17 + $0x68] sm:$0xff]  ;;  %v8489_v1 = vunpack.c.h.bf16 %v8528_v43 }
 0x753   : > { %9982 = vmatpush3.bf16.msra.mxu0 %v13073_v41 }
 0x754   : > { %v5102_v15 = vadd.f32 %v8481_v52, %v5006_v50  ;;  %v9317_v31 = vpop.f32.mrb[40].mxu1  ;;  %9983 = vmatprep.subr.bf16.mxu0 %v13083_v21  ;;  %v13263_v39 = vadd.f32 %v10941_v44, %v5101_v28  ;;  %v8488_v52 = vunpack.c.l.bf16 %v8528_v43  ;;  %v8529_v44 = vld [vmem:[%s15288_s3 + $0x40] sm:$0xff]  }
 0x755   : > { %v9318_v33 = vpop.f32.mrb[41].mxu1 }
 0x756   : > { %15362 = vst [vmem:[#allocation13_spill] sm:$0xff] %v13263_v39  ;;  %v13266_v7 = vadd.f32 %v10942_v53, %v5102_v15  ;;  %v9319_v24 = vadd.f32 %v9318_v33, %v9317_v31  ;;  %v9320_v62 = vpop.f32.mrb[42].mxu1 }
 0x757   : > { %v9321_v35 = vpop.f32.mrb[43].mxu1  ;;  %9984 = vmatpush3.bf16.msra.mxu0 %v13083_v21 }
 0x758   : > { %15363 = vst [vmem:[#allocation14_spill] sm:$0xff] %v13266_v7  ;;  %v5160_v41 = vpack.c.bf16 %v13266_v7, %v13263_v39  ;;  %v5007_v37 = vadd.f32 %v9319_v24, %v13116_v36  ;;  %v9322_v49 = vadd.f32 %v9321_v35, %v9320_v62  ;;  %v10945_v62 = vld [vmem:[%s11047_s17 + $0x70] sm:$0xff] }
 0x75a   : > { %v5103_v38 = vadd.f32 %v8484_v23, %v5007_v37  ;;  %v5008_v2 = vadd.f32 %v9322_v49, %v13119_v12  ;;  %9946 = vmatmul.mubr.bf16.gmra.mrb[24].mxu0 %v5160_v41  ;;  %v8492_v49 = vunpack.c.l.bf16 %v8529_v44 }
 0x75c   : > { %v5104_v56 = vadd.f32 %v8485_v46, %v5008_v2  ;;  %v9323_v22 = vpop.f32.mrb[44].mxu1  ;;  %v13277_v21 = vadd.f32 %v10943_v11, %v5103_v38  ;;  %v8530_v11 = vld [vmem:[%s15288_s3 + $0x48] sm:$0xff]  }
 0x75d   : > { %v9324_v16 = vpop.f32.mrb[45].mxu1 }
 0x75e   : > { %15364 = vst [vmem:[#allocation15_spill] sm:$0xff] %v13277_v21  ;;  %v13280_v63 = vadd.f32 %v10944_v29, %v5104_v56  ;;  %v9325_v36 = vadd.f32 %v9324_v16, %v9323_v22  ;;  %v9326_v40 = vpop.f32.mrb[46].mxu1  ;;  %v8493_v56 = vunpack.c.h.bf16 %v8529_v44  ;;  %v8497_v44 = vunpack.c.h.bf16 %v8530_v11 }
 0x75f   : > { %v9327_v12 = vpop.f32.mrb[47].mxu1 }
 0x760   : > { %15365 = vst [vmem:[#allocation16_spill] sm:$0xff] %v13280_v63  ;;  %v5009_v28 = vadd.f32 %v9325_v36, %v13122_v47  ;;  %v9328_v50 = vadd.f32 %v9327_v12, %v9326_v40  ;;  %v5161_v15 = vpack.c.bf16 %v13280_v63, %v13277_v21  ;;  %v10946_v47 = vld [vmem:[%s11047_s17 + $0x78] sm:$0xff]  ;;  %v10947_v40 = vld [vmem:[%s11047_s17 + $0x80] sm:$0xff] }
 0x762   : > { %v5105_v31 = vadd.f32 %v8488_v52, %v5009_v28  ;;  %v5010_v33 = vadd.f32 %v9328_v50, %v13125_v58  ;;  %9949 = vmatprep.mubr.bf16.mxu0 %v5161_v15  ;;  %v10948_v28 = vld [vmem:[%s11047_s17 + $0x88] sm:$0xff] }
 0x764   : > { %v5106_v53 = vadd.f32 %v8489_v1, %v5010_v33  ;;  %v9329_v24 = vpop.f32.mrb[48].mxu1  ;;  %v13290_v35 = vadd.f32 %v10945_v62, %v5105_v31  ;;  %v8496_v1 = vunpack.c.l.bf16 %v8530_v11  ;;  %v8531_v62 = vld [vmem:[%s15288_s3 + $0x50] sm:$0xff]  }
 0x765   : > { %v9330_v23 = vpop.f32.mrb[49].mxu1 }
 0x766   : > { %15366 = vst [vmem:[#allocation17_spill] sm:$0xff] %v13290_v35  ;;  %v13293_v41 = vadd.f32 %v10946_v47, %v5106_v53  ;;  %v9331_v37 = vadd.f32 %v9330_v23, %v9329_v24  ;;  %v9332_v46 = vpop.f32.mrb[50].mxu1 }
 0x767   : > { %v9333_v58 = vpop.f32.mrb[51].mxu1 }
 0x768   : > { %15367 = vst [vmem:[#allocation18_spill] sm:$0xff] %v13293_v41  ;;  %v5162_v38 = vpack.c.bf16 %v13293_v41, %v13290_v35  ;;  %v5011_v2 = vadd.f32 %v9331_v37, %v13128_v48  ;;  %v9334_v43 = vadd.f32 %v9333_v58, %v9332_v46  ;;  %v10949_v46 = vld [vmem:[%s11047_s17 + $0x90] sm:$0xff] }
 0x76a   : > { %v5107_v22 = vadd.f32 %v8492_v49, %v5011_v2  ;;  %v5012_v16 = vadd.f32 %v9334_v43, %v13131_v42  ;;  %9950 = vmatmul.mubr.bf16.gmra.mrb[28].mxu0 %v5162_v38  ;;  %v8500_v43 = vunpack.c.l.bf16 %v8531_v62 }
 0x76c   : > { %v5108_v29 = vadd.f32 %v8493_v56, %v5012_v16  ;;  %v9335_v36 = vpop.f32.mrb[52].mxu1  ;;  %v13303_v12 = vadd.f32 %v10947_v40, %v5107_v22  ;;  %v8532_v40 = vld [vmem:[%s15288_s3 + $0x58] sm:$0xff]  }
 0x76d   : > { %v9336_v52 = vpop.f32.mrb[53].mxu1 }
 0x76e   : > { %15368 = vst [vmem:[#allocation19_spill] sm:$0xff] %v13303_v12  ;;  %v13306_v50 = vadd.f32 %v10948_v28, %v5108_v29  ;;  %v9337_v48 = vadd.f32 %v9336_v52, %v9335_v36  ;;  %v9338_v15 = vpop.f32.mrb[54].mxu1  ;;  %v8501_v29 = vunpack.c.h.bf16 %v8531_v62  ;;  %v8505_v62 = vunpack.c.h.bf16 %v8532_v40 }
 0x76f   : > { %v9339_v42 = vpop.f32.mrb[55].mxu1 }
 0x770   : > { %15369 = vst [vmem:[#allocation20_spill] sm:$0xff] %v13306_v50  ;;  %v5013_v31 = vadd.f32 %v9337_v48, %v13134_v60  ;;  %v9340_v33 = vadd.f32 %v9339_v42, %v9338_v15  ;;  %v5163_v53 = vpack.c.bf16 %v13306_v50, %v13303_v12  ;;  %v10950_v60 = vld [vmem:[%s11047_s17 + $0x98] sm:$0xff]  ;;  %v10951_v15 = vld [vmem:[%s11047_s17 + $0xa0] sm:$0xff] }
 0x772   : > { %v5109_v24 = vadd.f32 %v8496_v1, %v5013_v31  ;;  %v5014_v23 = vadd.f32 %v9340_v33, %v13137_v8  ;;  %9953 = vmatprep.mubr.bf16.mxu0 %v5163_v53  ;;  %v10952_v31 = vld [vmem:[%s11047_s17 + $0xa8] sm:$0xff] }
 0x774   : > { %v5110_v47 = vadd.f32 %v8497_v44, %v5014_v23  ;;  %v9341_v37 = vpop.f32.mrb[56].mxu1  ;;  %v13316_v58 = vadd.f32 %v10949_v46, %v5109_v24  ;;  %v8504_v44 = vunpack.c.l.bf16 %v8532_v40  ;;  %v8533_v46 = vld [vmem:[%s15288_s3 + $0x60] sm:$0xff]  }
 0x775   : > { %v9342_v49 = vpop.f32.mrb[57].mxu1 }
 0x776   : > { %15370 = vst [vmem:[#allocation21_spill] sm:$0xff] %v13316_v58  ;;  %v13319_v38 = vadd.f32 %v10950_v60, %v5110_v47  ;;  %v9343_v2 = vadd.f32 %v9342_v49, %v9341_v37  ;;  %v9344_v56 = vpop.f32.mrb[58].mxu1 }
 0x777   : > { %v9345_v8 = vpop.f32.mrb[59].mxu1 }
 0x778   : > { %15371 = vst [vmem:[#allocation22_spill] sm:$0xff] %v13319_v38  ;;  %v5164_v22 = vpack.c.bf16 %v13319_v38, %v13316_v58  ;;  %v5015_v16 = vadd.f32 %v9343_v2, %v13140_v10  ;;  %v9346_v11 = vadd.f32 %v9345_v8, %v9344_v56  ;;  %v10953_v56 = vld [vmem:[%s11047_s17 + $0xb0] sm:$0xff] }
 0x77a   : > { %v5111_v36 = vadd.f32 %v8500_v43, %v5015_v16  ;;  %v5016_v52 = vadd.f32 %v9346_v11, %v13143_v13  ;;  %9954 = vmatmul.mubr.bf16.gmra.mrb[32].mxu0 %v5164_v22  ;;  %v8508_v11 = vunpack.c.l.bf16 %v8533_v46 }
 0x77c   : > { %v5112_v28 = vadd.f32 %v8501_v29, %v5016_v52  ;;  %v9347_v48 = vpop.f32.mrb[60].mxu1  ;;  %v13329_v42 = vadd.f32 %v10951_v15, %v5111_v36  ;;  %v8534_v15 = vld [vmem:[%s15288_s3 + $0x68] sm:$0xff]  }
 0x77d   : > { %v9348_v1 = vpop.f32.mrb[61].mxu1 }
 0x77e   : > { %15372 = vst [vmem:[#allocation23_spill] sm:$0xff] %v13329_v42  ;;  %v13332_v33 = vadd.f32 %v10952_v31, %v5112_v28  ;;  %v9349_v10 = vadd.f32 %v9348_v1, %v9347_v48  ;;  %v9350_v53 = vpop.f32.mrb[62].mxu1  ;;  %v8509_v28 = vunpack.c.h.bf16 %v8533_v46  ;;  %v8513_v46 = vunpack.c.h.bf16 %v8534_v15 }
 0x77f   : > { %v9351_v13 = vpop.f32.mrb[63].mxu1 }
 0x780   : > { %15373 = vst [vmem:[#allocation24_spill] sm:$0xff] %v13332_v33  ;;  %v5017_v24 = vadd.f32 %v9349_v10, %v13146_v4  ;;  %v9352_v23 = vadd.f32 %v9351_v13, %v9350_v53  ;;  %v5165_v47 = vpack.c.bf16 %v13332_v33, %v13329_v42  ;;  %v10954_v4 = vld [vmem:[%s11047_s17 + $0xb8] sm:$0xff]  ;;  %v10955_v53 = vld [vmem:[%s11047_s17 + $0xc0] sm:$0xff] }
 0x782   : > { %v5113_v37 = vadd.f32 %v8504_v44, %v5017_v24  ;;  %v5018_v49 = vadd.f32 %v9352_v23, %v13149_v26  ;;  %9957 = vmatprep.mubr.bf16.mxu0 %v5165_v47  ;;  %v10956_v24 = vld [vmem:[%s11047_s17 + $0xc8] sm:$0xff] }
 0x784   : > { %v5114_v60 = vadd.f32 %v8505_v62, %v5018_v49  ;;  %v9353_v2 = vpop.f32.mrb[64].mxu1  ;;  %v13342_v8 = vadd.f32 %v10953_v56, %v5113_v37  ;;  %v8512_v62 = vunpack.c.l.bf16 %v8534_v15  ;;  %v8535_v56 = vld [vmem:[%s15288_s3 + $0x70] sm:$0xff]  }
 0x785   : > { %v9354_v43 = vpop.f32.mrb[65].mxu1 }
 0x786   : > { %15374 = vst [vmem:[#allocation25_spill] sm:$0xff] %v13342_v8  ;;  %v13345_v22 = vadd.f32 %v10954_v4, %v5114_v60  ;;  %v9355_v16 = vadd.f32 %v9354_v43, %v9353_v2  ;;  %v9356_v29 = vpop.f32.mrb[66].mxu1 }
 0x787   : > { %v9357_v26 = vpop.f32.mrb[67].mxu1 }
 0x788   : > { %15375 = vst [vmem:[#allocation26_spill] sm:$0xff] %v13345_v22  ;;  %v5166_v36 = vpack.c.bf16 %v13345_v22, %v13342_v8  ;;  %v5019_v52 = vadd.f32 %v9355_v16, %v13152_v17  ;;  %v9358_v40 = vadd.f32 %v9357_v26, %v9356_v29  ;;  %v10957_v29 = vld [vmem:[%s11047_s17 + $0xd0] sm:$0xff] }
 0x78a   : > { %v5115_v48 = vadd.f32 %v8508_v11, %v5019_v52  ;;  %v5020_v1 = vadd.f32 %v9358_v40, %v13155_v34  ;;  %9958 = vmatmul.mubr.bf16.gmra.mrb[36].mxu0 %v5166_v36  ;;  %v8516_v40 = vunpack.c.l.bf16 %v8535_v56 }
 0x78c   : > { %v5116_v31 = vadd.f32 %v8509_v28, %v5020_v1  ;;  %v9359_v10 = vpop.f32.mrb[68].mxu1  ;;  %v13355_v13 = vadd.f32 %v10955_v53, %v5115_v48  ;;  %v8536_v53 = vld [vmem:[%s15288_s3 + $0x78] sm:$0xff]  }
 0x78d   : > { %v9360_v44 = vpop.f32.mrb[69].mxu1 }
 0x78e   : > { %15376 = vst [vmem:[#allocation27_spill] sm:$0xff] %v13355_v13  ;;  %v13358_v23 = vadd.f32 %v10956_v24, %v5116_v31  ;;  %v9361_v17 = vadd.f32 %v9360_v44, %v9359_v10  ;;  %v9362_v47 = vpop.f32.mrb[70].mxu1  ;;  %v8517_v31 = vunpack.c.h.bf16 %v8535_v56  ;;  %v8521_v56 = vunpack.c.h.bf16 %v8536_v53 }
 0x78f   : > { %v9363_v34 = vpop.f32.mrb[71].mxu1 }
 0x790   : > { %15377 = vst [vmem:[#allocation28_spill] sm:$0xff] %v13358_v23  ;;  %v5021_v37 = vadd.f32 %v9361_v17, %v13158_v18  ;;  %v9364_v49 = vadd.f32 %v9363_v34, %v9362_v47  ;;  %v5167_v60 = vpack.c.bf16 %v13358_v23, %v13355_v13  ;;  %v10958_v18 = vld [vmem:[%s11047_s17 + $0xd8] sm:$0xff]  ;;  %v10959_v47 = vld [vmem:[%s11047_s17 + $0xe0] sm:$0xff] }
 0x792   : > { %v5117_v2 = vadd.f32 %v8512_v62, %v5021_v37  ;;  %v5022_v43 = vadd.f32 %v9364_v49, %v13161_v32  ;;  %9961 = vmatprep.mubr.bf16.mxu0 %v5167_v60  ;;  %v10960_v37 = vld [vmem:[%s11047_s17 + $0xe8] sm:$0xff] }
 0x794   : > { %v5118_v4 = vadd.f32 %v8513_v46, %v5022_v43  ;;  %v9365_v16 = vpop.f32.mrb[72].mxu1  ;;  %v13368_v26 = vadd.f32 %v10957_v29, %v5117_v2  ;;  %v8520_v46 = vunpack.c.l.bf16 %v8536_v53 }
 0x795   : > { %v9366_v11 = vpop.f32.mrb[73].mxu1 }
 0x796   : > { %15378 = vst [vmem:[#allocation29_spill] sm:$0xff] %v13368_v26  ;;  %v13371_v36 = vadd.f32 %v10958_v18, %v5118_v4  ;;  %v9367_v52 = vadd.f32 %v9366_v11, %v9365_v16  ;;  %v9368_v28 = vpop.f32.mrb[74].mxu1  ;;  %v10961_v18 = vld [vmem:[%s11047_s17 + $0xf0] sm:$0xff] }
 0x797   : > { %v9369_v32 = vpop.f32.mrb[75].mxu1 }
 0x798   : > { %15379 = vst [vmem:[#allocation30_spill] sm:$0xff] %v13371_v36  ;;  %v5168_v48 = vpack.c.bf16 %v13371_v36, %v13368_v26  ;;  %v5023_v1 = vadd.f32 %v9367_v52, %v13164_v25  ;;  %v9370_v15 = vadd.f32 %v9369_v32, %v9368_v28 }
 0x79a   : > { %v5119_v10 = vadd.f32 %v8516_v40, %v5023_v1  ;;  %v5024_v44 = vadd.f32 %v9370_v15, %v13167_v27  ;;  %9962 = vmatmul.mubr.bf16.gmra.mrb[40].mxu0 %v5168_v48  ;;  %v10962_v40 = vld [vmem:[%s11047_s17 + $0xf8] sm:$0xff]  ;;  %v10502_v1 = vld [vmem:[%s15291_s6 + $0x8] ss:$12 sps:$4 sm:$0xff]  }
 0x79b   : > { %v10495_v48 = vld [vmem:[%s15291_s6 + $0x1c] ss:$12 sps:$4 sm:$0xff]   ;;  %v10493_v15 = vld [vmem:[%s15291_s6 + $0x18] ss:$12 sps:$4 sm:$0xff]   ;;  %10017 = vmatprep.subr.bf16.mxu0 %v10502_v1 }
 0x79c   : > { %v5120_v24 = vadd.f32 %v8517_v31, %v5024_v44  ;;  %v9371_v17 = vpop.f32.mrb[76].mxu1  ;;  %v13381_v34 = vadd.f32 %v10959_v47, %v5119_v10  ;;  %v10498_v31 = vld [vmem:[%s15291_s6 + $0x34] ss:$12 sps:$4 sm:$0xff]  }
 0x79d   : > { %v9372_v62 = vpop.f32.mrb[77].mxu1 }
 0x79e   : > { %15380 = vst [vmem:[#allocation31_spill] sm:$0xff] %v13381_v34  ;;  %v13384_v25 = vadd.f32 %v10960_v37, %v5120_v24  ;;  %v9373_v49 = vadd.f32 %v9372_v62, %v9371_v17  ;;  %v9374_v60 = vpop.f32.mrb[78].mxu1  ;;  %v10496_v17 = vld [vmem:[%s15291_s6 + $0x30] ss:$12 sps:$4 sm:$0xff]  }
 0x79f   : > { %v9375_v27 = vpop.f32.mrb[79].mxu1 }
 0x7a0   : > { %15381 = vst [vmem:[#allocation32_spill] sm:$0xff] %v13384_v25  ;;  %v5025_v2 = vadd.f32 %v9373_v49, %v13170_v55  ;;  %v9376_v43 = vadd.f32 %v9375_v27, %v9374_v60  ;;  %v5169_v4 = vpack.c.bf16 %v13384_v25, %v13381_v34  ;;  %v10490_v55 = vld [vmem:[%s15291_s6] ss:$12 sps:$4 sm:$0xff]  }
 0x7a1   : > { %v10501_v49 = vld [vmem:[%s15291_s6 + $0x4c] ss:$12 sps:$4 sm:$0xff]  }
 0x7a2   : > { %v5121_v16 = vadd.f32 %v8520_v46, %v5025_v2  ;;  %v5026_v11 = vadd.f32 %v9376_v43, %v13173_v0  ;;  %9965 = vmatprep.mubr.bf16.mxu0 %v5169_v4  ;;  %v10492_v0 = vld [vmem:[%s15291_s6 + $0x4] ss:$12 sps:$4 sm:$0xff]   ;;  %v10499_v43 = vld [vmem:[%s15291_s6 + $0x48] ss:$12 sps:$4 sm:$0xff]  }
 0x7a3   : > { %5967 = vmatprep.subr.bf16.mxu1 %v10492_v0  ;;  %v10505_v4 = vld [vmem:[%s15291_s6 + $0x64] ss:$12 sps:$4 sm:$0xff]  }
 0x7a4   : > { %v5122_v29 = vadd.f32 %v8521_v56, %v5026_v11  ;;  %v13391_v52 = vadd.f32 %v10961_v18, %v5121_v16  ;;  %5968 = vmatpush1.bf16.msra.mxu1 %v10490_v55  ;;  %v10503_v18 = vld [vmem:[%s15291_s6 + $0x60] ss:$12 sps:$4 sm:$0xff]  }
 0x7a5   : > { %5969 = vmatprep.subr.bf16.mxu1 %v10495_v48 }
 0x7a6   : > { %15382 = vst [vmem:[#allocation33_spill] sm:$0xff] %v13391_v52  ;;  %v13394_v28 = vadd.f32 %v10962_v40, %v5122_v29  ;;  %v10506_v29 = vld [vmem:[%s15291_s6 + $0x20] ss:$12 sps:$4 sm:$0xff]  }
 0x7a8   : > { %15383 = vst [vmem:[#allocation34_spill] sm:$0xff] %v13394_v28  ;;  %v5170_v32 = vpack.c.bf16 %v13394_v28, %v13391_v52  ;;  %5970 = vmatpush1.bf16.msra.mxu1 %v10493_v15 }
 0x7a9   : > { %5971 = vmatprep.subr.bf16.mxu1 %v10498_v31 }
 0x7aa   : > { %9966 = vmatmul.mubr.bf16.gmra.mrb[44].mxu0 %v5170_v32 }
 0x7ac   : > { %5972 = vmatpush1.bf16.msra.mxu1 %v10496_v17 }
 0x7ad   : > { %5973 = vmatprep.subr.bf16.mxu1 %v10501_v49 }
 0x7b0   : > { %5974 = vmatpush1.bf16.msra.mxu1 %v10499_v43 }
 0x7b1   : > { %5975 = vmatprep.subr.bf16.mxu1 %v10505_v4 }
 0x7b4   : > { %5976 = vmatpush1.bf16.msra.mxu1 %v10503_v18 }
 0x80d   : > { %v9939_v10 = vpop.f32.mrb[16].mxu0 }
 0x80e   : > { %v5270_v44 = vpop.f32.mrb[17].mxu0  ;;  %v13423_v62 = vsub.f32 %v13197_v51, %v9939_v10 }
 0x80f   : > { %v13417_v53 = vsub.f32 %v13184_v30, %v5270_v44  ;;  %v9940_v24 = vpop.f32.mrb[18].mxu0 }
 0x810   : > { %v13426_v47 = vsub.f32 %v13200_v20, %v9940_v24  ;;  %v5273_v37 = vpop.f32.mrb[19].mxu0  ;;  %v5431_v56 = vmul.f32 %v13423_v62, %v13423_v62 }
 0x811   : > { %v13432_v46 = vsub.f32 %v13187_v45, %v5273_v37  ;;  %v5429_v27 = vmul.f32 %v13417_v53, %v13417_v53 }
 0x812   : > { %v5432_v60 = vmul.f32 %v13426_v47, %v13426_v47 }
 0x813   : > { %v5430_v2 = vmul.f32 %v13432_v46, %v13432_v46 }
 0x814   : > { %v5462_v11 = vpack.c.bf16 %v5432_v60, %v5431_v56 }
 0x815   : > { %v5461_v16 = vpack.c.bf16 %v5430_v2, %v5429_v27 }
 0x817   : > { %9985 = vmatprep.mubr.bf16.mxu0 %v5461_v16 }
 0x818   : > { %9986 = vmatmul.mubr.bf16.vlgmr.msra.gmra.mrb[48].mxu0 %v5462_v11 }
 0x819   : > { %10018 = vmatpush3.bf16.msra.mxu0 %v10502_v1 }
 0x81a   : > { %10019 = vmatprep.subr.bf16.mxu0 %v10506_v29 }
 0x81d   : > { %v9943_v40 = vpop.f32.mrb[20].mxu0  ;;  %10020 = vmatpush3.bf16.msra.mxu0 %v10506_v29 }
 0x81e   : > { %v5286_v32 = vpop.f32.mrb[21].mxu0  ;;  %v13458_v48 = vsub.f32 %v13229_v59, %v9943_v40 }
 0x81f   : > { %v13455_v55 = vsub.f32 %v13212_v61, %v5286_v32  ;;  %v9944_v0 = vpop.f32.mrb[22].mxu0 }
 0x820   : > { %v13461_v15 = vsub.f32 %v13232_v19, %v9944_v0  ;;  %v5289_v31 = vpop.f32.mrb[23].mxu0  ;;  %v5435_v17 = vmul.f32 %v13458_v48, %v13458_v48 }
 0x821   : > { %v13464_v10 = vsub.f32 %v13215_v57, %v5289_v31  ;;  %v5433_v44 = vmul.f32 %v13455_v55, %v13455_v55 }
 0x822   : > { %v5436_v1 = vmul.f32 %v13461_v15, %v13461_v15 }
 0x823   : > { %v5434_v24 = vmul.f32 %v13464_v10, %v13464_v10 }
 0x824   : > { %v5464_v49 = vpack.c.bf16 %v5436_v1, %v5435_v17 }
 0x825   : > { %v5463_v37 = vpack.c.bf16 %v5434_v24, %v5433_v44 }
 0x827   : > { %9989 = vmatprep.mubr.bf16.mxu0 %v5463_v37 }
 0x828   : > { %9990 = vmatmul.mubr.bf16.gmra.mrb[52].mxu0 %v5464_v49 }
 0x82d   : > { %v9947_v60 = vpop.f32.mrb[24].mxu0 }
 0x82e   : > { %v5302_v27 = vpop.f32.mrb[25].mxu0  ;;  %v13478_v56 = vsub.f32 %v13263_v39, %v9947_v60 }
 0x82f   : > { %v13475_v2 = vsub.f32 %v13246_v9, %v5302_v27  ;;  %v9948_v43 = vpop.f32.mrb[26].mxu0 }
 0x830   : > { %v13481_v4 = vsub.f32 %v13266_v7, %v9948_v43  ;;  %v5305_v16 = vpop.f32.mrb[27].mxu0  ;;  %v5439_v32 = vmul.f32 %v13478_v56, %v13478_v56 }
 0x831   : > { %v13484_v11 = vsub.f32 %v13249_v54, %v5305_v16  ;;  %v5437_v18 = vmul.f32 %v13475_v2, %v13475_v2 }
 0x832   : > { %v5440_v29 = vmul.f32 %v13481_v4, %v13481_v4 }
 0x833   : > { %v5438_v40 = vmul.f32 %v13484_v11, %v13484_v11 }
 0x834   : > { %v5466_v31 = vpack.c.bf16 %v5440_v29, %v5439_v32 }
 0x835   : > { %v5465_v0 = vpack.c.bf16 %v5438_v40, %v5437_v18 }
 0x837   : > { %9993 = vmatprep.mubr.bf16.mxu0 %v5465_v0 }
 0x838   : > { %9994 = vmatmul.mubr.bf16.gmra.mrb[56].mxu0 %v5466_v31 }
 0x83d   : > { %v9951_v1 = vpop.f32.mrb[28].mxu0 }
 0x83e   : > { %v5318_v44 = vpop.f32.mrb[29].mxu0  ;;  %v13498_v37 = vsub.f32 %v13290_v35, %v9951_v1 }
 0x83f   : > { %v13495_v24 = vsub.f32 %v13277_v21, %v5318_v44  ;;  %v9952_v17 = vpop.f32.mrb[30].mxu0 }
 0x840   : > { %v13501_v49 = vsub.f32 %v13293_v41, %v9952_v17  ;;  %v5321_v60 = vpop.f32.mrb[31].mxu0  ;;  %v5443_v18 = vmul.f32 %v13498_v37, %v13498_v37 }
 0x841   : > { %v13504_v27 = vsub.f32 %v13280_v63, %v5321_v60  ;;  %v5441_v16 = vmul.f32 %v13495_v24, %v13495_v24 }
 0x842   : > { %v5444_v43 = vmul.f32 %v13501_v49, %v13501_v49 }
 0x843   : > { %v5442_v29 = vmul.f32 %v13504_v27, %v13504_v27 }
 0x844   : > { %v5468_v32 = vpack.c.bf16 %v5444_v43, %v5443_v18 }
 0x845   : > { %v5467_v40 = vpack.c.bf16 %v5442_v29, %v5441_v16 }
 0x847   : > { %9997 = vmatprep.mubr.bf16.mxu0 %v5467_v40 }
 0x848   : > { %9998 = vmatmul.mubr.bf16.gmra.mrb[60].mxu0 %v5468_v32 }
 0x84d   : > { %v9955_v0 = vpop.f32.mrb[32].mxu0 }
 0x84e   : > { %v5334_v31 = vpop.f32.mrb[33].mxu0  ;;  %v13518_v17 = vsub.f32 %v13316_v58, %v9955_v0 }
 0x84f   : > { %v13515_v1 = vsub.f32 %v13303_v12, %v5334_v31  ;;  %v9956_v44 = vpop.f32.mrb[34].mxu0 }
 0x850   : > { %v13521_v60 = vsub.f32 %v13319_v38, %v9956_v44  ;;  %v5337_v14 = vpop.f32.mrb[35].mxu0  ;;  %v5447_v18 = vmul.f32 %v13518_v17, %v13518_v17 }
 0x851   : > { %v13524_v6 = vsub.f32 %v13306_v50, %v5337_v14  ;;  %v5445_v16 = vmul.f32 %v13515_v1, %v13515_v1 }
 0x852   : > { %v5448_v43 = vmul.f32 %v13521_v60, %v13521_v60 }
 0x853   : > { %v5446_v29 = vmul.f32 %v13524_v6, %v13524_v6 }
 0x854   : > { %v5470_v32 = vpack.c.bf16 %v5448_v43, %v5447_v18 }
 0x855   : > { %v5469_v40 = vpack.c.bf16 %v5446_v29, %v5445_v16 }
 0x857   : > { %10001 = vmatprep.mubr.bf16.mxu0 %v5469_v40 }
 0x858   : > { %10002 = vmatmul.mubr.bf16.gmra.mrb[64].mxu0 %v5470_v32 }
 0x85d   : > { %v9959_v0 = vpop.f32.mrb[36].mxu0 }
 0x85e   : > { %v5350_v31 = vpop.f32.mrb[37].mxu0  ;;  %v13538_v5 = vsub.f32 %v13342_v8, %v9959_v0 }
 0x85f   : > { %v13535_v14 = vsub.f32 %v13329_v42, %v5350_v31  ;;  %v9960_v44 = vpop.f32.mrb[38].mxu0 }
 0x860   : > { %v13541_v38 = vsub.f32 %v13345_v22, %v9960_v44  ;;  %v5353_v58 = vpop.f32.mrb[39].mxu0  ;;  %v5451_v18 = vmul.f32 %v13538_v5, %v13538_v5 }
 0x861   : > { %v13544_v50 = vsub.f32 %v13332_v33, %v5353_v58  ;;  %v5449_v16 = vmul.f32 %v13535_v14, %v13535_v14 }
 0x862   : > { %v5452_v43 = vmul.f32 %v13541_v38, %v13541_v38 }
 0x863   : > { %v5450_v29 = vmul.f32 %v13544_v50, %v13544_v50 }
 0x864   : > { %v5472_v32 = vpack.c.bf16 %v5452_v43, %v5451_v18 }
 0x865   : > { %v5471_v40 = vpack.c.bf16 %v5450_v29, %v5449_v16 }
 0x867   : > { %10005 = vmatprep.mubr.bf16.mxu0 %v5471_v40 }
 0x868   : > { %10006 = vmatmul.mubr.bf16.gmra.mrb[68].mxu0 %v5472_v32 }
 0x86d   : > { %v9963_v0 = vpop.f32.mrb[40].mxu0 }
 0x86e   : > { %v5366_v31 = vpop.f32.mrb[41].mxu0  ;;  %v13558_v22 = vsub.f32 %v13368_v26, %v9963_v0  ;;  %v10507_v0 = vld [vmem:[%s15291_s6 + $0x38] ss:$12 sps:$4 sm:$0xff]  }
 0x86f   : > { %v13555_v58 = vsub.f32 %v13355_v13, %v5366_v31  ;;  %v9964_v44 = vpop.f32.mrb[42].mxu0  ;;  %10021 = vmatprep.subr.bf16.mxu0 %v10507_v0 }
 0x870   : > { %v13561_v8 = vsub.f32 %v13371_v36, %v9964_v44  ;;  %v5369_v33 = vpop.f32.mrb[43].mxu0  ;;  %v5455_v18 = vmul.f32 %v13558_v22, %v13558_v22  ;;  %10022 = vmatpush3.bf16.msra.mxu0 %v10507_v0  ;;  %v10514_v36 = vld [vmem:[%s15291_s6 + $0x90] ss:$12 sps:$4 sm:$0xff]  }
 0x871   : > { %v13564_v42 = vsub.f32 %v13358_v23, %v5369_v33  ;;  %v5453_v16 = vmul.f32 %v13555_v58, %v13555_v58  ;;  %v10508_v33 = vld [vmem:[%s15291_s6 + $0x50] ss:$12 sps:$4 sm:$0xff]  }
 0x872   : > { %v5456_v43 = vmul.f32 %v13561_v8, %v13561_v8  ;;  %10023 = vmatprep.subr.bf16.mxu0 %v10508_v33 }
 0x873   : > { %v5454_v29 = vmul.f32 %v13564_v42, %v13564_v42 }
 0x874   : > { %v5474_v32 = vpack.c.bf16 %v5456_v43, %v5455_v18  ;;  %10024 = vmatpush3.bf16.msra.mxu0 %v10508_v33  ;;  %v10509_v43 = vld [vmem:[%s15291_s6 + $0x68] ss:$12 sps:$4 sm:$0xff]  }
 0x875   : > { %v5473_v40 = vpack.c.bf16 %v5454_v29, %v5453_v16  ;;  %10025 = vmatprep.subr.bf16.mxu0 %v10509_v43  ;;  %v10512_v33 = vld [vmem:[%s15291_s6 + $0x7c] ss:$12 sps:$4 sm:$0xff]  }
 0x876   : > { %5977 = vmatprep.subr.bf16.mxu1 %v10512_v33  ;;  %v10517_v33 = vld [vmem:[%s15291_s6 + $0x98] ss:$12 sps:$4 sm:$0xff]  }
 0x877   : > { %10009 = vmatprep.mubr.bf16.mxu0 %v5473_v40 }
 0x878   : > { %10010 = vmatmul.mubr.bf16.gmra.mrb[72].mxu0 %v5474_v32 }
 0x879   : > { %10026 = vmatpush3.bf16.msra.mxu0 %v10509_v43 }
 0x87d   : > { %v9967_v31 = vpop.f32.mrb[44].mxu0 }
 0x87e   : > { %v5382_v44 = vpop.f32.mrb[45].mxu0  ;;  %v13587_v18 = vsub.f32 %v13391_v52, %v9967_v31  ;;  %v10510_v31 = vld [vmem:[%s15291_s6 + $0x78] ss:$12 sps:$4 sm:$0xff]  }
 0x87f   : > { %v13584_v16 = vsub.f32 %v13381_v34, %v5382_v44  ;;  %v9968_v29 = vpop.f32.mrb[46].mxu0  ;;  %5978 = vmatpush1.bf16.msra.mxu1 %v10510_v31  ;;  %v10521_v31 = vld [vmem:[%s15291_s6 + $0xb0] ss:$12 sps:$4 sm:$0xff]  }
 0x880   : > { %v13590_v40 = vsub.f32 %v13394_v28, %v9968_v29  ;;  %v5385_v32 = vpop.f32.mrb[47].mxu0  ;;  %v10513_v29 = vld [vmem:[%s15291_s6 + $0x80] ss:$12 sps:$4 sm:$0xff]   ;;  %v5459_v43 = vmul.f32 %v13587_v18, %v13587_v18 }
 0x881   : > { %v13593_v0 = vsub.f32 %v13384_v25, %v5385_v32  ;;  %v5457_v32 = vmul.f32 %v13584_v16, %v13584_v16  ;;  %10027 = vmatprep.subr.bf16.mxu0 %v10513_v29  ;;  %v10516_v25 = vld [vmem:[%s15291_s6 + $0x94] ss:$12 sps:$4 sm:$0xff]  }
 0x882   : > { %v5460_v44 = vmul.f32 %v13590_v40, %v13590_v40  ;;  %10028 = vmatpush3.bf16.msra.mxu0 %v10513_v29  ;;  %5979 = vmatprep.subr.bf16.mxu1 %v10516_v25 }
 0x883   : > { %v5458_v28 = vmul.f32 %v13593_v0, %v13593_v0  ;;  %5980 = vmatpush1.bf16.msra.mxu1 %v10514_v36  ;;  %10029 = vmatprep.subr.bf16.mxu0 %v10517_v33 }
 0x884   : > { %v5476_v34 = vpack.c.bf16 %v5460_v44, %v5459_v43  ;;  %v10518_v44 = vld [vmem:[%s15291_s6 + $0xa8] ss:$12 sps:$4 sm:$0xff]  }
 0x885   : > { %v5475_v52 = vpack.c.bf16 %v5458_v28, %v5457_v32  ;;  %v10520_v28 = vld [vmem:[%s15291_s6 + $0xac] ss:$12 sps:$4 sm:$0xff]  }
 0x886   : > { %10030 = vmatpush3.bf16.msra.mxu0 %v10517_v33  ;;  %5981 = vmatprep.subr.bf16.mxu1 %v10520_v28  ;;  %v5704_v28 = vsub.s32 4, %v11033_v3 }
 0x887   : > { %10013 = vmatprep.mubr.bf16.mxu0 %v5475_v52  ;;  %5982 = vmatpush1.bf16.msra.mxu1 %v10518_v44  ;;  %v10963_v44 = vld [vmem:[%s15286_s1] sm:$0xff] }
 0x888   : > { %10014 = vmatmul.mubr.bf16.gmra.mrb[76].mxu0 %v5476_v34  ;;  %10031 = vmatprep.subr.bf16.mxu0 %v10521_v31  ;;  %v15310_v34 = vmov 0  }
 0x889   : > { %5999 = vmatprep.mubr.bf16.mxu1 %v15310_v34 }
 0x88a   : > { %10032 = vmatpush3.bf16.msra.mxu0 %v10521_v31  ;;  %v13635_v31 = vrot.slane %v10963_v44, %v5704_v28 }
 0x8eb   : > { %v9987_v36 = vpop.f32.mrb[48].mxu0 }
 0x8ec   : > { %v5520_v25 = vadd.f32 1e-05, %v9987_v36  ;;  %v5511_v52 = vpop.f32.mrb[49].mxu0  ;;  %v5740_v36 = vsub.s32 5, %v11033_v3 }
 0x8ed   : > { %v5512_v29 = vadd.f32 1e-05, %v5511_v52  ;;  %v9988_v32 = vpop.f32.mrb[50].mxu0 }
 0x8ee   : > { %10674 = vrsqrt.f32 %v5520_v25  ;;  %v5523_v43 = vadd.f32 1e-05, %v9988_v32  ;;  %v5514_v33 = vpop.f32.mrb[51].mxu0 }
 0x8ef   : > { %10676 = vrsqrt.f32 %v5512_v29  ;;  %v5515_v26 = vadd.f32 1e-05, %v5514_v33 }
 0x8f0   : > { %10678 = vrsqrt.f32 %v5523_v43  ;;  %v13641_v43 = vrot.slane %v10963_v44, %v5740_v36 }
 0x8f1   : > { %10680 = vrsqrt.f32 %v5515_v26 }
 0x8f8   : > { %v10675_v34 = vpop.eup %10674 }
 0x8f9   : > { %v10677_v52 = vpop.eup %10676  ;;  %v5672_v25 = vmul.f32 %v10675_v34, %v13423_v62 }
 0x8fa   : > { %v10679_v32 = vpop.eup %10678  ;;  %v5670_v29 = vmul.f32 %v10677_v52, %v13417_v53 }
 0x8fb   : > { %v10681_v33 = vpop.eup %10680  ;;  %v5708_v26 = vmul.f32 %v13635_v31, %v5672_v25  ;;  %v5673_v23 = vmul.f32 %v10679_v32, %v13426_v47  ;;  %v9991_v13 = vpop.f32.mrb[52].mxu0 }
 0x8fc   : > { %v5706_v28 = vmul.f32 %v13635_v31, %v5670_v29  ;;  %v5671_v12 = vmul.f32 %v10681_v33, %v13432_v46  ;;  %v5536_v41 = vadd.f32 1e-05, %v9991_v13  ;;  %v5527_v35 = vpop.f32.mrb[53].mxu0 }
 0x8fd   : > { %v5709_v63 = vmul.f32 %v13635_v31, %v5673_v23  ;;  %v5528_v62 = vadd.f32 1e-05, %v5527_v35  ;;  %v9992_v34 = vpop.f32.mrb[54].mxu0  ;;  %v5744_v44 = vadd.f32 %v13641_v43, %v5708_v26 }
 0x8fe   : > { %v5707_v53 = vmul.f32 %v13635_v31, %v5671_v12  ;;  %10682 = vrsqrt.f32 %v5536_v41  ;;  %v5539_v52 = vadd.f32 1e-05, %v9992_v34  ;;  %v5530_v25 = vpop.f32.mrb[55].mxu0  ;;  %v5742_v32 = vadd.f32 %v13641_v43, %v5706_v28 }
 0x8ff   : > { %v5745_v47 = vadd.f32 %v13641_v43, %v5709_v63  ;;  %10684 = vrsqrt.f32 %v5528_v62  ;;  %v5531_v36 = vadd.f32 1e-05, %v5530_v25  ;;  %v15384_v41 = vmov 0  }
 0x900   : > { %v5743_v13 = vadd.f32 %v13641_v43, %v5707_v53  ;;  %10686 = vrsqrt.f32 %v5539_v52 }
 0x901   : > { %v5775_v46 = vpack.c.bf16 %v5745_v47, %v5744_v44  ;;  %10688 = vrsqrt.f32 %v5531_v36 }
 0x902   : > { %v5774_v35 = vpack.c.bf16 %v5743_v13, %v5742_v32 }
 0x904   : > { %6000 = vmatmul.mubr.bf16.vlgmr.msra.gmra.mrb[80].mxu1 %v5774_v35  ;;  %10033 = vmatprep.mubr.bf16.mxu0 %v5774_v35 }
 0x905   : > { %10034 = vmatmul.mubr.bf16.vlgmr.msra.gmra.mrb[80].mxu0 %v5775_v46  ;;  %6009 = vmatprep.mubr.bf16.mxu1 %v15384_v41 }
 0x908   : > { %v10683_v12 = vpop.eup %10682 }
 0x909   : > { %v10685_v23 = vpop.eup %10684  ;;  %v5676_v29 = vmul.f32 %v10683_v12, %v13458_v48 }
 0x90a   : > { %v10687_v63 = vpop.eup %10686  ;;  %v5674_v33 = vmul.f32 %v10685_v23, %v13455_v55 }
 0x90b   : > { %v10689_v26 = vpop.eup %10688  ;;  %v5712_v28 = vmul.f32 %v13635_v31, %v5676_v29  ;;  %v5677_v62 = vmul.f32 %v10687_v63, %v13461_v15  ;;  %v9995_v34 = vpop.f32.mrb[56].mxu0 }
 0x90c   : > { %v5710_v53 = vmul.f32 %v13635_v31, %v5674_v33  ;;  %v5675_v52 = vmul.f32 %v10689_v26, %v13464_v10  ;;  %v5552_v25 = vadd.f32 1e-05, %v9995_v34  ;;  %v5543_v44 = vpop.f32.mrb[57].mxu0  ;;  %6010 = vmatmul.mubr.bf16.gmra.mrb[84].mxu1 %v5775_v46 }
 0x90d   : > { %v5713_v47 = vmul.f32 %v13635_v31, %v5677_v62  ;;  %v5544_v36 = vadd.f32 1e-05, %v5543_v44  ;;  %v9996_v48 = vpop.f32.mrb[58].mxu0  ;;  %6019 = vmatprep.mubr.bf16.mxu1 %v15384_v41  ;;  %v5748_v15 = vadd.f32 %v13641_v43, %v5712_v28 }
 0x90e   : > { %v5711_v55 = vmul.f32 %v13635_v31, %v5675_v52  ;;  %10690 = vrsqrt.f32 %v5552_v25  ;;  %v5555_v32 = vadd.f32 1e-05, %v9996_v48  ;;  %v5546_v13 = vpop.f32.mrb[59].mxu0  ;;  %v5746_v12 = vadd.f32 %v13641_v43, %v5710_v53 }
 0x90f   : > { %v5749_v35 = vadd.f32 %v13641_v43, %v5713_v47  ;;  %10692 = vrsqrt.f32 %v5544_v36  ;;  %v5547_v10 = vadd.f32 1e-05, %v5546_v13 }
 0x910   : > { %v5747_v46 = vadd.f32 %v13641_v43, %v5711_v55  ;;  %10694 = vrsqrt.f32 %v5555_v32 }
 0x911   : > { %v5777_v23 = vpack.c.bf16 %v5749_v35, %v5748_v15  ;;  %10696 = vrsqrt.f32 %v5547_v10 }
 0x912   : > { %v5776_v29 = vpack.c.bf16 %v5747_v46, %v5746_v12 }
 0x914   : > { %6020 = vmatmul.mubr.bf16.gmra.mrb[88].mxu1 %v5776_v29  ;;  %10037 = vmatprep.mubr.bf16.mxu0 %v5776_v29 }
 0x915   : > { %10038 = vmatmul.mubr.bf16.gmra.mrb[84].mxu0 %v5777_v23  ;;  %6029 = vmatprep.mubr.bf16.mxu1 %v15384_v41 }
 0x918   : > { %v10691_v63 = vpop.eup %10690 }
 0x919   : > { %v10693_v33 = vpop.eup %10692  ;;  %v5680_v26 = vmul.f32 %v10691_v63, %v13478_v56 }
 0x91a   : > { %v10695_v28 = vpop.eup %10694  ;;  %v5678_v62 = vmul.f32 %v10693_v33, %v13475_v2 }
 0x91b   : > { %v10697_v34 = vpop.eup %10696  ;;  %v5716_v53 = vmul.f32 %v13635_v31, %v5680_v26  ;;  %v5681_v52 = vmul.f32 %v10695_v28, %v13481_v4  ;;  %v9999_v25 = vpop.f32.mrb[60].mxu0 }
 0x91c   : > { %v5714_v44 = vmul.f32 %v13635_v31, %v5678_v62  ;;  %v5679_v47 = vmul.f32 %v10697_v34, %v13484_v11  ;;  %v5568_v36 = vadd.f32 1e-05, %v9999_v25  ;;  %v5559_v48 = vpop.f32.mrb[61].mxu0  ;;  %6030 = vmatmul.mubr.bf16.gmra.mrb[92].mxu1 %v5777_v23 }
 0x91d   : > { %v5717_v55 = vmul.f32 %v13635_v31, %v5681_v52  ;;  %v5560_v32 = vadd.f32 1e-05, %v5559_v48  ;;  %v10000_v56 = vpop.f32.mrb[62].mxu0  ;;  %6039 = vmatprep.mubr.bf16.mxu1 %v15384_v41  ;;  %v5752_v4 = vadd.f32 %v13641_v43, %v5716_v53 }
 0x91e   : > { %v5715_v2 = vmul.f32 %v13635_v31, %v5679_v47  ;;  %10698 = vrsqrt.f32 %v5568_v36  ;;  %v5571_v13 = vadd.f32 1e-05, %v10000_v56  ;;  %v5562_v15 = vpop.f32.mrb[63].mxu0  ;;  %v5750_v10 = vadd.f32 %v13641_v43, %v5714_v44 }
 0x91f   : > { %v5753_v35 = vadd.f32 %v13641_v43, %v5717_v55  ;;  %10700 = vrsqrt.f32 %v5560_v32  ;;  %v5563_v11 = vadd.f32 1e-05, %v5562_v15 }
 0x920   : > { %v5751_v12 = vadd.f32 %v13641_v43, %v5715_v2  ;;  %10702 = vrsqrt.f32 %v5571_v13 }
 0x921   : > { %v5779_v46 = vpack.c.bf16 %v5753_v35, %v5752_v4  ;;  %10704 = vrsqrt.f32 %v5563_v11 }
 0x922   : > { %v5778_v23 = vpack.c.bf16 %v5751_v12, %v5750_v10 }
 0x924   : > { %6040 = vmatmul.mubr.bf16.gmra.mrb[96].mxu1 %v5778_v23  ;;  %10041 = vmatprep.mubr.bf16.mxu0 %v5778_v23 }
 0x925   : > { %10042 = vmatmul.mubr.bf16.gmra.mrb[88].mxu0 %v5779_v46  ;;  %6049 = vmatprep.mubr.bf16.mxu1 %v15384_v41 }
 0x928   : > { %v10699_v29 = vpop.eup %10698 }
 0x929   : > { %v10701_v63 = vpop.eup %10700  ;;  %v5684_v33 = vmul.f32 %v10699_v29, %v13498_v37 }
 0x92a   : > { %v10703_v26 = vpop.eup %10702  ;;  %v5682_v28 = vmul.f32 %v10701_v63, %v13495_v24 }
 0x92b   : > { %v10705_v62 = vpop.eup %10704  ;;  %v5720_v34 = vmul.f32 %v13635_v31, %v5684_v33  ;;  %v5685_v53 = vmul.f32 %v10703_v26, %v13501_v49  ;;  %v10003_v52 = vpop.f32.mrb[64].mxu0 }
 0x92c   : > { %v5718_v25 = vmul.f32 %v13635_v31, %v5682_v28  ;;  %v5683_v44 = vmul.f32 %v10705_v62, %v13504_v27  ;;  %v5584_v47 = vadd.f32 1e-05, %v10003_v52  ;;  %v5575_v36 = vpop.f32.mrb[65].mxu0  ;;  %6050 = vmatmul.mubr.bf16.gmra.mrb[100].mxu1 %v5779_v46 }
 0x92d   : > { %v5721_v48 = vmul.f32 %v13635_v31, %v5685_v53  ;;  %v5576_v55 = vadd.f32 1e-05, %v5575_v36  ;;  %v10004_v37 = vpop.f32.mrb[66].mxu0  ;;  %6059 = vmatprep.mubr.bf16.mxu1 %v15384_v41  ;;  %v5756_v49 = vadd.f32 %v13641_v43, %v5720_v34 }
 0x92e   : > { %v5719_v24 = vmul.f32 %v13635_v31, %v5683_v44  ;;  %10706 = vrsqrt.f32 %v5584_v47  ;;  %v5587_v32 = vadd.f32 1e-05, %v10004_v37  ;;  %v5578_v56 = vpop.f32.mrb[67].mxu0  ;;  %v5754_v13 = vadd.f32 %v13641_v43, %v5718_v25 }
 0x92f   : > { %v5757_v2 = vadd.f32 %v13641_v43, %v5721_v48  ;;  %10708 = vrsqrt.f32 %v5576_v55  ;;  %v5579_v27 = vadd.f32 1e-05, %v5578_v56 }
 0x930   : > { %v5755_v15 = vadd.f32 %v13641_v43, %v5719_v24  ;;  %10710 = vrsqrt.f32 %v5587_v32 }
 0x931   : > { %v5781_v4 = vpack.c.bf16 %v5757_v2, %v5756_v49  ;;  %10712 = vrsqrt.f32 %v5579_v27 }
 0x932   : > { %v5780_v35 = vpack.c.bf16 %v5755_v15, %v5754_v13 }
 0x934   : > { %6060 = vmatmul.mubr.bf16.gmra.mrb[104].mxu1 %v5780_v35  ;;  %10045 = vmatprep.mubr.bf16.mxu0 %v5780_v35 }
 0x935   : > { %10046 = vmatmul.mubr.bf16.gmra.mrb[92].mxu0 %v5781_v4  ;;  %6069 = vmatprep.mubr.bf16.mxu1 %v15384_v41 }
 0x938   : > { %v10707_v11 = vpop.eup %10706 }
 0x939   : > { %v10709_v10 = vpop.eup %10708  ;;  %v5688_v12 = vmul.f32 %v10707_v11, %v13518_v17 }
 0x93a   : > { %v10711_v46 = vpop.eup %10710  ;;  %v5686_v23 = vmul.f32 %v10709_v10, %v13515_v1 }
 0x93b   : > { %v10713_v29 = vpop.eup %10712  ;;  %v5724_v63 = vmul.f32 %v13635_v31, %v5688_v12  ;;  %v5689_v33 = vmul.f32 %v10711_v46, %v13521_v60  ;;  %v10007_v26 = vpop.f32.mrb[68].mxu0 }
 0x93c   : > { %v5722_v28 = vmul.f32 %v13635_v31, %v5686_v23  ;;  %v5687_v62 = vmul.f32 %v10713_v29, %v13524_v6  ;;  %v5600_v34 = vadd.f32 1e-05, %v10007_v26  ;;  %v5591_v53 = vpop.f32.mrb[69].mxu0  ;;  %6070 = vmatmul.mubr.bf16.gmra.mrb[108].mxu1 %v5781_v4 }
 0x93d   : > { %v5725_v52 = vmul.f32 %v13635_v31, %v5689_v33  ;;  %v5592_v25 = vadd.f32 1e-05, %v5591_v53  ;;  %v10008_v17 = vpop.f32.mrb[70].mxu0  ;;  %6079 = vmatprep.mubr.bf16.mxu1 %v15384_v41  ;;  %v5760_v60 = vadd.f32 %v13641_v43, %v5724_v63 }
 0x93e   : > { %v5723_v1 = vmul.f32 %v13635_v31, %v5687_v62  ;;  %10714 = vrsqrt.f32 %v5600_v34  ;;  %v5603_v44 = vadd.f32 1e-05, %v10008_v17  ;;  %v5594_v47 = vpop.f32.mrb[71].mxu0  ;;  %v5758_v48 = vadd.f32 %v13641_v43, %v5722_v28 }
 0x93f   : > { %v5761_v36 = vadd.f32 %v13641_v43, %v5725_v52  ;;  %10716 = vrsqrt.f32 %v5592_v25  ;;  %v5595_v6 = vadd.f32 1e-05, %v5594_v47 }
 0x940   : > { %v5759_v55 = vadd.f32 %v13641_v43, %v5723_v1  ;;  %10718 = vrsqrt.f32 %v5603_v44 }
 0x941   : > { %v5783_v37 = vpack.c.bf16 %v5761_v36, %v5760_v60  ;;  %10720 = vrsqrt.f32 %v5595_v6 }
 0x942   : > { %v5782_v24 = vpack.c.bf16 %v5759_v55, %v5758_v48 }
 0x944   : > { %6080 = vmatmul.mubr.bf16.gmra.mrb[112].mxu1 %v5782_v24  ;;  %10049 = vmatprep.mubr.bf16.mxu0 %v5782_v24 }
 0x945   : > { %10050 = vmatmul.mubr.bf16.gmra.mrb[96].mxu0 %v5783_v37  ;;  %6089 = vmatprep.mubr.bf16.mxu1 %v15384_v41 }
 0x948   : > { %v10715_v32 = vpop.eup %10714 }
 0x949   : > { %v10717_v56 = vpop.eup %10716  ;;  %v5692_v49 = vmul.f32 %v10715_v32, %v13538_v5 }
 0x94a   : > { %v10719_v2 = vpop.eup %10718  ;;  %v5690_v27 = vmul.f32 %v10717_v56, %v13535_v14 }
 0x94b   : > { %v10721_v13 = vpop.eup %10720  ;;  %v5728_v15 = vmul.f32 %v13635_v31, %v5692_v49  ;;  %v5693_v4 = vmul.f32 %v10719_v2, %v13541_v38  ;;  %v10011_v35 = vpop.f32.mrb[72].mxu0 }
 0x94c   : > { %v5726_v11 = vmul.f32 %v13635_v31, %v5690_v27  ;;  %v5691_v10 = vmul.f32 %v10721_v13, %v13544_v50  ;;  %v5616_v12 = vadd.f32 1e-05, %v10011_v35  ;;  %v5607_v46 = vpop.f32.mrb[73].mxu0  ;;  %6090 = vmatmul.mubr.bf16.gmra.mrb[116].mxu1 %v5783_v37 }
 0x94d   : > { %v5729_v23 = vmul.f32 %v13635_v31, %v5693_v4  ;;  %v5608_v29 = vadd.f32 1e-05, %v5607_v46  ;;  %v10012_v5 = vpop.f32.mrb[74].mxu0  ;;  %6099 = vmatprep.mubr.bf16.mxu1 %v15384_v41  ;;  %v5764_v38 = vadd.f32 %v13641_v43, %v5728_v15 }
 0x94e   : > { %v5727_v14 = vmul.f32 %v13635_v31, %v5691_v10  ;;  %10722 = vrsqrt.f32 %v5616_v12  ;;  %v5619_v63 = vadd.f32 1e-05, %v10012_v5  ;;  %v5610_v33 = vpop.f32.mrb[75].mxu0  ;;  %v5762_v28 = vadd.f32 %v13641_v43, %v5726_v11  ;;  %v10522_v11 = vld [vmem:[%s15292_s7 + $0x40] sm:$0xff]  }
 0x94f   : > { %v5765_v26 = vadd.f32 %v13641_v43, %v5729_v23  ;;  %10724 = vrsqrt.f32 %v5608_v29  ;;  %v5611_v50 = vadd.f32 1e-05, %v5610_v33  ;;  %v10523_v10 = vld [vmem:[%s15292_s7] sm:$0xff]   ;;  %9449 = vmatprep.subr.bf16.mxu0 %v10522_v11  ;;  %v10525_v23 = vld [vmem:[%s15292_s7 + $0x48] sm:$0xff]  }
 0x950   : > { %v5763_v62 = vadd.f32 %v13641_v43, %v5727_v14  ;;  %10726 = vrsqrt.f32 %v5619_v63  ;;  %v10524_v12 = vld [vmem:[%s15292_s7 + $0x80] sm:$0xff]   ;;  %9450 = vmatpush3.bf16.msra.mxu0 %v10523_v10  ;;  %v10526_v14 = vld [vmem:[%s15292_s7 + $0x8] sm:$0xff]  }
 0x951   : > { %v5785_v34 = vpack.c.bf16 %v5765_v26, %v5764_v38  ;;  %10728 = vrsqrt.f32 %v5611_v50  ;;  %10065 = vmatprep.subr.bf16.mxu1 %v10524_v12  ;;  %v10527_v63 = vld [vmem:[%s15292_s7 + $0x88] sm:$0xff]   ;;  %9451 = vmatprep.subr.bf16.mxu0 %v10525_v23 }
 0x952   : > { %v5784_v53 = vpack.c.bf16 %v5763_v62, %v5762_v28  ;;  %10066 = vmatpush3.bf16.msra.mxu1 %v10524_v12 }
 0x953   : > { %10067 = vmatprep.subr.bf16.mxu1 %v10527_v63 }
 0x954   : > { %6100 = vmatmul.mubr.bf16.gmra.mrb[120].mxu1 %v5784_v53  ;;  %10053 = vmatprep.mubr.bf16.mxu0 %v5784_v53 }
 0x955   : > { %10054 = vmatmul.mubr.bf16.gmra.mrb[100].mxu0 %v5785_v34  ;;  %6109 = vmatprep.mubr.bf16.mxu1 %v15384_v41 }
 0x956   : > { %9452 = vmatpush3.bf16.msra.mxu0 %v10526_v14  ;;  %10068 = vmatpush3.bf16.msra.mxu1 %v10527_v63 }
 0x958   : > { %v10723_v52 = vpop.eup %10722 }
 0x959   : > { %v10725_v25 = vpop.eup %10724  ;;  %v5696_v17 = vmul.f32 %v10723_v52, %v13558_v22 }
 0x95a   : > { %v10727_v1 = vpop.eup %10726  ;;  %v5694_v44 = vmul.f32 %v10725_v25, %v13555_v58 }
 0x95b   : > { %v10729_v47 = vpop.eup %10728  ;;  %v5732_v60 = vmul.f32 %v13635_v31, %v5696_v17  ;;  %v5697_v36 = vmul.f32 %v10727_v1, %v13561_v8  ;;  %v10015_v6 = vpop.f32.mrb[76].mxu0 }
 0x95c   : > { %v5730_v48 = vmul.f32 %v13635_v31, %v5694_v44  ;;  %v5695_v55 = vmul.f32 %v10729_v47, %v13564_v42  ;;  %v5632_v37 = vadd.f32 1e-05, %v10015_v6  ;;  %v5623_v24 = vpop.f32.mrb[77].mxu0  ;;  %6110 = vmatmul.mubr.bf16.gmra.mrb[124].mxu1 %v5785_v34  ;;  %v10528_v34 = vld [vmem:[%s15292_s7 + $0x50] sm:$0xff]   ;;  %v10531_v44 = vld [vmem:[%s15292_s7 + $0x58] sm:$0xff]   ;;  %v10535_v6 = vld [vmem:[%s15292_s7 + $0x20] sm:$0xff]  }
 0x95d   : > { %v5733_v32 = vmul.f32 %v13635_v31, %v5697_v36  ;;  %v5624_v56 = vadd.f32 1e-05, %v5623_v24  ;;  %v10016_v22 = vpop.f32.mrb[78].mxu0  ;;  %6119 = vmatprep.mubr.bf16.mxu1 %v15384_v41  ;;  %v5768_v8 = vadd.f32 %v13641_v43, %v5732_v60  ;;  %9453 = vmatprep.subr.bf16.mxu0 %v10528_v34  ;;  %v10533_v60 = vld [vmem:[%s15292_s7 + $0x98] sm:$0xff]   ;;  %v10540_v24 = vld [vmem:[%s15292_s7 + $0x70] sm:$0xff]  }
 0x95e   : > { %v5731_v58 = vmul.f32 %v13635_v31, %v5695_v55  ;;  %10730 = vrsqrt.f32 %v5632_v37  ;;  %v5635_v49 = vadd.f32 1e-05, %v10016_v22  ;;  %v5626_v2 = vpop.f32.mrb[79].mxu0  ;;  %v5766_v13 = vadd.f32 %v13641_v43, %v5730_v48  ;;  %v10536_v48 = vld [vmem:[%s15292_s7 + $0xa0] sm:$0xff]   ;;  %v10538_v55 = vld [vmem:[%s15292_s7 + $0x28] sm:$0xff]   ;;  %v10543_v22 = vld [vmem:[%s15292_s7 + $0x78] sm:$0xff]  }
 0x95f   : > { %v5769_v27 = vadd.f32 %v13641_v43, %v5733_v32  ;;  %10732 = vrsqrt.f32 %v5624_v56  ;;  %v5627_v42 = vadd.f32 1e-05, %v5626_v2  ;;  %v10539_v37 = vld [vmem:[%s15292_s7 + $0xa8] sm:$0xff]   ;;  %v10541_v32 = vld [vmem:[%s15292_s7 + $0x30] sm:$0xff]   ;;  %v5822_v2 = vld [vmem:[%s15287_s2] sm:$0x7] }
 0x960   : > { %v5767_v15 = vadd.f32 %v13641_v43, %v5731_v58  ;;  %10734 = vrsqrt.f32 %v5635_v49  ;;  %v10542_v56 = vld [vmem:[%s15292_s7 + $0xb0] sm:$0xff]   ;;  %v10544_v58 = vld [vmem:[%s15292_s7 + $0x38] sm:$0xff]  }
 0x961   : > { %v5787_v4 = vpack.c.bf16 %v5769_v27, %v5768_v8  ;;  %10736 = vrsqrt.f32 %v5627_v42  ;;  %v10545_v49 = vld [vmem:[%s15292_s7 + $0xb8] sm:$0xff]   ;;  %v15385_v8 = vsub.s32 0, %v11033_v3  ;;  %v15386_v42 = vsub.s32 1, %v11033_v3 }
 0x962   : > { %v5786_v35 = vpack.c.bf16 %v5767_v15, %v5766_v13  ;;  %v15387_v15 = vsub.s32 2, %v11033_v3 }
 0x963   : > { %v13828_v27 = vrot.slane %v5822_v2, %v15385_v8  ;;  %v13832_v13 = vrot.slane %v5822_v2, %v15386_v42 }
 0x964   : > { %6120 = vmatmul.mubr.bf16.gmra.mrb[128].mxu1 %v5786_v35  ;;  %10057 = vmatprep.mubr.bf16.mxu0 %v5786_v35 }
 0x965   : > { %10058 = vmatmul.mubr.bf16.gmra.mrb[104].mxu0 %v5787_v4  ;;  %6129 = vmatprep.mubr.bf16.mxu1 %v15384_v41 }
 0x968   : > { %v10731_v46 = vpop.eup %10730 }
 0x969   : > { %v10733_v29 = vpop.eup %10732  ;;  %v5700_v5 = vmul.f32 %v10731_v46, %v13587_v18 }
 0x96a   : > { %v10735_v33 = vpop.eup %10734  ;;  %v5698_v38 = vmul.f32 %v10733_v29, %v13584_v16  ;;  %v10529_v16 = vld [vmem:[%s15292_s7 + $0x10] sm:$0xff]  }
 0x96b   : > { %v10737_v26 = vpop.eup %10736  ;;  %v5736_v50 = vmul.f32 %v13635_v31, %v5700_v5  ;;  %v5701_v28 = vmul.f32 %v10735_v33, %v13590_v40  ;;  %v10530_v40 = vld [vmem:[%s15292_s7 + $0x90] sm:$0xff]   ;;  %9454 = vmatpush3.bf16.msra.mxu0 %v10529_v16 }
 0x96c   : > { %v5734_v18 = vmul.f32 %v13635_v31, %v5698_v38  ;;  %v5699_v62 = vmul.f32 %v10737_v26, %v13593_v0  ;;  %6130 = vmatmul.mubr.bf16.gmra.mrb[132].mxu1 %v5787_v4  ;;  %10069 = vmatprep.subr.bf16.mxu1 %v10530_v40  ;;  %v13836_v4 = vrot.slane %v5822_v2, %v15387_v15 }
 0x96d   : > { %v5737_v53 = vmul.f32 %v13635_v31, %v5701_v28  ;;  %6139 = vmatprep.mubr.bf16.mxu1 %v15384_v41  ;;  %v5772_v52 = vadd.f32 %v13641_v43, %v5736_v50  ;;  %10070 = vmatpush3.bf16.msra.mxu1 %v10530_v40 }
 0x96e   : > { %v5735_v0 = vmul.f32 %v13635_v31, %v5699_v62  ;;  %v5770_v17 = vadd.f32 %v13641_v43, %v5734_v18  ;;  %v10532_v31 = vld [vmem:[%s15292_s7 + $0x18] sm:$0xff]   ;;  %9455 = vmatprep.subr.bf16.mxu0 %v10531_v44  ;;  %10071 = vmatprep.subr.bf16.mxu1 %v10533_v60 }
 0x96f   : > { %v5773_v25 = vadd.f32 %v13641_v43, %v5737_v53  ;;  %9456 = vmatpush3.bf16.msra.mxu0 %v10532_v31 }
 0x970   : > { %v5771_v1 = vadd.f32 %v13641_v43, %v5735_v0  ;;  %v10534_v43 = vld [vmem:[%s15292_s7 + $0x60] sm:$0xff]  }
 0x971   : > { %v5789_v47 = vpack.c.bf16 %v5773_v25, %v5772_v52  ;;  %10072 = vmatpush3.bf16.msra.mxu1 %v10533_v60  ;;  %9457 = vmatprep.subr.bf16.mxu0 %v10534_v43 }
 0x972   : > { %v5788_v36 = vpack.c.bf16 %v5771_v1, %v5770_v17  ;;  %10073 = vmatprep.subr.bf16.mxu1 %v10536_v48 }
 0x973   : > { %9458 = vmatpush3.bf16.msra.mxu0 %v10535_v6 }
 0x974   : > { %6140 = vmatmul.mubr.bf16.gmra.mrb[136].mxu1 %v5788_v36  ;;  %10061 = vmatprep.mubr.bf16.mxu0 %v5788_v36 }
 0x975   : > { %10062 = vmatmul.mubr.bf16.gmra.mrb[108].mxu0 %v5789_v47  ;;  %6149 = vmatprep.mubr.bf16.mxu1 %v15384_v41  ;;  %v10537_v41 = vld [vmem:[%s15292_s7 + $0x68] sm:$0xff]  }
 0x976   : > { %10074 = vmatpush3.bf16.msra.mxu1 %v10536_v48  ;;  %9459 = vmatprep.subr.bf16.mxu0 %v10537_v41 }
 0x977   : > { %9460 = vmatpush3.bf16.msra.mxu0 %v10538_v55  ;;  %10075 = vmatprep.subr.bf16.mxu1 %v10539_v37 }
 0x978   : > { %9461 = vmatprep.subr.bf16.mxu0 %v10540_v24 }
 0x97a   : > { %10076 = vmatpush3.bf16.msra.mxu1 %v10539_v37 }
 0x97b   : > { %9462 = vmatpush3.bf16.msra.mxu0 %v10541_v32  ;;  %10077 = vmatprep.subr.bf16.mxu1 %v10542_v56 }
 0x97c   : > { %6150 = vmatmul.mubr.bf16.gmra.mrb[140].mxu1 %v5789_v47  ;;  %9463 = vmatprep.subr.bf16.mxu0 %v10543_v22 }
 0x97e   : > { %10078 = vmatpush3.bf16.msra.mxu1 %v10542_v56 }
 0x97f   : > { %9464 = vmatpush3.bf16.msra.mxu0 %v10544_v58  ;;  %10079 = vmatprep.subr.bf16.mxu1 %v10545_v49 }
 0x982   : > { %10080 = vmatpush3.bf16.msra.mxu1 %v10545_v49 }
 0x9d7   : > { %v6001_v35 = vpop.f32.mrb[80].mxu1 }
 0x9d8   : > { %v13839_v11 = vadd.f32 %v6001_v35, %v13828_v27  ;;  %v6003_v10 = vpop.f32.mrb[81].mxu1  ;;  %v10035_v12 = vpop.f32.mrb[80].mxu0 }
 0x9d9   : > { %v13842_v46 = vadd.f32 %v6003_v10, %v13832_v13  ;;  %v13845_v23 = vadd.f32 %v10035_v12, %v13836_v4  ;;  %v6005_v29 = vpop.f32.mrb[82].mxu1  ;;  %v6194_v5 = vpop.f32.mrb[81].mxu0 }
 0x9da   : > { %v6321_v14 = vmul.f32 %v13839_v11, %v13839_v11  ;;  %v13850_v63 = vadd.f32 %v6005_v29, %v13828_v27  ;;  %v13853_v33 = vadd.f32 %v6194_v5, %v13836_v4  ;;  %v6007_v38 = vpop.f32.mrb[83].mxu1  ;;  %v10036_v26 = vpop.f32.mrb[82].mxu0 }
 0x9db   : > { %v6322_v50 = vmul.f32 %v13842_v46, %v13842_v46  ;;  %v6329_v28 = vmul.f32 %v13845_v23, %v13845_v23  ;;  %v13860_v18 = vadd.f32 %v6007_v38, %v13832_v13  ;;  %v13863_v62 = vadd.f32 %v10036_v26, %v13836_v4  ;;  %v6197_v34 = vpop.f32.mrb[83].mxu0 }
 0x9dc   : > { %v6417_v53 = vmul.f32 %v6321_v14, %v13839_v11  ;;  %v6324_v16 = vmul.f32 %v13850_v63, %v13850_v63  ;;  %v6323_v40 = vmul.f32 %v13853_v33, %v13853_v33  ;;  %v13871_v0 = vadd.f32 %v6197_v34, %v13836_v4 }
 0x9dd   : > { %v6418_v52 = vmul.f32 %v6322_v50, %v13842_v46  ;;  %v6425_v25 = vmul.f32 %v6329_v28, %v13845_v23  ;;  %v6325_v17 = vmul.f32 %v13860_v18, %v13860_v18  ;;  %v6332_v1 = vmul.f32 %v13863_v62, %v13863_v62 }
 0x9de   : > { %v6513_v44 = vmul.f32 0.044715, %v6417_v53  ;;  %v6420_v47 = vmul.f32 %v6324_v16, %v13850_v63  ;;  %v6419_v31 = vmul.f32 %v6323_v40, %v13853_v33  ;;  %v6326_v60 = vmul.f32 %v13871_v0, %v13871_v0 }
 0x9df   : > { %v6514_v36 = vmul.f32 0.044715, %v6418_v52  ;;  %v6521_v43 = vmul.f32 0.044715, %v6425_v25  ;;  %v6421_v6 = vmul.f32 %v6325_v17, %v13860_v18  ;;  %v6428_v48 = vmul.f32 %v6332_v1, %v13863_v62  ;;  %v6011_v41 = vpop.f32.mrb[84].mxu1 }
 0x9e0   : > { %v6609_v55 = vadd.f32 %v6513_v44, %v13839_v11  ;;  %v6516_v37 = vmul.f32 0.044715, %v6420_v47  ;;  %v6515_v24 = vmul.f32 0.044715, %v6419_v31  ;;  %v6422_v32 = vmul.f32 %v6326_v60, %v13871_v0  ;;  %v6013_v56 = vpop.f32.mrb[85].mxu1 }
 0x9e1   : > { %v6610_v22 = vadd.f32 %v6514_v36, %v13842_v46  ;;  %v6617_v58 = vadd.f32 %v6521_v43, %v13845_v23  ;;  %v6517_v49 = vmul.f32 0.044715, %v6421_v6  ;;  %v6524_v2 = vmul.f32 0.044715, %v6428_v48  ;;  %v6015_v8 = vpop.f32.mrb[86].mxu1 }
 0x9e2   : > { %v6705_v42 = vmul.f32 0.7978846, %v6609_v55  ;;  %v6612_v15 = vadd.f32 %v6516_v37, %v13850_v63  ;;  %v6611_v35 = vadd.f32 %v6515_v24, %v13853_v33  ;;  %v6518_v10 = vmul.f32 0.044715, %v6422_v32  ;;  %v6017_v12 = vpop.f32.mrb[87].mxu1 }
 0x9e3   : > { %v6706_v29 = vmul.f32 0.7978846, %v6610_v22  ;;  %v6713_v5 = vmul.f32 0.7978846, %v6617_v58  ;;  %v6613_v14 = vadd.f32 %v6517_v49, %v13860_v18  ;;  %v6620_v38 = vadd.f32 %v6524_v2, %v13863_v62 }
 0x9e4   : > { %10738 = vtanh.f32 %v6705_v42  ;;  %v6708_v26 = vmul.f32 0.7978846, %v6612_v15  ;;  %v6707_v50 = vmul.f32 0.7978846, %v6611_v35  ;;  %v6614_v28 = vadd.f32 %v6518_v10, %v13871_v0 }
 0x9e5   : > { %10740 = vtanh.f32 %v6706_v29  ;;  %v6709_v34 = vmul.f32 0.7978846, %v6613_v14  ;;  %v13895_v53 = vadd.f32 %v6011_v41, %v13828_v27  ;;  %v6716_v16 = vmul.f32 0.7978846, %v6620_v38 }
 0x9e6   : > { %10742 = vtanh.f32 %v6713_v5  ;;  %v13898_v40 = vadd.f32 %v6013_v56, %v13832_v13  ;;  %v13901_v52 = vadd.f32 %v6015_v8, %v13828_v27  ;;  %v6710_v25 = vmul.f32 0.7978846, %v6614_v28 }
 0x9e7   : > { %10744 = vtanh.f32 %v6708_v26  ;;  %v6327_v17 = vmul.f32 %v13895_v53, %v13895_v53  ;;  %v13906_v1 = vadd.f32 %v6017_v12, %v13832_v13  ;;  %v6021_v44 = vpop.f32.mrb[88].mxu1 }
 0x9e8   : > { %10746 = vtanh.f32 %v6707_v50  ;;  %v6328_v47 = vmul.f32 %v13898_v40, %v13898_v40  ;;  %v6330_v31 = vmul.f32 %v13901_v52, %v13901_v52  ;;  %v13913_v60 = vadd.f32 %v6021_v44, %v13828_v27  ;;  %v6023_v36 = vpop.f32.mrb[89].mxu1  ;;  %v10039_v43 = vpop.f32.mrb[84].mxu0 }
 0x9e9   : > { %10748 = vtanh.f32 %v6709_v34  ;;  %v6423_v6 = vmul.f32 %v6327_v17, %v13895_v53  ;;  %v6331_v48 = vmul.f32 %v13906_v1, %v13906_v1  ;;  %v13919_v41 = vadd.f32 %v6023_v36, %v13832_v13  ;;  %v6025_v55 = vpop.f32.mrb[90].mxu1  ;;  %v13921_v37 = vpop.f32.mrb[85].mxu0 }
 0x9ea   : > { %10750 = vtanh.f32 %v6716_v16  ;;  %v6424_v24 = vmul.f32 %v6328_v47, %v13898_v40  ;;  %v6426_v32 = vmul.f32 %v6330_v31, %v13901_v52  ;;  %v6333_v56 = vmul.f32 %v13913_v60, %v13913_v60  ;;  %v13927_v22 = vpop.f32.mrb[91].mxu1  ;;  %v13929_v58 = vpop.f32.mrb[86].mxu0 }
 0x9eb   : > { %15388 = vst [vmem:[#allocation35_spill] sm:$0xff] %v13919_v41  ;;  %10752 = vtanh.f32 %v6710_v25  ;;  %v6519_v49 = vmul.f32 0.044715, %v6423_v6  ;;  %v6427_v2 = vmul.f32 %v6331_v48, %v13906_v1  ;;  %v6334_v8 = vmul.f32 %v13919_v41, %v13919_v41  ;;  %v13934_v42 = vpop.f32.mrb[87].mxu0 }
 0x9ec   : > { %v6520_v15 = vmul.f32 0.044715, %v6424_v24  ;;  %v6522_v35 = vmul.f32 0.044715, %v6426_v32  ;;  %v6429_v10 = vmul.f32 %v6333_v56, %v13913_v60  ;;  %v13938_v12 = vadd.f32 %v10039_v43, %v13836_v4 }
 0x9ed   : > { %v6615_v29 = vadd.f32 %v6519_v49, %v13895_v53  ;;  %v6523_v5 = vmul.f32 0.044715, %v6427_v2  ;;  %v6430_v14 = vmul.f32 %v6334_v8, %v13919_v41  ;;  %v13943_v38 = vadd.f32 %v6025_v55, %v13828_v27 }
 0x9ee   : > { %v10739_v26 = vpop.eup %10738  ;;  %v6616_v50 = vadd.f32 %v6520_v15, %v13898_v40  ;;  %v6618_v28 = vadd.f32 %v6522_v35, %v13901_v52  ;;  %v6525_v34 = vmul.f32 0.044715, %v6429_v10  ;;  %v6341_v16 = vmul.f32 %v13938_v12, %v13938_v12 }
 0x9ef   : > { %v13949_v25 = vpop.eup %10740  ;;  %v6897_v17 = vadd.f32 1.0, %v10739_v26  ;;  %v6711_v44 = vmul.f32 0.7978846, %v6615_v29  ;;  %v6619_v47 = vadd.f32 %v6523_v5, %v13906_v1  ;;  %v6526_v31 = vmul.f32 0.044715, %v6430_v14  ;;  %v6031_v36 = vpop.f32.mrb[92].mxu1 }
 0x9f0   : > { %v10743_v43 = vpop.eup %10742  ;;  %v6712_v6 = vmul.f32 0.7978846, %v6616_v50  ;;  %v6714_v48 = vmul.f32 0.7978846, %v6618_v28  ;;  %v6621_v55 = vadd.f32 %v6525_v34, %v13913_v60  ;;  %v6437_v24 = vmul.f32 %v6341_v16, %v13938_v12  ;;  %v6033_v32 = vpop.f32.mrb[93].mxu1 }
 0x9f1   : > { %v10745_v56 = vpop.eup %10744  ;;  %v6993_v49 = vmul.f32 0.5, %v6897_v17  ;;  %v6905_v2 = vadd.f32 1.0, %v10743_v43  ;;  %10754 = vtanh.f32 %v6711_v44  ;;  %v6715_v8 = vmul.f32 0.7978846, %v6619_v47  ;;  %v13954_v15 = vpop.f32.mrb[94].mxu1 }
 0x9f2   : > { %v13956_v35 = vpop.eup %10746  ;;  %v6900_v10 = vadd.f32 1.0, %v10745_v56  ;;  %10756 = vtanh.f32 %v6712_v6  ;;  %v6717_v29 = vmul.f32 0.7978846, %v6621_v55  ;;  %v6622_v5 = vadd.f32 %v6526_v31, %v13919_v41  ;;  %v13959_v14 = vpop.f32.mrb[95].mxu1 }
 0x9f3   : > { %v13961_v26 = vpop.eup %10748  ;;  %v13964_v50 = vmul.f32 %v6993_v49, %v13839_v11  ;;  %v7001_v28 = vmul.f32 0.5, %v6905_v2  ;;  %10758 = vtanh.f32 %v6714_v48  ;;  %v6533_v34 = vmul.f32 0.044715, %v6437_v24 }
 0x9f4   : > { %v10751_v16 = vpop.eup %10750  ;;  %v6996_v17 = vmul.f32 0.5, %v6900_v10  ;;  %10760 = vtanh.f32 %v6715_v8  ;;  %v6718_v44 = vmul.f32 0.7978846, %v6622_v5  ;;  %v6336_v47 = vmul.f32 %v13943_v38, %v13943_v38 }
 0x9f5   : > { %v13968_v43 = vpop.eup %10752  ;;  %v13971_v31 = vmul.f32 %v7001_v28, %v13845_v23  ;;  %v6908_v6 = vadd.f32 1.0, %v10751_v16  ;;  %10762 = vtanh.f32 %v6717_v29  ;;  %v6629_v11 = vadd.f32 %v6533_v34, %v13938_v12 }
 0x9f6   : > { %v13975_v55 = vmul.f32 %v6996_v17, %v13850_v63  ;;  %10764 = vtanh.f32 %v6718_v44  ;;  %v6432_v48 = vmul.f32 %v6336_v47, %v13943_v38  ;;  %v13980_v24 = vadd.f32 %v13921_v37, %v13836_v4 }
 0x9f7   : > { %v7004_v56 = vmul.f32 0.5, %v6908_v6  ;;  %v6725_v49 = vmul.f32 0.7978846, %v6629_v11  ;;  %v13984_v23 = vadd.f32 %v13927_v22, %v13832_v13  ;;  %v13988_v2 = vadd.f32 %v13929_v58, %v13836_v4  ;;  %v13990_v8 = vpop.f32.mrb[96].mxu1 }
 0x9f8   : > { %15389 = vst [vmem:[#allocation36_spill] sm:$0xff] %v13980_v24  ;;  %v6528_v10 = vmul.f32 0.044715, %v6432_v48  ;;  %v6335_v37 = vmul.f32 %v13980_v24, %v13980_v24  ;;  %v13998_v29 = vadd.f32 %v13934_v42, %v13836_v4  ;;  %v14000_v5 = vpop.f32.mrb[97].mxu1  ;;  %v14002_v22 = vpop.f32.mrb[88].mxu0 }
 0x9f9   : > { %15390 = vst [vmem:[#allocation37_spill] sm:$0xff] %v13984_v23  ;;  %v14005_v58 = vmul.f32 %v7004_v56, %v13863_v62  ;;  %10766 = vtanh.f32 %v6725_v49  ;;  %v6337_v28 = vmul.f32 %v13984_v23, %v13984_v23  ;;  %v6344_v34 = vmul.f32 %v13988_v2, %v13988_v2  ;;  %v14011_v16 = vpop.f32.mrb[98].mxu1  ;;  %v14013_v17 = vpop.f32.mrb[89].mxu0 }
 0x9fa   : > { %15391 = vst [vmem:[#allocation38_spill] sm:$0xff] %v13998_v29  ;;  %v6624_v42 = vadd.f32 %v6528_v10, %v13943_v38  ;;  %v6431_v44 = vmul.f32 %v6335_v37, %v13980_v24  ;;  %v6338_v47 = vmul.f32 %v13998_v29, %v13998_v29  ;;  %v14020_v62 = vadd.f32 %v6031_v36, %v13828_v27  ;;  %v14022_v6 = vpop.f32.mrb[99].mxu1  ;;  %v14024_v11 = vpop.f32.mrb[90].mxu0 }
 0x9fb   : > { %v10755_v48 = vpop.eup %10754  ;;  %v6433_v49 = vmul.f32 %v6337_v28, %v13984_v23  ;;  %v6440_v10 = vmul.f32 %v6344_v34, %v13988_v2  ;;  %v14031_v37 = vadd.f32 %v6033_v32, %v13832_v13  ;;  %v14033_v63 = vpop.f32.mrb[91].mxu0 }
 0x9fc   : > { %v14035_v21 = vpop.eup %10756  ;;  %v6903_v36 = vadd.f32 1.0, %v10755_v48  ;;  %v6720_v7 = vmul.f32 0.7978846, %v6624_v42  ;;  %v6527_v39 = vmul.f32 0.044715, %v6431_v44  ;;  %v6434_v54 = vmul.f32 %v6338_v47, %v13998_v29 }
 0x9fd   : > { %15392 = vst [vmem:[#allocation39_spill] sm:$0xff] %v14031_v37  ;;  %v10759_v9 = vpop.eup %10758  ;;  %v6529_v19 = vmul.f32 0.044715, %v6433_v49  ;;  %v6536_v59 = vmul.f32 0.044715, %v6440_v10  ;;  %v6339_v28 = vmul.f32 %v14020_v62, %v14020_v62  ;;  %v6340_v34 = vmul.f32 %v14031_v37, %v14031_v37 }
 0x9fe   : > { %v14042_v32 = vpop.eup %10760  ;;  %v6999_v56 = vmul.f32 0.5, %v6903_v36  ;;  %v6906_v57 = vadd.f32 1.0, %v10759_v9  ;;  %10768 = vtanh.f32 %v6720_v7  ;;  %v6623_v48 = vadd.f32 %v6527_v39, %v13980_v24 }
 0x9ff   : > { %v10763_v42 = vpop.eup %10762  ;;  %v6625_v44 = vadd.f32 %v6529_v19, %v13984_v23  ;;  %v6632_v47 = vadd.f32 %v6536_v59, %v13988_v2  ;;  %v6530_v49 = vmul.f32 0.044715, %v6434_v54  ;;  %v6435_v10 = vmul.f32 %v6339_v28, %v14020_v62  ;;  %v14048_v61 = vpop.f32.mrb[100].mxu1 }
 0xa00   : > { %v14050_v20 = vpop.eup %10764  ;;  %v14053_v51 = vmul.f32 %v6999_v56, %v13895_v53  ;;  %v7002_v36 = vmul.f32 0.5, %v6906_v57  ;;  %v6909_v9 = vadd.f32 1.0, %v10763_v42  ;;  %v6719_v7 = vmul.f32 0.7978846, %v6623_v48  ;;  %v14055_v45 = vpop.f32.mrb[101].mxu1 }
 0xa01   : > { %15393 = vst [vmem:[#allocation40_spill] sm:$0xff] %v14050_v20  ;;  %v6721_v39 = vmul.f32 0.7978846, %v6625_v44  ;;  %v6728_v30 = vmul.f32 0.7978846, %v6632_v47  ;;  %v6626_v19 = vadd.f32 %v6530_v49, %v13998_v29  ;;  %v6436_v3 = vmul.f32 %v6340_v34, %v14031_v37  ;;  %v14062_v24 = vpop.f32.mrb[102].mxu1 }
 0xa02   : > { %v6531_v59 = vmul.f32 0.044715, %v6435_v10  ;;  %v14059_v54 = vmul.f32 %v7002_v36, %v13901_v52  ;;  %v7005_v28 = vmul.f32 0.5, %v6909_v9  ;;  %10770 = vtanh.f32 %v6719_v7  ;;  %v14069_v42 = vpop.f32.mrb[103].mxu1 }
 0xa03   : > { %v10767_v53 = vpop.eup %10766  ;;  %10772 = vtanh.f32 %v6721_v39  ;;  %v6722_v57 = vmul.f32 0.7978846, %v6626_v19  ;;  %v14067_v48 = vadd.f32 %v13954_v15, %v13828_v27  ;;  %v6532_v49 = vmul.f32 0.044715, %v6436_v3 }
 0xa04   : > { %v6627_v56 = vadd.f32 %v6531_v59, %v14020_v62  ;;  %v14074_v44 = vmul.f32 %v7005_v28, %v13913_v60  ;;  %v6917_v34 = vadd.f32 1.0, %v10767_v53  ;;  %10774 = vtanh.f32 %v6728_v30 }
 0xa05   : > { %10776 = vtanh.f32 %v6722_v57  ;;  %v6342_v10 = vmul.f32 %v14067_v48, %v14067_v48  ;;  %v14080_v15 = vadd.f32 %v13959_v14, %v13832_v13  ;;  %v14084_v9 = vadd.f32 %v13990_v8, %v13828_v27 }
 0xa06   : > { %v6723_v47 = vmul.f32 0.7978846, %v6627_v56  ;;  %v7013_v36 = vmul.f32 0.5, %v6917_v34  ;;  %v14088_v60 = vadd.f32 %v14000_v5, %v13832_v13  ;;  %v6628_v30 = vadd.f32 %v6532_v49, %v14031_v37 }
 0xa07   : > { %15394 = vst [vmem:[#allocation41_spill] sm:$0xff] %v14080_v15  ;;  %v6438_v3 = vmul.f32 %v6342_v10, %v14067_v48  ;;  %v14094_v7 = vadd.f32 %v14002_v22, %v13836_v4  ;;  %v14096_v39 = vpop.f32.mrb[104].mxu1  ;;  %v6343_v8 = vmul.f32 %v14080_v15, %v14080_v15  ;;  %v6345_v5 = vmul.f32 %v14084_v9, %v14084_v9 }
 0xa08   : > { %15395 = vst [vmem:[#allocation42_spill] sm:$0xff] %v14088_v60  ;;  %10778 = vtanh.f32 %v6723_v47  ;;  %v10769_v14 = vpop.eup %10768  ;;  %v14099_v19 = vmul.f32 %v7013_v36, %v13938_v12  ;;  %v6346_v59 = vmul.f32 %v14088_v60, %v14088_v60  ;;  %v14107_v28 = vpop.f32.mrb[105].mxu1  ;;  %v6724_v57 = vmul.f32 0.7978846, %v6628_v30 }
 0xa09   : > { %v14109_v53 = vpop.f32.mrb[92].mxu0  ;;  %v6912_v22 = vadd.f32 1.0, %v10769_v14  ;;  %v6534_v56 = vmul.f32 0.044715, %v6438_v3  ;;  %v6353_v12 = vmul.f32 %v14094_v7, %v14094_v7  ;;  %v14113_v34 = vpop.f32.mrb[106].mxu1  ;;  %v6439_v47 = vmul.f32 %v6343_v8, %v14080_v15 }
 0xa0a   : > { %v6441_v49 = vmul.f32 %v6345_v5, %v14084_v9  ;;  %v6442_v10 = vmul.f32 %v6346_v59, %v14088_v60  ;;  %v14120_v36 = vadd.f32 %v14011_v16, %v13828_v27  ;;  %v14122_v52 = vpop.f32.mrb[93].mxu0  ;;  %v14124_v14 = vpop.f32.mrb[107].mxu1  ;;  %10780 = vtanh.f32 %v6724_v57 }
 0xa0b   : > { %v7008_v30 = vmul.f32 0.5, %v6912_v22  ;;  %v6630_v3 = vadd.f32 %v6534_v56, %v14067_v48  ;;  %v6449_v37 = vmul.f32 %v6353_v12, %v14094_v7  ;;  %v14128_v29 = vpop.f32.mrb[94].mxu0  ;;  %v6535_v5 = vmul.f32 0.044715, %v6439_v47 }
 0xa0c   : > { %15396 = vst [vmem:[#allocation43_spill] sm:$0xff] %v14128_v29  ;;  %v14130_v8 = vpop.eup %10770  ;;  %v6537_v59 = vmul.f32 0.044715, %v6441_v49  ;;  %v6538_v23 = vmul.f32 0.044715, %v6442_v10  ;;  %v6348_v16 = vmul.f32 %v14120_v36, %v14120_v36  ;;  %v14141_v56 = vadd.f32 %v14013_v17, %v13836_v4  ;;  %v14143_v12 = vpop.f32.mrb[95].mxu0 }
 0xa0d   : > { %15397 = vst [vmem:[#allocation44_spill] sm:$0xff] %v14130_v8  ;;  %v14134_v41 = vpop.eup %10772  ;;  %v14137_v20 = vmul.f32 %v7008_v30, %v13943_v38  ;;  %v6726_v22 = vmul.f32 0.7978846, %v6630_v3  ;;  %v6545_v57 = vmul.f32 0.044715, %v6449_v37  ;;  %15400 = vst [vmem:[#allocation47_spill] sm:$0xff] %v14143_v12  ;;  %v6631_v47 = vadd.f32 %v6535_v5, %v14080_v15 }
 0xa0e   : > { %15398 = vst [vmem:[#allocation45_spill] sm:$0xff] %v14134_v41  ;;  %15399 = vst [vmem:[#allocation46_spill] sm:$0xff] %v14141_v56  ;;  %v10775_v8 = vpop.eup %10774  ;;  %v6633_v49 = vadd.f32 %v6537_v59, %v14084_v9  ;;  %v6634_v10 = vadd.f32 %v6538_v23, %v14088_v60  ;;  %v6444_v41 = vmul.f32 %v6348_v16, %v14120_v36  ;;  %v6901_v38 = vadd.f32 1.0, %v13961_v26 }
 0xa0f   : > { %v14149_v29 = vpop.eup %10776  ;;  %v6920_v37 = vadd.f32 1.0, %v10775_v8  ;;  %10782 = vtanh.f32 %v6726_v22  ;;  %v6641_v17 = vadd.f32 %v6545_v57, %v14094_v7  ;;  %v14154_v30 = vpop.f32.mrb[108].mxu1  ;;  %v6727_v3 = vmul.f32 0.7978846, %v6631_v47 }
 0xa10   : > { %15401 = vst [vmem:[#allocation48_spill] sm:$0xff] %v14149_v29  ;;  %v6729_v12 = vmul.f32 0.7978846, %v6633_v49  ;;  %v6730_v5 = vmul.f32 0.7978846, %v6634_v10  ;;  %v6347_v59 = vmul.f32 %v14141_v56, %v14141_v56  ;;  %v14160_v29 = vadd.f32 %v14022_v6, %v13832_v13  ;;  %v14162_v8 = vpop.f32.mrb[109].mxu1 }
 0xa11   : > { %v7016_v60 = vmul.f32 0.5, %v6920_v37  ;;  %v6737_v16 = vmul.f32 0.7978846, %v6641_v17  ;;  %v6540_v15 = vmul.f32 0.044715, %v6444_v41  ;;  %10784 = vtanh.f32 %v6727_v3  ;;  %v14169_v49 = vpop.f32.mrb[110].mxu1 }
 0xa12   : > { %v10779_v23 = vpop.eup %10778  ;;  %15402 = vst [vmem:[#allocation49_spill] sm:$0xff] %v14160_v29  ;;  %v6443_v57 = vmul.f32 %v6347_v59, %v14141_v56  ;;  %v14167_v47 = vadd.f32 %v14024_v11, %v13836_v4  ;;  %10786 = vtanh.f32 %v6729_v12  ;;  %v6349_v6 = vmul.f32 %v14160_v29, %v14160_v29  ;;  %v14177_v37 = vpop.f32.mrb[111].mxu1 }
 0xa13   : > { %v6915_v22 = vadd.f32 1.0, %v10779_v23  ;;  %v14172_v10 = vmul.f32 %v7016_v60, %v13988_v2  ;;  %v6636_v41 = vadd.f32 %v6540_v15, %v14120_v36  ;;  %10788 = vtanh.f32 %v6730_v5 }
 0xa14   : > { %v6539_v3 = vmul.f32 0.044715, %v6443_v57  ;;  %v6356_v11 = vmul.f32 %v14167_v47, %v14167_v47  ;;  %v14181_v59 = vpop.eup %10780  ;;  %10790 = vtanh.f32 %v6737_v16  ;;  %v6445_v15 = vmul.f32 %v6349_v6, %v14160_v29 }
 0xa15   : > { %v7011_v17 = vmul.f32 0.5, %v6915_v22  ;;  %v6732_v60 = vmul.f32 0.7978846, %v6636_v41  ;;  %v6898_v22 = vadd.f32 1.0, %v13949_v25  ;;  %v14195_v2 = vadd.f32 %v14033_v63, %v13836_v4 }
 0xa16   : > { %v6635_v23 = vadd.f32 %v6539_v3, %v14141_v56  ;;  %v6452_v5 = vmul.f32 %v6356_v11, %v14167_v47  ;;  %v6541_v57 = vmul.f32 0.044715, %v6445_v15  ;;  %v6997_v56 = vmul.f32 0.5, %v6901_v38 }
 0xa17   : > { %v14187_v12 = vmul.f32 %v7011_v17, %v14020_v62  ;;  %10792 = vtanh.f32 %v6732_v60  ;;  %v14197_v16 = vpop.f32.mrb[112].mxu1  ;;  %v6994_v62 = vmul.f32 0.5, %v6898_v22  ;;  %v6899_v17 = vadd.f32 1.0, %v13956_v35 }
 0xa18   : > { %15403 = vst [vmem:[#allocation50_spill] sm:$0xff] %v14197_v16  ;;  %v6731_v41 = vmul.f32 0.7978846, %v6635_v23  ;;  %v6548_v6 = vmul.f32 0.044715, %v6452_v5  ;;  %v6637_v11 = vadd.f32 %v6541_v57, %v14160_v29  ;;  %v6350_v25 = vmul.f32 %v14195_v2, %v14195_v2  ;;  %v14204_v60 = vpop.f32.mrb[113].mxu1 }
 0xa19   : > { %v10783_v3 = vpop.eup %10782  ;;  %v6902_v26 = vadd.f32 1.0, %v13968_v43  ;;  %15404 = vst [vmem:[#allocation51_spill] sm:$0xff] %v14204_v60  ;;  %v14206_v63 = vpop.f32.mrb[96].mxu0  ;;  %v7090_v5 = vmul.f32 %v6994_v62, %v13842_v46  ;;  %v7093_v57 = vmul.f32 %v6997_v56, %v13860_v18  ;;  %v6995_v43 = vmul.f32 0.5, %v6899_v17 }
 0xa1a   : > { %15405 = vst [vmem:[#allocation52_spill] sm:$0xff] %v14206_v63  ;;  %v6918_v15 = vadd.f32 1.0, %v10783_v3  ;;  %10794 = vtanh.f32 %v6731_v41  ;;  %v6644_v23 = vadd.f32 %v6548_v6, %v14167_v47  ;;  %v14210_v35 = vpop.f32.mrb[114].mxu1  ;;  %v14212_v22 = vpop.f32.mrb[97].mxu0  ;;  %v6733_v38 = vmul.f32 0.7978846, %v6637_v11 }
 0xa1b   : > { %v6446_v29 = vmul.f32 %v6350_v25, %v14195_v2  ;;  %v14216_v16 = vpop.f32.mrb[115].mxu1  ;;  %v14218_v60 = vpop.f32.mrb[98].mxu0  ;;  %v6998_v63 = vmul.f32 0.5, %v6902_v26  ;;  %v14224_v46 = vadd.f32 %v14048_v61, %v13828_v27  ;;  %v7186_v18 = vpack.c.bf16 %v7093_v57, %v7090_v5 }
 0xa1c   : > { %15406 = vst [vmem:[#allocation53_spill] sm:$0xff] %v14218_v60  ;;  %v14220_v3 = vpop.eup %10784  ;;  %v7014_v41 = vmul.f32 0.5, %v6918_v15  ;;  %v6740_v6 = vmul.f32 0.7978846, %v6644_v23  ;;  %v14226_v62 = vpop.f32.mrb[99].mxu0  ;;  %10796 = vtanh.f32 %v6733_v38  ;;  %v7091_v17 = vmul.f32 %v6995_v43, %v13853_v33 }
 0xa1d   : > { %v10787_v11 = vpop.eup %10786  ;;  %v6542_v56 = vmul.f32 0.044715, %v6446_v29  ;;  %v7094_v26 = vmul.f32 %v6998_v63, %v13871_v0  ;;  %7461 = vmatprep.mubr.bf16.mxu0 %v7186_v18  ;;  %v6351_v38 = vmul.f32 %v14224_v46, %v14224_v46  ;;  %v14240_v29 = vadd.f32 %v14055_v45, %v13832_v13 }
 0xa1e   : > { %v14229_v25 = vpop.eup %10788  ;;  %v14232_v60 = vmul.f32 %v7014_v41, %v14067_v48  ;;  %v6921_v15 = vadd.f32 1.0, %v10787_v11  ;;  %10798 = vtanh.f32 %v6740_v6  ;;  %v14244_v33 = vadd.f32 %v14062_v24, %v13828_v27 }
 0xa1f   : > { %v10791_v23 = vpop.eup %10790  ;;  %v6638_v61 = vadd.f32 %v6542_v56, %v14195_v2  ;;  %15407 = vst [vmem:[#allocation54_spill] sm:$0xff] %v14240_v29  ;;  %v14246_v48 = vpop.f32.mrb[116].mxu1  ;;  %v15408_v57 = vpack.c.bf16 %v13975_v55, %v13964_v50  ;;  %v7187_v43 = vpack.c.bf16 %v7094_v26, %v7091_v17  ;;  %v6447_v11 = vmul.f32 %v6351_v38, %v14224_v46 }
 0xa20   : > { %v7017_v63 = vmul.f32 0.5, %v6921_v15  ;;  %v6929_v5 = vadd.f32 1.0, %v10791_v23  ;;  %v14253_v41 = vpop.f32.mrb[117].mxu1  ;;  %v6352_v24 = vmul.f32 %v14240_v29, %v14240_v29  ;;  %v6354_v18 = vmul.f32 %v14244_v33, %v14244_v33 }
 0xa21   : > { %7462 = vmatmul.mubr.bf16.vlgmr.msra.gmra.mrb[112].mxu0 %v15408_v57  ;;  %v10793_v45 = vpop.eup %10792  ;;  %v6734_v6 = vmul.f32 0.7978846, %v6638_v61  ;;  %v14260_v56 = vpop.f32.mrb[118].mxu1  ;;  %10081 = vmatprep.mubr.bf16.mxu1 %v7187_v43  ;;  %v14267_v17 = vadd.f32 %v14069_v42, %v13832_v13  ;;  %v15410_v23 = vpack.c.bf16 %v14005_v58, %v13971_v31  ;;  %v6543_v61 = vmul.f32 0.044715, %v6447_v11 }
 0xa22   : > { %v14263_v15 = vmul.f32 %v7017_v63, %v14084_v9  ;;  %v7025_v50 = vmul.f32 0.5, %v6929_v5  ;;  %v6924_v55 = vadd.f32 1.0, %v10793_v45  ;;  %v14269_v26 = vpop.f32.mrb[119].mxu1  ;;  %v6448_v38 = vmul.f32 %v6352_v24, %v14240_v29 }
 0xa23   : > { %15409 = vst [vmem:[#allocation55_spill] sm:$0xff] %v14267_v17  ;;  %10800 = vtanh.f32 %v6734_v6  ;;  %10082 = vmatmul.mubr.bf16.vlgmr.msra.gmra.mrb[144].mxu1 %v15410_v23  ;;  %v6450_v9 = vmul.f32 %v6354_v18, %v14244_v33  ;;  %v6355_v42 = vmul.f32 %v14267_v17, %v14267_v17  ;;  %v6904_v43 = vadd.f32 1.0, %v14035_v21 }
 0xa24   : > { %v14276_v63 = vpop.eup %10794  ;;  %v14279_v5 = vmul.f32 %v7025_v50, %v14094_v7  ;;  %v7020_v57 = vmul.f32 0.5, %v6924_v55  ;;  %v6639_v45 = vadd.f32 %v6543_v61, %v14224_v46  ;;  %v6544_v31 = vmul.f32 0.044715, %v6448_v38 }
 0xa25   : > { %v6546_v58 = vmul.f32 0.044715, %v6450_v9  ;;  %v6907_v6 = vadd.f32 1.0, %v14042_v32  ;;  %v6451_v24 = vmul.f32 %v6355_v42, %v14267_v17  ;;  %v7000_v18 = vmul.f32 0.5, %v6904_v43 }
 0xa26   : > { %15411 = vst [vmem:[#allocation56_spill] sm:$0xff] %v14279_v5  ;;  %v14287_v11 = vmul.f32 %v7020_v57, %v14120_v36  ;;  %v14292_v7 = vadd.f32 %v14096_v39, %v13828_v27  ;;  %v14294_v50 = vpop.eup %10796  ;;  %v6735_v55 = vmul.f32 0.7978846, %v6639_v45  ;;  %v6640_v21 = vadd.f32 %v6544_v31, %v14240_v29 }
 0xa27   : > { %v6642_v23 = vadd.f32 %v6546_v58, %v14244_v33  ;;  %v7003_v61 = vmul.f32 0.5, %v6907_v6  ;;  %v14298_v38 = vpop.f32.mrb[120].mxu1  ;;  %v6547_v9 = vmul.f32 0.044715, %v6451_v24  ;;  %v7096_v57 = vmul.f32 %v7000_v18, %v13898_v40 }
 0xa28   : > { %15412 = vst [vmem:[#allocation57_spill] sm:$0xff] %v14298_v38  ;;  %v10799_v32 = vpop.eup %10798  ;;  %v6357_v39 = vmul.f32 %v14292_v7, %v14292_v7  ;;  %v14305_v42 = vpop.f32.mrb[121].mxu1  ;;  %10802 = vtanh.f32 %v6735_v55  ;;  %v6736_v31 = vmul.f32 0.7978846, %v6640_v21  ;;  %v14316_v40 = vadd.f32 %v14107_v28, %v13832_v13 }
 0xa29   : > { %15413 = vst [vmem:[#allocation58_spill] sm:$0xff] %v14305_v42  ;;  %v14307_v43 = vpop.f32.mrb[100].mxu0  ;;  %v6932_v45 = vadd.f32 1.0, %v10799_v32  ;;  %v6738_v58 = vmul.f32 0.7978846, %v6642_v23  ;;  %v14309_v6 = vpop.f32.mrb[122].mxu1  ;;  %v6643_v0 = vadd.f32 %v6547_v9, %v14267_v17  ;;  %v7099_v36 = vmul.f32 %v7003_v61, %v13906_v1 }
 0xa2a   : > { %15414 = vst [vmem:[#allocation59_spill] sm:$0xff] %v14307_v43  ;;  %15415 = vst [vmem:[#allocation60_spill] sm:$0xff] %v14309_v6  ;;  %v6453_v24 = vmul.f32 %v6357_v39, %v14292_v7  ;;  %v14318_v18 = vpop.f32.mrb[101].mxu0  ;;  %v14320_v42 = vpop.f32.mrb[123].mxu1  ;;  %10804 = vtanh.f32 %v6736_v31  ;;  %v14324_v55 = vadd.f32 %v14109_v53, %v13836_v4  ;;  %v14328_v21 = vadd.f32 %v14113_v34, %v13828_v27 }
 0xa2b   : > { %15416 = vst [vmem:[#allocation61_spill] sm:$0xff] %v14316_v40  ;;  %15417 = vst [vmem:[#allocation62_spill] sm:$0xff] %v14318_v18  ;;  %v7028_v32 = vmul.f32 0.5, %v6932_v45  ;;  %v14330_v1 = vpop.f32.mrb[102].mxu0  ;;  %10806 = vtanh.f32 %v6738_v58  ;;  %v6739_v23 = vmul.f32 0.7978846, %v6643_v0  ;;  %v7189_v28 = vpack.c.bf16 %v7099_v36, %v7096_v57 }
 0xa2c   : > { %15418 = vst [vmem:[#allocation63_spill] sm:$0xff] %v14320_v42  ;;  %15419 = vst [vmem:[#allocation64_spill] sm:$0xff] %v14330_v1  ;;  %v6549_v61 = vmul.f32 0.044715, %v6453_v24  ;;  %v14332_v9 = vpop.f32.mrb[103].mxu0  ;;  %v6358_v53 = vmul.f32 %v14316_v40, %v14316_v40  ;;  %v6365_v34 = vmul.f32 %v14324_v55, %v14324_v55  ;;  %v6360_v31 = vmul.f32 %v14328_v21, %v14328_v21  ;;  %v15423_v57 = vld [vmem:[#allocation43_spill] sm:$0xff] }
 0xa2d   : > { %15420 = vst [vmem:[#allocation65_spill] sm:$0xff] %v14332_v9  ;;  %v14334_v39 = vpop.eup %10800  ;;  %v14337_v45 = vmul.f32 %v7028_v32, %v14167_v47  ;;  %10808 = vtanh.f32 %v6739_v23  ;;  %7469 = vmatprep.mubr.bf16.mxu0 %v7189_v28  ;;  %v14348_v36 = vadd.f32 %v14122_v52, %v13836_v4  ;;  %v14352_v47 = vadd.f32 %v14124_v14, %v13832_v13 }
 0xa2e   : > { %v6645_v0 = vadd.f32 %v6549_v61, %v14292_v7  ;;  %v15421_v58 = vpack.c.bf16 %v14059_v54, %v14053_v51  ;;  %v6454_v24 = vmul.f32 %v6358_v53, %v14316_v40  ;;  %v6461_v32 = vmul.f32 %v6365_v34, %v14324_v55 }
 0xa2f   : > { %v6456_v23 = vmul.f32 %v6360_v31, %v14328_v21  ;;  %v14362_v28 = vpop.f32.mrb[124].mxu1  ;;  %v6359_v14 = vmul.f32 %v14348_v36, %v14348_v36  ;;  %v6361_v61 = vmul.f32 %v14352_v47, %v14352_v47  ;;  %v14370_v9 = vadd.f32 %v15423_v57, %v13836_v4  ;;  %v15425_v31 = vld [vmem:[#allocation47_spill] sm:$0xff] }
 0xa30   : > { %7470 = vmatmul.mubr.bf16.gmra.mrb[116].mxu0 %v15421_v58  ;;  %15422 = vst [vmem:[#allocation66_spill] sm:$0xff] %v14362_v28  ;;  %v6741_v52 = vmul.f32 0.7978846, %v6645_v0  ;;  %v14372_v51 = vpop.f32.mrb[125].mxu1  ;;  %v6550_v54 = vmul.f32 0.044715, %v6454_v24  ;;  %v14376_v58 = vadd.f32 %v15425_v31, %v13836_v4 }
 0xa31   : > { %15424 = vst [vmem:[#allocation43_spill] sm:$0xff] %v14372_v51  ;;  %v6557_v53 = vmul.f32 0.044715, %v6461_v32  ;;  %v6552_v34 = vmul.f32 0.044715, %v6456_v23  ;;  %v6455_v0 = vmul.f32 %v6359_v14, %v14348_v36  ;;  %v6457_v28 = vmul.f32 %v6361_v61, %v14352_v47  ;;  %v14382_v42 = vpop.f32.mrb[126].mxu1 }
 0xa32   : > { %10810 = vtanh.f32 %v6741_v52  ;;  %v6368_v1 = vmul.f32 %v14370_v9, %v14370_v9  ;;  %15426 = vst [vmem:[#allocation47_spill] sm:$0xff] %v14382_v42  ;;  %v10803_v57 = vpop.eup %10802  ;;  %v6646_v51 = vadd.f32 %v6550_v54, %v14316_v40  ;;  %v15427_v23 = vld [vmem:[#allocation40_spill] sm:$0xff]  ;;  %v14388_v18 = vpop.f32.mrb[127].mxu1  ;;  %v6362_v54 = vmul.f32 %v14376_v58, %v14376_v58 }
 0xa33   : > { %v6653_v24 = vadd.f32 %v6557_v53, %v14324_v55  ;;  %v6648_v32 = vadd.f32 %v6552_v34, %v14328_v21  ;;  %v6910_v31 = vadd.f32 1.0, %v15427_v23  ;;  %15428 = vst [vmem:[#allocation40_spill] sm:$0xff] %v14388_v18  ;;  %v6927_v52 = vadd.f32 1.0, %v10803_v57 }
 0xa34   : > { %v6551_v14 = vmul.f32 0.044715, %v6455_v0  ;;  %v6553_v6 = vmul.f32 0.044715, %v6457_v28  ;;  %v6464_v61 = vmul.f32 %v6368_v1, %v14370_v9  ;;  %v14391_v43 = vpop.eup %10804  ;;  %v6742_v38 = vmul.f32 0.7978846, %v6646_v51 }
 0xa35   : > { %v6749_v42 = vmul.f32 0.7978846, %v6653_v24  ;;  %v6744_v17 = vmul.f32 0.7978846, %v6648_v32  ;;  %v10807_v53 = vpop.eup %10806  ;;  %v7023_v40 = vmul.f32 0.5, %v6927_v52  ;;  %v15429_v28 = vld [vmem:[#allocation45_spill] sm:$0xff] }
 0xa36   : > { %v6647_v34 = vadd.f32 %v6551_v14, %v14348_v36  ;;  %v6649_v23 = vadd.f32 %v6553_v6, %v14352_v47  ;;  %v6560_v18 = vmul.f32 0.044715, %v6464_v61  ;;  %v6930_v57 = vadd.f32 1.0, %v10807_v53 }
 0xa37   : > { %10812 = vtanh.f32 %v6742_v38  ;;  %v6913_v0 = vadd.f32 1.0, %v15429_v28  ;;  %v7006_v1 = vmul.f32 0.5, %v6910_v31  ;;  %v14398_v29 = vpop.f32.mrb[128].mxu1  ;;  %v14400_v51 = vpop.eup %10808  ;;  %v14403_v24 = vmul.f32 %v7023_v40, %v14224_v46  ;;  %v15434_v28 = vld [vmem:[#allocation35_spill] sm:$0xff]  ;;  %v15435_v40 = vld [vmem:[#allocation44_spill] sm:$0xff] }
 0xa38   : > { %10814 = vtanh.f32 %v6749_v42  ;;  %v6743_v32 = vmul.f32 0.7978846, %v6647_v34  ;;  %v6745_v52 = vmul.f32 0.7978846, %v6649_v23  ;;  %v14405_v5 = vpop.f32.mrb[129].mxu1  ;;  %v14407_v14 = vpop.f32.mrb[104].mxu0  ;;  %v6656_v38 = vadd.f32 %v6560_v18, %v14370_v9 }
 0xa39   : > { %15430 = vst [vmem:[#allocation45_spill] sm:$0xff] %v14405_v5  ;;  %15431 = vst [vmem:[#allocation67_spill] sm:$0xff] %v14407_v14  ;;  %v7026_v6 = vmul.f32 0.5, %v6930_v57  ;;  %10816 = vtanh.f32 %v6744_v17  ;;  %v7009_v61 = vmul.f32 0.5, %v6913_v0  ;;  %v14410_v31 = vpop.f32.mrb[130].mxu1  ;;  %v14412_v53 = vpop.f32.mrb[105].mxu0  ;;  %v7102_v46 = vmul.f32 %v7006_v1, %v15434_v28 }
 0xa3a   : > { %15432 = vst [vmem:[#allocation68_spill] sm:$0xff] %v14410_v31  ;;  %15433 = vst [vmem:[#allocation69_spill] sm:$0xff] %v14412_v53  ;;  %10818 = vtanh.f32 %v6743_v32  ;;  %v6458_v42 = vmul.f32 %v6362_v54, %v14376_v58  ;;  %v6911_v34 = vadd.f32 1.0, %v15435_v40  ;;  %v14417_v23 = vpop.f32.mrb[131].mxu1  ;;  %v14419_v5 = vpop.f32.mrb[106].mxu0  ;;  %v15438_v57 = vld [vmem:[#allocation37_spill] sm:$0xff]  ;;  %v14430_v40 = vadd.f32 %v14154_v30, %v13828_v27 }
 0xa3b   : > { %15436 = vst [vmem:[#allocation35_spill] sm:$0xff] %v14417_v23  ;;  %15437 = vst [vmem:[#allocation44_spill] sm:$0xff] %v14419_v5  ;;  %v14422_v17 = vmul.f32 %v7026_v6, %v14244_v33  ;;  %10820 = vtanh.f32 %v6745_v52  ;;  %v6752_v18 = vmul.f32 0.7978846, %v6656_v38  ;;  %v7105_v0 = vmul.f32 %v7009_v61, %v15438_v57  ;;  %v14425_v31 = vpop.f32.mrb[107].mxu0  ;;  %v15440_v1 = vld [vmem:[#allocation48_spill] sm:$0xff] }
 0xa3c   : > { %15439 = vst [vmem:[#allocation37_spill] sm:$0xff] %v14425_v31  ;;  %v10811_v32 = vpop.eup %10810  ;;  %v6554_v53 = vmul.f32 0.044715, %v6458_v42  ;;  %v6914_v28 = vadd.f32 1.0, %v15440_v1  ;;  %v7007_v54 = vmul.f32 0.5, %v6911_v34  ;;  %v15441_v61 = vld [vmem:[#allocation36_spill] sm:$0xff]  ;;  %v6363_v42 = vmul.f32 %v14430_v40, %v14430_v40 }
 0xa3d   : > { %v6933_v33 = vadd.f32 1.0, %v10811_v32  ;;  %10822 = vtanh.f32 %v6752_v18  ;;  %v7192_v52 = vpack.c.bf16 %v7105_v0, %v7102_v46  ;;  %v14440_v30 = vadd.f32 %v14162_v8, %v13832_v13  ;;  %v15444_v32 = vld [vmem:[#allocation38_spill] sm:$0xff]  ;;  %v15450_v23 = vld [vmem:[#allocation39_spill] sm:$0xff] }
 0xa3e   : > { %v6650_v6 = vadd.f32 %v6554_v53, %v14376_v58  ;;  %v7010_v38 = vmul.f32 0.5, %v6914_v28  ;;  %v7103_v57 = vmul.f32 %v7007_v54, %v15441_v61  ;;  %v14444_v34 = vadd.f32 %v14169_v49, %v13828_v27 }
 0xa3f   : > { %v7029_v1 = vmul.f32 0.5, %v6933_v33  ;;  %7477 = vmatprep.mubr.bf16.mxu0 %v7192_v52  ;;  %v14448_v46 = vadd.f32 %v14177_v37, %v13832_v13  ;;  %v14450_v53 = vpop.f32.mrb[132].mxu1  ;;  %v15443_v0 = vpack.c.bf16 %v14137_v20, %v14074_v44  ;;  %v6459_v8 = vmul.f32 %v6363_v42, %v14430_v40 }
 0xa40   : > { %15442 = vst [vmem:[#allocation48_spill] sm:$0xff] %v14450_v53  ;;  %v6746_v18 = vmul.f32 0.7978846, %v6650_v6  ;;  %v7106_v28 = vmul.f32 %v7010_v38, %v15444_v32  ;;  %v6916_v54 = vadd.f32 1.0, %v14181_v59  ;;  %v14458_v33 = vpop.f32.mrb[133].mxu1  ;;  %v6364_v52 = vmul.f32 %v14440_v30, %v14440_v30 }
 0xa41   : > { %7478 = vmatmul.mubr.bf16.gmra.mrb[120].mxu0 %v15443_v0  ;;  %15445 = vst [vmem:[#allocation36_spill] sm:$0xff] %v14458_v33  ;;  %v14460_v49 = vpop.eup %10812  ;;  %v14463_v37 = vmul.f32 %v7029_v1, %v14292_v7  ;;  %v6366_v20 = vmul.f32 %v14444_v34, %v14444_v34  ;;  %v6367_v44 = vmul.f32 %v14448_v46, %v14448_v46  ;;  %v14471_v6 = vpop.f32.mrb[134].mxu1  ;;  %v6555_v61 = vmul.f32 0.044715, %v6459_v8 }
 0xa42   : > { %15446 = vst [vmem:[#allocation38_spill] sm:$0xff] %v14471_v6  ;;  %v10815_v38 = vpop.eup %10814  ;;  %10824 = vtanh.f32 %v6746_v18  ;;  %v7193_v59 = vpack.c.bf16 %v7106_v28, %v7103_v57  ;;  %v6919_v42 = vadd.f32 1.0, %v14220_v3  ;;  %v14474_v0 = vpop.f32.mrb[135].mxu1  ;;  %v6460_v32 = vmul.f32 %v6364_v52, %v14440_v30 }
 0xa43   : > { %15447 = vst [vmem:[#allocation70_spill] sm:$0xff] %v14474_v0  ;;  %v10817_v7 = vpop.eup %10816  ;;  %v6941_v1 = vadd.f32 1.0, %v10815_v38  ;;  %v6462_v5 = vmul.f32 %v6366_v20, %v14444_v34  ;;  %v6463_v33 = vmul.f32 %v6367_v44, %v14448_v46  ;;  %v6651_v18 = vadd.f32 %v6555_v61, %v14430_v40  ;;  %v15449_v20 = vld [vmem:[#allocation50_spill] sm:$0xff] }
 0xa44   : > { %v14479_v53 = vpop.eup %10818  ;;  %v6936_v31 = vadd.f32 1.0, %v10817_v7  ;;  %10085 = vmatprep.mubr.bf16.mxu1 %v7193_v59  ;;  %v7012_v57 = vmul.f32 0.5, %v6916_v54  ;;  %v7015_v28 = vmul.f32 0.5, %v6919_v42  ;;  %v15448_v38 = vpack.c.bf16 %v14172_v10, %v14099_v19  ;;  %v15451_v10 = vld [vmem:[#allocation41_spill] sm:$0xff] }
 0xa45   : > { %v14482_v8 = vpop.eup %10820  ;;  %v7037_v3 = vmul.f32 0.5, %v6941_v1  ;;  %v6556_v52 = vmul.f32 0.044715, %v6460_v32  ;;  %v6558_v0 = vmul.f32 0.044715, %v6462_v5  ;;  %v14489_v44 = vadd.f32 %v15449_v20, %v13828_v27 }
 0xa46   : > { %10086 = vmatmul.mubr.bf16.gmra.mrb[148].mxu1 %v15448_v38  ;;  %v7032_v6 = vmul.f32 0.5, %v6936_v31  ;;  %v6747_v7 = vmul.f32 0.7978846, %v6651_v18  ;;  %v6559_v59 = vmul.f32 0.044715, %v6463_v33  ;;  %v7108_v61 = vmul.f32 %v7012_v57, %v15450_v23 }
 0xa47   : > { %v10823_v54 = vpop.eup %10822  ;;  %v14493_v42 = vmul.f32 %v7037_v3, %v14324_v55  ;;  %v6652_v1 = vadd.f32 %v6556_v52, %v14440_v30  ;;  %v6654_v19 = vadd.f32 %v6558_v0, %v14444_v34  ;;  %v7111_v32 = vmul.f32 %v7015_v28, %v15451_v10  ;;  %v14498_v5 = vpop.f32.mrb[136].mxu1 }
 0xa48   : > { %15452 = vst [vmem:[#allocation50_spill] sm:$0xff] %v14498_v5  ;;  %v14501_v38 = vmul.f32 %v7032_v6, %v14328_v21  ;;  %v6944_v31 = vadd.f32 1.0, %v10823_v54  ;;  %10826 = vtanh.f32 %v6747_v7  ;;  %v6655_v33 = vadd.f32 %v6559_v59, %v14448_v46  ;;  %v14504_v23 = vpop.f32.mrb[137].mxu1  ;;  %v14506_v18 = vpop.f32.mrb[108].mxu0  ;;  %v15457_v7 = vld [vmem:[#allocation51_spill] sm:$0xff] }
 0xa49   : > { %15453 = vst [vmem:[#allocation39_spill] sm:$0xff] %v14504_v23  ;;  %15454 = vst [vmem:[#allocation41_spill] sm:$0xff] %v14506_v18  ;;  %v6748_v55 = vmul.f32 0.7978846, %v6652_v1  ;;  %v6750_v57 = vmul.f32 0.7978846, %v6654_v19  ;;  %v7195_v3 = vpack.c.bf16 %v7111_v32, %v7108_v61  ;;  %v6369_v0 = vmul.f32 %v14489_v44, %v14489_v44 }
 0xa4a   : > { %v14510_v28 = vpop.f32.mrb[138].mxu1  ;;  %v14512_v52 = vpop.f32.mrb[109].mxu0  ;;  %v7040_v6 = vmul.f32 0.5, %v6944_v31  ;;  %v6751_v20 = vmul.f32 0.7978846, %v6655_v33  ;;  %v14518_v59 = vadd.f32 %v15457_v7, %v13832_v13  ;;  %v15461_v19 = vld [vmem:[#allocation52_spill] sm:$0xff]  ;;  %v14531_v32 = vadd.f32 %v14210_v35, %v13828_v27 }
 0xa4b   : > { %15455 = vst [vmem:[#allocation71_spill] sm:$0xff] %v14510_v28  ;;  %15456 = vst [vmem:[#allocation72_spill] sm:$0xff] %v14512_v52  ;;  %v14520_v54 = vpop.f32.mrb[139].mxu1  ;;  %v14522_v1 = vpop.f32.mrb[110].mxu0  ;;  %10828 = vtanh.f32 %v6748_v55  ;;  %7485 = vmatprep.mubr.bf16.mxu0 %v7195_v3  ;;  %v6465_v61 = vmul.f32 %v6369_v0, %v14489_v44  ;;  %v14527_v10 = vadd.f32 %v15461_v19, %v13836_v4 }
 0xa4c   : > { %15458 = vst [vmem:[#allocation51_spill] sm:$0xff] %v14518_v59  ;;  %15459 = vst [vmem:[#allocation73_spill] sm:$0xff] %v14520_v54  ;;  %v14533_v31 = vpop.f32.mrb[111].mxu0  ;;  %v14535_v33 = vpop.eup %10824  ;;  %v14538_v7 = vmul.f32 %v7040_v6, %v14370_v9  ;;  %10830 = vtanh.f32 %v6750_v57  ;;  %v15463_v55 = vpack.c.bf16 %v14232_v60, %v14187_v12  ;;  %v6370_v3 = vmul.f32 %v14518_v59, %v14518_v59 }
 0xa4d   : > { %15460 = vst [vmem:[#allocation74_spill] sm:$0xff] %v14522_v1  ;;  %15462 = vst [vmem:[#allocation52_spill] sm:$0xff] %v14533_v31  ;;  %v14547_v0 = vadd.f32 %v14212_v22, %v13836_v4  ;;  %10832 = vtanh.f32 %v6751_v20  ;;  %v6561_v35 = vmul.f32 0.044715, %v6465_v61  ;;  %v6377_v19 = vmul.f32 %v14527_v10, %v14527_v10 }
 0xa4e   : > { %7486 = vmatmul.mubr.bf16.gmra.mrb[124].mxu0 %v15463_v55  ;;  %v6372_v9 = vmul.f32 %v14531_v32, %v14531_v32  ;;  %v6466_v12 = vmul.f32 %v6370_v3, %v14518_v59  ;;  %v14560_v22 = vadd.f32 %v14216_v16, %v13832_v13  ;;  %v15464_v55 = vld [vmem:[#allocation53_spill] sm:$0xff]  ;;  %v6922_v16 = vadd.f32 1.0, %v14229_v25 }
 0xa4f   : > { %v6371_v60 = vmul.f32 %v14547_v0, %v14547_v0  ;;  %v6657_v6 = vadd.f32 %v6561_v35, %v14489_v44  ;;  %v6473_v20 = vmul.f32 %v6377_v19, %v14527_v10  ;;  %v14567_v21 = vadd.f32 %v15464_v55, %v13836_v4  ;;  %v14569_v57 = vpop.f32.mrb[140].mxu1 }
 0xa50   : > { %v6468_v61 = vmul.f32 %v6372_v9, %v14531_v32  ;;  %15465 = vst [vmem:[#allocation53_spill] sm:$0xff] %v14569_v57  ;;  %v6562_v3 = vmul.f32 0.044715, %v6466_v12  ;;  %v6373_v1 = vmul.f32 %v14560_v22, %v14560_v22  ;;  %v14575_v54 = vpop.f32.mrb[141].mxu1 }
 0xa51   : > { %v6467_v31 = vmul.f32 %v6371_v60, %v14547_v0  ;;  %15466 = vst [vmem:[#allocation75_spill] sm:$0xff] %v14575_v54  ;;  %v6753_v35 = vmul.f32 0.7978846, %v6657_v6  ;;  %v6569_v19 = vmul.f32 0.044715, %v6473_v20  ;;  %v6380_v9 = vmul.f32 %v14567_v21, %v14567_v21  ;;  %v14582_v18 = vpop.f32.mrb[142].mxu1 }
 0xa52   : > { %v6564_v52 = vmul.f32 0.044715, %v6468_v61  ;;  %v10827_v55 = vpop.eup %10826  ;;  %v6658_v28 = vadd.f32 %v6562_v3, %v14518_v59  ;;  %v6469_v12 = vmul.f32 %v6373_v1, %v14560_v22  ;;  %v6925_v60 = vadd.f32 1.0, %v14294_v50  ;;  %15467 = vst [vmem:[#allocation76_spill] sm:$0xff] %v14582_v18  ;;  %v14586_v20 = vpop.f32.mrb[143].mxu1 }
 0xa53   : > { %v6563_v57 = vmul.f32 0.044715, %v6467_v31  ;;  %v6939_v23 = vadd.f32 1.0, %v10827_v55  ;;  %10834 = vtanh.f32 %v6753_v35  ;;  %v6665_v25 = vadd.f32 %v6569_v19, %v14527_v10  ;;  %15468 = vst [vmem:[#allocation77_spill] sm:$0xff] %v14586_v20 }
 0xa54   : > { %v6660_v6 = vadd.f32 %v6564_v52, %v14531_v32  ;;  %v6754_v61 = vmul.f32 0.7978846, %v6658_v28  ;;  %v6565_v5 = vmul.f32 0.044715, %v6469_v12  ;;  %v6476_v31 = vmul.f32 %v6380_v9, %v14567_v21 }
 0xa55   : > { %v6659_v54 = vadd.f32 %v6563_v57, %v14547_v0  ;;  %v14590_v3 = vpop.eup %10828  ;;  %v7035_v1 = vmul.f32 0.5, %v6939_v23  ;;  %v6761_v50 = vmul.f32 0.7978846, %v6665_v25  ;;  %v7018_v18 = vmul.f32 0.5, %v6922_v16  ;;  %v15469_v25 = vld [vmem:[#allocation42_spill] sm:$0xff] }
 0xa56   : > { %v6756_v59 = vmul.f32 0.7978846, %v6660_v6  ;;  %v10831_v55 = vpop.eup %10830  ;;  %10836 = vtanh.f32 %v6754_v61  ;;  %v6661_v19 = vadd.f32 %v6565_v5, %v14560_v22  ;;  %v6572_v52 = vmul.f32 0.044715, %v6476_v31 }
 0xa57   : > { %v6755_v35 = vmul.f32 0.7978846, %v6659_v54  ;;  %v14593_v14 = vpop.eup %10832  ;;  %v14596_v28 = vmul.f32 %v7035_v1, %v14430_v40  ;;  %v6942_v57 = vadd.f32 1.0, %v10831_v55  ;;  %10838 = vtanh.f32 %v6761_v50  ;;  %v15470_v54 = vld [vmem:[#allocation49_spill] sm:$0xff] }
 0xa58   : > { %v7021_v9 = vmul.f32 0.5, %v6925_v60  ;;  %10840 = vtanh.f32 %v6756_v59  ;;  %v6757_v12 = vmul.f32 0.7978846, %v6661_v19  ;;  %v6668_v23 = vadd.f32 %v6572_v52, %v14567_v21 }
 0xa59   : > { %v7114_v16 = vmul.f32 %v7018_v18, %v15469_v25  ;;  %v7038_v6 = vmul.f32 0.5, %v6942_v57  ;;  %10842 = vtanh.f32 %v6755_v35  ;;  %v14603_v5 = vadd.f32 %v14226_v62, %v13836_v4 }
 0xa5a   : > { %v7117_v61 = vmul.f32 %v7021_v9, %v15470_v54  ;;  %10844 = vtanh.f32 %v6757_v12  ;;  %v6764_v40 = vmul.f32 0.7978846, %v6668_v23  ;;  %v6923_v31 = vadd.f32 1.0, %v14276_v63 }
 0xa5b   : > { %v6926_v60 = vadd.f32 1.0, %v14334_v39  ;;  %v14608_v59 = vmul.f32 %v7038_v6, %v14444_v34  ;;  %v6374_v18 = vmul.f32 %v14603_v5, %v14603_v5  ;;  %v14614_v50 = vadd.f32 %v14246_v48, %v13828_v27 }
 0xa5c   : > { %v7198_v1 = vpack.c.bf16 %v7117_v61, %v7114_v16  ;;  %10846 = vtanh.f32 %v6764_v40  ;;  %v7019_v62 = vmul.f32 0.5, %v6923_v31  ;;  %v14618_v35 = vadd.f32 %v14253_v41, %v13832_v13  ;;  %v15473_v41 = vld [vmem:[#allocation46_spill] sm:$0xff] }
 0xa5d   : > { %v7022_v55 = vmul.f32 0.5, %v6926_v60  ;;  %v10835_v63 = vpop.eup %10834  ;;  %v6470_v34 = vmul.f32 %v6374_v18, %v14603_v5  ;;  %v6375_v19 = vmul.f32 %v14614_v50, %v14614_v50  ;;  %v14627_v48 = vadd.f32 %v14260_v56, %v13828_v27 }
 0xa5e   : > { %15471 = vst [vmem:[#allocation42_spill] sm:$0xff] %v14618_v35  ;;  %7493 = vmatprep.mubr.bf16.mxu0 %v7198_v1  ;;  %v6945_v52 = vadd.f32 1.0, %v10835_v63  ;;  %v15472_v57 = vpack.c.bf16 %v14287_v11, %v14263_v15  ;;  %v7115_v9 = vmul.f32 %v7019_v62, %v15473_v41  ;;  %v6376_v23 = vmul.f32 %v14618_v35, %v14618_v35 }
 0xa5f   : > { %v7118_v12 = vmul.f32 %v7022_v55, %v14195_v2  ;;  %v6566_v25 = vmul.f32 0.044715, %v6470_v34  ;;  %v6471_v16 = vmul.f32 %v6375_v19, %v14614_v50  ;;  %v6378_v6 = vmul.f32 %v14627_v48, %v14627_v48 }
 0xa60   : > { %7494 = vmatmul.mubr.bf16.gmra.mrb[128].mxu0 %v15472_v57  ;;  %v14641_v56 = vadd.f32 %v14269_v26, %v13832_v13  ;;  %v14643_v54 = vpop.eup %10836  ;;  %v7041_v15 = vmul.f32 0.5, %v6945_v52  ;;  %v6472_v61 = vmul.f32 %v6376_v23, %v14618_v35  ;;  %v6928_v2 = vadd.f32 1.0, %v14391_v43  ;;  %v15475_v57 = vld [vmem:[#allocation56_spill] sm:$0xff] }
 0xa61   : > { %v7199_v11 = vpack.c.bf16 %v7118_v12, %v7115_v9  ;;  %v10839_v40 = vpop.eup %10838  ;;  %v6662_v31 = vadd.f32 %v6566_v25, %v14603_v5  ;;  %v6567_v60 = vmul.f32 0.044715, %v6471_v16  ;;  %v6474_v1 = vmul.f32 %v6378_v6, %v14627_v48 }
 0xa62   : > { %15474 = vst [vmem:[#allocation49_spill] sm:$0xff] %v14641_v56  ;;  %v6379_v18 = vmul.f32 %v14641_v56, %v14641_v56  ;;  %v10841_v62 = vpop.eup %10840  ;;  %v14652_v26 = vmul.f32 %v7041_v15, %v14489_v44  ;;  %v6953_v55 = vadd.f32 1.0, %v10839_v40  ;;  %v6568_v63 = vmul.f32 0.044715, %v6472_v61 }
 0xa63   : > { %10089 = vmatprep.mubr.bf16.mxu1 %v7199_v11  ;;  %v6931_v34 = vadd.f32 1.0, %v14400_v51  ;;  %v14655_v19 = vpop.eup %10842  ;;  %v6948_v43 = vadd.f32 1.0, %v10841_v62  ;;  %v6758_v52 = vmul.f32 0.7978846, %v6662_v31  ;;  %v15476_v41 = vpack.c.bf16 %v14337_v45, %v15475_v57 }
 0xa64   : > { %v6663_v9 = vadd.f32 %v6567_v60, %v14614_v50  ;;  %v6570_v12 = vmul.f32 0.044715, %v6474_v1  ;;  %v14661_v23 = vpop.eup %10844  ;;  %v7049_v44 = vmul.f32 0.5, %v6953_v55  ;;  %v6664_v25 = vadd.f32 %v6568_v63, %v14618_v35 }
 0xa65   : > { %10090 = vmatmul.mubr.bf16.gmra.mrb[152].mxu1 %v15476_v41  ;;  %v6475_v16 = vmul.f32 %v6379_v18, %v14641_v56  ;;  %v7024_v6 = vmul.f32 0.5, %v6928_v2  ;;  %v7044_v51 = vmul.f32 0.5, %v6948_v43  ;;  %10848 = vtanh.f32 %v6758_v52  ;;  %v15477_v18 = vld [vmem:[#allocation54_spill] sm:$0xff]  ;;  %v15478_v43 = vld [vmem:[#allocation55_spill] sm:$0xff] }
 0xa66   : > { %v6759_v15 = vmul.f32 0.7978846, %v6663_v9  ;;  %v6666_v11 = vadd.f32 %v6570_v12, %v14627_v48  ;;  %v10847_v61 = vpop.eup %10846  ;;  %v14667_v45 = vmul.f32 %v7049_v44, %v14527_v10  ;;  %v6760_v40 = vmul.f32 0.7978846, %v6664_v25  ;;  %v15480_v12 = vld [vmem:[#allocation58_spill] sm:$0xff]  ;;  %v15482_v25 = vld [vmem:[#allocation59_spill] sm:$0xff] }
 0xa67   : > { %v6571_v31 = vmul.f32 0.044715, %v6475_v16  ;;  %v7027_v60 = vmul.f32 0.5, %v6931_v34  ;;  %v14670_v1 = vmul.f32 %v7044_v51, %v14531_v32  ;;  %v6956_v62 = vadd.f32 1.0, %v10847_v61  ;;  %v15479_v34 = vld [vmem:[#allocation57_spill] sm:$0xff]  ;;  %v15484_v61 = vld [vmem:[#allocation62_spill] sm:$0xff] }
 0xa68   : > { %10850 = vtanh.f32 %v6759_v15  ;;  %v6762_v55 = vmul.f32 0.7978846, %v6666_v11  ;;  %v7120_v63 = vmul.f32 %v7024_v6, %v15477_v18  ;;  %v14679_v41 = vadd.f32 %v15479_v34, %v13828_v27  ;;  %v15483_v15 = vld [vmem:[#allocation60_spill] sm:$0xff] }
 0xa69   : > { %10852 = vtanh.f32 %v6760_v40  ;;  %v6667_v2 = vadd.f32 %v6571_v31, %v14641_v56  ;;  %v7123_v52 = vmul.f32 %v7027_v60, %v15478_v43  ;;  %v7052_v57 = vmul.f32 0.5, %v6956_v62  ;;  %v15485_v60 = vld [vmem:[#allocation63_spill] sm:$0xff] }
 0xa6a   : > { %10854 = vtanh.f32 %v6762_v55  ;;  %v14683_v44 = vadd.f32 %v15480_v12, %v13832_v13  ;;  %v14687_v16 = vadd.f32 %v15482_v25, %v13836_v4  ;;  %v6381_v51 = vmul.f32 %v14679_v41, %v14679_v41 }
 0xa6b   : > { %v6763_v32 = vmul.f32 0.7978846, %v6667_v2  ;;  %v7201_v9 = vpack.c.bf16 %v7123_v52, %v7120_v63  ;;  %v14690_v6 = vmul.f32 %v7052_v57, %v14567_v21  ;;  %v14696_v11 = vadd.f32 %v15483_v15, %v13828_v27 }
 0xa6c   : > { %15481 = vst [vmem:[#allocation46_spill] sm:$0xff] %v14683_v44  ;;  %v14700_v40 = vadd.f32 %v15484_v61, %v13836_v4  ;;  %v6382_v31 = vmul.f32 %v14683_v44, %v14683_v44  ;;  %v6389_v21 = vmul.f32 %v14687_v16, %v14687_v16  ;;  %v14708_v62 = vadd.f32 %v15485_v60, %v13832_v13 }
 0xa6d   : > { %10856 = vtanh.f32 %v6763_v32  ;;  %7501 = vmatprep.mubr.bf16.mxu0 %v7201_v9  ;;  %v15486_v2 = vpack.c.bf16 %v14422_v17, %v14403_v24  ;;  %v6477_v18 = vmul.f32 %v6381_v51, %v14679_v41  ;;  %v6384_v63 = vmul.f32 %v14696_v11, %v14696_v11  ;;  %v15487_v32 = vld [vmem:[#allocation64_spill] sm:$0xff] }
 0xa6e   : > { %v6383_v43 = vmul.f32 %v14700_v40, %v14700_v40  ;;  %v6478_v52 = vmul.f32 %v6382_v31, %v14683_v44  ;;  %v6485_v57 = vmul.f32 %v6389_v21, %v14687_v16  ;;  %v6385_v34 = vmul.f32 %v14708_v62, %v14708_v62 }
 0xa6f   : > { %7502 = vmatmul.mubr.bf16.gmra.mrb[132].mxu0 %v15486_v2  ;;  %v14726_v9 = vadd.f32 %v15487_v32, %v13836_v4  ;;  %v14728_v24 = vpop.eup %10848  ;;  %v6573_v17 = vmul.f32 0.044715, %v6477_v18  ;;  %v6480_v12 = vmul.f32 %v6384_v63, %v14696_v11  ;;  %v6934_v51 = vadd.f32 1.0, %v14460_v49 }
 0xa70   : > { %v6479_v25 = vmul.f32 %v6383_v43, %v14700_v40  ;;  %v6574_v15 = vmul.f32 0.044715, %v6478_v52  ;;  %v6581_v61 = vmul.f32 0.044715, %v6485_v57  ;;  %v6481_v31 = vmul.f32 %v6385_v34, %v14708_v62 }
 0xa71   : > { %v6392_v21 = vmul.f32 %v14726_v9, %v14726_v9  ;;  %v6669_v2 = vadd.f32 %v6573_v17, %v14679_v41  ;;  %v6576_v32 = vmul.f32 0.044715, %v6480_v12  ;;  %v6937_v18 = vadd.f32 1.0, %v14482_v8 }
 0xa72   : > { %v10851_v60 = vpop.eup %10850  ;;  %v6575_v55 = vmul.f32 0.044715, %v6479_v25  ;;  %v6670_v43 = vadd.f32 %v6574_v15, %v14683_v44  ;;  %v6677_v49 = vadd.f32 %v6581_v61, %v14687_v16  ;;  %v6577_v52 = vmul.f32 0.044715, %v6481_v31 }
 0xa73   : > { %v14738_v10 = vpop.eup %10852  ;;  %v6951_v63 = vadd.f32 1.0, %v10851_v60  ;;  %v6765_v34 = vmul.f32 0.7978846, %v6669_v2  ;;  %v6672_v39 = vadd.f32 %v6576_v32, %v14696_v11  ;;  %v6488_v17 = vmul.f32 %v6392_v21, %v14726_v9 }
 0xa74   : > { %v10855_v57 = vpop.eup %10854  ;;  %v6671_v20 = vadd.f32 %v6575_v55, %v14700_v40  ;;  %v6766_v56 = vmul.f32 0.7978846, %v6670_v43  ;;  %v6773_v8 = vmul.f32 0.7978846, %v6677_v49  ;;  %v6673_v15 = vadd.f32 %v6577_v52, %v14708_v62 }
 0xa75   : > { %v7047_v12 = vmul.f32 0.5, %v6951_v63  ;;  %v6954_v25 = vadd.f32 1.0, %v10855_v57  ;;  %10858 = vtanh.f32 %v6765_v34  ;;  %v6768_v35 = vmul.f32 0.7978846, %v6672_v39  ;;  %v15488_v39 = vld [vmem:[#allocation65_spill] sm:$0xff] }
 0xa76   : > { %v6767_v60 = vmul.f32 0.7978846, %v6671_v20  ;;  %10860 = vtanh.f32 %v6766_v56  ;;  %v6584_v2 = vmul.f32 0.044715, %v6488_v17  ;;  %v6769_v55 = vmul.f32 0.7978846, %v6673_v15 }
 0xa77   : > { %v14746_v44 = vpop.eup %10856  ;;  %v14749_v61 = vmul.f32 %v7047_v12, %v14614_v50  ;;  %v7050_v31 = vmul.f32 0.5, %v6954_v25  ;;  %10862 = vtanh.f32 %v6773_v8  ;;  %v7030_v21 = vmul.f32 0.5, %v6934_v51  ;;  %v15489_v50 = vld [vmem:[#allocation61_spill] sm:$0xff]  ;;  %v15490_v17 = vld [vmem:[#allocation66_spill] sm:$0xff]  ;;  %v15492_v8 = vld [vmem:[#allocation47_spill] sm:$0xff] }
 0xa78   : > { %v7033_v32 = vmul.f32 0.5, %v6937_v18  ;;  %10864 = vtanh.f32 %v6768_v35  ;;  %v6680_v20 = vadd.f32 %v6584_v2, %v14726_v9  ;;  %v14757_v43 = vadd.f32 %v15488_v39, %v13836_v4  ;;  %v15493_v2 = vld [vmem:[#allocation40_spill] sm:$0xff] }
 0xa79   : > { %v14752_v63 = vmul.f32 %v7050_v31, %v14627_v48  ;;  %10866 = vtanh.f32 %v6767_v60  ;;  %v7126_v49 = vmul.f32 %v7030_v21, %v15489_v50  ;;  %v6935_v52 = vadd.f32 1.0, %v14479_v53  ;;  %v15491_v53 = vld [vmem:[#allocation43_spill] sm:$0xff] }
 0xa7a   : > { %v7129_v56 = vmul.f32 %v7033_v32, %v14352_v47  ;;  %10868 = vtanh.f32 %v6769_v55  ;;  %v6776_v48 = vmul.f32 0.7978846, %v6680_v20  ;;  %v6386_v35 = vmul.f32 %v14757_v43, %v14757_v43 }
 0xa7b   : > { %v7212_v51 = vpack.c.bf16 %v14752_v63, %v14749_v61  ;;  %v6938_v57 = vadd.f32 1.0, %v14535_v33  ;;  %v7031_v34 = vmul.f32 0.5, %v6935_v52  ;;  %v14769_v12 = vadd.f32 %v15490_v17, %v13828_v27 }
 0xa7c   : > { %v7204_v18 = vpack.c.bf16 %v7129_v56, %v7126_v49  ;;  %10870 = vtanh.f32 %v6776_v48  ;;  %v6482_v47 = vmul.f32 %v6386_v35, %v14757_v43  ;;  %v14774_v25 = vadd.f32 %v15491_v53, %v13832_v13 }
 0xa7d   : > { %v14778_v60 = vadd.f32 %v15492_v8, %v13828_v27  ;;  %v7034_v15 = vmul.f32 0.5, %v6938_v57  ;;  %v7127_v33 = vmul.f32 %v7031_v34, %v14348_v36  ;;  %v6387_v31 = vmul.f32 %v14769_v12, %v14769_v12 }
 0xa7e   : > { %7509 = vmatprep.mubr.bf16.mxu0 %v7204_v18  ;;  %v14785_v55 = vadd.f32 %v15493_v2, %v13832_v13  ;;  %v6578_v21 = vmul.f32 0.044715, %v6482_v47  ;;  %v15494_v32 = vpack.c.bf16 %v14501_v38, %v14463_v37  ;;  %v6388_v20 = vmul.f32 %v14774_v25, %v14774_v25 }
 0xa7f   : > { %v6390_v39 = vmul.f32 %v14778_v60, %v14778_v60  ;;  %v6940_v36 = vadd.f32 1.0, %v14590_v3  ;;  %v10859_v50 = vpop.eup %10858  ;;  %v7130_v49 = vmul.f32 %v7034_v15, %v14376_v58  ;;  %v6483_v56 = vmul.f32 %v6387_v31, %v14769_v12 }
 0xa80   : > { %7510 = vmatmul.mubr.bf16.gmra.mrb[136].mxu0 %v15494_v32  ;;  %v6391_v52 = vmul.f32 %v14785_v55, %v14785_v55  ;;  %v6943_v48 = vadd.f32 1.0, %v14593_v14  ;;  %v14800_v37 = vpop.eup %10860  ;;  %v6957_v38 = vadd.f32 1.0, %v10859_v50  ;;  %v6674_v35 = vadd.f32 %v6578_v21, %v14757_v43 }
 0xa81   : > { %v6484_v18 = vmul.f32 %v6388_v20, %v14774_v25  ;;  %v6486_v57 = vmul.f32 %v6390_v39, %v14778_v60  ;;  %v10863_v3 = vpop.eup %10862  ;;  %v7205_v34 = vpack.c.bf16 %v7130_v49, %v7127_v33  ;;  %v6579_v17 = vmul.f32 0.044715, %v6483_v56 }
 0xa82   : > { %v6487_v58 = vmul.f32 %v6391_v52, %v14785_v55  ;;  %v7036_v47 = vmul.f32 0.5, %v6940_v36  ;;  %v10865_v53 = vpop.eup %10864  ;;  %v7053_v8 = vmul.f32 0.5, %v6957_v38  ;;  %v6965_v15 = vadd.f32 1.0, %v10863_v3 }
 0xa83   : > { %v6770_v31 = vmul.f32 0.7978846, %v6674_v35  ;;  %v6580_v14 = vmul.f32 0.044715, %v6484_v18  ;;  %v14806_v2 = vpop.eup %10866  ;;  %v6960_v32 = vadd.f32 1.0, %v10865_v53  ;;  %10093 = vmatprep.mubr.bf16.mxu1 %v7205_v34  ;;  %v6675_v21 = vadd.f32 %v6579_v17, %v14769_v12 }
 0xa84   : > { %v6582_v20 = vmul.f32 0.044715, %v6486_v57  ;;  %v6583_v50 = vmul.f32 0.044715, %v6487_v58  ;;  %v14809_v39 = vpop.eup %10868  ;;  %v14812_v33 = vmul.f32 %v7053_v8, %v14679_v41  ;;  %v7061_v49 = vmul.f32 0.5, %v6965_v15 }
 0xa85   : > { %10872 = vtanh.f32 %v6770_v31  ;;  %v15495_v36 = vpack.c.bf16 %v14538_v7, %v14493_v42  ;;  %v6676_v56 = vadd.f32 %v6580_v14, %v14774_v25  ;;  %v7056_v52 = vmul.f32 0.5, %v6960_v32 }
 0xa86   : > { %v6771_v38 = vmul.f32 0.7978846, %v6675_v21  ;;  %v6678_v35 = vadd.f32 %v6582_v20, %v14778_v60  ;;  %v6679_v18 = vadd.f32 %v6583_v50, %v14785_v55  ;;  %v10871_v57 = vpop.eup %10870  ;;  %v14821_v3 = vmul.f32 %v7061_v49, %v14687_v16  ;;  %v15498_v21 = vld [vmem:[#allocation68_spill] sm:$0xff]  ;;  %v15499_v50 = vld [vmem:[#allocation69_spill] sm:$0xff] }
 0xa87   : > { %10094 = vmatmul.mubr.bf16.gmra.mrb[156].mxu1 %v15495_v36  ;;  %v6772_v41 = vmul.f32 0.7978846, %v6676_v56  ;;  %v7039_v34 = vmul.f32 0.5, %v6943_v48  ;;  %v7132_v17 = vmul.f32 %v7036_v47, %v14440_v30  ;;  %v14825_v58 = vmul.f32 %v7056_v52, %v14696_v11  ;;  %v15496_v30 = vld [vmem:[#allocation45_spill] sm:$0xff] }
 0xa88   : > { %v6968_v42 = vadd.f32 1.0, %v10871_v57  ;;  %10874 = vtanh.f32 %v6771_v38  ;;  %v6774_v7 = vmul.f32 0.7978846, %v6678_v35  ;;  %v6775_v53 = vmul.f32 0.7978846, %v6679_v18  ;;  %v15501_v38 = vld [vmem:[#allocation44_spill] sm:$0xff] }
 0xa89   : > { %10876 = vtanh.f32 %v6772_v41  ;;  %v7135_v8 = vmul.f32 %v7039_v34, %v14448_v46  ;;  %v14830_v15 = vadd.f32 %v14398_v29, %v13828_v27  ;;  %v14836_v11 = vadd.f32 %v15496_v30, %v13832_v13  ;;  %v15497_v46 = vld [vmem:[#allocation67_spill] sm:$0xff] }
 0xa8a   : > { %v7064_v48 = vmul.f32 0.5, %v6968_v42  ;;  %10878 = vtanh.f32 %v6774_v7  ;;  %v14842_v14 = vadd.f32 %v15497_v46, %v13836_v4  ;;  %v14851_v20 = vadd.f32 %v15498_v21, %v13828_v27 }
 0xa8b   : > { %10880 = vtanh.f32 %v6775_v53  ;;  %v7207_v47 = vpack.c.bf16 %v7135_v8, %v7132_v17  ;;  %v6393_v31 = vmul.f32 %v14830_v15, %v14830_v15  ;;  %v6394_v32 = vmul.f32 %v14836_v11, %v14836_v11 }
 0xa8c   : > { %v14845_v29 = vmul.f32 %v7064_v48, %v14726_v9  ;;  %v14855_v49 = vadd.f32 %v15499_v50, %v13836_v4  ;;  %v6401_v56 = vmul.f32 %v14842_v14, %v14842_v14  ;;  %v15500_v9 = vld [vmem:[#allocation35_spill] sm:$0xff]  ;;  %v14866_v35 = vadd.f32 %v15501_v38, %v13836_v4 }
 0xa8d   : > { %7517 = vmatprep.mubr.bf16.mxu0 %v7207_v47  ;;  %v6489_v36 = vmul.f32 %v6393_v31, %v14830_v15  ;;  %v14862_v52 = vadd.f32 %v15500_v9, %v13832_v13  ;;  %v15502_v57 = vpack.c.bf16 %v14608_v59, %v14596_v28  ;;  %v6490_v41 = vmul.f32 %v6394_v32, %v14836_v11 }
 0xa8e   : > { %v6396_v34 = vmul.f32 %v14851_v20, %v14851_v20  ;;  %v6395_v17 = vmul.f32 %v14855_v49, %v14855_v49  ;;  %v6497_v53 = vmul.f32 %v6401_v56, %v14842_v14  ;;  %v6404_v28 = vmul.f32 %v14866_v35, %v14866_v35 }
 0xa8f   : > { %7518 = vmatmul.mubr.bf16.gmra.mrb[140].mxu0 %v15502_v57  ;;  %v14878_v42 = vpop.eup %10872  ;;  %v6585_v7 = vmul.f32 0.044715, %v6489_v36  ;;  %v6397_v8 = vmul.f32 %v14862_v52, %v14862_v52  ;;  %v6586_v59 = vmul.f32 0.044715, %v6490_v41  ;;  %v6946_v47 = vadd.f32 1.0, %v14643_v54 }
 0xa90   : > { %v6492_v48 = vmul.f32 %v6396_v34, %v14851_v20  ;;  %v6491_v30 = vmul.f32 %v6395_v17, %v14855_v49  ;;  %v6593_v46 = vmul.f32 0.044715, %v6497_v53  ;;  %v6500_v21 = vmul.f32 %v6404_v28, %v14866_v35 }
 0xa91   : > { %v6681_v31 = vadd.f32 %v6585_v7, %v14830_v15  ;;  %v6493_v32 = vmul.f32 %v6397_v8, %v14862_v52  ;;  %v6682_v36 = vadd.f32 %v6586_v59, %v14836_v11  ;;  %v6949_v38 = vadd.f32 1.0, %v14661_v23 }
 0xa92   : > { %v10875_v50 = vpop.eup %10874  ;;  %v6588_v56 = vmul.f32 0.044715, %v6492_v48  ;;  %v6587_v9 = vmul.f32 0.044715, %v6491_v30  ;;  %v6689_v54 = vadd.f32 %v6593_v46, %v14842_v14  ;;  %v6596_v18 = vmul.f32 0.044715, %v6500_v21 }
 0xa93   : > { %v14893_v57 = vpop.eup %10876  ;;  %v6963_v41 = vadd.f32 1.0, %v10875_v50  ;;  %v6777_v34 = vmul.f32 0.7978846, %v6681_v31  ;;  %v6589_v17 = vmul.f32 0.044715, %v6493_v32 }
 0xa94   : > { %v10879_v7 = vpop.eup %10878  ;;  %v6778_v53 = vmul.f32 0.7978846, %v6682_v36  ;;  %v6684_v8 = vadd.f32 %v6588_v56, %v14851_v20  ;;  %v6683_v28 = vadd.f32 %v6587_v9, %v14855_v49  ;;  %v6785_v23 = vmul.f32 0.7978846, %v6689_v54  ;;  %v15503_v54 = vld [vmem:[#allocation37_spill] sm:$0xff] }
 0xa95   : > { %v14898_v16 = vpop.eup %10880  ;;  %v7059_v59 = vmul.f32 0.5, %v6963_v41  ;;  %v6966_v48 = vadd.f32 1.0, %v10879_v7  ;;  %10882 = vtanh.f32 %v6777_v34  ;;  %v6685_v31 = vadd.f32 %v6589_v17, %v14862_v52 }
 0xa96   : > { %10884 = vtanh.f32 %v6778_v53  ;;  %v6780_v30 = vmul.f32 0.7978846, %v6684_v8  ;;  %v6779_v50 = vmul.f32 0.7978846, %v6683_v28  ;;  %v6692_v36 = vadd.f32 %v6596_v18, %v14866_v35 }
 0xa97   : > { %v14902_v46 = vmul.f32 %v7059_v59, %v14769_v12  ;;  %v7062_v32 = vmul.f32 0.5, %v6966_v48  ;;  %10886 = vtanh.f32 %v6785_v23  ;;  %v6781_v21 = vmul.f32 0.7978846, %v6685_v31  ;;  %v15504_v12 = vld [vmem:[#allocation51_spill] sm:$0xff]  ;;  %v15505_v59 = vld [vmem:[#allocation48_spill] sm:$0xff] }
 0xa98   : > { %10888 = vtanh.f32 %v6780_v30  ;;  %v7042_v56 = vmul.f32 0.5, %v6946_v47  ;;  %v7045_v9 = vmul.f32 0.5, %v6949_v38  ;;  %v6788_v34 = vmul.f32 0.7978846, %v6692_v36  ;;  %v15506_v23 = vld [vmem:[#allocation36_spill] sm:$0xff] }
 0xa99   : > { %v14906_v41 = vmul.f32 %v7062_v32, %v14778_v60  ;;  %10890 = vtanh.f32 %v6779_v50  ;;  %v14910_v7 = vadd.f32 %v15503_v54, %v13836_v4  ;;  %v6947_v18 = vadd.f32 1.0, %v14655_v19  ;;  %v15507_v50 = vld [vmem:[#allocation38_spill] sm:$0xff] }
 0xa9a   : > { %10892 = vtanh.f32 %v6781_v21  ;;  %v7138_v17 = vmul.f32 %v7042_v56, %v15504_v12  ;;  %v7141_v53 = vmul.f32 %v7045_v9, %v14560_v22  ;;  %v6950_v38 = vadd.f32 1.0, %v14728_v24  ;;  %v15508_v32 = vld [vmem:[#allocation70_spill] sm:$0xff] }
 0xa9b   : > { %10894 = vtanh.f32 %v6788_v34  ;;  %v6398_v60 = vmul.f32 %v14910_v7, %v14910_v7  ;;  %v7043_v28 = vmul.f32 0.5, %v6947_v18  ;;  %v14922_v48 = vadd.f32 %v15505_v59, %v13828_v27 }
 0xa9c   : > { %v7210_v8 = vpack.c.bf16 %v7141_v53, %v7138_v17  ;;  %v14926_v22 = vadd.f32 %v15506_v23, %v13832_v13  ;;  %v7046_v30 = vmul.f32 0.5, %v6950_v38  ;;  %v14931_v31 = vadd.f32 %v15507_v50, %v13828_v27 }
 0xa9d   : > { %v6494_v19 = vmul.f32 %v6398_v60, %v14910_v7  ;;  %v14935_v24 = vadd.f32 %v15508_v32, %v13832_v13  ;;  %v7139_v36 = vmul.f32 %v7043_v28, %v14547_v0  ;;  %v6399_v21 = vmul.f32 %v14922_v48, %v14922_v48 }
 0xa9e   : > { %7525 = vmatprep.mubr.bf16.mxu0 %v7210_v8  ;;  %v6400_v56 = vmul.f32 %v14926_v22, %v14926_v22  ;;  %v6952_v9 = vadd.f32 1.0, %v14738_v10  ;;  %v15509_v12 = vpack.c.bf16 %v14670_v1, %v14652_v26  ;;  %v7142_v17 = vmul.f32 %v7046_v30, %v14603_v5 }
 0xa9f   : > { %v10883_v34 = vpop.eup %10882  ;;  %v6590_v54 = vmul.f32 0.044715, %v6494_v19  ;;  %v6402_v53 = vmul.f32 %v14931_v31, %v14931_v31  ;;  %v6403_v0 = vmul.f32 %v14935_v24, %v14935_v24  ;;  %v6495_v38 = vmul.f32 %v6399_v21, %v14922_v48 }
 0xaa0   : > { %7526 = vmatmul.mubr.bf16.gmra.mrb[144].mxu0 %v15509_v12  ;;  %v14951_v18 = vpop.eup %10884  ;;  %v6969_v60 = vadd.f32 1.0, %v10883_v34  ;;  %v6496_v10 = vmul.f32 %v6400_v56, %v14926_v22  ;;  %v6955_v8 = vadd.f32 1.0, %v14746_v44  ;;  %v7211_v1 = vpack.c.bf16 %v7142_v17, %v7139_v36 }
 0xaa1   : > { %v10887_v28 = vpop.eup %10886  ;;  %v6686_v26 = vadd.f32 %v6590_v54, %v14910_v7  ;;  %v6498_v5 = vmul.f32 %v6402_v53, %v14931_v31  ;;  %v6499_v59 = vmul.f32 %v6403_v0, %v14935_v24  ;;  %v6591_v50 = vmul.f32 0.044715, %v6495_v38 }
 0xaa2   : > { %v10889_v23 = vpop.eup %10888  ;;  %v7065_v19 = vmul.f32 0.5, %v6969_v60  ;;  %v6977_v30 = vadd.f32 1.0, %v10887_v28  ;;  %v6592_v32 = vmul.f32 0.044715, %v6496_v10  ;;  %10097 = vmatprep.mubr.bf16.mxu1 %v7211_v1  ;;  %v7048_v44 = vmul.f32 0.5, %v6952_v9 }
 0xaa3   : > { %v14959_v34 = vpop.eup %10890  ;;  %v6972_v21 = vadd.f32 1.0, %v10889_v23  ;;  %v6782_v12 = vmul.f32 0.7978846, %v6686_v26  ;;  %v6594_v56 = vmul.f32 0.044715, %v6498_v5  ;;  %v15511_v17 = vpack.c.bf16 %v14690_v6, %v14667_v45 }
 0xaa4   : > { %v14961_v47 = vpop.eup %10892  ;;  %v14964_v36 = vmul.f32 %v7065_v19, %v14830_v15  ;;  %v7073_v54 = vmul.f32 0.5, %v6977_v30  ;;  %v6687_v53 = vadd.f32 %v6591_v50, %v14922_v48  ;;  %v6688_v0 = vadd.f32 %v6592_v32, %v14926_v22  ;;  %v15513_v30 = vld [vmem:[#allocation42_spill] sm:$0xff] }
 0xaa5   : > { %10098 = vmatmul.mubr.bf16.gmra.mrb[160].mxu1 %v15511_v17  ;;  %v10895_v60 = vpop.eup %10894  ;;  %v7068_v38 = vmul.f32 0.5, %v6972_v21  ;;  %10896 = vtanh.f32 %v6782_v12  ;;  %v6690_v10 = vadd.f32 %v6594_v56, %v14931_v31  ;;  %v6595_v9 = vmul.f32 0.044715, %v6499_v59  ;;  %v15514_v32 = vld [vmem:[#allocation50_spill] sm:$0xff]  ;;  %v15515_v12 = vld [vmem:[#allocation49_spill] sm:$0xff] }
 0xaa6   : > { %15510 = vst [vmem:[#allocation56_spill] sm:$0xff] %v14964_v36  ;;  %v14973_v28 = vmul.f32 %v7073_v54, %v14842_v14  ;;  %v6980_v15 = vadd.f32 1.0, %v10895_v60  ;;  %v6783_v26 = vmul.f32 0.7978846, %v6687_v53  ;;  %v6784_v1 = vmul.f32 0.7978846, %v6688_v0 }
 0xaa7   : > { %v14976_v5 = vmul.f32 %v7068_v38, %v14851_v20  ;;  %v6786_v45 = vmul.f32 0.7978846, %v6690_v10  ;;  %v6691_v6 = vadd.f32 %v6595_v9, %v14935_v24  ;;  %v7051_v23 = vmul.f32 0.5, %v6955_v8  ;;  %v15517_v53 = vld [vmem:[#allocation41_spill] sm:$0xff]  ;;  %v15518_v60 = vld [vmem:[#allocation71_spill] sm:$0xff] }
 0xaa8   : > { %v7076_v19 = vmul.f32 0.5, %v6980_v15  ;;  %10898 = vtanh.f32 %v6783_v26  ;;  %v7144_v50 = vmul.f32 %v7048_v44, %v15513_v30  ;;  %v14982_v59 = vadd.f32 %v15514_v32, %v13828_v27  ;;  %v15516_v44 = vld [vmem:[#allocation39_spill] sm:$0xff]  ;;  %v15519_v15 = vld [vmem:[#allocation72_spill] sm:$0xff] }
 0xaa9   : > { %15512 = vst [vmem:[#allocation54_spill] sm:$0xff] %v14976_v5  ;;  %10900 = vtanh.f32 %v6784_v1  ;;  %v6787_v21 = vmul.f32 0.7978846, %v6691_v6  ;;  %v7147_v20 = vmul.f32 %v7051_v23, %v15515_v12  ;;  %v14994_v54 = vadd.f32 %v15516_v44, %v13832_v13  ;;  %v15520_v6 = vld [vmem:[#allocation73_spill] sm:$0xff] }
 0xaaa   : > { %v14988_v56 = vmul.f32 %v7076_v19, %v14866_v35  ;;  %10902 = vtanh.f32 %v6786_v45  ;;  %v6405_v8 = vmul.f32 %v14982_v59, %v14982_v59  ;;  %v14998_v0 = vadd.f32 %v15517_v53, %v13836_v4  ;;  %v15521_v19 = vld [vmem:[#allocation74_spill] sm:$0xff] }
 0xaab   : > { %10904 = vtanh.f32 %v6787_v21  ;;  %v7213_v17 = vpack.c.bf16 %v7147_v20, %v7144_v50  ;;  %v15002_v38 = vadd.f32 %v15518_v60, %v13828_v27  ;;  %v6406_v9 = vmul.f32 %v14994_v54, %v14994_v54 }
 0xaac   : > { %v6501_v10 = vmul.f32 %v6405_v8, %v14982_v59  ;;  %v15011_v26 = vadd.f32 %v15519_v15, %v13836_v4  ;;  %v6413_v1 = vmul.f32 %v14998_v0, %v14998_v0  ;;  %v15019_v23 = vadd.f32 %v15520_v6, %v13832_v13 }
 0xaad   : > { %7533 = vmatprep.mubr.bf16.mxu0 %v7213_v17  ;;  %v6408_v45 = vmul.f32 %v15002_v38, %v15002_v38  ;;  %v15023_v30 = vadd.f32 %v15521_v19, %v13836_v4  ;;  %v6502_v32 = vmul.f32 %v6406_v9, %v14994_v54  ;;  %v6958_v12 = vadd.f32 1.0, %v14800_v37 }
 0xaae   : > { %7534 = vmatmul.mubr.bf16.gmra.mrb[148].mxu0 %v7212_v51  ;;  %v6597_v50 = vmul.f32 0.044715, %v6501_v10  ;;  %v6407_v21 = vmul.f32 %v15011_v26, %v15011_v26  ;;  %v6509_v8 = vmul.f32 %v6413_v1, %v14998_v0  ;;  %v6409_v17 = vmul.f32 %v15019_v23, %v15019_v23 }
 0xaaf   : > { %v15032_v20 = vpop.eup %10896  ;;  %v6504_v44 = vmul.f32 %v6408_v45, %v15002_v38  ;;  %v6416_v61 = vmul.f32 %v15023_v30, %v15023_v30  ;;  %v6598_v51 = vmul.f32 0.044715, %v6502_v32  ;;  %v6961_v60 = vadd.f32 1.0, %v14809_v39 }
 0xab0   : > { %v6693_v63 = vadd.f32 %v6597_v50, %v14982_v59  ;;  %v6503_v53 = vmul.f32 %v6407_v21, %v15011_v26  ;;  %v6605_v37 = vmul.f32 0.044715, %v6509_v8  ;;  %v6505_v9 = vmul.f32 %v6409_v17, %v15019_v23 }
 0xab1   : > { %v6600_v10 = vmul.f32 0.044715, %v6504_v44  ;;  %v6512_v15 = vmul.f32 %v6416_v61, %v15023_v30  ;;  %v6694_v6 = vadd.f32 %v6598_v51, %v14994_v54  ;;  %v7054_v14 = vmul.f32 0.5, %v6958_v12 }
 0xab2   : > { %v10899_v1 = vpop.eup %10898  ;;  %v6789_v45 = vmul.f32 0.7978846, %v6693_v63  ;;  %v6599_v19 = vmul.f32 0.044715, %v6503_v53  ;;  %v6701_v32 = vadd.f32 %v6605_v37, %v14998_v0  ;;  %v6601_v39 = vmul.f32 0.044715, %v6505_v9 }
 0xab3   : > { %v15046_v35 = vpop.eup %10900  ;;  %v6975_v50 = vadd.f32 1.0, %v10899_v1  ;;  %v6696_v21 = vadd.f32 %v6600_v10, %v15002_v38  ;;  %v6790_v44 = vmul.f32 0.7978846, %v6694_v6  ;;  %v6608_v61 = vmul.f32 0.044715, %v6512_v15 }
 0xab4   : > { %v10903_v8 = vpop.eup %10902  ;;  %10906 = vtanh.f32 %v6789_v45  ;;  %v6695_v17 = vadd.f32 %v6599_v19, %v15011_v26  ;;  %v6797_v53 = vmul.f32 0.7978846, %v6701_v32  ;;  %v6697_v1 = vadd.f32 %v6601_v39, %v15019_v23  ;;  %v15522_v19 = vld [vmem:[#allocation46_spill] sm:$0xff]  ;;  %v15523_v39 = vld [vmem:[#allocation52_spill] sm:$0xff] }
 0xab5   : > { %v15051_v36 = vpop.eup %10904  ;;  %v7071_v63 = vmul.f32 0.5, %v6975_v50  ;;  %v6978_v51 = vadd.f32 1.0, %v10903_v8  ;;  %v6792_v12 = vmul.f32 0.7978846, %v6696_v21  ;;  %10908 = vtanh.f32 %v6790_v44  ;;  %v15524_v44 = vld [vmem:[#allocation53_spill] sm:$0xff] }
 0xab6   : > { %v6791_v5 = vmul.f32 0.7978846, %v6695_v17  ;;  %v6704_v37 = vadd.f32 %v6608_v61, %v15023_v30  ;;  %10910 = vtanh.f32 %v6797_v53  ;;  %v7057_v45 = vmul.f32 0.5, %v6961_v60 }
 0xab7   : > { %v15056_v10 = vmul.f32 %v7071_v63, %v14922_v48  ;;  %v7074_v9 = vmul.f32 0.5, %v6978_v51  ;;  %10912 = vtanh.f32 %v6792_v12  ;;  %v6793_v15 = vmul.f32 0.7978846, %v6697_v1  ;;  %v15526_v51 = vld [vmem:[#allocation76_spill] sm:$0xff]  ;;  %v15527_v12 = vld [vmem:[#allocation77_spill] sm:$0xff] }
 0xab8   : > { %v6800_v6 = vmul.f32 0.7978846, %v6704_v37  ;;  %v7150_v50 = vmul.f32 %v7054_v14, %v15522_v19  ;;  %10914 = vtanh.f32 %v6791_v5  ;;  %v7153_v21 = vmul.f32 %v7057_v45, %v14708_v62 }
 0xab9   : > { %v15060_v32 = vmul.f32 %v7074_v9, %v14931_v31  ;;  %v15065_v8 = vadd.f32 %v15523_v39, %v13836_v4  ;;  %10916 = vtanh.f32 %v6793_v15  ;;  %v6959_v48 = vadd.f32 1.0, %v14806_v2  ;;  %v15525_v2 = vld [vmem:[#allocation75_spill] sm:$0xff] }
 0xaba   : > { %v6962_v60 = vadd.f32 1.0, %v14878_v42  ;;  %v15071_v17 = vadd.f32 %v15524_v44, %v13828_v27  ;;  %10918 = vtanh.f32 %v6800_v6  ;;  %v7216_v5 = vpack.c.bf16 %v7153_v21, %v7150_v50 }
 0xabb   : > { %v7224_v31 = vpack.c.bf16 %v15060_v32, %v15056_v10  ;;  %v6410_v62 = vmul.f32 %v15065_v8, %v15065_v8  ;;  %v7055_v14 = vmul.f32 0.5, %v6959_v48  ;;  %v15081_v42 = vadd.f32 %v15525_v2, %v13832_v13 }
 0xabc   : > { %v7058_v4 = vmul.f32 0.5, %v6962_v60  ;;  %v6411_v61 = vmul.f32 %v15071_v17, %v15071_v17  ;;  %7541 = vmatprep.mubr.bf16.mxu0 %v7216_v5  ;;  %v15086_v53 = vadd.f32 %v15526_v51, %v13828_v27  ;;  %v15090_v1 = vadd.f32 %v15527_v12, %v13832_v13 }
 0xabd   : > { %v6506_v63 = vmul.f32 %v6410_v62, %v15065_v8  ;;  %v6964_v37 = vadd.f32 1.0, %v14893_v57  ;;  %v15528_v45 = vpack.c.bf16 %v14825_v58, %v14812_v33  ;;  %v7151_v15 = vmul.f32 %v7055_v14, %v14700_v40 }
 0xabe   : > { %v10907_v9 = vpop.eup %10906  ;;  %v7154_v6 = vmul.f32 %v7058_v4, %v14757_v43  ;;  %v6507_v19 = vmul.f32 %v6411_v61, %v15071_v17  ;;  %v6412_v27 = vmul.f32 %v15081_v42, %v15081_v42  ;;  %v6414_v13 = vmul.f32 %v15086_v53, %v15086_v53 }
 0xabf   : > { %7542 = vmatmul.mubr.bf16.gmra.mrb[152].mxu0 %v15528_v45  ;;  %v6981_v50 = vadd.f32 1.0, %v10907_v9  ;;  %v6602_v21 = vmul.f32 0.044715, %v6506_v63  ;;  %v6415_v57 = vmul.f32 %v15090_v1, %v15090_v1  ;;  %v15105_v39 = vpop.eup %10908  ;;  %v6967_v43 = vadd.f32 1.0, %v14898_v16 }
 0xac0   : > { %v7217_v33 = vpack.c.bf16 %v7154_v6, %v7151_v15  ;;  %v6603_v58 = vmul.f32 0.044715, %v6507_v19  ;;  %v6508_v40 = vmul.f32 %v6412_v27, %v15081_v42  ;;  %v10911_v48 = vpop.eup %10910  ;;  %v6510_v5 = vmul.f32 %v6414_v13, %v15086_v53 }
 0xac1   : > { %v7077_v60 = vmul.f32 0.5, %v6981_v50  ;;  %v6698_v44 = vadd.f32 %v6602_v21, %v15065_v8  ;;  %v6511_v62 = vmul.f32 %v6415_v57, %v15090_v1  ;;  %v10913_v14 = vpop.eup %10912  ;;  %v6989_v4 = vadd.f32 1.0, %v10911_v48 }
 0xac2   : > { %10101 = vmatprep.mubr.bf16.mxu1 %v7217_v33  ;;  %v6699_v61 = vadd.f32 %v6603_v58, %v15071_v17  ;;  %v6604_v2 = vmul.f32 0.044715, %v6508_v40  ;;  %v7060_v63 = vmul.f32 0.5, %v6964_v37  ;;  %v10915_v51 = vpop.eup %10914  ;;  %v6984_v16 = vadd.f32 1.0, %v10913_v14 }
 0xac3   : > { %v15114_v12 = vmul.f32 %v7077_v60, %v14982_v59  ;;  %v6794_v9 = vmul.f32 0.7978846, %v6698_v44  ;;  %v15529_v45 = vpack.c.bf16 %v14845_v29, %v14821_v3  ;;  %v6606_v15 = vmul.f32 0.044715, %v6510_v5  ;;  %v10917_v6 = vpop.eup %10916 }
 0xac4   : > { %v7085_v19 = vmul.f32 0.5, %v6989_v4  ;;  %v6795_v27 = vmul.f32 0.7978846, %v6699_v61  ;;  %v6700_v50 = vadd.f32 %v6604_v2, %v15081_v42  ;;  %v6607_v21 = vmul.f32 0.044715, %v6511_v62  ;;  %v10919_v13 = vpop.eup %10918 }
 0xac5   : > { %10102 = vmatmul.mubr.bf16.gmra.mrb[164].mxu1 %v15529_v45  ;;  %v7080_v57 = vmul.f32 0.5, %v6984_v16  ;;  %10920 = vtanh.f32 %v6794_v9  ;;  %v6702_v37 = vadd.f32 %v6606_v15, %v15086_v53  ;;  %v7063_v59 = vmul.f32 0.5, %v6967_v43 }
 0xac6   : > { %v15122_v33 = vmul.f32 %v7085_v19, %v14998_v0  ;;  %v6992_v58 = vadd.f32 1.0, %v10919_v13  ;;  %10922 = vtanh.f32 %v6795_v27  ;;  %v6796_v3 = vmul.f32 0.7978846, %v6700_v50 }
 0xac7   : > { %v15125_v29 = vmul.f32 %v7080_v57, %v15002_v38  ;;  %v6798_v40 = vmul.f32 0.7978846, %v6702_v37  ;;  %v6703_v48 = vadd.f32 %v6607_v21, %v15090_v1  ;;  %v7156_v60 = vmul.f32 %v7060_v63, %v14774_v25 }
 0xac8   : > { %v7088_v44 = vmul.f32 0.5, %v6992_v58  ;;  %10924 = vtanh.f32 %v6796_v3  ;;  %v7159_v5 = vmul.f32 %v7063_v59, %v14785_v55  ;;  %v6970_v43 = vadd.f32 1.0, %v14951_v18 }
 0xac9   : > { %v7227_v0 = vpack.c.bf16 %v15125_v29, %v15114_v12  ;;  %10926 = vtanh.f32 %v6798_v40  ;;  %v6799_v62 = vmul.f32 0.7978846, %v6703_v48  ;;  %v6973_v14 = vadd.f32 1.0, %v14961_v47 }
 0xaca   : > { %v15135_v38 = vmul.f32 %v7088_v44, %v15023_v30  ;;  %v7219_v4 = vpack.c.bf16 %v7159_v5, %v7156_v60  ;;  %v7066_v61 = vmul.f32 0.5, %v6970_v43  ;;  %v6971_v25 = vadd.f32 1.0, %v14959_v34 }
 0xacb   : > { %10928 = vtanh.f32 %v6799_v62  ;;  %v7069_v2 = vmul.f32 0.5, %v6973_v14  ;;  %v6974_v55 = vadd.f32 1.0, %v15032_v20  ;;  %v6976_v18 = vadd.f32 1.0, %v15046_v35  ;;  %v15532_v62 = vld [vmem:[#allocation54_spill] sm:$0xff] }
 0xacc   : > { %v7232_v63 = vpack.c.bf16 %v15135_v38, %v15122_v33  ;;  %7549 = vmatprep.mubr.bf16.mxu0 %v7219_v4  ;;  %v7162_v16 = vmul.f32 %v7066_v61, %v14836_v11  ;;  %v7067_v47 = vmul.f32 0.5, %v6971_v25  ;;  %v6979_v30 = vadd.f32 1.0, %v15051_v36 }
 0xacd   : > { %v15530_v9 = vpack.c.bf16 %v14906_v41, %v14902_v46  ;;  %v7165_v34 = vmul.f32 %v7069_v2, %v14862_v52  ;;  %v7070_v45 = vmul.f32 0.5, %v6974_v55  ;;  %v7072_v15 = vmul.f32 0.5, %v6976_v18 }
 0xace   : > { %v6982_v20 = vadd.f32 1.0, %v15105_v39  ;;  %v7163_v35 = vmul.f32 %v7067_v47, %v14855_v49  ;;  %v7075_v19 = vmul.f32 0.5, %v6979_v30  ;;  %v6985_v27 = vadd.f32 1.0, %v10917_v6 }
 0xacf   : > { %7550 = vmatmul.mubr.bf16.gmra.mrb[156].mxu0 %v15530_v9  ;;  %v6983_v50 = vadd.f32 1.0, %v10915_v51  ;;  %v10921_v21 = vpop.eup %10920  ;;  %v7222_v11 = vpack.c.bf16 %v7165_v34, %v7162_v16  ;;  %v7166_v13 = vmul.f32 %v7070_v45, %v14910_v7  ;;  %v7168_v36 = vmul.f32 %v7072_v15, %v14926_v22  ;;  %v15536_v45 = vld [vmem:[#allocation3_spill] sm:$0xff] }
 0xad0   : > { %v7078_v57 = vmul.f32 0.5, %v6982_v20  ;;  %v10923_v46 = vpop.eup %10922  ;;  %v7171_v41 = vmul.f32 %v7075_v19, %v14935_v24  ;;  %v7081_v52 = vmul.f32 0.5, %v6985_v27  ;;  %v6986_v37 = vadd.f32 1.0, %v10921_v21 }
 0xad1   : > { %v7079_v59 = vmul.f32 0.5, %v6983_v50  ;;  %v6987_v33 = vadd.f32 1.0, %v10923_v46  ;;  %7557 = vmatprep.mubr.bf16.mxu0 %v7222_v11  ;;  %v7223_v39 = vpack.c.bf16 %v7166_v13, %v7163_v35  ;;  %v15531_v60 = vpack.c.bf16 %v14988_v56, %v14973_v28  ;;  %v15537_v35 = vld [vmem:[#allocation4_spill] sm:$0xff] }
 0xad2   : > { %v10925_v49 = vpop.eup %10924  ;;  %v7225_v58 = vpack.c.bf16 %v7171_v41, %v7168_v36  ;;  %v7174_v51 = vmul.f32 %v7078_v57, %v14994_v54  ;;  %v7177_v6 = vmul.f32 %v7081_v52, %v15019_v23  ;;  %v7082_v3 = vmul.f32 0.5, %v6986_v37  ;;  %v15533_v54 = vld [vmem:[#allocation56_spill] sm:$0xff]  ;;  %v15538_v52 = vld [vmem:[#allocation5_spill] sm:$0xff] }
 0xad3   : > { %v10927_v7 = vpop.eup %10926  ;;  %10105 = vmatprep.mubr.bf16.mxu1 %v7223_v39  ;;  %v7175_v22 = vmul.f32 %v7079_v59, %v15011_v26  ;;  %v6988_v40 = vadd.f32 1.0, %v10925_v49  ;;  %v7083_v48 = vmul.f32 0.5, %v6987_v33  ;;  %v15534_v14 = vpack.c.bf16 %v15532_v62, %v15533_v54  ;;  %v15539_v33 = vld [vmem:[#allocation6_spill] sm:$0xff] }
 0xad4   : > { %v6990_v24 = vadd.f32 1.0, %v10927_v7  ;;  %10106 = vmatmul.mubr.bf16.gmra.mrb[168].mxu1 %v15531_v60  ;;  %v7228_v44 = vpack.c.bf16 %v7177_v6, %v7174_v51  ;;  %v7178_v5 = vmul.f32 %v7082_v3, %v15065_v8 }
 0xad5   : > { %v10929_v43 = vpop.eup %10928  ;;  %v7084_v26 = vmul.f32 0.5, %v6988_v40  ;;  %v7179_v61 = vmul.f32 %v7083_v48, %v15071_v17  ;;  %v15535_v17 = vld [vmem:[#allocation2_spill] sm:$0xff] }
 0xad6   : > { %v7086_v23 = vmul.f32 0.5, %v6990_v24  ;;  %v7229_v38 = vpack.c.bf16 %v7178_v5, %v7175_v22  ;;  %v6991_v4 = vadd.f32 1.0, %v10929_v43  ;;  %v15540_v43 = vld [vmem:[#allocation7_spill] sm:$0xff] }
 0xad7   : > { %7558 = vmatmul.mubr.bf16.gmra.mrb[160].mxu0 %v15534_v14  ;;  %v7180_v2 = vmul.f32 %v7084_v26, %v15081_v42  ;;  %v10964_v42 = vld [vmem:[%s15286_s1] sm:$0xff]  ;;  %v15541_v14 = vld [vmem:[#allocation8_spill] sm:$0xff] }
 0xad8   : > { %7565 = vmatprep.mubr.bf16.mxu0 %v7225_v58  ;;  %v7182_v25 = vmul.f32 %v7086_v23, %v15086_v53  ;;  %10109 = vmatprep.mubr.bf16.mxu1 %v7229_v38  ;;  %v7087_v28 = vmul.f32 0.5, %v6991_v4  ;;  %v7283_v53 = vsub.s32 7, %v15535_v17 }
 0xada   : > { %v7230_v56 = vpack.c.bf16 %v7182_v25, %v7179_v61  ;;  %v7183_v8 = vmul.f32 %v7087_v28, %v15090_v1  ;;  %v15177_v1 = vrot.slane %v10964_v42, %v7283_v53 }
 0xadc   : > { %10110 = vmatmul.mubr.bf16.gmra.mrb[172].mxu1 %v7232_v63  ;;  %v7231_v55 = vpack.c.bf16 %v7183_v8, %v7180_v2 }
 0xadf   : > { %7566 = vmatmul.mubr.bf16.gmra.mrb[164].mxu0 %v7224_v31 }
 0xae0   : > { %7573 = vmatprep.mubr.bf16.mxu0 %v7228_v44 }
 0xae7   : > { %7574 = vmatmul.mubr.bf16.gmra.mrb[168].mxu0 %v7227_v0 }
 0xae8   : > { %7581 = vmatprep.mubr.bf16.mxu0 %v7231_v55  ;;  %v15542_v55 = vld [vmem:[#allocation9_spill] sm:$0xff] }
 0xaef   : > { %7582 = vmatmul.mubr.bf16.gmra.mrb[172].mxu0 %v7230_v56 }
 0xaf4   : > { %v9465_v18 = vpop.f32.mrb[112].mxu0 }
 0xaf5   : > { %v9466_v63 = vpop.f32.mrb[113].mxu0 }
 0xaf6   : > { %v9467_v10 = vadd.f32 %v9466_v63, %v9465_v18  ;;  %v9468_v32 = vpop.f32.mrb[114].mxu0  ;;  %v10083_v31 = vpop.f32.mrb[144].mxu1  ;;  %v15543_v18 = vld [vmem:[#allocation10_spill] sm:$0xff] }
 0xaf7   : > { %v9469_v16 = vpop.f32.mrb[115].mxu0  ;;  %v7624_v29 = vpop.f32.mrb[145].mxu1 }
 0xaf8   : > { %v7464_v12 = vadd.f32 %v9467_v10, %v15177_v1  ;;  %v9470_v0 = vadd.f32 %v9469_v16, %v9468_v32  ;;  %v10084_v47 = vpop.f32.mrb[146].mxu1 }
 0xaf9   : > { %v7627_v34 = vpop.f32.mrb[147].mxu1 }
 0xafa   : > { %v7625_v30 = vadd.f32 %v7624_v29, %v7464_v12  ;;  %v7467_v9 = vadd.f32 %v9470_v0, %v15177_v1 }
 0xafc   : > { %v7751_v15 = vadd.f32 %v7625_v30, %v15536_v45  ;;  %v7628_v20 = vadd.f32 %v7627_v34, %v7467_v9 }
 0xafe   : > { %7783 = vst [vmem:[%s15186_s29] sm:$0xff] %v7751_v15  ;;  %v7752_v19 = vadd.f32 %v7628_v20, %v15537_v35  ;;  %v15544_v15 = vld [vmem:[#allocation11_spill] sm:$0xff] }
 0xb00   : > { %7784 = vst [vmem:[%s15186_s29 + $0x8] sm:$0xff] %v7752_v19  ;;  %v15545_v19 = vld [vmem:[#allocation12_spill] sm:$0xff] }
 0xb03   : > { %v9471_v27 = vpop.f32.mrb[116].mxu0 }
 0xb04   : > { %v9472_v50 = vpop.f32.mrb[117].mxu0 }
 0xb05   : > { %v9473_v21 = vadd.f32 %v9472_v50, %v9471_v27  ;;  %v9474_v11 = vpop.f32.mrb[118].mxu0 }
 0xb06   : > { %v9475_v13 = vpop.f32.mrb[119].mxu0 }
 0xb07   : > { %v7472_v36 = vadd.f32 %v9473_v21, %v15177_v1  ;;  %v9476_v57 = vadd.f32 %v9475_v13, %v9474_v11 }
 0xb09   : > { %v7633_v46 = vadd.f32 %v10083_v31, %v7472_v36  ;;  %v7475_v41 = vadd.f32 %v9476_v57, %v15177_v1 }
 0xb0b   : > { %v7753_v37 = vadd.f32 %v7633_v46, %v15538_v52  ;;  %v7636_v59 = vadd.f32 %v10084_v47, %v7475_v41 }
 0xb0d   : > { %7785 = vst [vmem:[%s15186_s29 + $0x10] sm:$0xff] %v7753_v37  ;;  %v7754_v39 = vadd.f32 %v7636_v59, %v15539_v33  ;;  %v15546_v37 = vld [vmem:[#allocation13_spill] sm:$0xff] }
 0xb0f   : > { %7786 = vst [vmem:[%s15186_s29 + $0x18] sm:$0xff] %v7754_v39  ;;  %v15547_v39 = vld [vmem:[#allocation14_spill] sm:$0xff] }
 0xb14   : > { %v9477_v49 = vpop.f32.mrb[120].mxu0 }
 0xb15   : > { %v9478_v58 = vpop.f32.mrb[121].mxu0 }
 0xb16   : > { %v9479_v51 = vadd.f32 %v9478_v58, %v9477_v49  ;;  %v9480_v6 = vpop.f32.mrb[122].mxu0 }
 0xb17   : > { %v9481_v3 = vpop.f32.mrb[123].mxu0 }
 0xb18   : > { %v7480_v7 = vadd.f32 %v9479_v51, %v15177_v1  ;;  %v9482_v22 = vadd.f32 %v9481_v3, %v9480_v6 }
 0xb19   : > { %v10087_v40 = vpop.f32.mrb[148].mxu1 }
 0xb1a   : > { %v7640_v48 = vpop.f32.mrb[149].mxu1  ;;  %v7483_v24 = vadd.f32 %v9482_v22, %v15177_v1 }
 0xb1b   : > { %v7641_v60 = vadd.f32 %v7640_v48, %v7480_v7  ;;  %v10088_v44 = vpop.f32.mrb[150].mxu1 }
 0xb1c   : > { %v7643_v5 = vpop.f32.mrb[151].mxu1 }
 0xb1d   : > { %v7755_v62 = vadd.f32 %v7641_v60, %v15540_v43  ;;  %v7644_v54 = vadd.f32 %v7643_v5, %v7483_v24 }
 0xb1f   : > { %7787 = vst [vmem:[%s15186_s29 + $0x20] sm:$0xff] %v7755_v62  ;;  %v7756_v23 = vadd.f32 %v7644_v54, %v15541_v14  ;;  %v15548_v62 = vld [vmem:[#allocation15_spill] sm:$0xff] }
 0xb21   : > { %v9483_v38 = vpop.f32.mrb[124].mxu0  ;;  %7788 = vst [vmem:[%s15186_s29 + $0x28] sm:$0xff] %v7756_v23  ;;  %v15549_v23 = vld [vmem:[#allocation16_spill] sm:$0xff] }
 0xb22   : > { %v9484_v4 = vpop.f32.mrb[125].mxu0 }
 0xb23   : > { %v9485_v26 = vadd.f32 %v9484_v4, %v9483_v38  ;;  %v9486_v61 = vpop.f32.mrb[126].mxu0 }
 0xb24   : > { %v9487_v25 = vpop.f32.mrb[127].mxu0 }
 0xb25   : > { %v7488_v28 = vadd.f32 %v9485_v26, %v15177_v1  ;;  %v9488_v56 = vadd.f32 %v9487_v25, %v9486_v61 }
 0xb27   : > { %v7649_v2 = vadd.f32 %v10087_v40, %v7488_v28  ;;  %v7491_v8 = vadd.f32 %v9488_v56, %v15177_v1 }
 0xb29   : > { %v7757_v17 = vadd.f32 %v7649_v2, %v15542_v55  ;;  %v7652_v53 = vadd.f32 %v10088_v44, %v7491_v8 }
 0xb2b   : > { %7789 = vst [vmem:[%s15186_s29 + $0x30] sm:$0xff] %v7757_v17  ;;  %v7758_v42 = vadd.f32 %v7652_v53, %v15543_v18  ;;  %v15550_v17 = vld [vmem:[#allocation17_spill] sm:$0xff] }
 0xb2d   : > { %7790 = vst [vmem:[%s15186_s29 + $0x38] sm:$0xff] %v7758_v42  ;;  %v15551_v42 = vld [vmem:[#allocation18_spill] sm:$0xff] }
 0xb33   : > { %v9489_v63 = vpop.f32.mrb[128].mxu0 }
 0xb34   : > { %v9490_v10 = vpop.f32.mrb[129].mxu0 }
 0xb35   : > { %v9491_v32 = vadd.f32 %v9490_v10, %v9489_v63  ;;  %v9492_v31 = vpop.f32.mrb[130].mxu0 }
 0xb36   : > { %v9493_v16 = vpop.f32.mrb[131].mxu0 }
 0xb37   : > { %v7496_v12 = vadd.f32 %v9491_v32, %v15177_v1  ;;  %v9494_v29 = vadd.f32 %v9493_v16, %v9492_v31 }
 0xb38   : > { %v10091_v0 = vpop.f32.mrb[152].mxu1 }
 0xb39   : > { %v7656_v47 = vpop.f32.mrb[153].mxu1  ;;  %v7499_v30 = vadd.f32 %v9494_v29, %v15177_v1 }
 0xb3a   : > { %v7657_v9 = vadd.f32 %v7656_v47, %v7496_v12  ;;  %v10092_v34 = vpop.f32.mrb[154].mxu1 }
 0xb3b   : > { %v7659_v45 = vpop.f32.mrb[155].mxu1 }
 0xb3c   : > { %v7759_v20 = vadd.f32 %v7657_v9, %v15544_v15  ;;  %v7660_v35 = vadd.f32 %v7659_v45, %v7499_v30 }
 0xb3e   : > { %7791 = vst [vmem:[%s15186_s29 + $0x40] sm:$0xff] %v7759_v20  ;;  %v7760_v27 = vadd.f32 %v7660_v35, %v15545_v19  ;;  %v15552_v20 = vld [vmem:[#allocation19_spill] sm:$0xff] }
 0xb40   : > { %7792 = vst [vmem:[%s15186_s29 + $0x48] sm:$0xff] %v7760_v27  ;;  %v15553_v27 = vld [vmem:[#allocation20_spill] sm:$0xff] }
 0xb42   : > { %v9495_v50 = vpop.f32.mrb[132].mxu0 }
 0xb43   : > { %v9496_v21 = vpop.f32.mrb[133].mxu0 }
 0xb44   : > { %v9497_v11 = vadd.f32 %v9496_v21, %v9495_v50  ;;  %v9498_v13 = vpop.f32.mrb[134].mxu0 }
 0xb45   : > { %v9499_v36 = vpop.f32.mrb[135].mxu0 }
 0xb46   : > { %v7504_v57 = vadd.f32 %v9497_v11, %v15177_v1  ;;  %v9500_v46 = vadd.f32 %v9499_v36, %v9498_v13 }
 0xb48   : > { %v7665_v41 = vadd.f32 %v10091_v0, %v7504_v57  ;;  %v7507_v52 = vadd.f32 %v9500_v46, %v15177_v1 }
 0xb4a   : > { %v7761_v59 = vadd.f32 %v7665_v41, %v15546_v37  ;;  %v7668_v33 = vadd.f32 %v10092_v34, %v7507_v52 }
 0xb4c   : > { %7793 = vst [vmem:[%s15186_s29 + $0x50] sm:$0xff] %v7761_v59  ;;  %v7762_v49 = vadd.f32 %v7668_v33, %v15547_v39  ;;  %v15554_v59 = vld [vmem:[#allocation21_spill] sm:$0xff] }
 0xb4e   : > { %7794 = vst [vmem:[%s15186_s29 + $0x58] sm:$0xff] %v7762_v49  ;;  %v15555_v49 = vld [vmem:[#allocation22_spill] sm:$0xff] }
 0xb53   : > { %v9501_v58 = vpop.f32.mrb[136].mxu0 }
 0xb54   : > { %v9502_v51 = vpop.f32.mrb[137].mxu0 }
 0xb55   : > { %v9503_v6 = vadd.f32 %v9502_v51, %v9501_v58  ;;  %v9504_v3 = vpop.f32.mrb[138].mxu0 }
 0xb56   : > { %v9505_v7 = vpop.f32.mrb[139].mxu0 }
 0xb57   : > { %v7512_v22 = vadd.f32 %v9503_v6, %v15177_v1  ;;  %v9506_v40 = vadd.f32 %v9505_v7, %v9504_v3 }
 0xb59   : > { %v7515_v24 = vadd.f32 %v9506_v40, %v15177_v1 }
 0xb5a   : > { %v10095_v48 = vpop.f32.mrb[156].mxu1 }
 0xb5b   : > { %v7672_v60 = vpop.f32.mrb[157].mxu1 }
 0xb5c   : > { %v7673_v44 = vadd.f32 %v7672_v60, %v7512_v22  ;;  %v10096_v5 = vpop.f32.mrb[158].mxu1 }
 0xb5d   : > { %v7675_v43 = vpop.f32.mrb[159].mxu1 }
 0xb5e   : > { %v7763_v54 = vadd.f32 %v7673_v44, %v15548_v62  ;;  %v7676_v14 = vadd.f32 %v7675_v43, %v7515_v24 }
 0xb60   : > { %7795 = vst [vmem:[%s15186_s29 + $0x60] sm:$0xff] %v7763_v54  ;;  %v7764_v38 = vadd.f32 %v7676_v14, %v15549_v23  ;;  %v15556_v54 = vld [vmem:[#allocation23_spill] sm:$0xff] }
 0xb62   : > { %7796 = vst [vmem:[%s15186_s29 + $0x68] sm:$0xff] %v7764_v38  ;;  %v9507_v4 = vpop.f32.mrb[140].mxu0  ;;  %v15557_v38 = vld [vmem:[#allocation24_spill] sm:$0xff] }
 0xb63   : > { %v9508_v26 = vpop.f32.mrb[141].mxu0 }
 0xb64   : > { %v9509_v61 = vadd.f32 %v9508_v26, %v9507_v4  ;;  %v9510_v25 = vpop.f32.mrb[142].mxu0 }
 0xb65   : > { %v9511_v28 = vpop.f32.mrb[143].mxu0 }
 0xb66   : > { %v7520_v56 = vadd.f32 %v9509_v61, %v15177_v1  ;;  %v9512_v2 = vadd.f32 %v9511_v28, %v9510_v25 }
 0xb68   : > { %v7681_v8 = vadd.f32 %v10095_v48, %v7520_v56  ;;  %v7523_v55 = vadd.f32 %v9512_v2, %v15177_v1 }
 0xb6a   : > { %v7765_v53 = vadd.f32 %v7681_v8, %v15550_v17  ;;  %v7684_v18 = vadd.f32 %v10096_v5, %v7523_v55 }
 0xb6c   : > { %7797 = vst [vmem:[%s15186_s29 + $0x70] sm:$0xff] %v7765_v53  ;;  %v7766_v63 = vadd.f32 %v7684_v18, %v15551_v42  ;;  %v15558_v18 = vld [vmem:[#allocation25_spill] sm:$0xff] }
 0xb6e   : > { %7798 = vst [vmem:[%s15186_s29 + $0x78] sm:$0xff] %v7766_v63 }
 0xb73   : > { %v9513_v10 = vpop.f32.mrb[144].mxu0 }
 0xb74   : > { %v9514_v32 = vpop.f32.mrb[145].mxu0 }
 0xb75   : > { %v9515_v31 = vadd.f32 %v9514_v32, %v9513_v10  ;;  %v9516_v16 = vpop.f32.mrb[146].mxu0 }
 0xb76   : > { %v9517_v12 = vpop.f32.mrb[147].mxu0 }
 0xb77   : > { %v7528_v29 = vadd.f32 %v9515_v31, %v15177_v1  ;;  %v9518_v0 = vadd.f32 %v9517_v12, %v9516_v16  ;;  %v15559_v12 = vld [vmem:[#allocation26_spill] sm:$0xff] }
 0xb78   : > { %v10099_v47 = vpop.f32.mrb[160].mxu1 }
 0xb79   : > { %v7688_v30 = vpop.f32.mrb[161].mxu1  ;;  %v7531_v9 = vadd.f32 %v9518_v0, %v15177_v1 }
 0xb7a   : > { %v7689_v34 = vadd.f32 %v7688_v30, %v7528_v29  ;;  %v10100_v45 = vpop.f32.mrb[162].mxu1 }
 0xb7b   : > { %v7691_v15 = vpop.f32.mrb[163].mxu1 }
 0xb7c   : > { %v7767_v35 = vadd.f32 %v7689_v34, %v15552_v20  ;;  %v7692_v19 = vadd.f32 %v7691_v15, %v7531_v9 }
 0xb7e   : > { %7799 = vst [vmem:[%s15186_s29 + $0x80] sm:$0xff] %v7767_v35  ;;  %v7768_v50 = vadd.f32 %v7692_v19, %v15553_v27  ;;  %v15560_v19 = vld [vmem:[#allocation27_spill] sm:$0xff] }
 0xb80   : > { %7800 = vst [vmem:[%s15186_s29 + $0x88] sm:$0xff] %v7768_v50 }
 0xb81   : > { %v9519_v21 = vpop.f32.mrb[148].mxu0 }
 0xb82   : > { %v9520_v11 = vpop.f32.mrb[149].mxu0 }
 0xb83   : > { %v9521_v13 = vadd.f32 %v9520_v11, %v9519_v21  ;;  %v9522_v36 = vpop.f32.mrb[150].mxu0 }
 0xb84   : > { %v9523_v57 = vpop.f32.mrb[151].mxu0 }
 0xb85   : > { %v7536_v46 = vadd.f32 %v9521_v13, %v15177_v1  ;;  %v9524_v41 = vadd.f32 %v9523_v57, %v9522_v36  ;;  %v15561_v57 = vld [vmem:[#allocation28_spill] sm:$0xff] }
 0xb87   : > { %v7697_v52 = vadd.f32 %v10099_v47, %v7536_v46  ;;  %v7539_v37 = vadd.f32 %v9524_v41, %v15177_v1 }
 0xb89   : > { %v7769_v33 = vadd.f32 %v7697_v52, %v15554_v59  ;;  %v7700_v39 = vadd.f32 %v10100_v45, %v7539_v37 }
 0xb8b   : > { %7801 = vst [vmem:[%s15186_s29 + $0x90] sm:$0xff] %v7769_v33  ;;  %v7770_v58 = vadd.f32 %v7700_v39, %v15555_v49 }
 0xb8d   : > { %7802 = vst [vmem:[%s15186_s29 + $0x98] sm:$0xff] %v7770_v58 }
 0xb92   : > { %v9525_v51 = vpop.f32.mrb[152].mxu0 }
 0xb93   : > { %v9526_v6 = vpop.f32.mrb[153].mxu0 }
 0xb94   : > { %v9527_v3 = vadd.f32 %v9526_v6, %v9525_v51  ;;  %v9528_v7 = vpop.f32.mrb[154].mxu0  ;;  %v15562_v51 = vld [vmem:[#allocation29_spill] sm:$0xff] }
 0xb95   : > { %v9529_v22 = vpop.f32.mrb[155].mxu0 }
 0xb96   : > { %v7544_v40 = vadd.f32 %v9527_v3, %v15177_v1  ;;  %v9530_v48 = vadd.f32 %v9529_v22, %v9528_v7 }
 0xb98   : > { %v10103_v24 = vpop.f32.mrb[164].mxu1  ;;  %v7547_v44 = vadd.f32 %v9530_v48, %v15177_v1 }
 0xb99   : > { %v7704_v60 = vpop.f32.mrb[165].mxu1 }
 0xb9a   : > { %v7705_v5 = vadd.f32 %v7704_v60, %v7544_v40  ;;  %v10104_v43 = vpop.f32.mrb[166].mxu1  ;;  %v15563_v40 = vld [vmem:[#allocation30_spill] sm:$0xff] }
 0xb9b   : > { %v7707_v62 = vpop.f32.mrb[167].mxu1 }
 0xb9c   : > { %v7771_v14 = vadd.f32 %v7705_v5, %v15556_v54  ;;  %v7708_v23 = vadd.f32 %v7707_v62, %v7547_v44 }
 0xb9e   : > { %7803 = vst [vmem:[%s15186_s29 + $0xa0] sm:$0xff] %v7771_v14  ;;  %v7772_v4 = vadd.f32 %v7708_v23, %v15557_v38  ;;  %v15564_v14 = vld [vmem:[#allocation31_spill] sm:$0xff] }
 0xba0   : > { %7804 = vst [vmem:[%s15186_s29 + $0xa8] sm:$0xff] %v7772_v4 }
 0xba2   : > { %v9531_v26 = vpop.f32.mrb[156].mxu0 }
 0xba3   : > { %v9532_v61 = vpop.f32.mrb[157].mxu0 }
 0xba4   : > { %v9533_v25 = vadd.f32 %v9532_v61, %v9531_v26  ;;  %v9534_v28 = vpop.f32.mrb[158].mxu0  ;;  %v15565_v61 = vld [vmem:[#allocation32_spill] sm:$0xff] }
 0xba5   : > { %v9535_v56 = vpop.f32.mrb[159].mxu0 }
 0xba6   : > { %v7552_v2 = vadd.f32 %v9533_v25, %v15177_v1  ;;  %v9536_v8 = vadd.f32 %v9535_v56, %v9534_v28 }
 0xba7   : > { %v10107_v53 = vpop.f32.mrb[168].mxu1 }
 0xba8   : > { %v7713_v55 = vadd.f32 %v10103_v24, %v7552_v2  ;;  %v7555_v17 = vadd.f32 %v9536_v8, %v15177_v1  ;;  %v7720_v32 = vpop.f32.mrb[169].mxu1 }
 0xba9   : > { %v10108_v16 = vpop.f32.mrb[170].mxu1 }
 0xbaa   : > { %v7773_v42 = vadd.f32 %v7713_v55, %v15558_v18  ;;  %v7716_v63 = vadd.f32 %v10104_v43, %v7555_v17  ;;  %v9537_v10 = vpop.f32.mrb[160].mxu0  ;;  %v7723_v30 = vpop.f32.mrb[171].mxu1  ;;  %v15566_v18 = vld [vmem:[#allocation33_spill] sm:$0xff] }
 0xbab   : > { %v9538_v31 = vpop.f32.mrb[161].mxu0 }
 0xbac   : > { %7805 = vst [vmem:[%s15186_s29 + $0xb0] sm:$0xff] %v7773_v42  ;;  %v7774_v29 = vadd.f32 %v7716_v63, %v15559_v12  ;;  %v9539_v0 = vadd.f32 %v9538_v31, %v9537_v10  ;;  %v9540_v47 = vpop.f32.mrb[162].mxu0  ;;  %v15567_v10 = vld [vmem:[#allocation34_spill] sm:$0xff] }
 0xbad   : > { %v9541_v9 = vpop.f32.mrb[163].mxu0 }
 0xbae   : > { %7806 = vst [vmem:[%s15186_s29 + $0xb8] sm:$0xff] %v7774_v29  ;;  %v7560_v34 = vadd.f32 %v9539_v0, %v15177_v1  ;;  %v9542_v45 = vadd.f32 %v9541_v9, %v9540_v47 }
 0xbaf   : > { %v10111_v35 = vpop.f32.mrb[172].mxu1 }
 0xbb0   : > { %v7721_v15 = vadd.f32 %v7720_v32, %v7560_v34  ;;  %v7563_v20 = vadd.f32 %v9542_v45, %v15177_v1  ;;  %v7736_v11 = vpop.f32.mrb[173].mxu1 }
 0xbb1   : > { %v10112_v36 = vpop.f32.mrb[174].mxu1 }
 0xbb2   : > { %v7775_v27 = vadd.f32 %v7721_v15, %v15560_v19  ;;  %v7724_v50 = vadd.f32 %v7723_v30, %v7563_v20  ;;  %v9543_v21 = vpop.f32.mrb[164].mxu0  ;;  %v7739_v37 = vpop.f32.mrb[175].mxu1 }
 0xbb3   : > { %v9544_v13 = vpop.f32.mrb[165].mxu0 }
 0xbb4   : > { %7807 = vst [vmem:[%s15186_s29 + $0xc0] sm:$0xff] %v7775_v27  ;;  %v7776_v46 = vadd.f32 %v7724_v50, %v15561_v57  ;;  %v9545_v41 = vadd.f32 %v9544_v13, %v9543_v21  ;;  %v9546_v52 = vpop.f32.mrb[166].mxu0 }
 0xbb5   : > { %v9547_v59 = vpop.f32.mrb[167].mxu0 }
 0xbb6   : > { %7808 = vst [vmem:[%s15186_s29 + $0xc8] sm:$0xff] %v7776_v46  ;;  %v7568_v33 = vadd.f32 %v9545_v41, %v15177_v1  ;;  %v9548_v39 = vadd.f32 %v9547_v59, %v9546_v52 }
 0xbb8   : > { %v7729_v49 = vadd.f32 %v10107_v53, %v7568_v33  ;;  %v7571_v58 = vadd.f32 %v9548_v39, %v15177_v1 }
 0xbba   : > { %v7777_v6 = vadd.f32 %v7729_v49, %v15562_v51  ;;  %v7732_v3 = vadd.f32 %v10108_v16, %v7571_v58  ;;  %v9549_v7 = vpop.f32.mrb[168].mxu0 }
 0xbbb   : > { %v9550_v22 = vpop.f32.mrb[169].mxu0 }
 0xbbc   : > { %7809 = vst [vmem:[%s15186_s29 + $0xd0] sm:$0xff] %v7777_v6  ;;  %v7778_v48 = vadd.f32 %v7732_v3, %v15563_v40  ;;  %v9551_v24 = vadd.f32 %v9550_v22, %v9549_v7  ;;  %v9552_v60 = vpop.f32.mrb[170].mxu0 }
 0xbbd   : > { %v9553_v44 = vpop.f32.mrb[171].mxu0 }
 0xbbe   : > { %7810 = vst [vmem:[%s15186_s29 + $0xd8] sm:$0xff] %v7778_v48  ;;  %v7576_v5 = vadd.f32 %v9551_v24, %v15177_v1  ;;  %v9554_v43 = vadd.f32 %v9553_v44, %v9552_v60 }
 0xbc0   : > { %v7737_v62 = vadd.f32 %v7736_v11, %v7576_v5  ;;  %v7579_v54 = vadd.f32 %v9554_v43, %v15177_v1 }
 0xbc2   : > { %v7779_v23 = vadd.f32 %v7737_v62, %v15564_v14  ;;  %v7740_v38 = vadd.f32 %v7739_v37, %v7579_v54  ;;  %v9555_v4 = vpop.f32.mrb[172].mxu0 }
 0xbc3   : > { %v9556_v26 = vpop.f32.mrb[173].mxu0 }
 0xbc4   : > { %7811 = vst [vmem:[%s15186_s29 + $0xe0] sm:$0xff] %v7779_v23  ;;  %v7780_v25 = vadd.f32 %v7740_v38, %v15565_v61  ;;  %v9557_v28 = vadd.f32 %v9556_v26, %v9555_v4  ;;  %v9558_v56 = vpop.f32.mrb[174].mxu0 }
 0xbc5   : > { %v9559_v2 = vpop.f32.mrb[175].mxu0 }
 0xbc6   : > { %7812 = vst [vmem:[%s15186_s29 + $0xe8] sm:$0xff] %v7780_v25  ;;  %v7584_v8 = vadd.f32 %v9557_v28, %v15177_v1  ;;  %v9560_v55 = vadd.f32 %v9559_v2, %v9558_v56 }
 0xbc8   : > { %v7745_v17 = vadd.f32 %v10111_v35, %v7584_v8  ;;  %v7587_v53 = vadd.f32 %v9560_v55, %v15177_v1 }
 0xbca   : > { %v7781_v42 = vadd.f32 %v7745_v17, %v15566_v18  ;;  %v7748_v63 = vadd.f32 %v10112_v36, %v7587_v53 }
 0xbcc   : > { %7813 = vst [vmem:[%s15186_s29 + $0xf0] sm:$0xff] %v7781_v42  ;;  %v7782_v32 = vadd.f32 %v7748_v63, %v15567_v10 }
 0xbce   : > { %7814 = vst [vmem:[%s15186_s29 + $0xf8] sm:$0xff] %v7782_v32 }
 0xbcf PF: > { %s18_s27 = sadd.s32 1, %s10971_s27  }
 0xbd0   : > { %p15_p4 = scmp.ge.s32.totalorder %s18_s27, 4  }
 0xbd2   :  { %17 = sbr.rel (!%p15_p4) target bundleno = 1 (0x1), region = 94 }

</bundles_post_ra>
